<compile_context>
chip_gen: v7x
topology: tpu7x:2x2x1
jax: 0.10.0
libtpu: 0.0.40
codegen_flags: <defaults>
</compile_context>

<pallas_src>
import functools

import jax
import jax.numpy as jnp
from jax.experimental import pallas as pl
from jax.experimental.pallas import tpu as pltpu


_COMPILER_PARAMS = pltpu.CompilerParams(
    dimension_semantics=("parallel",),      # split row tiles across TCs (v7x)
    vmem_limit_bytes=32 * 1024 * 1024,      # explicit scoped-VMEM (v5e default 16 MiB)
)


# ----------------------------------------------------------------------------
# Kernels
# ----------------------------------------------------------------------------
def _project_kernel(h_ref, w_ref, wa_ref, g_ref, s_ref):
    """g = h @ W ; s = g @ W_attn_blockdiag  (per row tile)."""
    g = jnp.dot(h_ref[...].astype(jnp.float32),
                w_ref[...].astype(jnp.float32),
                preferred_element_type=jnp.float32)
    g_ref[...] = g.astype(g_ref.dtype)
    s = jnp.dot(g, wa_ref[...].astype(jnp.float32),
                preferred_element_type=jnp.float32)
    s_ref[...] = s.astype(s_ref.dtype)


def _attention_kernel(sl_ref, srt_ref, adj_ref, g_ref, out_ref, *,
                      n_heads, n_hidden, neg_slope, mean_heads, apply_elu):
    """Masked attention softmax over j + per-head aggregation for one row tile."""
    sl = sl_ref[...]                          # (tm, H)  scores on node i
    srt = srt_ref[...]                        # (H, n)   scores on node j (pre-transposed)
    edge = adj_ref[...] > 0                   # (tm, n)  bf16 mask -> bool
    g = g_ref[...]                            # (n, H*hid)
    neg = jnp.float32(neg_slope)

    head_outs = []
    for hd in range(n_heads):
        # e[i, j] = a_l . g[i] + a_r . g[j]
        e = sl[:, hd:hd + 1] + srt[hd:hd + 1, :]          # (tm, n)
        e = jnp.where(e >= 0, e, neg * e)                 # LeakyReLU (pre-mask, as in torch)
        e = jnp.where(edge, e, jnp.float32(-1e9))         # masked_fill(adj == 0, -1e9)

        # softmax over j
        m = jnp.max(e, axis=1, keepdims=True)
        p = jnp.exp(e - m)
        denom = jnp.sum(p, axis=1, keepdims=True)
        a = p * pl.reciprocal(denom, approx=True)         # EUP reciprocal slot

        # aggregation on MXU with bf16 operands, f32 accumulation
        g_h = g[:, hd * n_hidden:(hd + 1) * n_hidden]
        head_outs.append(jnp.dot(a.astype(jnp.bfloat16),
                                 g_h.astype(jnp.bfloat16),
                                 preferred_element_type=jnp.float32))

    if mean_heads:
        out = head_outs[0]
        for r in head_outs[1:]:
            out = out + r
        out = out * jnp.float32(1.0 / n_heads)
    else:
        out = head_outs[0] if n_heads == 1 else jnp.concatenate(head_outs, axis=-1)

    if apply_elu:  # fused nn.ELU() epilogue of layer 1
        out = jnp.where(out > 0, out, jnp.exp(jnp.minimum(out, 0.0)) - 1.0)

    out_ref[...] = out.astype(out_ref.dtype)


# ----------------------------------------------------------------------------
# Wrappers
# ----------------------------------------------------------------------------
def _pick_row_tile(n, *, max_tm=256, budget_bytes=24 << 20):
    """Row tile so the per-step live set (double-buffered bf16 adj tile plus
    ~4 f32 (tm, n) temporaries) fits a conservative VMEM budget (v7x-safe)."""
    per_row = n * (2 * 2 + 4 * 4)
    tm = min(max_tm, max(8, budget_bytes // max(per_row, 1)))
    tm = min(tm, n)
    if n >= 8:
        tm = max(8, tm - tm % 8)
    else:
        tm = n
    return int(tm)


def _block_diag_attn(attn_w, n_heads, n_hidden):
    """Build (H*hid, 2H) block-diagonal attention weight from the shared
    nn.Linear(2*hid, 1).weight of shape (1, 2*hid):
      column h   = a_l at rows [h*hid:(h+1)*hid]
      column H+h = a_r at rows [h*hid:(h+1)*hid]."""
    al = attn_w[0, :n_hidden]
    ar = attn_w[0, n_hidden:]
    w = jnp.zeros((n_heads * n_hidden, 2 * n_heads), jnp.float32)
    for h in range(n_heads):
        w = w.at[h * n_hidden:(h + 1) * n_hidden, h].set(al)
        w = w.at[h * n_hidden:(h + 1) * n_hidden, n_heads + h].set(ar)
    return w


def gat_project(h, w, w_attn, *, tm):
    n, f = h.shape
    hf = w.shape[1]
    two_h = w_attn.shape[1]
    return pl.pallas_call(
        _project_kernel,
        out_shape=(jax.ShapeDtypeStruct((n, hf), jnp.float32),
                   jax.ShapeDtypeStruct((n, two_h), jnp.float32)),
        grid=(pl.cdiv(n, tm),),
        in_specs=[
            pl.BlockSpec((tm, f), lambda i: (i, 0)),        # h row tile
            pl.BlockSpec((f, hf), lambda i: (0, 0)),        # W (full)
            pl.BlockSpec((hf, two_h), lambda i: (0, 0)),    # W_attn (full)
        ],
        out_specs=[
            pl.BlockSpec((tm, hf), lambda i: (i, 0)),       # g row tile
            pl.BlockSpec((tm, two_h), lambda i: (i, 0)),    # s row tile
        ],
        compiler_params=_COMPILER_PARAMS,
    )(h, w, w_attn)


def gat_attention(sl, sr_t, adj_b, g, *, n_heads, n_hidden, is_concat,
                  apply_elu, neg_slope, tm):
    n = g.shape[0]
    out_dim = n_heads * n_hidden if is_concat else n_hidden
    kern = functools.partial(
        _attention_kernel, n_heads=n_heads, n_hidden=n_hidden,
        neg_slope=neg_slope, mean_heads=not is_concat, apply_elu=apply_elu)
    return pl.pallas_call(
        kern,
        out_shape=jax.ShapeDtypeStruct((n, out_dim), jnp.float32),
        grid=(pl.cdiv(n, tm),),
        in_specs=[
            pl.BlockSpec((tm, n_heads), lambda i: (i, 0)),  # sl row tile
            pl.BlockSpec((n_heads, n), lambda i: (0, 0)),   # sr^T (full)
            pl.BlockSpec((tm, n), lambda i: (i, 0)),        # adj row tile (bf16)
            pl.BlockSpec(g.shape, lambda i: (0, 0)),        # g (full)
        ],
        out_specs=pl.BlockSpec((tm, out_dim), lambda i: (i, 0)),
        compiler_params=_COMPILER_PARAMS,
    )(sl, sr_t, adj_b, g)


def gat_layer(h, w, attn_w, adj_b, *, n_heads, n_hidden, is_concat,
              apply_elu=False, neg_slope=0.2, max_row_tile=256):
    """One GraphAttentionLayer (inference mode)."""
    n = h.shape[0]
    tm = _pick_row_tile(n, max_tm=max_row_tile)
    w_attn = _block_diag_attn(attn_w, n_heads, n_hidden)
    g, s = gat_project(h, w, w_attn, tm=tm)
    sl = s[:, :n_heads]                       # scores on node i
    sr_t = jnp.transpose(s[:, n_heads:])      # (H, n): one layout op outside the
                                              # kernel, no per-head XLU transposes
    return gat_attention(sl, sr_t, adj_b, g, n_heads=n_heads, n_hidden=n_hidden,
                         is_concat=is_concat, apply_elu=apply_elu,
                         neg_slope=neg_slope, tm=tm)


def gat_forward(x, adj_mat, params, *, n_heads, hid_per_head, n_classes,
                max_row_tile=256):
    """Full GAT.forward.  x: (1, n, in_features), adj_mat: (1, n, n)."""
    h = x[0]                                           # squeeze(0)
    adj_b = (adj_mat[0] != 0).astype(jnp.bfloat16)     # bf16 edge mask stream
    # dropout -> identity (eval mode)
    h1 = gat_layer(h, params["w1"], params["attn1"], adj_b,
                   n_heads=n_heads, n_hidden=hid_per_head, is_concat=True,
                   apply_elu=True, max_row_tile=max_row_tile)   # ELU fused
    # dropout -> identity (eval mode)
    out = gat_layer(h1, params["w2"], params["attn2"], adj_b,
                    n_heads=1, n_hidden=n_classes, is_concat=False,
                    apply_elu=False, max_row_tile=max_row_tile)
    return out[None]                                   # unsqueeze(0)


if __name__ == "__main__":
    # Small-but-tileable shapes consistent with the module.
    N_NODES = 256
    IN_FEATURES = 32
    N_HEADS = 4
    HID_PER_HEAD = 8
    N_HIDDEN = N_HEADS * HID_PER_HEAD    # layer1 out_features (concat of heads)
    N_CLASSES = 8

    key = jax.random.PRNGKey(0)
    k_x, k_adj, k_w1, k_a1, k_w2, k_a2 = jax.random.split(key, 6)

    # Deterministic synthetic parameters (PyTorch-equivalent shapes).
    params = {
        # layer1.linear: nn.Linear(IN_FEATURES, N_HEADS*HID_PER_HEAD, bias=False)
        "w1": jax.random.normal(k_w1, (IN_FEATURES, N_HEADS * HID_PER_HEAD),
                                jnp.float32) * 0.2,
        # layer1.attn: nn.Linear(2*HID_PER_HEAD, 1, bias=False) -> (1, 2*hid)
        "attn1": jax.random.normal(k_a1, (1, 2 * HID_PER_HEAD),
                                   jnp.float32) * 0.2,
        # output.linear: nn.Linear(N_HIDDEN, N_CLASSES, bias=False)
        "w2": jax.random.normal(k_w2, (N_HIDDEN, N_CLASSES),
                                jnp.float32) * 0.2,
        # output.attn: nn.Linear(2*N_CLASSES, 1, bias=False)
        "attn2": jax.random.normal(k_a2, (1, 2 * N_CLASSES),
                                   jnp.float32) * 0.2,
    }

    # Inputs.
    x = jax.random.normal(k_x, (1, N_NODES, IN_FEATURES), jnp.float32)
    adj = (jax.random.uniform(k_adj, (N_NODES, N_NODES)) > 0.5).astype(jnp.float32)
    adj = jnp.maximum(adj, jnp.eye(N_NODES, dtype=jnp.float32))  # self-loops
    adj_mat = adj[None]                                          # (1, n, n)

    # max_row_tile=128 -> grid=(2,) here, exercising the pipelined tiled path.
    fwd = jax.jit(functools.partial(gat_forward, n_heads=N_HEADS,
                                    hid_per_head=HID_PER_HEAD,
                                    n_classes=N_CLASSES, max_row_tile=128))
    out = fwd(x, adj_mat, params)
    out = jax.block_until_ready(out)
    assert out.shape == (1, N_NODES, N_CLASSES), out.shape
    assert bool(jnp.all(jnp.isfinite(out)))
    print("KERNEL_OK")
</pallas_src>

<mosaic_0001>
module attributes {stable_mosaic.version = 11 : i64} {
  func.func @_project_kernel(%arg0: i32, %arg1: memref<128x32xf32, #tpu.memory_space<vmem>>, %arg2: memref<32x32xf32, #tpu.memory_space<vmem>>, %arg3: memref<32x8xf32, #tpu.memory_space<vmem>>, %arg4: memref<128x32xf32, #tpu.memory_space<vmem>>, %arg5: memref<128x8xf32, #tpu.memory_space<vmem>>) attributes {dimension_semantics = [#tpu.dimension_semantics<parallel>], iteration_bounds = array<i64: 2>, scalar_prefetch = 0 : i64, scratch_operands = 0 : i64, tpu.core_type = #tpu.core_type<tc>, window_params = [{transform_indices = @transform_0, window_bounds = array<i64: 128, 32>}, {pipeline_mode = #tpu.pipeline_mode<synchronous>, transform_indices = @transform_1, window_bounds = array<i64: 32, 32>}, {pipeline_mode = #tpu.pipeline_mode<synchronous>, transform_indices = @transform_2, window_bounds = array<i64: 32, 8>}, {transform_indices = @transform_3, window_bounds = array<i64: 128, 32>}, {transform_indices = @transform_4, window_bounds = array<i64: 128, 8>}]} {
    %c0 = arith.constant 0 : index
    %c0_0 = arith.constant 0 : index
    %0 = vector.load %arg1[%c0, %c0_0] : memref<128x32xf32, #tpu.memory_space<vmem>>, vector<128x32xf32>
    %c0_1 = arith.constant 0 : index
    %c0_2 = arith.constant 0 : index
    %1 = vector.load %arg2[%c0_1, %c0_2] : memref<32x32xf32, #tpu.memory_space<vmem>>, vector<32x32xf32>
    %cst = arith.constant dense<0.000000e+00> : vector<128x32xf32>
    %2 = tpu.matmul %0, %1, %cst {dimension_numbers = #tpu.dot_dimension_numbers<[1], [0], [0], [1], [0, 0, 1, 1], [], []>} : vector<128x32xf32>, vector<32x32xf32>, vector<128x32xf32> -> vector<128x32xf32>
    %c0_3 = arith.constant 0 : index
    %c0_4 = arith.constant 0 : index
    %3 = vector.load %arg4[%c0_3, %c0_4] : memref<128x32xf32, #tpu.memory_space<vmem>>, vector<128x32xf32>
    tpu.vector_store %arg4[%c0_3, %c0_4], %2 {strides = array<i32>} : memref<128x32xf32, #tpu.memory_space<vmem>>, vector<128x32xf32>,
    %c0_5 = arith.constant 0 : index
    %c0_6 = arith.constant 0 : index
    %4 = vector.load %arg3[%c0_5, %c0_6] : memref<32x8xf32, #tpu.memory_space<vmem>>, vector<32x8xf32>
    %cst_7 = arith.constant dense<0.000000e+00> : vector<128x8xf32>
    %5 = tpu.matmul %2, %4, %cst_7 {dimension_numbers = #tpu.dot_dimension_numbers<[1], [0], [0], [1], [0, 0, 1, 1], [], []>} : vector<128x32xf32>, vector<32x8xf32>, vector<128x8xf32> -> vector<128x8xf32>
    %c0_8 = arith.constant 0 : index
    %c0_9 = arith.constant 0 : index
    %6 = vector.load %arg5[%c0_8, %c0_9] : memref<128x8xf32, #tpu.memory_space<vmem>>, vector<128x8xf32>
    tpu.vector_store %arg5[%c0_8, %c0_9], %5 {strides = array<i32>} : memref<128x8xf32, #tpu.memory_space<vmem>>, vector<128x8xf32>,
    return
  }
  func.func @transform_0(%arg0: i32) -> (i32, i32) {
    %c0_i32 = arith.constant 0 : i32
    %c0_i32_0 = arith.constant 0 : i32
    return %arg0, %c0_i32 : i32, i32
  }
  func.func @transform_1(%arg0: i32) -> (i32, i32) {
    %c0_i32 = arith.constant 0 : i32
    %c0_i32_0 = arith.constant 0 : i32
    %c0_i32_1 = arith.constant 0 : i32
    return %c0_i32, %c0_i32_0 : i32, i32
  }
  func.func @transform_2(%arg0: i32) -> (i32, i32) {
    %c0_i32 = arith.constant 0 : i32
    %c0_i32_0 = arith.constant 0 : i32
    %c0_i32_1 = arith.constant 0 : i32
    return %c0_i32, %c0_i32_0 : i32, i32
  }
  func.func @transform_3(%arg0: i32) -> (i32, i32) {
    %c0_i32 = arith.constant 0 : i32
    %c0_i32_0 = arith.constant 0 : i32
    return %arg0, %c0_i32 : i32, i32
  }
  func.func @transform_4(%arg0: i32) -> (i32, i32) {
    %c0_i32 = arith.constant 0 : i32
    %c0_i32_0 = arith.constant 0 : i32
    return %arg0, %c0_i32 : i32, i32
  }
}

module attributes {stable_mosaic.version = 11 : i64} {
  func.func @_attention_kernel(%arg0: i32, %arg1: memref<128x4xf32, #tpu.memory_space<vmem>>, %arg2: memref<4x256xf32, #tpu.memory_space<vmem>>, %arg3: memref<128x256xbf16, #tpu.memory_space<vmem>>, %arg4: memref<256x32xf32, #tpu.memory_space<vmem>>, %arg5: memref<128x32xf32, #tpu.memory_space<vmem>>) attributes {dimension_semantics = [#tpu.dimension_semantics<parallel>], iteration_bounds = array<i64: 2>, scalar_prefetch = 0 : i64, scratch_operands = 0 : i64, tpu.core_type = #tpu.core_type<tc>, window_params = [{transform_indices = @transform_0, window_bounds = array<i64: 128, 4>}, {pipeline_mode = #tpu.pipeline_mode<synchronous>, transform_indices = @transform_1, window_bounds = array<i64: 4, 256>}, {transform_indices = @transform_2, window_bounds = array<i64: 128, 256>}, {pipeline_mode = #tpu.pipeline_mode<synchronous>, transform_indices = @transform_3, window_bounds = array<i64: 256, 32>}, {transform_indices = @transform_4, window_bounds = array<i64: 128, 32>}]} {
    %c0 = arith.constant 0 : index
    %c0_0 = arith.constant 0 : index
    %0 = vector.load %arg1[%c0, %c0_0] : memref<128x4xf32, #tpu.memory_space<vmem>>, vector<128x4xf32>
    %c0_1 = arith.constant 0 : index
    %c0_2 = arith.constant 0 : index
    %1 = vector.load %arg2[%c0_1, %c0_2] : memref<4x256xf32, #tpu.memory_space<vmem>>, vector<4x256xf32>
    %c0_3 = arith.constant 0 : index
    %c0_4 = arith.constant 0 : index
    %2 = vector.load %arg3[%c0_3, %c0_4] : memref<128x256xbf16, #tpu.memory_space<vmem>>, vector<128x256xbf16>
    %cst = arith.constant 0.000000e+00 : bf16
    %3 = vector.broadcast %cst : bf16 to vector<128x256xbf16>
    %4 = arith.cmpf ogt, %2, %3 : vector<128x256xbf16>
    %c0_5 = arith.constant 0 : index
    %c0_6 = arith.constant 0 : index
    %5 = vector.load %arg4[%c0_5, %c0_6] : memref<256x32xf32, #tpu.memory_space<vmem>>, vector<256x32xf32>
    %6 = vector.extract_strided_slice %0 {offsets = [0, 0], sizes = [128, 1], strides = [1, 1]} : vector<128x4xf32> to vector<128x1xf32>
    %7 = vector.extract_strided_slice %1 {offsets = [0, 0], sizes = [1, 256], strides = [1, 1]} : vector<4x256xf32> to vector<1x256xf32>
    %8 = vector.broadcast %6 : vector<128x1xf32> to vector<128x256xf32>
    %9 = vector.broadcast %7 : vector<1x256xf32> to vector<128x256xf32>
    %10 = arith.addf %8, %9 : vector<128x256xf32>
    %cst_7 = arith.constant 0.000000e+00 : f32
    %11 = vector.broadcast %cst_7 : f32 to vector<128x256xf32>
    %12 = arith.cmpf oge, %10, %11 : vector<128x256xf32>
    %cst_8 = arith.constant 2.000000e-01 : f32
    %13 = vector.broadcast %cst_8 : f32 to vector<128x256xf32>
    %14 = arith.mulf %13, %10 : vector<128x256xf32>
    %15 = arith.select %12, %10, %14 : vector<128x256xi1>, vector<128x256xf32>
    %cst_9 = arith.constant -1.000000e+09 : f32
    %16 = vector.broadcast %cst_9 : f32 to vector<128x256xf32>
    %17 = arith.select %4, %15, %16 : vector<128x256xi1>, vector<128x256xf32>
    %cst_10 = arith.constant dense<0xFF800000> : vector<128xf32>
    %18 = vector.multi_reduction <maximumf>, %17, %cst_10 [1] : vector<128x256xf32> to vector<128xf32>
    %19 = vector.shape_cast %18 : vector<128xf32> to vector<128x1xf32>
    %20 = vector.broadcast %19 : vector<128x1xf32> to vector<128x256xf32>
    %21 = arith.subf %17, %20 : vector<128x256xf32>
    %22 = math.exp %21 : vector<128x256xf32>
    %cst_11 = arith.constant dense<0.000000e+00> : vector<128xf32>
    %23 = vector.multi_reduction <add>, %22, %cst_11 [1] : vector<128x256xf32> to vector<128xf32>
    %24 = vector.shape_cast %23 : vector<128xf32> to vector<128x1xf32>
    %25 = tpu.reciprocal %24 {approx = true} : vector<128x1xf32> -> vector<128x1xf32>
    %26 = vector.broadcast %25 : vector<128x1xf32> to vector<128x256xf32>
    %27 = arith.mulf %22, %26 : vector<128x256xf32>
    %28 = vector.extract_strided_slice %5 {offsets = [0, 0], sizes = [256, 8], strides = [1, 1]} : vector<256x32xf32> to vector<256x8xf32>
    %29 = arith.truncf %27 : vector<128x256xf32> to vector<128x256xbf16>
    %30 = arith.truncf %28 : vector<256x8xf32> to vector<256x8xbf16>
    %cst_12 = arith.constant dense<0.000000e+00> : vector<128x8xf32>
    %31 = tpu.matmul %29, %30, %cst_12 {dimension_numbers = #tpu.dot_dimension_numbers<[1], [0], [0], [1], [0, 0, 1, 1], [], []>} : vector<128x256xbf16>, vector<256x8xbf16>, vector<128x8xf32> -> vector<128x8xf32>
    %32 = vector.extract_strided_slice %0 {offsets = [0, 1], sizes = [128, 1], strides = [1, 1]} : vector<128x4xf32> to vector<128x1xf32>
    %33 = vector.extract_strided_slice %1 {offsets = [1, 0], sizes = [1, 256], strides = [1, 1]} : vector<4x256xf32> to vector<1x256xf32>
    %34 = vector.broadcast %32 : vector<128x1xf32> to vector<128x256xf32>
    %35 = vector.broadcast %33 : vector<1x256xf32> to vector<128x256xf32>
    %36 = arith.addf %34, %35 : vector<128x256xf32>
    %cst_13 = arith.constant 0.000000e+00 : f32
    %37 = vector.broadcast %cst_13 : f32 to vector<128x256xf32>
    %38 = arith.cmpf oge, %36, %37 : vector<128x256xf32>
    %cst_14 = arith.constant 2.000000e-01 : f32
    %39 = vector.broadcast %cst_14 : f32 to vector<128x256xf32>
    %40 = arith.mulf %39, %36 : vector<128x256xf32>
    %41 = arith.select %38, %36, %40 : vector<128x256xi1>, vector<128x256xf32>
    %cst_15 = arith.constant -1.000000e+09 : f32
    %42 = vector.broadcast %cst_15 : f32 to vector<128x256xf32>
    %43 = arith.select %4, %41, %42 : vector<128x256xi1>, vector<128x256xf32>
    %cst_16 = arith.constant dense<0xFF800000> : vector<128xf32>
    %44 = vector.multi_reduction <maximumf>, %43, %cst_16 [1] : vector<128x256xf32> to vector<128xf32>
    %45 = vector.shape_cast %44 : vector<128xf32> to vector<128x1xf32>
    %46 = vector.broadcast %45 : vector<128x1xf32> to vector<128x256xf32>
    %47 = arith.subf %43, %46 : vector<128x256xf32>
    %48 = math.exp %47 : vector<128x256xf32>
    %cst_17 = arith.constant dense<0.000000e+00> : vector<128xf32>
    %49 = vector.multi_reduction <add>, %48, %cst_17 [1] : vector<128x256xf32> to vector<128xf32>
    %50 = vector.shape_cast %49 : vector<128xf32> to vector<128x1xf32>
    %51 = tpu.reciprocal %50 {approx = true} : vector<128x1xf32> -> vector<128x1xf32>
    %52 = vector.broadcast %51 : vector<128x1xf32> to vector<128x256xf32>
    %53 = arith.mulf %48, %52 : vector<128x256xf32>
    %54 = vector.extract_strided_slice %5 {offsets = [0, 8], sizes = [256, 8], strides = [1, 1]} : vector<256x32xf32> to vector<256x8xf32>
    %55 = arith.truncf %53 : vector<128x256xf32> to vector<128x256xbf16>
    %56 = arith.truncf %54 : vector<256x8xf32> to vector<256x8xbf16>
    %cst_18 = arith.constant dense<0.000000e+00> : vector<128x8xf32>
    %57 = tpu.matmul %55, %56, %cst_18 {dimension_numbers = #tpu.dot_dimension_numbers<[1], [0], [0], [1], [0, 0, 1, 1], [], []>} : vector<128x256xbf16>, vector<256x8xbf16>, vector<128x8xf32> -> vector<128x8xf32>
    %58 = vector.extract_strided_slice %0 {offsets = [0, 2], sizes = [128, 1], strides = [1, 1]} : vector<128x4xf32> to vector<128x1xf32>
    %59 = vector.extract_strided_slice %1 {offsets = [2, 0], sizes = [1, 256], strides = [1, 1]} : vector<4x256xf32> to vector<1x256xf32>
    %60 = vector.broadcast %58 : vector<128x1xf32> to vector<128x256xf32>
    %61 = vector.broadcast %59 : vector<1x256xf32> to vector<128x256xf32>
    %62 = arith.addf %60, %61 : vector<128x256xf32>
    %cst_19 = arith.constant 0.000000e+00 : f32
    %63 = vector.broadcast %cst_19 : f32 to vector<128x256xf32>
    %64 = arith.cmpf oge, %62, %63 : vector<128x256xf32>
    %cst_20 = arith.constant 2.000000e-01 : f32
    %65 = vector.broadcast %cst_20 : f32 to vector<128x256xf32>
    %66 = arith.mulf %65, %62 : vector<128x256xf32>
    %67 = arith.select %64, %62, %66 : vector<128x256xi1>, vector<128x256xf32>
    %cst_21 = arith.constant -1.000000e+09 : f32
    %68 = vector.broadcast %cst_21 : f32 to vector<128x256xf32>
    %69 = arith.select %4, %67, %68 : vector<128x256xi1>, vector<128x256xf32>
    %cst_22 = arith.constant dense<0xFF800000> : vector<128xf32>
    %70 = vector.multi_reduction <maximumf>, %69, %cst_22 [1] : vector<128x256xf32> to vector<128xf32>
    %71 = vector.shape_cast %70 : vector<128xf32> to vector<128x1xf32>
    %72 = vector.broadcast %71 : vector<128x1xf32> to vector<128x256xf32>
    %73 = arith.subf %69, %72 : vector<128x256xf32>
    %74 = math.exp %73 : vector<128x256xf32>
    %cst_23 = arith.constant dense<0.000000e+00> : vector<128xf32>
    %75 = vector.multi_reduction <add>, %74, %cst_23 [1] : vector<128x256xf32> to vector<128xf32>
    %76 = vector.shape_cast %75 : vector<128xf32> to vector<128x1xf32>
    %77 = tpu.reciprocal %76 {approx = true} : vector<128x1xf32> -> vector<128x1xf32>
    %78 = vector.broadcast %77 : vector<128x1xf32> to vector<128x256xf32>
    %79 = arith.mulf %74, %78 : vector<128x256xf32>
    %80 = vector.extract_strided_slice %5 {offsets = [0, 16], sizes = [256, 8], strides = [1, 1]} : vector<256x32xf32> to vector<256x8xf32>
    %81 = arith.truncf %79 : vector<128x256xf32> to vector<128x256xbf16>
    %82 = arith.truncf %80 : vector<256x8xf32> to vector<256x8xbf16>
    %cst_24 = arith.constant dense<0.000000e+00> : vector<128x8xf32>
    %83 = tpu.matmul %81, %82, %cst_24 {dimension_numbers = #tpu.dot_dimension_numbers<[1], [0], [0], [1], [0, 0, 1, 1], [], []>} : vector<128x256xbf16>, vector<256x8xbf16>, vector<128x8xf32> -> vector<128x8xf32>
    %84 = vector.extract_strided_slice %0 {offsets = [0, 3], sizes = [128, 1], strides = [1, 1]} : vector<128x4xf32> to vector<128x1xf32>
    %85 = vector.extract_strided_slice %1 {offsets = [3, 0], sizes = [1, 256], strides = [1, 1]} : vector<4x256xf32> to vector<1x256xf32>
    %86 = vector.broadcast %84 : vector<128x1xf32> to vector<128x256xf32>
    %87 = vector.broadcast %85 : vector<1x256xf32> to vector<128x256xf32>
    %88 = arith.addf %86, %87 : vector<128x256xf32>
    %cst_25 = arith.constant 0.000000e+00 : f32
    %89 = vector.broadcast %cst_25 : f32 to vector<128x256xf32>
    %90 = arith.cmpf oge, %88, %89 : vector<128x256xf32>
    %cst_26 = arith.constant 2.000000e-01 : f32
    %91 = vector.broadcast %cst_26 : f32 to vector<128x256xf32>
    %92 = arith.mulf %91, %88 : vector<128x256xf32>
    %93 = arith.select %90, %88, %92 : vector<128x256xi1>, vector<128x256xf32>
    %cst_27 = arith.constant -1.000000e+09 : f32
    %94 = vector.broadcast %cst_27 : f32 to vector<128x256xf32>
    %95 = arith.select %4, %93, %94 : vector<128x256xi1>, vector<128x256xf32>
    %cst_28 = arith.constant dense<0xFF800000> : vector<128xf32>
    %96 = vector.multi_reduction <maximumf>, %95, %cst_28 [1] : vector<128x256xf32> to vector<128xf32>
    %97 = vector.shape_cast %96 : vector<128xf32> to vector<128x1xf32>
    %98 = vector.broadcast %97 : vector<128x1xf32> to vector<128x256xf32>
    %99 = arith.subf %95, %98 : vector<128x256xf32>
    %100 = math.exp %99 : vector<128x256xf32>
    %cst_29 = arith.constant dense<0.000000e+00> : vector<128xf32>
    %101 = vector.multi_reduction <add>, %100, %cst_29 [1] : vector<128x256xf32> to vector<128xf32>
    %102 = vector.shape_cast %101 : vector<128xf32> to vector<128x1xf32>
    %103 = tpu.reciprocal %102 {approx = true} : vector<128x1xf32> -> vector<128x1xf32>
    %104 = vector.broadcast %103 : vector<128x1xf32> to vector<128x256xf32>
    %105 = arith.mulf %100, %104 : vector<128x256xf32>
    %106 = vector.extract_strided_slice %5 {offsets = [0, 24], sizes = [256, 8], strides = [1, 1]} : vector<256x32xf32> to vector<256x8xf32>
    %107 = arith.truncf %105 : vector<128x256xf32> to vector<128x256xbf16>
    %108 = arith.truncf %106 : vector<256x8xf32> to vector<256x8xbf16>
    %cst_30 = arith.constant dense<0.000000e+00> : vector<128x8xf32>
    %109 = tpu.matmul %107, %108, %cst_30 {dimension_numbers = #tpu.dot_dimension_numbers<[1], [0], [0], [1], [0, 0, 1, 1], [], []>} : vector<128x256xbf16>, vector<256x8xbf16>, vector<128x8xf32> -> vector<128x8xf32>
    %110 = tpu.concatenate %31, %57, %83, %109 in 1 : vector<128x8xf32>, vector<128x8xf32>, vector<128x8xf32>, vector<128x8xf32> -> vector<128x32xf32>
    %cst_31 = arith.constant 0.000000e+00 : f32
    %111 = vector.broadcast %cst_31 : f32 to vector<128x32xf32>
    %112 = arith.cmpf ogt, %110, %111 : vector<128x32xf32>
    %cst_32 = arith.constant 0.000000e+00 : f32
    %113 = vector.broadcast %cst_32 : f32 to vector<128x32xf32>
    %114 = arith.minimumf %110, %113 : vector<128x32xf32>
    %115 = math.exp %114 : vector<128x32xf32>
    %cst_33 = arith.constant 1.000000e+00 : f32
    %116 = vector.broadcast %cst_33 : f32 to vector<128x32xf32>
    %117 = arith.subf %115, %116 : vector<128x32xf32>
    %118 = arith.select %112, %110, %117 : vector<128x32xi1>, vector<128x32xf32>
    %c0_34 = arith.constant 0 : index
    %c0_35 = arith.constant 0 : index
    %119 = vector.load %arg5[%c0_34, %c0_35] : memref<128x32xf32, #tpu.memory_space<vmem>>, vector<128x32xf32>
    tpu.vector_store %arg5[%c0_34, %c0_35], %118 {strides = array<i32>} : memref<128x32xf32, #tpu.memory_space<vmem>>, vector<128x32xf32>,
    return
  }
  func.func @transform_0(%arg0: i32) -> (i32, i32) {
    %c0_i32 = arith.constant 0 : i32
    %c0_i32_0 = arith.constant 0 : i32
    return %arg0, %c0_i32 : i32, i32
  }
  func.func @transform_1(%arg0: i32) -> (i32, i32) {
    %c0_i32 = arith.constant 0 : i32
    %c0_i32_0 = arith.constant 0 : i32
    %c0_i32_1 = arith.constant 0 : i32
    return %c0_i32, %c0_i32_0 : i32, i32
  }
  func.func @transform_2(%arg0: i32) -> (i32, i32) {
    %c0_i32 = arith.constant 0 : i32
    %c0_i32_0 = arith.constant 0 : i32
    return %arg0, %c0_i32 : i32, i32
  }
  func.func @transform_3(%arg0: i32) -> (i32, i32) {
    %c0_i32 = arith.constant 0 : i32
    %c0_i32_0 = arith.constant 0 : i32
    %c0_i32_1 = arith.constant 0 : i32
    return %c0_i32, %c0_i32_0 : i32, i32
  }
  func.func @transform_4(%arg0: i32) -> (i32, i32) {
    %c0_i32 = arith.constant 0 : i32
    %c0_i32_0 = arith.constant 0 : i32
    return %arg0, %c0_i32 : i32, i32
  }
}

module attributes {stable_mosaic.version = 11 : i64} {
  func.func @_project_kernel(%arg0: i32, %arg1: memref<128x32xf32, #tpu.memory_space<vmem>>, %arg2: memref<32x8xf32, #tpu.memory_space<vmem>>, %arg3: memref<8x2xf32, #tpu.memory_space<vmem>>, %arg4: memref<128x8xf32, #tpu.memory_space<vmem>>, %arg5: memref<128x2xf32, #tpu.memory_space<vmem>>) attributes {dimension_semantics = [#tpu.dimension_semantics<parallel>], iteration_bounds = array<i64: 2>, scalar_prefetch = 0 : i64, scratch_operands = 0 : i64, tpu.core_type = #tpu.core_type<tc>, window_params = [{transform_indices = @transform_0, window_bounds = array<i64: 128, 32>}, {pipeline_mode = #tpu.pipeline_mode<synchronous>, transform_indices = @transform_1, window_bounds = array<i64: 32, 8>}, {pipeline_mode = #tpu.pipeline_mode<synchronous>, transform_indices = @transform_2, window_bounds = array<i64: 8, 2>}, {transform_indices = @transform_3, window_bounds = array<i64: 128, 8>}, {transform_indices = @transform_4, window_bounds = array<i64: 128, 2>}]} {
    %c0 = arith.constant 0 : index
    %c0_0 = arith.constant 0 : index
    %0 = vector.load %arg1[%c0, %c0_0] : memref<128x32xf32, #tpu.memory_space<vmem>>, vector<128x32xf32>
    %c0_1 = arith.constant 0 : index
    %c0_2 = arith.constant 0 : index
    %1 = vector.load %arg2[%c0_1, %c0_2] : memref<32x8xf32, #tpu.memory_space<vmem>>, vector<32x8xf32>
    %cst = arith.constant dense<0.000000e+00> : vector<128x8xf32>
    %2 = tpu.matmul %0, %1, %cst {dimension_numbers = #tpu.dot_dimension_numbers<[1], [0], [0], [1], [0, 0, 1, 1], [], []>} : vector<128x32xf32>, vector<32x8xf32>, vector<128x8xf32> -> vector<128x8xf32>
    %c0_3 = arith.constant 0 : index
    %c0_4 = arith.constant 0 : index
    %3 = vector.load %arg4[%c0_3, %c0_4] : memref<128x8xf32, #tpu.memory_space<vmem>>, vector<128x8xf32>
    tpu.vector_store %arg4[%c0_3, %c0_4], %2 {strides = array<i32>} : memref<128x8xf32, #tpu.memory_space<vmem>>, vector<128x8xf32>,
    %c0_5 = arith.constant 0 : index
    %c0_6 = arith.constant 0 : index
    %4 = vector.load %arg3[%c0_5, %c0_6] : memref<8x2xf32, #tpu.memory_space<vmem>>, vector<8x2xf32>
    %cst_7 = arith.constant dense<0.000000e+00> : vector<128x2xf32>
    %5 = tpu.matmul %2, %4, %cst_7 {dimension_numbers = #tpu.dot_dimension_numbers<[1], [0], [0], [1], [0, 0, 1, 1], [], []>} : vector<128x8xf32>, vector<8x2xf32>, vector<128x2xf32> -> vector<128x2xf32>
    %c0_8 = arith.constant 0 : index
    %c0_9 = arith.constant 0 : index
    %6 = vector.load %arg5[%c0_8, %c0_9] : memref<128x2xf32, #tpu.memory_space<vmem>>, vector<128x2xf32>
    tpu.vector_store %arg5[%c0_8, %c0_9], %5 {strides = array<i32>} : memref<128x2xf32, #tpu.memory_space<vmem>>, vector<128x2xf32>,
    return
  }
  func.func @transform_0(%arg0: i32) -> (i32, i32) {
    %c0_i32 = arith.constant 0 : i32
    %c0_i32_0 = arith.constant 0 : i32
    return %arg0, %c0_i32 : i32, i32
  }
  func.func @transform_1(%arg0: i32) -> (i32, i32) {
    %c0_i32 = arith.constant 0 : i32
    %c0_i32_0 = arith.constant 0 : i32
    %c0_i32_1 = arith.constant 0 : i32
    return %c0_i32, %c0_i32_0 : i32, i32
  }
  func.func @transform_2(%arg0: i32) -> (i32, i32) {
    %c0_i32 = arith.constant 0 : i32
    %c0_i32_0 = arith.constant 0 : i32
    %c0_i32_1 = arith.constant 0 : i32
    return %c0_i32, %c0_i32_0 : i32, i32
  }
  func.func @transform_3(%arg0: i32) -> (i32, i32) {
    %c0_i32 = arith.constant 0 : i32
    %c0_i32_0 = arith.constant 0 : i32
    return %arg0, %c0_i32 : i32, i32
  }
  func.func @transform_4(%arg0: i32) -> (i32, i32) {
    %c0_i32 = arith.constant 0 : i32
    %c0_i32_0 = arith.constant 0 : i32
    return %arg0, %c0_i32 : i32, i32
  }
}

module attributes {stable_mosaic.version = 11 : i64} {
  func.func @_attention_kernel(%arg0: i32, %arg1: memref<128x1xf32, #tpu.memory_space<vmem>>, %arg2: memref<1x256xf32, #tpu.memory_space<vmem>>, %arg3: memref<128x256xbf16, #tpu.memory_space<vmem>>, %arg4: memref<256x8xf32, #tpu.memory_space<vmem>>, %arg5: memref<128x8xf32, #tpu.memory_space<vmem>>) attributes {dimension_semantics = [#tpu.dimension_semantics<parallel>], iteration_bounds = array<i64: 2>, scalar_prefetch = 0 : i64, scratch_operands = 0 : i64, tpu.core_type = #tpu.core_type<tc>, window_params = [{transform_indices = @transform_0, window_bounds = array<i64: 128, 1>}, {pipeline_mode = #tpu.pipeline_mode<synchronous>, transform_indices = @transform_1, window_bounds = array<i64: 1, 256>}, {transform_indices = @transform_2, window_bounds = array<i64: 128, 256>}, {pipeline_mode = #tpu.pipeline_mode<synchronous>, transform_indices = @transform_3, window_bounds = array<i64: 256, 8>}, {transform_indices = @transform_4, window_bounds = array<i64: 128, 8>}]} {
    %c0 = arith.constant 0 : index
    %c0_0 = arith.constant 0 : index
    %0 = vector.load %arg1[%c0, %c0_0] : memref<128x1xf32, #tpu.memory_space<vmem>>, vector<128x1xf32>
    %c0_1 = arith.constant 0 : index
    %c0_2 = arith.constant 0 : index
    %1 = vector.load %arg2[%c0_1, %c0_2] : memref<1x256xf32, #tpu.memory_space<vmem>>, vector<1x256xf32>
    %c0_3 = arith.constant 0 : index
    %c0_4 = arith.constant 0 : index
    %2 = vector.load %arg3[%c0_3, %c0_4] : memref<128x256xbf16, #tpu.memory_space<vmem>>, vector<128x256xbf16>
    %cst = arith.constant 0.000000e+00 : bf16
    %3 = vector.broadcast %cst : bf16 to vector<128x256xbf16>
    %4 = arith.cmpf ogt, %2, %3 : vector<128x256xbf16>
    %c0_5 = arith.constant 0 : index
    %c0_6 = arith.constant 0 : index
    %5 = vector.load %arg4[%c0_5, %c0_6] : memref<256x8xf32, #tpu.memory_space<vmem>>, vector<256x8xf32>
    %6 = vector.broadcast %0 : vector<128x1xf32> to vector<128x256xf32>
    %7 = vector.broadcast %1 : vector<1x256xf32> to vector<128x256xf32>
    %8 = arith.addf %6, %7 : vector<128x256xf32>
    %cst_7 = arith.constant 0.000000e+00 : f32
    %9 = vector.broadcast %cst_7 : f32 to vector<128x256xf32>
    %10 = arith.cmpf oge, %8, %9 : vector<128x256xf32>
    %cst_8 = arith.constant 2.000000e-01 : f32
    %11 = vector.broadcast %cst_8 : f32 to vector<128x256xf32>
    %12 = arith.mulf %11, %8 : vector<128x256xf32>
    %13 = arith.select %10, %8, %12 : vector<128x256xi1>, vector<128x256xf32>
    %cst_9 = arith.constant -1.000000e+09 : f32
    %14 = vector.broadcast %cst_9 : f32 to vector<128x256xf32>
    %15 = arith.select %4, %13, %14 : vector<128x256xi1>, vector<128x256xf32>
    %cst_10 = arith.constant dense<0xFF800000> : vector<128xf32>
    %16 = vector.multi_reduction <maximumf>, %15, %cst_10 [1] : vector<128x256xf32> to vector<128xf32>
    %17 = vector.shape_cast %16 : vector<128xf32> to vector<128x1xf32>
    %18 = vector.broadcast %17 : vector<128x1xf32> to vector<128x256xf32>
    %19 = arith.subf %15, %18 : vector<128x256xf32>
    %20 = math.exp %19 : vector<128x256xf32>
    %cst_11 = arith.constant dense<0.000000e+00> : vector<128xf32>
    %21 = vector.multi_reduction <add>, %20, %cst_11 [1] : vector<128x256xf32> to vector<128xf32>
    %22 = vector.shape_cast %21 : vector<128xf32> to vector<128x1xf32>
    %23 = tpu.reciprocal %22 {approx = true} : vector<128x1xf32> -> vector<128x1xf32>
    %24 = vector.broadcast %23 : vector<128x1xf32> to vector<128x256xf32>
    %25 = arith.mulf %20, %24 : vector<128x256xf32>
    %26 = arith.truncf %25 : vector<128x256xf32> to vector<128x256xbf16>
    %27 = arith.truncf %5 : vector<256x8xf32> to vector<256x8xbf16>
    %cst_12 = arith.constant dense<0.000000e+00> : vector<128x8xf32>
    %28 = tpu.matmul %26, %27, %cst_12 {dimension_numbers = #tpu.dot_dimension_numbers<[1], [0], [0], [1], [0, 0, 1, 1], [], []>} : vector<128x256xbf16>, vector<256x8xbf16>, vector<128x8xf32> -> vector<128x8xf32>
    %cst_13 = arith.constant 1.000000e+00 : f32
    %29 = vector.broadcast %cst_13 : f32 to vector<128x8xf32>
    %30 = arith.mulf %28, %29 : vector<128x8xf32>
    %c0_14 = arith.constant 0 : index
    %c0_15 = arith.constant 0 : index
    %31 = vector.load %arg5[%c0_14, %c0_15] : memref<128x8xf32, #tpu.memory_space<vmem>>, vector<128x8xf32>
    tpu.vector_store %arg5[%c0_14, %c0_15], %30 {strides = array<i32>} : memref<128x8xf32, #tpu.memory_space<vmem>>, vector<128x8xf32>,
    return
  }
  func.func @transform_0(%arg0: i32) -> (i32, i32) {
    %c0_i32 = arith.constant 0 : i32
    %c0_i32_0 = arith.constant 0 : i32
    return %arg0, %c0_i32 : i32, i32
  }
  func.func @transform_1(%arg0: i32) -> (i32, i32) {
    %c0_i32 = arith.constant 0 : i32
    %c0_i32_0 = arith.constant 0 : i32
    %c0_i32_1 = arith.constant 0 : i32
    return %c0_i32, %c0_i32_0 : i32, i32
  }
  func.func @transform_2(%arg0: i32) -> (i32, i32) {
    %c0_i32 = arith.constant 0 : i32
    %c0_i32_0 = arith.constant 0 : i32
    return %arg0, %c0_i32 : i32, i32
  }
  func.func @transform_3(%arg0: i32) -> (i32, i32) {
    %c0_i32 = arith.constant 0 : i32
    %c0_i32_0 = arith.constant 0 : i32
    %c0_i32_1 = arith.constant 0 : i32
    return %c0_i32, %c0_i32_0 : i32, i32
  }
  func.func @transform_4(%arg0: i32) -> (i32, i32) {
    %c0_i32 = arith.constant 0 : i32
    %c0_i32_0 = arith.constant 0 : i32
    return %arg0, %c0_i32 : i32, i32
  }
}

</mosaic_0001>

<bundles_post_ra>
// kernel: gat_forward.4
= control target key start
LH: loop header
LB: loop body
LE: loop exit
PB: predicated region body
PF: predicated region fallthrough
CT: control target
= control target key end

     0   :  { %s955_s15 = smov 0   ;;  %s1122_s0 = inlined_call_operand.vmem [shape: f32[256,32], index: 0, kind: input, shape index: {}]   ;;  %s1123_s1 = inlined_call_operand.vmem [shape: f32[32,32], index: 1, kind: input, shape index: {}]   ;;  %s1124_s2 = inlined_call_operand.vmem [shape: f32[32,8], index: 2, kind: input, shape index: {}]   ;;  %s1125_s3 = inlined_call_operand.vmem [shape: f32[256,32], index: 3, kind: output, shape index: {0}]   ;;  %s1126_s4 = inlined_call_operand.vmem [shape: f32[256,8], index: 4, kind: output, shape index: {1}]  }
   0x1 LB: > { %s749_s16 = sadd.s32 4294967295, %s928_s15   ;;  %p753_p0 = scmp.ge.s32.totalorder %s928_s15, 1  ;;  %s928_s15 = sphi %s955_s15, %s15_s15  }
   0x2   : > { %p166_p1 = scmp.lt.s32.totalorder %s928_s15, 3 }
   0x4   : > { %p167_p2 = pnand %p753_p0, %p166_p1 }
   0x5   : > { %v231_v0 = vld [vmem:[%s1123_s1] sm:$0xff] (!%p167_p2)  ;;  %v232_v1 = vld [vmem:[%s1123_s1 + $0x8] sm:$0xff] (!%p167_p2)  ;;  %v233_v2 = vld [vmem:[%s1123_s1 + $0x10] sm:$0xff] (!%p167_p2)  ;;  %s754_s23 = sshll.u32 (!%p167_p2), %s749_s16, 4  ;;  %vm235_vm0 = vcmask (!%p167_p2), 261120   ;;  %vm642_vm1 = vcmask (!%p167_p2), 64512  }
   0x6   : > { %170 = sbr.rel (%p167_p2) target bundleno = 474 (0x1da), region = 32  ;;  %v898_v3 = vpack.c.bf16 (!%p167_p2), %v232_v1, %v231_v0  ;;  %v234_v4 = vld [vmem:[%s1123_s1 + $0x18] sm:$0xff] (!%p167_p2)  ;;  %p198_p3 = scmp.lt.s32.totalorder (!%p167_p2), %s754_s23, 31  ;;  %v445_v5 = vld [vmem:[%s1124_s2] sm:$0xff] (!%p167_p2)  ;;  %v446_v6 = vld [vmem:[%s1124_s2 + $0x8] sm:$0xff] (!%p167_p2) }
   0x7   : > { %v902_v7 = vpack.c.bf16 (!%p167_p2), %v234_v4, %v233_v2  ;;  %v906_v8 = vpack.c.bf16 (!%p167_p2), %v446_v6, %v445_v5  ;;  %v447_v9 = vld [vmem:[%s1124_s2 + $0x10] sm:$0xff] (!%p167_p2)  ;;  %v448_v10 = vld [vmem:[%s1124_s2 + $0x18] sm:$0xff] (!%p167_p2) }
   0x8   : > { %899 = vmatprep.subr.bf16.mxu0 (!%p167_p2), %v898_v3  ;;  %v910_v11 = vpack.c.bf16 (!%p167_p2), %v448_v10, %v447_v9 }
   0x9   : > { %901 = vmatpush3.bf16.msra.mxu0 (!%p167_p2), %v898_v3  ;;  %907 = vmatprep.subr.bf16.mxu1 (!%p167_p2), %v906_v8 }
   0xa   : > { %903 = vmatprep.subr.bf16.mxu0 (!%p167_p2), %v902_v7  ;;  %909 = vmatpush3.bf16.msra.mxu1 (!%p167_p2), %v906_v8 }
   0xb   : > { %911 = vmatprep.subr.bf16.mxu1 (!%p167_p2), %v910_v11 }
   0xd   : > { %s1128_s23 = smov (!%p198_p3, %s754_s23), 31  ;;  %905 = vmatpush3.bf16.msra.mxu0 %v902_v7 }
   0xe   : > { %s987_s8 = sshll.u32 %s1128_s23, 3  ;;  %913 = vmatpush3.bf16.msra.mxu1 %v910_v11 }
   0xf   : > { %s993_s11 = scalar_lea.vmem %s1122_s0, %s987_s8  ;;  %s1031_s14 = scalar_lea.vmem %s1125_s3, %s987_s8 }
  0x10   : > { %v215_v12 = vld [vmem:[%s993_s11] sm:$0xff]  ;;  %v216_v13 = vld [vmem:[%s993_s11 + $0x8] sm:$0xff]  ;;  %v217_v14 = vld [vmem:[%s993_s11 + $0x10] sm:$0xff]  ;;  %s1085_s18 = scalar_lea.vmem %s1126_s4, %s987_s8 }
  0x11   : > { %842 = vmatprep.mubr.msk.f32.mxu0 %vm235_vm0, %v215_v12  ;;  %v218_v15 = vld [vmem:[%s993_s11 + $0x18] sm:$0xff]  ;;  %v219_v16 = vld [vmem:[%s993_s11 + $0x20] sm:$0xff]  ;;  %v220_v17 = vld [vmem:[%s993_s11 + $0x28] sm:$0xff] }
  0x12   : > { %843 = vmatmul.mubr.msk.f32.vlgmr.msra.gmra.mrb[0].mxu0 %vm235_vm0, %v216_v13  ;;  %v221_v18 = vld [vmem:[%s993_s11 + $0x30] sm:$0xff]  ;;  %v222_v19 = vld [vmem:[%s993_s11 + $0x38] sm:$0xff]  ;;  %v223_v20 = vld [vmem:[%s993_s11 + $0x40] sm:$0xff] }
  0x13   : > { %845 = vmatprep.mubr.msk.f32.mxu0 %vm235_vm0, %v217_v14  ;;  %v224_v21 = vld [vmem:[%s993_s11 + $0x48] sm:$0xff]  ;;  %v225_v22 = vld [vmem:[%s993_s11 + $0x50] sm:$0xff]  ;;  %v226_v23 = vld [vmem:[%s993_s11 + $0x58] sm:$0xff] }
  0x14   : > { %v227_v24 = vld [vmem:[%s993_s11 + $0x60] sm:$0xff]  ;;  %v228_v25 = vld [vmem:[%s993_s11 + $0x68] sm:$0xff]  ;;  %v229_v26 = vld [vmem:[%s993_s11 + $0x70] sm:$0xff] }
  0x15   : > { %v230_v27 = vld [vmem:[%s993_s11 + $0x78] sm:$0xff] }
  0x16   : > { %846 = vmatmul.mubr.msk.f32.gmra.mrb[2].mxu0 %vm235_vm0, %v218_v15 }
  0x17   : > { %848 = vmatprep.mubr.msk.f32.mxu0 %vm235_vm0, %v219_v16 }
  0x1a   : > { %849 = vmatmul.mubr.msk.f32.gmra.mrb[4].mxu0 %vm235_vm0, %v220_v17 }
  0x1b   : > { %851 = vmatprep.mubr.msk.f32.mxu0 %vm235_vm0, %v221_v18 }
  0x1e   : > { %852 = vmatmul.mubr.msk.f32.gmra.mrb[6].mxu0 %vm235_vm0, %v222_v19 }
  0x1f   : > { %854 = vmatprep.mubr.msk.f32.mxu0 %vm235_vm0, %v223_v20 }
  0x22   : > { %855 = vmatmul.mubr.msk.f32.gmra.mrb[8].mxu0 %vm235_vm0, %v224_v21 }
  0x23   : > { %857 = vmatprep.mubr.msk.f32.mxu0 %vm235_vm0, %v225_v22 }
  0x26   : > { %858 = vmatmul.mubr.msk.f32.gmra.mrb[10].mxu0 %vm235_vm0, %v226_v23 }
  0x27   : > { %860 = vmatprep.mubr.msk.f32.mxu0 %vm235_vm0, %v227_v24 }
  0x2a   : > { %861 = vmatmul.mubr.msk.f32.gmra.mrb[12].mxu0 %vm235_vm0, %v228_v25 }
  0x2b   : > { %863 = vmatprep.mubr.msk.f32.mxu0 %vm235_vm0, %v229_v26 }
  0x2e   : > { %864 = vmatmul.mubr.msk.f32.gmra.mrb[14].mxu0 %vm235_vm0, %v230_v27 }
  0xe5   : > { %v844_v28 = vpop.f32.mrb[0].mxu0 }
  0xe6   : > { %430 = vst.msk [vmem:[%s1031_s14 + $0x8] sm:$0xff] %vm235_vm0, %v844_v28  ;;  %v350_v29 = vpop.f32.mrb[1].mxu0 }
  0xe7   : > { %429 = vst.msk [vmem:[%s1031_s14] sm:$0xff] %vm235_vm0, %v350_v29  ;;  %874 = vmatprep.mubr.msk.f32.mxu1 %vm235_vm0, %v350_v29 }
  0xe8   : > { %875 = vmatmul.mubr.msk.f32.vlgmr.msra.gmra.mrb[0].mxu1 %vm235_vm0, %v844_v28 }
  0xe9   : > { %v847_v30 = vpop.f32.mrb[2].mxu0 }
  0xea   : > { %432 = vst.msk [vmem:[%s1031_s14 + $0x18] sm:$0xff] %vm235_vm0, %v847_v30  ;;  %v360_v31 = vpop.f32.mrb[3].mxu0 }
  0xeb   : > { %431 = vst.msk [vmem:[%s1031_s14 + $0x10] sm:$0xff] %vm235_vm0, %v360_v31  ;;  %877 = vmatprep.mubr.msk.f32.mxu1 %vm235_vm0, %v360_v31 }
  0xec   : > { %878 = vmatmul.mubr.msk.f32.gmra.mrb[2].mxu1 %vm235_vm0, %v847_v30 }
  0xed   : > { %v850_v32 = vpop.f32.mrb[4].mxu0 }
  0xee   : > { %434 = vst.msk [vmem:[%s1031_s14 + $0x28] sm:$0xff] %vm235_vm0, %v850_v32  ;;  %v370_v33 = vpop.f32.mrb[5].mxu0 }
  0xef   : > { %433 = vst.msk [vmem:[%s1031_s14 + $0x20] sm:$0xff] %vm235_vm0, %v370_v33  ;;  %880 = vmatprep.mubr.msk.f32.mxu1 %vm235_vm0, %v370_v33 }
  0xf0   : > { %881 = vmatmul.mubr.msk.f32.gmra.mrb[4].mxu1 %vm235_vm0, %v850_v32 }
  0xf1   : > { %v853_v34 = vpop.f32.mrb[6].mxu0 }
  0xf2   : > { %436 = vst.msk [vmem:[%s1031_s14 + $0x38] sm:$0xff] %vm235_vm0, %v853_v34  ;;  %v380_v35 = vpop.f32.mrb[7].mxu0 }
  0xf3   : > { %435 = vst.msk [vmem:[%s1031_s14 + $0x30] sm:$0xff] %vm235_vm0, %v380_v35  ;;  %883 = vmatprep.mubr.msk.f32.mxu1 %vm235_vm0, %v380_v35 }
  0xf4   : > { %884 = vmatmul.mubr.msk.f32.gmra.mrb[6].mxu1 %vm235_vm0, %v853_v34 }
  0xf5   : > { %v856_v36 = vpop.f32.mrb[8].mxu0 }
  0xf6   : > { %438 = vst.msk [vmem:[%s1031_s14 + $0x48] sm:$0xff] %vm235_vm0, %v856_v36  ;;  %v390_v37 = vpop.f32.mrb[9].mxu0 }
  0xf7   : > { %437 = vst.msk [vmem:[%s1031_s14 + $0x40] sm:$0xff] %vm235_vm0, %v390_v37  ;;  %886 = vmatprep.mubr.msk.f32.mxu1 %vm235_vm0, %v390_v37 }
  0xf8   : > { %887 = vmatmul.mubr.msk.f32.gmra.mrb[8].mxu1 %vm235_vm0, %v856_v36 }
  0xf9   : > { %v859_v38 = vpop.f32.mrb[10].mxu0 }
  0xfa   : > { %440 = vst.msk [vmem:[%s1031_s14 + $0x58] sm:$0xff] %vm235_vm0, %v859_v38  ;;  %v400_v39 = vpop.f32.mrb[11].mxu0 }
  0xfb   : > { %439 = vst.msk [vmem:[%s1031_s14 + $0x50] sm:$0xff] %vm235_vm0, %v400_v39  ;;  %889 = vmatprep.mubr.msk.f32.mxu1 %vm235_vm0, %v400_v39 }
  0xfc   : > { %890 = vmatmul.mubr.msk.f32.gmra.mrb[10].mxu1 %vm235_vm0, %v859_v38 }
  0xfd   : > { %v862_v40 = vpop.f32.mrb[12].mxu0 }
  0xfe   : > { %442 = vst.msk [vmem:[%s1031_s14 + $0x68] sm:$0xff] %vm235_vm0, %v862_v40  ;;  %v410_v41 = vpop.f32.mrb[13].mxu0 }
  0xff   : > { %441 = vst.msk [vmem:[%s1031_s14 + $0x60] sm:$0xff] %vm235_vm0, %v410_v41  ;;  %892 = vmatprep.mubr.msk.f32.mxu1 %vm235_vm0, %v410_v41 }
 0x100   : > { %893 = vmatmul.mubr.msk.f32.gmra.mrb[12].mxu1 %vm235_vm0, %v862_v40 }
 0x101   : > { %v865_v42 = vpop.f32.mrb[14].mxu0 }
 0x102   : > { %444 = vst.msk [vmem:[%s1031_s14 + $0x78] sm:$0xff] %vm235_vm0, %v865_v42  ;;  %v420_v43 = vpop.f32.mrb[15].mxu0 }
 0x103   : > { %443 = vst.msk [vmem:[%s1031_s14 + $0x70] sm:$0xff] %vm235_vm0, %v420_v43  ;;  %895 = vmatprep.mubr.msk.f32.mxu1 %vm235_vm0, %v420_v43 }
 0x104   : > { %896 = vmatmul.mubr.msk.f32.gmra.mrb[14].mxu1 %vm235_vm0, %v865_v42 }
 0x1bb   : > { %v876_v44 = vpop.f32.mrb[0].mxu1 }
 0x1bc   : > { %644 = vst.msk [vmem:[%s1085_s18 + $0x8] sm:$0xff] %vm642_vm1, %v876_v44  ;;  %v563_v45 = vpop.f32.mrb[1].mxu1 }
 0x1bd   : > { %643 = vst.msk [vmem:[%s1085_s18] sm:$0xff] %vm642_vm1, %v563_v45 }
 0x1bf   : > { %v879_v46 = vpop.f32.mrb[2].mxu1 }
 0x1c0   : > { %646 = vst.msk [vmem:[%s1085_s18 + $0x18] sm:$0xff] %vm642_vm1, %v879_v46  ;;  %v573_v47 = vpop.f32.mrb[3].mxu1 }
 0x1c1   : > { %645 = vst.msk [vmem:[%s1085_s18 + $0x10] sm:$0xff] %vm642_vm1, %v573_v47 }
 0x1c3   : > { %v882_v48 = vpop.f32.mrb[4].mxu1 }
 0x1c4   : > { %648 = vst.msk [vmem:[%s1085_s18 + $0x28] sm:$0xff] %vm642_vm1, %v882_v48  ;;  %v583_v49 = vpop.f32.mrb[5].mxu1 }
 0x1c5   : > { %647 = vst.msk [vmem:[%s1085_s18 + $0x20] sm:$0xff] %vm642_vm1, %v583_v49 }
 0x1c7   : > { %v885_v50 = vpop.f32.mrb[6].mxu1 }
 0x1c8   : > { %650 = vst.msk [vmem:[%s1085_s18 + $0x38] sm:$0xff] %vm642_vm1, %v885_v50  ;;  %v593_v51 = vpop.f32.mrb[7].mxu1 }
 0x1c9   : > { %649 = vst.msk [vmem:[%s1085_s18 + $0x30] sm:$0xff] %vm642_vm1, %v593_v51 }
 0x1cb   : > { %v888_v52 = vpop.f32.mrb[8].mxu1 }
 0x1cc   : > { %652 = vst.msk [vmem:[%s1085_s18 + $0x48] sm:$0xff] %vm642_vm1, %v888_v52  ;;  %v603_v53 = vpop.f32.mrb[9].mxu1 }
 0x1cd   : > { %651 = vst.msk [vmem:[%s1085_s18 + $0x40] sm:$0xff] %vm642_vm1, %v603_v53 }
 0x1cf   : > { %v891_v54 = vpop.f32.mrb[10].mxu1 }
 0x1d0   : > { %654 = vst.msk [vmem:[%s1085_s18 + $0x58] sm:$0xff] %vm642_vm1, %v891_v54  ;;  %v613_v55 = vpop.f32.mrb[11].mxu1 }
 0x1d1   : > { %653 = vst.msk [vmem:[%s1085_s18 + $0x50] sm:$0xff] %vm642_vm1, %v613_v55 }
 0x1d3   : > { %v894_v56 = vpop.f32.mrb[12].mxu1 }
 0x1d4   : > { %656 = vst.msk [vmem:[%s1085_s18 + $0x68] sm:$0xff] %vm642_vm1, %v894_v56  ;;  %v623_v57 = vpop.f32.mrb[13].mxu1 }
 0x1d5   : > { %655 = vst.msk [vmem:[%s1085_s18 + $0x60] sm:$0xff] %vm642_vm1, %v623_v57 }
 0x1d7   : > { %v897_v58 = vpop.f32.mrb[14].mxu1 }
 0x1d8   : > { %658 = vst.msk [vmem:[%s1085_s18 + $0x78] sm:$0xff] %vm642_vm1, %v897_v58  ;;  %v633_v59 = vpop.f32.mrb[15].mxu1 }
 0x1d9   : > { %657 = vst.msk [vmem:[%s1085_s18 + $0x70] sm:$0xff] %vm642_vm1, %v633_v59 }
 0x1da PF: > { %s15_s15 = sadd.s32 1, %s928_s15  }
 0x1db   : > { %p12_p4 = scmp.ge.s32.totalorder %s15_s15, 4  }
 0x1dd   :  { %14 = sbr.rel (!%p12_p4) target bundleno = 1 (0x1), region = 74 }

// kernel: gat_forward.6
= control target key start
LH: loop header
LB: loop body
LE: loop exit
PB: predicated region body
PF: predicated region fallthrough
CT: control target
= control target key end

     0   :  { %s936_s15 = smov 0   ;;  %s1094_s0 = inlined_call_operand.vmem [shape: f32[256,32], index: 0, kind: input, shape index: {}]   ;;  %s1095_s1 = inlined_call_operand.vmem [shape: f32[32,8], index: 1, kind: input, shape index: {}]   ;;  %s1096_s2 = inlined_call_operand.vmem [shape: f32[8,2], index: 2, kind: input, shape index: {}]   ;;  %s1097_s3 = inlined_call_operand.vmem [shape: f32[256,8], index: 3, kind: output, shape index: {0}]   ;;  %s1098_s4 = inlined_call_operand.vmem [shape: f32[256,2], index: 4, kind: output, shape index: {1}]  }
   0x1 LB: > { %s747_s16 = sadd.s32 4294967295, %s909_s15   ;;  %p751_p0 = scmp.ge.s32.totalorder %s909_s15, 1  ;;  %s909_s15 = sphi %s936_s15, %s15_s15  }
   0x2   : > { %p166_p1 = scmp.lt.s32.totalorder %s909_s15, 3 }
   0x4   : > { %p167_p2 = pnand %p751_p0, %p166_p1 }
   0x5   : > { %v231_v0 = vld [vmem:[%s1095_s1] sm:$0xff] (!%p167_p2)  ;;  %v232_v1 = vld [vmem:[%s1095_s1 + $0x8] sm:$0xff] (!%p167_p2)  ;;  %v233_v2 = vld [vmem:[%s1095_s1 + $0x10] sm:$0xff] (!%p167_p2)  ;;  %s752_s23 = sshll.u32 (!%p167_p2), %s747_s16, 4  ;;  %vm235_vm0 = vcmask (!%p167_p2), 261120   ;;  %vm429_vm1 = vcmask (!%p167_p2), 64512  }
   0x6   : > { %170 = sbr.rel (%p167_p2) target bundleno = 474 (0x1da), region = 32  ;;  %v887_v3 = vpack.c.bf16 (!%p167_p2), %v232_v1, %v231_v0  ;;  %v234_v4 = vld [vmem:[%s1095_s1 + $0x18] sm:$0xff] (!%p167_p2)  ;;  %p198_p3 = scmp.lt.s32.totalorder (!%p167_p2), %s752_s23, 31  ;;  %v446_v22 = vld [vmem:[%s1096_s2] sm:$0xff] (!%p167_p2)  ;;  %vm640_vm2 = vcmask (!%p167_p2), 15360  }
   0x7   : > { %v891_v5 = vpack.c.bf16 (!%p167_p2), %v234_v4, %v233_v2  ;;  %861 = vmatprep.subr.mxu1 (!%p167_p2), %v446_v22 }
   0x8   : > { %888 = vmatprep.subr.bf16.mxu0 (!%p167_p2), %v887_v3  ;;  %862 = vmatpush3.msra.mxu1 (!%p167_p2), %v446_v22 }
   0x9   : > { %890 = vmatpush3.bf16.msra.mxu0 (!%p167_p2), %v887_v3 }
   0xa   : > { %892 = vmatprep.subr.bf16.mxu0 (!%p167_p2), %v891_v5 }
   0xd   : > { %s1100_s23 = smov (!%p198_p3, %s752_s23), 31  ;;  %894 = vmatpush3.bf16.msra.mxu0 %v891_v5 }
   0xe   : > { %s956_s26 = sshll.u32 %s1100_s23, 3 }
   0xf   : > { %s962_s29 = scalar_lea.vmem %s1094_s0, %s956_s26  ;;  %s1003_s8 = scalar_lea.vmem %s1097_s3, %s956_s26 }
  0x10   : > { %v215_v6 = vld [vmem:[%s962_s29] sm:$0xff]  ;;  %v216_v7 = vld [vmem:[%s962_s29 + $0x8] sm:$0xff]  ;;  %v217_v8 = vld [vmem:[%s962_s29 + $0x10] sm:$0xff]  ;;  %s1057_s11 = scalar_lea.vmem %s1098_s4, %s956_s26 }
  0x11   : > { %837 = vmatprep.mubr.msk.f32.mxu0 %vm235_vm0, %v215_v6  ;;  %v218_v9 = vld [vmem:[%s962_s29 + $0x18] sm:$0xff]  ;;  %v219_v10 = vld [vmem:[%s962_s29 + $0x20] sm:$0xff]  ;;  %v220_v11 = vld [vmem:[%s962_s29 + $0x28] sm:$0xff] }
  0x12   : > { %838 = vmatmul.mubr.msk.f32.vlgmr.msra.gmra.mrb[0].mxu0 %vm235_vm0, %v216_v7  ;;  %v221_v12 = vld [vmem:[%s962_s29 + $0x30] sm:$0xff]  ;;  %v222_v13 = vld [vmem:[%s962_s29 + $0x38] sm:$0xff]  ;;  %v223_v14 = vld [vmem:[%s962_s29 + $0x40] sm:$0xff] }
  0x13   : > { %840 = vmatprep.mubr.msk.f32.mxu0 %vm235_vm0, %v217_v8  ;;  %v224_v15 = vld [vmem:[%s962_s29 + $0x48] sm:$0xff]  ;;  %v225_v16 = vld [vmem:[%s962_s29 + $0x50] sm:$0xff]  ;;  %v226_v17 = vld [vmem:[%s962_s29 + $0x58] sm:$0xff] }
  0x14   : > { %v227_v18 = vld [vmem:[%s962_s29 + $0x60] sm:$0xff]  ;;  %v228_v19 = vld [vmem:[%s962_s29 + $0x68] sm:$0xff]  ;;  %v229_v20 = vld [vmem:[%s962_s29 + $0x70] sm:$0xff] }
  0x15   : > { %v230_v21 = vld [vmem:[%s962_s29 + $0x78] sm:$0xff] }
  0x16   : > { %841 = vmatmul.mubr.msk.f32.gmra.mrb[2].mxu0 %vm235_vm0, %v218_v9 }
  0x17   : > { %843 = vmatprep.mubr.msk.f32.mxu0 %vm235_vm0, %v219_v10 }
  0x1a   : > { %844 = vmatmul.mubr.msk.f32.gmra.mrb[4].mxu0 %vm235_vm0, %v220_v11 }
  0x1b   : > { %846 = vmatprep.mubr.msk.f32.mxu0 %vm235_vm0, %v221_v12 }
  0x1e   : > { %847 = vmatmul.mubr.msk.f32.gmra.mrb[6].mxu0 %vm235_vm0, %v222_v13 }
  0x1f   : > { %849 = vmatprep.mubr.msk.f32.mxu0 %vm235_vm0, %v223_v14 }
  0x22   : > { %850 = vmatmul.mubr.msk.f32.gmra.mrb[8].mxu0 %vm235_vm0, %v224_v15 }
  0x23   : > { %852 = vmatprep.mubr.msk.f32.mxu0 %vm235_vm0, %v225_v16 }
  0x26   : > { %853 = vmatmul.mubr.msk.f32.gmra.mrb[10].mxu0 %vm235_vm0, %v226_v17 }
  0x27   : > { %855 = vmatprep.mubr.msk.f32.mxu0 %vm235_vm0, %v227_v18 }
  0x2a   : > { %856 = vmatmul.mubr.msk.f32.gmra.mrb[12].mxu0 %vm235_vm0, %v228_v19 }
  0x2b   : > { %858 = vmatprep.mubr.msk.f32.mxu0 %vm235_vm0, %v229_v20 }
  0x2e   : > { %859 = vmatmul.mubr.msk.f32.gmra.mrb[14].mxu0 %vm235_vm0, %v230_v21 }
  0xe5   : > { %v839_v23 = vpop.f32.mrb[0].mxu0 }
  0xe6   : > { %431 = vst.msk [vmem:[%s1003_s8 + $0x8] sm:$0xff] %vm429_vm1, %v839_v23  ;;  %v350_v24 = vpop.f32.mrb[1].mxu0 }
  0xe7   : > { %430 = vst.msk [vmem:[%s1003_s8] sm:$0xff] %vm429_vm1, %v350_v24  ;;  %863 = vmatprep.mubr.msk.f32.mxu1 %vm429_vm1, %v350_v24 }
  0xe8   : > { %864 = vmatmul.mubr.msk.f32.vlgmr.msra.gmra.mrb[0].mxu1 %vm429_vm1, %v839_v23 }
  0xe9   : > { %v842_v25 = vpop.f32.mrb[2].mxu0 }
  0xea   : > { %433 = vst.msk [vmem:[%s1003_s8 + $0x18] sm:$0xff] %vm429_vm1, %v842_v25  ;;  %v360_v26 = vpop.f32.mrb[3].mxu0 }
  0xeb   : > { %432 = vst.msk [vmem:[%s1003_s8 + $0x10] sm:$0xff] %vm429_vm1, %v360_v26  ;;  %866 = vmatprep.mubr.msk.f32.mxu1 %vm429_vm1, %v360_v26 }
  0xec   : > { %867 = vmatmul.mubr.msk.f32.gmra.mrb[2].mxu1 %vm429_vm1, %v842_v25 }
  0xed   : > { %v845_v27 = vpop.f32.mrb[4].mxu0 }
  0xee   : > { %435 = vst.msk [vmem:[%s1003_s8 + $0x28] sm:$0xff] %vm429_vm1, %v845_v27  ;;  %v370_v28 = vpop.f32.mrb[5].mxu0 }
  0xef   : > { %434 = vst.msk [vmem:[%s1003_s8 + $0x20] sm:$0xff] %vm429_vm1, %v370_v28  ;;  %869 = vmatprep.mubr.msk.f32.mxu1 %vm429_vm1, %v370_v28 }
  0xf0   : > { %870 = vmatmul.mubr.msk.f32.gmra.mrb[4].mxu1 %vm429_vm1, %v845_v27 }
  0xf1   : > { %v848_v29 = vpop.f32.mrb[6].mxu0 }
  0xf2   : > { %437 = vst.msk [vmem:[%s1003_s8 + $0x38] sm:$0xff] %vm429_vm1, %v848_v29  ;;  %v380_v30 = vpop.f32.mrb[7].mxu0 }
  0xf3   : > { %436 = vst.msk [vmem:[%s1003_s8 + $0x30] sm:$0xff] %vm429_vm1, %v380_v30  ;;  %872 = vmatprep.mubr.msk.f32.mxu1 %vm429_vm1, %v380_v30 }
  0xf4   : > { %873 = vmatmul.mubr.msk.f32.gmra.mrb[6].mxu1 %vm429_vm1, %v848_v29 }
  0xf5   : > { %v851_v31 = vpop.f32.mrb[8].mxu0 }
  0xf6   : > { %439 = vst.msk [vmem:[%s1003_s8 + $0x48] sm:$0xff] %vm429_vm1, %v851_v31  ;;  %v390_v32 = vpop.f32.mrb[9].mxu0 }
  0xf7   : > { %438 = vst.msk [vmem:[%s1003_s8 + $0x40] sm:$0xff] %vm429_vm1, %v390_v32  ;;  %875 = vmatprep.mubr.msk.f32.mxu1 %vm429_vm1, %v390_v32 }
  0xf8   : > { %876 = vmatmul.mubr.msk.f32.gmra.mrb[8].mxu1 %vm429_vm1, %v851_v31 }
  0xf9   : > { %v854_v33 = vpop.f32.mrb[10].mxu0 }
  0xfa   : > { %441 = vst.msk [vmem:[%s1003_s8 + $0x58] sm:$0xff] %vm429_vm1, %v854_v33  ;;  %v400_v34 = vpop.f32.mrb[11].mxu0 }
  0xfb   : > { %440 = vst.msk [vmem:[%s1003_s8 + $0x50] sm:$0xff] %vm429_vm1, %v400_v34  ;;  %878 = vmatprep.mubr.msk.f32.mxu1 %vm429_vm1, %v400_v34 }
  0xfc   : > { %879 = vmatmul.mubr.msk.f32.gmra.mrb[10].mxu1 %vm429_vm1, %v854_v33 }
  0xfd   : > { %v857_v35 = vpop.f32.mrb[12].mxu0 }
  0xfe   : > { %443 = vst.msk [vmem:[%s1003_s8 + $0x68] sm:$0xff] %vm429_vm1, %v857_v35  ;;  %v410_v36 = vpop.f32.mrb[13].mxu0 }
  0xff   : > { %442 = vst.msk [vmem:[%s1003_s8 + $0x60] sm:$0xff] %vm429_vm1, %v410_v36  ;;  %881 = vmatprep.mubr.msk.f32.mxu1 %vm429_vm1, %v410_v36 }
 0x100   : > { %882 = vmatmul.mubr.msk.f32.gmra.mrb[12].mxu1 %vm429_vm1, %v857_v35 }
 0x101   : > { %v860_v37 = vpop.f32.mrb[14].mxu0 }
 0x102   : > { %445 = vst.msk [vmem:[%s1003_s8 + $0x78] sm:$0xff] %vm429_vm1, %v860_v37  ;;  %v420_v38 = vpop.f32.mrb[15].mxu0 }
 0x103   : > { %444 = vst.msk [vmem:[%s1003_s8 + $0x70] sm:$0xff] %vm429_vm1, %v420_v38  ;;  %884 = vmatprep.mubr.msk.f32.mxu1 %vm429_vm1, %v420_v38 }
 0x104   : > { %885 = vmatmul.mubr.msk.f32.gmra.mrb[14].mxu1 %vm429_vm1, %v860_v37 }
 0x1bb   : > { %v865_v39 = vpop.f32.mrb[0].mxu1 }
 0x1bc   : > { %642 = vst.msk [vmem:[%s1057_s11 + $0x8] sm:$0xff] %vm640_vm2, %v865_v39  ;;  %v561_v40 = vpop.f32.mrb[1].mxu1 }
 0x1bd   : > { %641 = vst.msk [vmem:[%s1057_s11] sm:$0xff] %vm640_vm2, %v561_v40 }
 0x1bf   : > { %v868_v41 = vpop.f32.mrb[2].mxu1 }
 0x1c0   : > { %644 = vst.msk [vmem:[%s1057_s11 + $0x18] sm:$0xff] %vm640_vm2, %v868_v41  ;;  %v571_v42 = vpop.f32.mrb[3].mxu1 }
 0x1c1   : > { %643 = vst.msk [vmem:[%s1057_s11 + $0x10] sm:$0xff] %vm640_vm2, %v571_v42 }
 0x1c3   : > { %v871_v43 = vpop.f32.mrb[4].mxu1 }
 0x1c4   : > { %646 = vst.msk [vmem:[%s1057_s11 + $0x28] sm:$0xff] %vm640_vm2, %v871_v43  ;;  %v581_v44 = vpop.f32.mrb[5].mxu1 }
 0x1c5   : > { %645 = vst.msk [vmem:[%s1057_s11 + $0x20] sm:$0xff] %vm640_vm2, %v581_v44 }
 0x1c7   : > { %v874_v45 = vpop.f32.mrb[6].mxu1 }
 0x1c8   : > { %648 = vst.msk [vmem:[%s1057_s11 + $0x38] sm:$0xff] %vm640_vm2, %v874_v45  ;;  %v591_v46 = vpop.f32.mrb[7].mxu1 }
 0x1c9   : > { %647 = vst.msk [vmem:[%s1057_s11 + $0x30] sm:$0xff] %vm640_vm2, %v591_v46 }
 0x1cb   : > { %v877_v47 = vpop.f32.mrb[8].mxu1 }
 0x1cc   : > { %650 = vst.msk [vmem:[%s1057_s11 + $0x48] sm:$0xff] %vm640_vm2, %v877_v47  ;;  %v601_v48 = vpop.f32.mrb[9].mxu1 }
 0x1cd   : > { %649 = vst.msk [vmem:[%s1057_s11 + $0x40] sm:$0xff] %vm640_vm2, %v601_v48 }
 0x1cf   : > { %v880_v49 = vpop.f32.mrb[10].mxu1 }
 0x1d0   : > { %652 = vst.msk [vmem:[%s1057_s11 + $0x58] sm:$0xff] %vm640_vm2, %v880_v49  ;;  %v611_v50 = vpop.f32.mrb[11].mxu1 }
 0x1d1   : > { %651 = vst.msk [vmem:[%s1057_s11 + $0x50] sm:$0xff] %vm640_vm2, %v611_v50 }
 0x1d3   : > { %v883_v51 = vpop.f32.mrb[12].mxu1 }
 0x1d4   : > { %654 = vst.msk [vmem:[%s1057_s11 + $0x68] sm:$0xff] %vm640_vm2, %v883_v51  ;;  %v621_v52 = vpop.f32.mrb[13].mxu1 }
 0x1d5   : > { %653 = vst.msk [vmem:[%s1057_s11 + $0x60] sm:$0xff] %vm640_vm2, %v621_v52 }
 0x1d7   : > { %v886_v53 = vpop.f32.mrb[14].mxu1 }
 0x1d8   : > { %656 = vst.msk [vmem:[%s1057_s11 + $0x78] sm:$0xff] %vm640_vm2, %v886_v53  ;;  %v631_v54 = vpop.f32.mrb[15].mxu1 }
 0x1d9   : > { %655 = vst.msk [vmem:[%s1057_s11 + $0x70] sm:$0xff] %vm640_vm2, %v631_v54 }
 0x1da PF: > { %s15_s15 = sadd.s32 1, %s909_s15  }
 0x1db   : > { %p12_p4 = scmp.ge.s32.totalorder %s15_s15, 4  }
 0x1dd   :  { %14 = sbr.rel (!%p12_p4) target bundleno = 1 (0x1), region = 74 }

// kernel: gat_forward.5
= control target key start
LH: loop header
LB: loop body
LE: loop exit
PB: predicated region body
PF: predicated region fallthrough
CT: control target
= control target key end

     0   :  { %s4178_s15 = smov 0   ;;  %s7079_s0 = inlined_call_operand.vmem [shape: f32[256,4], index: 0, kind: input, shape index: {}]   ;;  %s7080_s1 = inlined_call_operand.vmem [shape: f32[4,256], index: 1, kind: input, shape index: {}]   ;;  %s7081_s2 = inlined_call_operand.vmem [shape: bf16[256,256], index: 2, kind: input, shape index: {}]   ;;  %s7082_s3 = inlined_call_operand.vmem [shape: f32[256,32], index: 3, kind: input, shape index: {}]   ;;  %s7083_s4 = inlined_call_operand.vmem [shape: f32[256,32], index: 4, kind: output, shape index: {}]  }
   0x1 LB: > { %s3387_s16 = sadd.s32 4294967295, %s4141_s15   ;;  %p3391_p0 = scmp.ge.s32.totalorder %s4141_s15, 1  ;;  %s4141_s15 = sphi %s4178_s15, %s14_s15  }
   0x2   : > { %p175_p1 = scmp.lt.s32.totalorder %s4141_s15, 3 }
   0x4   : > { %p176_p2 = pnand %p3391_p0, %p175_p1 }
   0x6   : > { %179 = sbr.rel (%p176_p2) target bundleno = 1891 (0x763), region = 36 }
   0xd   : > { %s3392_s17 = sshll.u32 %s3387_s16, 4  ;;  %v4143_v0 = vmov 0   ;;  %v4144_v17 = vmov 1   ;;  %v391_v18 = vlaneseq  ;;  %v4248_v24 = vld [vmem:[%s7080_s1] sm:$0xff]  ;;  %v7397_v62 = vmov 0  ;;  %s4147_s23 = smov 120  }
   0xe   : > { %3693 = vset.pattern.permute.xlu1 %v4143_v0  ;;  %3692 = vset.pattern.permute.xlu0 %v4143_v0  ;;  %p208_p3 = scmp.lt.s32.totalorder %s3392_s17, 31  ;;  %v7400_v63 = vmov 0  ;;  %s4149_s25 = smov 104  }
   0xf   : > { %v4239_v19 = vshrl.u32 %v391_v18, 7  ;;  %s4150_s26 = smov 8   ;;  %s4151_s27 = smov 16  }
  0x10   : > { %s8005_s17 = smov (!%p208_p3, %s3392_s17), 31  ;;  %s4152_s28 = smov 24  }
  0x11   : > { %s4188_s18 = sshll.u32 %s8005_s17, 3  ;;  %7396 = vst [vmem:[#allocation2_spill] sm:$0xff] %v4239_v19  ;;  %v393_v21 = vsub.s32 0, %v4239_v19  ;;  %v397_v22 = vsub.s32 4, %v4239_v19 }
  0x12   : > { %s4194_s21 = scalar_lea.vmem %s7079_s0, %s4188_s18  ;;  %s4237_s24 = scalar_lea.vmem %s7081_s2, %s4188_s18 }
  0x13   : > { %v4197_v1 = vld [vmem:[%s4194_s21 + $0x10] sm:$0xff]  ;;  %v229_v2 = vld [vmem:[%s4194_s21] sm:$0xff]  ;;  %v232_v3 = vld [vmem:[%s4194_s21 + $0x18] sm:$0xff]  ;;  %v394_v27 = vrot.slane %v4248_v24, %v393_v21  ;;  %v398_v28 = vrot.slane %v4248_v24, %v397_v22  ;;  %s6979_s5 = scalar_lea.vmem %s7083_s4, %s4188_s18 }
  0x14   : > { %322 = vperm.xlu1 %3693, %v4197_v1   ;;  %312 = vperm.xlu0 %3692, %v229_v2   ;;  %v4203_v4 = vld [vmem:[%s4194_s21 + $0x8] sm:$0xff]  ;;  %v233_v6 = vld [vmem:[%s4194_s21 + $0x20] sm:$0xff]  ;;  %v236_v7 = vld [vmem:[%s4194_s21 + $0x38] sm:$0xff] }
  0x15   : > { %v234_v5 = vld [vmem:[%s4194_s21 + $0x28] sm:$0xff]  ;;  %v235_v8 = vld [vmem:[%s4194_s21 + $0x30] sm:$0xff]  ;;  %v237_v10 = vld [vmem:[%s4194_s21 + $0x40] sm:$0xff]  ;;  %v4263_v36 = vrot.slane %v394_v27, %v393_v21  ;;  %v4265_v37 = vrot.slane %v398_v28, %v393_v21 }
  0x16   : > { %v4211_v9 = vld [vmem:[%s4194_s21 + $0x48] sm:$0xff]  ;;  %v240_v11 = vld [vmem:[%s4194_s21 + $0x58] sm:$0xff]  ;;  %v239_v12 = vld [vmem:[%s4194_s21 + $0x50] sm:$0xff] }
  0x17   : > { %v4218_v13 = vld [vmem:[%s4194_s21 + $0x68] sm:$0xff]  ;;  %v241_v14 = vld [vmem:[%s4194_s21 + $0x60] sm:$0xff]  ;;  %v4223_v15 = vld [vmem:[%s4194_s21 + $0x78] sm:$0xff] }
  0x18   : > { %327 = vperm.xlu1 %3693, %v232_v3   ;;  %317 = vperm.xlu0 %3692, %v4203_v4   ;;  %v4226_v16 = vld [vmem:[%s4194_s21 + $0x70] sm:$0xff]  ;;  %v246_v20 = vld [vmem:[%s4237_s24] sm:$0xff]  ;;  %v247_v25 = vld [vmem:[%s4237_s24 + $0x8] sm:$0xff] }
  0x19   : > { %v248_v23 = vld [vmem:[%s4237_s24 + $0x10] sm:$0xff]  ;;  %vm262_vm0 = vcmp.gt.bf16.partialorder %v246_v20, 0  ;;  %v249_v26 = vld [vmem:[%s4237_s24 + $0x18] sm:$0xff]  ;;  %vm263_vm2 = vcmp.gt.bf16.partialorder %v247_v25, 0  ;;  %v250_v29 = vld [vmem:[%s4237_s24 + $0x20] sm:$0xff] }
  0x1a   : > { %vm264_vm1 = vcmp.gt.bf16.partialorder %v248_v23, 0  ;;  %v537_v30 = vsel %vm262_vm0, 65537, %v4143_v0  ;;  %v251_v31 = vld [vmem:[%s4237_s24 + $0x28] sm:$0xff]  ;;  %vm265_vm3 = vcmp.gt.bf16.partialorder %v249_v26, 0  ;;  %v252_v33 = vld [vmem:[%s4237_s24 + $0x30] sm:$0xff]  ;;  %v4260_v34 = vsel %vm263_vm2, 65537, %v4143_v0 }
  0x1b   : > { %v539_v32 = vsel %vm264_vm1, 65537, %v4143_v0  ;;  %vm266_vm4 = vcmp.gt.bf16.partialorder %v250_v29, 0  ;;  %v253_v35 = vld [vmem:[%s4237_s24 + $0x38] sm:$0xff]  ;;  %v553_v38 = vunpack.c.l.b16 %v537_v30  ;;  %vm267_vm5 = vcmp.gt.bf16.partialorder %v251_v31, 0  ;;  %v254_v39 = vld [vmem:[%s4237_s24 + $0x40] sm:$0xff]  ;;  %v255_v40 = vld [vmem:[%s4237_s24 + $0x48] sm:$0xff] }
  0x1c   : > { %337 = vperm.xlu1 %3693, %v234_v5   ;;  %332 = vperm.xlu0 %3692, %v233_v6   ;;  %v554_v41 = vunpack.c.h.b16 %v537_v30  ;;  %v557_v42 = vunpack.c.l.b16 %v539_v32  ;;  %v4270_v43 = vsel %vm265_vm3, 65537, %v4143_v0  ;;  %vm268_vm6 = vcmp.gt.bf16.partialorder %v252_v33, 0  ;;  %v256_v44 = vld [vmem:[%s4237_s24 + $0x50] sm:$0xff]  ;;  %v257_v48 = vld [vmem:[%s4237_s24 + $0x58] sm:$0xff]  ;;  %v258_v49 = vld [vmem:[%s4237_s24 + $0x60] sm:$0xff] }
  0x1d   : > { %v558_v45 = vunpack.c.h.b16 %v539_v32  ;;  %v555_v46 = vunpack.c.l.b16 %v4260_v34  ;;  %v4275_v47 = vsel %vm266_vm4, 65537, %v4143_v0  ;;  %vm269_vm7 = vcmp.gt.bf16.partialorder %v253_v35, 0  ;;  %v259_v55 = vld [vmem:[%s4237_s24 + $0x68] sm:$0xff]  ;;  %v260_v26 = vld [vmem:[%s4237_s24 + $0x70] sm:$0xff]  ;;  %v261_v27 = vld [vmem:[%s4237_s24 + $0x78] sm:$0xff]  ;;  %s4148_s24 = smov 112  }
  0x1e   : > { %v556_v50 = vunpack.c.h.b16 %v4260_v34  ;;  %v4281_v51 = vsel %vm267_vm5, 65537, %v4143_v0  ;;  %vm270_vm8 = vcmp.gt.bf16.partialorder %v254_v39, 0  ;;  %vm271_vm9 = vcmp.gt.bf16.partialorder %v255_v40, 0 }
  0x1f   : > { %v559_v52 = vunpack.c.l.b16 %v4270_v43  ;;  %v560_v53 = vunpack.c.h.b16 %v4270_v43  ;;  %v4286_v54 = vsel %vm268_vm6, 65537, %v4143_v0  ;;  %vm272_vm10 = vcmp.gt.bf16.partialorder %v256_v44, 0 }
  0x20   : > { %347 = vperm.xlu1 %3693, %v236_v7   ;;  %342 = vperm.xlu0 %3692, %v235_v8   ;;  %v561_v56 = vunpack.c.l.b16 %v4275_v47  ;;  %v4291_v57 = vsel %vm269_vm7, 65537, %v4143_v0  ;;  %vm273_vm11 = vcmp.gt.bf16.partialorder %v257_v48, 0  ;;  %vm274_vm12 = vcmp.gt.bf16.partialorder %v258_v49, 0 }
  0x21   : > { %v562_v58 = vunpack.c.h.b16 %v4275_v47  ;;  %v563_v59 = vunpack.c.l.b16 %v4281_v51  ;;  %v4296_v60 = vsel %vm270_vm8, 65537, %v4143_v0  ;;  %v4299_v61 = vsel %vm271_vm9, 65537, %v4143_v0 }
  0x22   : > { %vm4301_vm13 = vcmp.ne.s32.totalorder %v553_v38, 0  ;;  %vm4305_vm14 = vcmp.ne.s32.totalorder %v554_v41, 0  ;;  %vm275_vm15 = vcmp.gt.bf16.partialorder %v259_v55, 0  ;;  %vm4314_vm0 = vcmp.ne.s32.totalorder %v557_v42, 0 }
  0x23   : > { %v7398_v62 = vsel %vm4301_vm13, 4294967295, %v7397_v62  ;;  %v7401_v63 = vsel %vm4305_vm14, 4294967295, %v7400_v63  ;;  %vm4318_vm1 = vcmp.ne.s32.totalorder %v558_v45, 0  ;;  %v4340_v25 = vsel %vm275_vm15, 65537, %v4143_v0 }
  0x24   : > { %357 = vperm.xlu1 %3693, %v4211_v9   ;;  %352 = vperm.xlu0 %3692, %v237_v10   ;;  %7399 = vst [vmem:[#allocation3_spill] sm:$0xff] %v7398_v62  ;;  %7402 = vst [vmem:[#allocation4_spill] sm:$0xff] %v7401_v63  ;;  %vm276_vm2 = vcmp.gt.bf16.partialorder %v260_v26, 0  ;;  %vm277_vm3 = vcmp.gt.bf16.partialorder %v261_v27, 0  ;;  %vm4354_vm6 = vcmp.ne.s32.totalorder %v555_v46, 0  ;;  %v7409_v44 = vmov 0 }
  0x25   : > { %v7410_v44 = vsel %vm4354_vm6, 4294967295, %v7409_v44  ;;  %vm4358_vm7 = vcmp.ne.s32.totalorder %v556_v50, 0  ;;  %v7412_v45 = vmov 0  ;;  %v7418_v41 = vmov 0 }
  0x26   : > { %7411 = vst [vmem:[#allocation7_spill] sm:$0xff] %v7410_v44  ;;  %v7413_v45 = vsel %vm4358_vm7, 4294967295, %v7412_v45  ;;  %v4374_v40 = vsel %vm276_vm2, 65537, %v4143_v0  ;;  %v4378_v33 = vsel %vm277_vm3, 65537, %v4143_v0  ;;  %vm4410_vm15 = vcmp.ne.s32.totalorder %v562_v58, 0 }
  0x27   : > { %7414 = vst [vmem:[#allocation8_spill] sm:$0xff] %v7413_v45 }
  0x28   : > { %367 = vperm.xlu1 %3693, %v240_v11   ;;  %362 = vperm.xlu0 %3692, %v239_v12  }
  0x2c   : > { %377 = vperm.xlu1 %3693, %v4218_v13   ;;  %372 = vperm.xlu0 %3692, %v241_v14  }
  0x30   : > { %387 = vperm.xlu1 %3693, %v4223_v15   ;;  %382 = vperm.xlu0 %3692, %v4226_v16  }
  0x34   : > { %3694 = vset.pattern.permute.xlu1 %v4144_v17  ;;  %3695 = vset.pattern.permute.xlu0 %v4144_v17  ;;  %v569_v17 = vunpack.c.l.b16 %v4296_v60 }
  0x35   : > { %1019 = vperm.xlu1 %3694, %v229_v2   ;;  %1023 = vperm.xlu0 %3695, %v4203_v4   ;;  %v564_v2 = vunpack.c.h.b16 %v4281_v51  ;;  %v7436_v51 = vmov 0 }
  0x39   : > { %1027 = vperm.xlu1 %3694, %v4197_v1   ;;  %1059 = vperm.xlu0 %3695, %v239_v12   ;;  %v4330_v12 = vsel %vm274_vm12, 65537, %v4143_v0  ;;  %vm4394_vm12 = vcmp.ne.s32.totalorder %v561_v56, 0  ;;  %v7424_v56 = vmov 0 }
  0x3a   : > { %v7425_v56 = vsel %vm4410_vm15, 4294967295, %v7424_v56 }
  0x3b   : > { %7426 = vst [vmem:[#allocation12_spill] sm:$0xff] %v7425_v56 }
  0x3d   : > { %1031 = vperm.xlu1 %3694, %v232_v3   ;;  %1067 = vperm.xlu0 %3695, %v241_v14   ;;  %v565_v3 = vunpack.c.l.b16 %v4286_v54  ;;  %v568_v14 = vunpack.c.h.b16 %v4291_v57 }
  0x41   : > { %1035 = vperm.xlu1 %3694, %v233_v6   ;;  %v7403_v6 = vmov 0 }
  0x42   : > { %v7404_v6 = vsel %vm4314_vm0, 4294967295, %v7403_v6 }
  0x43   : > { %7405 = vst [vmem:[#allocation5_spill] sm:$0xff] %v7404_v6 }
  0x45   : > { %1039 = vperm.xlu1 %3694, %v234_v5   ;;  %v4312_v5 = vsel %vm272_vm10, 65537, %v4143_v0  ;;  %vm4362_vm10 = vcmp.ne.s32.totalorder %v559_v52, 0 }
  0x49   : > { %1043 = vperm.xlu1 %3694, %v235_v8   ;;  %v566_v8 = vunpack.c.h.b16 %v4286_v54 }
  0x4d   : > { %1047 = vperm.xlu1 %3694, %v236_v7   ;;  %v7406_v7 = vmov 0 }
  0x4e   : > { %v7407_v7 = vsel %vm4318_vm1, 4294967295, %v7406_v7 }
  0x4f   : > { %7408 = vst [vmem:[#allocation6_spill] sm:$0xff] %v7407_v7 }
  0x51   : > { %1051 = vperm.xlu1 %3694, %v237_v10   ;;  %v567_v10 = vunpack.c.l.b16 %v4291_v57 }
  0x55   : > { %1055 = vperm.xlu1 %3694, %v4211_v9  }
  0x59   : > { %1063 = vperm.xlu1 %3694, %v240_v11   ;;  %v4326_v11 = vsel %vm273_vm11, 65537, %v4143_v0  ;;  %vm4366_vm11 = vcmp.ne.s32.totalorder %v560_v53, 0  ;;  %v7421_v0 = vmov 0 }
  0x5a   : > { %v7419_v41 = vsel %vm4366_vm11, 4294967295, %v7418_v41  ;;  %v7422_v0 = vsel %vm4394_vm12, 4294967295, %v7421_v0 }
  0x5b   : > { %7420 = vst [vmem:[#allocation10_spill] sm:$0xff] %v7419_v41  ;;  %7423 = vst [vmem:[#allocation11_spill] sm:$0xff] %v7422_v0 }
  0x93   : > { %v323_v28 = vpop.permute.xlu1 %322  ;;  %v313_v29 = vpop.permute.xlu0 %312 }
  0x94   : > { %v413_v34 = vadd.f32 %v4263_v36, %v323_v28  ;;  %v414_v35 = vadd.f32 %v4265_v37, %v323_v28  ;;  %v409_v38 = vadd.f32 %v4263_v36, %v313_v29  ;;  %v410_v39 = vadd.f32 %v4265_v37, %v313_v29 }
  0x95   : > { %v7415_v29 = vmov 0 }
  0x96   : > { %vm441_vm4 = vcmp.ge.f32.partialorder %v409_v38, 0.0  ;;  %vm442_vm5 = vcmp.ge.f32.partialorder %v410_v39, 0.0  ;;  %v473_v42 = vmul.f32 0.2, %v409_v38  ;;  %v474_v43 = vmul.f32 0.2, %v410_v39 }
  0x97   : > { %v328_v48 = vpop.permute.xlu1 %327  ;;  %v318_v49 = vpop.permute.xlu0 %317  ;;  %vm445_vm8 = vcmp.ge.f32.partialorder %v413_v34, 0.0  ;;  %vm446_vm9 = vcmp.ge.f32.partialorder %v414_v35, 0.0  ;;  %v477_v55 = vmul.f32 0.2, %v413_v34  ;;  %v478_v28 = vmul.f32 0.2, %v414_v35 }
  0x98   : > { %v7416_v29 = vsel %vm4362_vm10, 4294967295, %v7415_v29  ;;  %v411_v46 = vadd.f32 %v4263_v36, %v318_v49  ;;  %v412_v50 = vadd.f32 %v4265_v37, %v318_v49  ;;  %v505_v52 = vsel %vm441_vm4, %v409_v38, %v473_v42 }
  0x99   : > { %7417 = vst [vmem:[#allocation9_spill] sm:$0xff] %v7416_v29  ;;  %v506_v32 = vsel %vm442_vm5, %v410_v39, %v474_v43  ;;  %v509_v53 = vsel %vm445_vm8, %v413_v34, %v477_v55  ;;  %v510_v31 = vsel %vm446_vm9, %v414_v35, %v478_v28  ;;  %v415_v30 = vadd.f32 %v4263_v36, %v328_v48 }
  0x9a   : > { %v416_v23 = vadd.f32 %v4265_v37, %v328_v48  ;;  %v4386_v49 = vsel %vm4301_vm13, %v505_v52, -1e+09  ;;  %v4390_v26 = vsel %vm4305_vm14, %v506_v32, -1e+09  ;;  %v4402_v38 = vsel %vm4314_vm0, %v509_v53, -1e+09 }
  0x9b   : > { %v338_v27 = vpop.permute.xlu1 %337  ;;  %v333_v34 = vpop.permute.xlu0 %332  ;;  %v649_v35 = vmax.f32 %v4386_v49, %v4390_v26  ;;  %v4406_v39 = vsel %vm4318_vm1, %v510_v31, -1e+09  ;;  %vm443_vm2 = vcmp.ge.f32.partialorder %v411_v46, 0.0  ;;  %vm444_vm3 = vcmp.ge.f32.partialorder %v412_v50, 0.0 }
  0x9c   : > { %v417_v42 = vadd.f32 %v4263_v36, %v333_v34  ;;  %v418_v43 = vadd.f32 %v4265_v37, %v333_v34  ;;  %v419_v48 = vadd.f32 %v4263_v36, %v338_v27  ;;  %v420_v55 = vadd.f32 %v4265_v37, %v338_v27 }
  0x9d   : > { %650 = vmax.xlane.f32.xlu0 %v649_v35  ;;  %v475_v31 = vmul.f32 0.2, %v411_v46  ;;  %v476_v28 = vmul.f32 0.2, %v412_v50  ;;  %v479_v47 = vmul.f32 0.2, %v415_v30  ;;  %v655_v35 = vmax.f32 %v4402_v38, %v4406_v39 }
  0x9e   : > { %v480_v58 = vmul.f32 0.2, %v416_v23  ;;  %vm4421_vm8 = vcmp.ne.s32.totalorder %v563_v59, 0  ;;  %v7427_v52 = vmov 0  ;;  %vm4427_vm9 = vcmp.ne.s32.totalorder %v564_v2, 0 }
  0x9f   : > { %v7428_v52 = vsel %vm4421_vm8, 4294967295, %v7427_v52  ;;  %v7430_v53 = vmov 0  ;;  %v348_v27 = vpop.permute.xlu1 %347  ;;  %v343_v34 = vpop.permute.xlu0 %342  ;;  %v507_v32 = vsel %vm443_vm2, %v411_v46, %v475_v31  ;;  %v508_v22 = vsel %vm444_vm3, %v412_v50, %v476_v28 }
  0xa0   : > { %7429 = vst [vmem:[#allocation13_spill] sm:$0xff] %v7428_v52  ;;  %v7431_v53 = vsel %vm4427_vm9, 4294967295, %v7430_v53  ;;  %v481_v21 = vmul.f32 0.2, %v417_v42  ;;  %vm4437_vm5 = vcmp.ne.s32.totalorder %v565_v3, 0  ;;  %v7433_v59 = vmov 0 }
  0xa1   : > { %7432 = vst [vmem:[#allocation14_spill] sm:$0xff] %v7431_v53  ;;  %v7434_v59 = vsel %vm4437_vm5, 4294967295, %v7433_v59  ;;  %vm4443_vm4 = vcmp.ne.s32.totalorder %v566_v8, 0  ;;  %v421_v2 = vadd.f32 %v4263_v36, %v343_v34  ;;  %v422_v20 = vadd.f32 %v4265_v37, %v343_v34  ;;  %656 = vmax.xlane.f32.xlu0 %v655_v35 }
  0xa2   : > { %7435 = vst [vmem:[#allocation15_spill] sm:$0xff] %v7434_v59  ;;  %v7437_v51 = vsel %vm4443_vm4, 4294967295, %v7436_v51  ;;  %vm449_vm2 = vcmp.ge.f32.partialorder %v417_v42, 0.0  ;;  %v4451_v46 = vsel %vm4354_vm6, %v507_v32, -1e+09  ;;  %vm7441_vm3 = vcmp.ge.f32.partialorder %v415_v30, 0.0 }
  0xa3   : > { %7438 = vst [vmem:[#allocation16_spill] sm:$0xff] %v7437_v51  ;;  %7439 = vst [vmem:[#allocation17_spill] sm:$0xff] %v4451_v46  ;;  %v4455_v3 = vsel %vm4358_vm7, %v508_v22, -1e+09  ;;  %v511_v54 = vsel %vm7441_vm3, %v415_v30, %v479_v47  ;;  %vm7442_vm0 = vcmp.ge.f32.partialorder %v416_v23, 0.0  ;;  %v358_v34 = vpop.permute.xlu1 %357  ;;  %v353_v35 = vpop.permute.xlu0 %352  ;;  %v513_v30 = vsel %vm449_vm2, %v417_v42, %v481_v21 }
  0xa4   : > { %7440 = vst [vmem:[#allocation18_spill] sm:$0xff] %v4455_v3  ;;  %v512_v8 = vsel %vm7442_vm0, %v416_v23, %v480_v58  ;;  %v652_v50 = vmax.f32 %v4451_v46, %v4455_v3  ;;  %v4463_v31 = vsel %vm4362_vm10, %v511_v54, -1e+09  ;;  %v482_v32 = vmul.f32 0.2, %v418_v43 }
  0xa5   : > { %7443 = vst [vmem:[#allocation19_spill] sm:$0xff] %v4463_v31  ;;  %v4467_v28 = vsel %vm4366_vm11, %v512_v8, -1e+09  ;;  %vm4473_vm0 = vcmp.ne.s32.totalorder %v567_v10, 0  ;;  %v7445_v23 = vmov 0  ;;  %vm4479_vm3 = vcmp.ne.s32.totalorder %v568_v14, 0 }
  0xa6   : > { %7444 = vst [vmem:[#allocation20_spill] sm:$0xff] %v4467_v28  ;;  %v658_v22 = vmax.f32 %v4463_v31, %v4467_v28  ;;  %v7446_v23 = vsel %vm4473_vm0, 4294967295, %v7445_v23  ;;  %v7448_v47 = vmov 0  ;;  %v423_v8 = vadd.f32 %v4263_v36, %v348_v27  ;;  %653 = vmax.xlane.f32.xlu1 %v652_v50 }
  0xa7   : > { %7447 = vst [vmem:[#allocation21_spill] sm:$0xff] %v7446_v23  ;;  %v7449_v47 = vsel %vm4479_vm3, 4294967295, %v7448_v47  ;;  %v424_v21 = vadd.f32 %v4265_v37, %v348_v27  ;;  %vm451_vm2 = vcmp.ge.f32.partialorder %v419_v48, 0.0  ;;  %vm452_vm1 = vcmp.ge.f32.partialorder %v420_v55, 0.0  ;;  %v368_v50 = vpop.permute.xlu1 %367 }
  0xa8   : > { %7450 = vst [vmem:[#allocation22_spill] sm:$0xff] %v7449_v47  ;;  %659 = vmax.xlane.f32.xlu0 %v658_v22  ;;  %vm7451_vm11 = vcmp.ge.f32.partialorder %v418_v43, 0.0  ;;  %v4490_v57 = vsel %vm4394_vm12, %v513_v30, -1e+09  ;;  %v483_v14 = vmul.f32 0.2, %v419_v48  ;;  %v427_v31 = vadd.f32 %v4263_v36, %v358_v34 }
  0xa9   : > { %v514_v10 = vsel %vm7451_vm11, %v418_v43, %v482_v32  ;;  %v484_v42 = vmul.f32 0.2, %v420_v55  ;;  %vm453_vm10 = vcmp.ge.f32.partialorder %v421_v2, 0.0  ;;  %vm454_vm14 = vcmp.ge.f32.partialorder %v422_v20, 0.0  ;;  %v363_v32 = vpop.permute.xlu0 %362 }
  0xaa   : > { %v4494_v58 = vsel %vm4410_vm15, %v514_v10, -1e+09  ;;  %v485_v54 = vmul.f32 0.2, %v421_v2  ;;  %vm4498_vm13 = vcmp.ne.s32.totalorder %v569_v17, 0  ;;  %v7452_v27 = vmov 0 }
  0xab   : > { %v7453_v27 = vsel %vm4498_vm13, 4294967295, %v7452_v27  ;;  %v661_v43 = vmax.f32 %v4490_v57, %v4494_v58  ;;  %v515_v22 = vsel %vm451_vm2, %v419_v48, %v483_v14  ;;  %v516_v30 = vsel %vm452_vm1, %v420_v55, %v484_v42 }
  0xac   : > { %7454 = vst [vmem:[#allocation23_spill] sm:$0xff] %v7453_v27  ;;  %v486_v18 = vmul.f32 0.2, %v422_v20  ;;  %v7455_v10 = vunpack.c.h.b16 %v4296_v60  ;;  %v7456_v28 = vmov 0  ;;  %v425_v17 = vadd.f32 %v4263_v36, %v353_v35 }
  0xad   : > { %v426_v3 = vadd.f32 %v4265_v37, %v353_v35  ;;  %662 = vmax.xlane.f32.xlu1 %v661_v43  ;;  %v4516_v48 = vsel %vm4421_vm8, %v515_v22, -1e+09  ;;  %v4520_v60 = vsel %vm4427_vm9, %v516_v30, -1e+09  ;;  %v517_v55 = vsel %vm453_vm10, %v421_v2, %v485_v54  ;;  %v378_v54 = vpop.permute.xlu1 %377 }
  0xae   : > { %vm4506_vm11 = vcmp.ne.s32.totalorder %v7455_v10, 0  ;;  %7459 = vst [vmem:[#allocation25_spill] sm:$0xff] %v4516_v48  ;;  %7460 = vst [vmem:[#allocation26_spill] sm:$0xff] %v4520_v60  ;;  %v518_v14 = vsel %vm454_vm14, %v422_v20, %v486_v18  ;;  %v7461_v42 = vunpack.c.l.b16 %v4299_v61  ;;  %v7462_v10 = vmov 0 }
  0xaf   : > { %v7457_v28 = vsel %vm4506_vm11, 4294967295, %v7456_v28  ;;  %v664_v35 = vmax.f32 %v4516_v48, %v4520_v60  ;;  %v4534_v43 = vsel %vm4437_vm5, %v517_v55, -1e+09  ;;  %v4538_v22 = vsel %vm4443_vm4, %v518_v14, -1e+09 }
  0xb0   : > { %7458 = vst [vmem:[#allocation24_spill] sm:$0xff] %v7457_v28  ;;  %vm4526_vm1 = vcmp.ne.s32.totalorder %v7461_v42, 0  ;;  %7465 = vst [vmem:[#allocation28_spill] sm:$0xff] %v4534_v43  ;;  %v7467_v18 = vunpack.c.h.b16 %v4299_v61  ;;  %v7468_v20 = vmov 0  ;;  %v667_v2 = vmax.f32 %v4534_v43, %v4538_v22 }
  0xb1   : > { %v7463_v10 = vsel %vm4526_vm1, 4294967295, %v7462_v10  ;;  %7466 = vst [vmem:[#allocation29_spill] sm:$0xff] %v4538_v22  ;;  %vm456_vm2 = vcmp.ge.f32.partialorder %v424_v21, 0.0  ;;  %v487_v30 = vmul.f32 0.2, %v423_v8  ;;  %v7471_v55 = vunpack.c.l.b16 %v4312_v5  ;;  %665 = vmax.xlane.f32.xlu0 %v664_v35 }
  0xb2   : > { %7464 = vst [vmem:[#allocation27_spill] sm:$0xff] %v7463_v10  ;;  %vm4542_vm14 = vcmp.ne.s32.totalorder %v7467_v18, 0  ;;  %v488_v42 = vmul.f32 0.2, %v424_v21  ;;  %v7472_v46 = vmov 0  ;;  %v7475_v14 = vunpack.c.h.b16 %v4312_v5  ;;  %668 = vmax.xlane.f32.xlu1 %v667_v2 }
  0xb3   : > { %v7469_v20 = vsel %vm4542_vm14, 4294967295, %v7468_v20  ;;  %vm4550_vm5 = vcmp.ne.s32.totalorder %v7471_v55, 0  ;;  %v7476_v61 = vmov 0  ;;  %v428_v18 = vadd.f32 %v4265_v37, %v358_v34  ;;  %v373_v55 = vpop.permute.xlu0 %372 }
  0xb4   : > { %7470 = vst [vmem:[#allocation30_spill] sm:$0xff] %v7469_v20  ;;  %v7473_v46 = vsel %vm4550_vm5, 4294967295, %v7472_v46  ;;  %vm4556_vm10 = vcmp.ne.s32.totalorder %v7475_v14, 0  ;;  %v4562_v51 = vadd.f32 %v4263_v36, %v368_v50  ;;  %v4565_v59 = vadd.f32 %v4265_v37, %v368_v50 }
  0xb5   : > { %7474 = vst [vmem:[#allocation31_spill] sm:$0xff] %v7473_v46  ;;  %v7477_v61 = vsel %vm4556_vm10, 4294967295, %v7476_v61  ;;  %v429_v22 = vadd.f32 %v4263_v36, %v363_v32  ;;  %vm7479_vm4 = vcmp.ge.f32.partialorder %v423_v8, 0.0  ;;  %v520_v5 = vsel %vm456_vm2, %v424_v21, %v488_v42 }
  0xb6   : > { %7478 = vst [vmem:[#allocation32_spill] sm:$0xff] %v7477_v61  ;;  %v519_v43 = vsel %vm7479_vm4, %v423_v8, %v487_v30  ;;  %vm457_vm15 = vcmp.ge.f32.partialorder %v425_v17, 0.0  ;;  %v430_v14 = vadd.f32 %v4265_v37, %v363_v32  ;;  %v4576_v50 = vsel %vm4479_vm3, %v520_v5, -1e+09 }
  0xb7   : > { %v4572_v34 = vsel %vm4473_vm0, %v519_v43, -1e+09  ;;  %7481 = vst [vmem:[#allocation34_spill] sm:$0xff] %v4576_v50  ;;  %v489_v60 = vmul.f32 0.2, %v425_v17  ;;  %v4579_v35 = vadd.f32 %v4263_v36, %v378_v54  ;;  %v4582_v2 = vadd.f32 %v4265_v37, %v378_v54 }
  0xb8   : > { %7480 = vst [vmem:[#allocation33_spill] sm:$0xff] %v4572_v34  ;;  %v670_v8 = vmax.f32 %v4572_v34, %v4576_v50  ;;  %v490_v21 = vmul.f32 0.2, %v426_v3  ;;  %v7482_v32 = vunpack.c.l.b16 %v4326_v11  ;;  %v7483_v43 = vmov 0 }
  0xb9   : > { %v7486_v30 = vunpack.c.h.b16 %v4326_v11  ;;  %v7487_v42 = vmov 0  ;;  %v433_v5 = vadd.f32 %v4263_v36, %v373_v55  ;;  %v434_v54 = vadd.f32 %v4265_v37, %v373_v55 }
  0xba   : > { %vm4588_vm4 = vcmp.ne.s32.totalorder %v7482_v32, 0  ;;  %v521_v47 = vsel %vm457_vm15, %v425_v17, %v489_v60  ;;  %vm459_vm12 = vcmp.ge.f32.partialorder %v427_v31, 0.0  ;;  %v7490_v23 = vunpack.c.l.b16 %v4330_v12  ;;  %671 = vmax.xlane.f32.xlu0 %v670_v8  ;;  %v388_v17 = vpop.permute.xlu1 %387 }
  0xbb   : > { %v7484_v43 = vsel %vm4588_vm4, 4294967295, %v7483_v43  ;;  %vm4594_vm2 = vcmp.ne.s32.totalorder %v7486_v30, 0  ;;  %v7491_v50 = vmov 0  ;;  %v7494_v32 = vunpack.c.h.b16 %v4330_v12 }
  0xbc   : > { %7485 = vst [vmem:[#allocation35_spill] sm:$0xff] %v7484_v43  ;;  %v7488_v42 = vsel %vm4594_vm2, 4294967295, %v7487_v42  ;;  %vm4602_vm3 = vcmp.ne.s32.totalorder %v7490_v23, 0  ;;  %v7495_v11 = vmov 0  ;;  %vm7498_vm9 = vcmp.ge.f32.partialorder %v426_v3, 0.0 }
  0xbd   : > { %7489 = vst [vmem:[#allocation36_spill] sm:$0xff] %v7488_v42  ;;  %v7492_v50 = vsel %vm4602_vm3, 4294967295, %v7491_v50  ;;  %vm4608_vm0 = vcmp.ne.s32.totalorder %v7494_v32, 0  ;;  %v522_v30 = vsel %vm7498_vm9, %v426_v3, %v490_v21  ;;  %v4615_v55 = vsel %vm4498_vm13, %v521_v47, -1e+09 }
  0xbe   : > { %7493 = vst [vmem:[#allocation37_spill] sm:$0xff] %v7492_v50  ;;  %v7496_v11 = vsel %vm4608_vm0, 4294967295, %v7495_v11  ;;  %vm460_vm15 = vcmp.ge.f32.partialorder %v428_v18, 0.0  ;;  %v491_v60 = vmul.f32 0.2, %v427_v31  ;;  %vm461_vm8 = vcmp.ge.f32.partialorder %v429_v22, 0.0 }
  0xbf   : > { %7497 = vst [vmem:[#allocation38_spill] sm:$0xff] %v7496_v11  ;;  %v4619_v23 = vsel %vm4506_vm11, %v522_v30, -1e+09  ;;  %v492_v34 = vmul.f32 0.2, %v428_v18  ;;  %vm462_vm7 = vcmp.ge.f32.partialorder %v430_v14, 0.0  ;;  %v4624_v21 = vadd.f32 %v4263_v36, %v388_v17 }
  0xc0   : > { %v673_v12 = vmax.f32 %v4615_v55, %v4619_v23  ;;  %v523_v8 = vsel %vm459_vm12, %v427_v31, %v491_v60  ;;  %v493_v32 = vmul.f32 0.2, %v429_v22  ;;  %v494_v3 = vmul.f32 0.2, %v430_v14 }
  0xc1   : > { %v4627_v47 = vadd.f32 %v4265_v37, %v388_v17  ;;  %v524_v27 = vsel %vm460_vm15, %v428_v18, %v492_v34  ;;  %v4631_v30 = vsel %vm4526_vm1, %v523_v8, -1e+09  ;;  %v7499_v28 = vunpack.c.l.b16 %v4340_v25  ;;  %v383_v17 = vpop.permute.xlu0 %382 }
  0xc2   : > { %v7500_v48 = vmov 0  ;;  %v7503_v31 = vunpack.c.h.b16 %v4340_v25  ;;  %v7504_v60 = vmov 0  ;;  %674 = vmax.xlane.f32.xlu1 %v673_v12  ;;  %v4647_v18 = vsel %vm4542_vm14, %v524_v27, -1e+09 }
  0xc3   : > { %vm4635_vm9 = vcmp.ne.s32.totalorder %v7499_v28, 0  ;;  %v525_v34 = vsel %vm461_vm8, %v429_v22, %v493_v32  ;;  %v526_v8 = vsel %vm462_vm7, %v430_v14, %v494_v3  ;;  %v7507_v28 = vunpack.c.l.b16 %v4374_v40 }
  0xc4   : > { %v7501_v48 = vsel %vm4635_vm9, 4294967295, %v7500_v48  ;;  %vm4641_vm12 = vcmp.ne.s32.totalorder %v7503_v31, 0  ;;  %v7508_v10 = vmov 0  ;;  %v676_v25 = vmax.f32 %v4631_v30, %v4647_v18 }
  0xc5   : > { %7502 = vst [vmem:[#allocation39_spill] sm:$0xff] %v7501_v48  ;;  %v7505_v60 = vsel %vm4641_vm12, 4294967295, %v7504_v60  ;;  %vm4652_vm1 = vcmp.ne.s32.totalorder %v7507_v28, 0  ;;  %v4660_v12 = vsel %vm4550_vm5, %v525_v34, -1e+09  ;;  %vm464_vm7 = vcmp.ge.f32.partialorder %v4565_v59, 0.0 }
  0xc6   : > { %7506 = vst [vmem:[#allocation40_spill] sm:$0xff] %v7505_v60  ;;  %v7509_v10 = vsel %vm4652_vm1, 4294967295, %v7508_v10  ;;  %v4664_v27 = vsel %vm4556_vm10, %v526_v8, -1e+09  ;;  %v495_v14 = vmul.f32 0.2, %v4562_v51  ;;  %v437_v3 = vadd.f32 %v4263_v36, %v383_v17  ;;  %677 = vmax.xlane.f32.xlu0 %v676_v25 }
  0xc7   : > { %7510 = vst [vmem:[#allocation41_spill] sm:$0xff] %v7509_v10  ;;  %v679_v22 = vmax.f32 %v4660_v12, %v4664_v27  ;;  %v496_v32 = vmul.f32 0.2, %v4565_v59  ;;  %vm465_vm8 = vcmp.ge.f32.partialorder %v433_v5, 0.0  ;;  %vm466_vm15 = vcmp.ge.f32.partialorder %v434_v54, 0.0 }
  0xc8   : > { %v497_v31 = vmul.f32 0.2, %v433_v5  ;;  %v498_v34 = vmul.f32 0.2, %v434_v54  ;;  %v438_v28 = vadd.f32 %v4265_v37, %v383_v17  ;;  %vm7511_vm10 = vcmp.ge.f32.partialorder %v4562_v51, 0.0 }
  0xc9   : > { %680 = vmax.xlane.f32.xlu1 %v679_v22  ;;  %v527_v8 = vsel %vm7511_vm10, %v4562_v51, %v495_v14  ;;  %v528_v61 = vsel %vm464_vm7, %v4565_v59, %v496_v32  ;;  %vm467_vm5 = vcmp.ge.f32.partialorder %v4579_v35, 0.0  ;;  %vm468_vm10 = vcmp.ge.f32.partialorder %v4582_v2, 0.0 }
  0xca   : > { %v4680_v46 = vsel %vm4588_vm4, %v527_v8, -1e+09  ;;  %v4684_v36 = vsel %vm4594_vm2, %v528_v61, -1e+09  ;;  %v529_v25 = vsel %vm465_vm8, %v433_v5, %v497_v31  ;;  %v530_v20 = vsel %vm466_vm15, %v434_v54, %v498_v34 }
  0xcb   : > { %v682_v37 = vmax.f32 %v4680_v46, %v4684_v36  ;;  %v4690_v51 = vsel %vm4602_vm3, %v529_v25, -1e+09  ;;  %v4694_v59 = vsel %vm4608_vm0, %v530_v20, -1e+09  ;;  %v499_v61 = vmul.f32 0.2, %v4579_v35 }
  0xcc   : > { %v685_v17 = vmax.f32 %v4690_v51, %v4694_v59  ;;  %v500_v5 = vmul.f32 0.2, %v4582_v2  ;;  %vm469_vm15 = vcmp.ge.f32.partialorder %v437_v3, 0.0  ;;  %vm470_vm7 = vcmp.ge.f32.partialorder %v438_v28, 0.0 }
  0xcd   : > { %683 = vmax.xlane.f32.xlu0 %v682_v37  ;;  %v501_v54 = vmul.f32 0.2, %v437_v3  ;;  %v502_v22 = vmul.f32 0.2, %v438_v28  ;;  %v7512_v14 = vunpack.c.h.b16 %v4374_v40  ;;  %v7513_v32 = vmov 0 }
  0xce   : > { %686 = vmax.xlane.f32.xlu1 %v685_v17  ;;  %v531_v20 = vsel %vm467_vm5, %v4579_v35, %v499_v61  ;;  %v532_v31 = vsel %vm468_vm10, %v4582_v2, %v500_v5  ;;  %vm471_vm0 = vcmp.ge.f32.partialorder %v4624_v21, 0.0  ;;  %v7516_v34 = vunpack.c.l.b16 %v4378_v33 }
  0xcf   : > { %vm4703_vm8 = vcmp.ne.s32.totalorder %v7512_v14, 0  ;;  %v7517_v8 = vmov 0  ;;  %v4720_v40 = vsel %vm4635_vm9, %v531_v20, -1e+09  ;;  %v4724_v25 = vsel %vm4641_vm12, %v532_v31, -1e+09 }
  0xd0   : > { %v7514_v32 = vsel %vm4703_vm8, 4294967295, %v7513_v32  ;;  %vm4714_vm3 = vcmp.ne.s32.totalorder %v7516_v34, 0  ;;  %v533_v37 = vsel %vm469_vm15, %v437_v3, %v501_v54  ;;  %v534_v35 = vsel %vm470_vm7, %v438_v28, %v502_v22 }
  0xd1   : > { %7515 = vst [vmem:[#allocation42_spill] sm:$0xff] %v7514_v32  ;;  %v7518_v8 = vsel %vm4714_vm3, 4294967295, %v7517_v8  ;;  %v688_v2 = vmax.f32 %v4720_v40, %v4724_v25  ;;  %v4730_v17 = vsel %vm4652_vm1, %v533_v37, -1e+09  ;;  %v4734_v61 = vsel %vm4703_vm8, %v534_v35, -1e+09  ;;  %v1020_v37 = vpop.permute.xlu1 %1019 }
  0xd2   : > { %7519 = vst [vmem:[#allocation43_spill] sm:$0xff] %v7518_v8  ;;  %vm472_vm5 = vcmp.ge.f32.partialorder %v4627_v47, 0.0  ;;  %v691_v5 = vmax.f32 %v4730_v17, %v4734_v61  ;;  %v503_v14 = vmul.f32 0.2, %v4624_v21  ;;  %v504_v3 = vmul.f32 0.2, %v4627_v47 }
  0xd3   : > { %v7520_v28 = vunpack.c.h.b16 %v4378_v33  ;;  %v7521_v54 = vmov 0  ;;  %689 = vmax.xlane.f32.xlu0 %v688_v2  ;;  %v1088_v35 = vsub.s32 5, %v4239_v19  ;;  %vm7525_vm8 = vnez %v7413_v45 }
  0xd4   : > { %692 = vmax.xlane.f32.xlu1 %v691_v5  ;;  %v535_v22 = vsel %vm471_vm0, %v4624_v21, %v503_v14  ;;  %v536_v20 = vsel %vm472_vm5, %v4627_v47, %v504_v3  ;;  %v7160_v21 = vmov 3   ;;  %v1084_v47 = vsub.s32 1, %v4239_v19  ;;  %v1024_v3 = vpop.permute.xlu0 %1023 }
  0xd5   : > { %vm4743_vm10 = vcmp.ne.s32.totalorder %v7520_v28, 0  ;;  %v4753_v31 = vsel %vm4714_vm3, %v535_v22, -1e+09  ;;  %v1028_v2 = vpop.permute.xlu1 %1027  ;;  %v1089_v14 = vrot.slane %v4248_v24, %v1088_v35 }
  0xd6   : > { %v7522_v54 = vsel %vm4743_vm10, 4294967295, %v7521_v54  ;;  %v4757_v34 = vsel %vm4743_vm10, %v536_v20, -1e+09  ;;  %v1085_v5 = vrot.slane %v4248_v24, %v1084_v47 }
  0xd7   : > { %7523 = vst [vmem:[#allocation44_spill] sm:$0xff] %v7522_v54  ;;  %v694_v33 = vmax.f32 %v4753_v31, %v4757_v34 }
  0xd8   : > { %v4770_v28 = vrot.slane %v1085_v5, %v1084_v47 }
  0xd9   : > { %695 = vmax.xlane.f32.xlu0 %v694_v33 }
  0xda   : > { %v1102_v22 = vadd.f32 %v4770_v28, %v1024_v3  ;;  %v1100_v33 = vadd.f32 %v4770_v28, %v1020_v37  ;;  %v1104_v24 = vadd.f32 %v4770_v28, %v1028_v2 }
  0xdc   : > { %v1166_v10 = vmul.f32 0.2, %v1102_v22  ;;  %vm1134_vm0 = vcmp.ge.f32.partialorder %v1102_v22, 0.0  ;;  %v1164_v5 = vmul.f32 0.2, %v1100_v33  ;;  %vm1132_vm7 = vcmp.ge.f32.partialorder %v1100_v33, 0.0 }
  0xdd   : > { %vm1136_vm1 = vcmp.ge.f32.partialorder %v1104_v24, 0.0 }
  0xde   : > { %v1196_v60 = vsel %vm1132_vm7, %v1100_v33, %v1164_v5  ;;  %vm7527_vm7 = vnez %v7398_v62 }
  0xdf   : > { %v4796_v33 = vsel %vm7527_vm7, %v1196_v60, -1e+09 }
  0xe0   : > { %7528 = vst [vmem:[#allocation47_spill] sm:$0xff] %v4796_v33 }
  0xe5   : > { %1071 = vperm.xlu1 %3694, %v4218_v13   ;;  %v1032_v13 = vpop.permute.xlu1 %1031 }
  0xe6   : > { %v1106_v35 = vadd.f32 %v4770_v28, %v1032_v13 }
  0xe9   : > { %1079 = vperm.xlu1 %3694, %v4223_v15   ;;  %v4772_v15 = vrot.slane %v1089_v14, %v1084_v47 }
  0xeb   : > { %v1103_v20 = vadd.f32 %v4772_v15, %v1024_v3  ;;  %v1101_v32 = vadd.f32 %v4772_v15, %v1020_v37  ;;  %v1107_v47 = vadd.f32 %v4772_v15, %v1032_v13  ;;  %v1105_v50 = vadd.f32 %v4772_v15, %v1028_v2 }
  0xed   : > { %3697 = vset.pattern.permute.xlu1 %v7160_v21  ;;  %v1167_v11 = vmul.f32 0.2, %v1103_v20  ;;  %vm1135_vm15 = vcmp.ge.f32.partialorder %v1103_v20, 0.0  ;;  %v1165_v14 = vmul.f32 0.2, %v1101_v32  ;;  %vm1133_vm5 = vcmp.ge.f32.partialorder %v1101_v32, 0.0 }
  0xee   : > { %v1171_v2 = vmul.f32 0.2, %v1107_v47  ;;  %vm1137_vm10 = vcmp.ge.f32.partialorder %v1105_v50, 0.0 }
  0xef   : > { %1075 = vperm.xlu0 %3695, %v4226_v16   ;;  %v1036_v16 = vpop.permute.xlu1 %1035  ;;  %v1199_v3 = vsel %vm1135_vm15, %v1103_v20, %v1167_v11  ;;  %v1197_v11 = vsel %vm1133_vm5, %v1101_v32, %v1165_v14  ;;  %vm1139_vm15 = vcmp.ge.f32.partialorder %v1107_v47, 0.0 }
  0xf0   : > { %v1108_v37 = vadd.f32 %v4770_v28, %v1036_v16  ;;  %v1109_v54 = vadd.f32 %v4772_v15, %v1036_v16  ;;  %v4791_v13 = vsel %vm7525_vm8, %v1199_v3, -1e+09  ;;  %v1169_v16 = vmul.f32 0.2, %v1105_v50 }
  0xf1   : > { %7526 = vst [vmem:[#allocation46_spill] sm:$0xff] %v4791_v13  ;;  %v1203_v14 = vsel %vm1139_vm15, %v1107_v47, %v1171_v2  ;;  %vm7539_vm15 = vnez %v7428_v52 }
  0xf2   : > { %v1201_v45 = vsel %vm1137_vm10, %v1105_v50, %v1169_v16  ;;  %v1172_v42 = vmul.f32 0.2, %v1108_v37  ;;  %v1173_v43 = vmul.f32 0.2, %v1109_v54  ;;  %vm1140_vm3 = vcmp.ge.f32.partialorder %v1108_v37, 0.0 }
  0xf3   : > { %3696 = vset.pattern.permute.xlu0 %v7160_v21  ;;  %v1198_v21 = vsel %vm1134_vm0, %v1102_v22, %v1166_v10  ;;  %v1040_v19 = vpop.permute.xlu1 %1039  ;;  %v1170_v10 = vmul.f32 0.2, %v1106_v35  ;;  %vm1138_vm0 = vcmp.ge.f32.partialorder %v1106_v35, 0.0  ;;  %v1168_v22 = vmul.f32 0.2, %v1104_v24 }
  0xf4   : > { %v1110_v8 = vadd.f32 %v4770_v28, %v1040_v19  ;;  %v4787_v48 = vsel %vm4354_vm6, %v1198_v21, -1e+09  ;;  %v1111_v20 = vadd.f32 %v4772_v15, %v1040_v19  ;;  %vm7529_vm6 = vnez %v7401_v63 }
  0xf5   : > { %7524 = vst [vmem:[#allocation45_spill] sm:$0xff] %v4787_v48  ;;  %v4800_v21 = vsel %vm7529_vm6, %v1197_v11, -1e+09  ;;  %v1263_v32 = vmax.f32 %v4787_v48, %v4791_v13  ;;  %v1202_v5 = vsel %vm1138_vm0, %v1106_v35, %v1170_v10  ;;  %v1200_v3 = vsel %vm1136_vm1, %v1104_v24, %v1168_v22  ;;  %v282_v48 = vld [vmem:[%s7082_s3 + $0x20] sm:$0xff] }
  0xf6   : > { %7530 = vst [vmem:[#allocation48_spill] sm:$0xff] %v4800_v21  ;;  %vm1142_vm5 = vcmp.ge.f32.partialorder %v1110_v8, 0.0  ;;  %v1174_v19 = vmul.f32 0.2, %v1110_v8  ;;  %v1175_v44 = vmul.f32 0.2, %v1111_v20  ;;  %v1260_v60 = vmax.f32 %v4796_v33, %v4800_v21 }
  0xf7   : > { %vm1143_vm8 = vcmp.ge.f32.partialorder %v1111_v20, 0.0  ;;  %vm1141_vm7 = vcmp.ge.f32.partialorder %v1109_v54, 0.0  ;;  %vm7531_vm6 = vnez %v7416_v29  ;;  %vm7533_vm0 = vnez %v7419_v41  ;;  %v307_v33 = vld [vmem:[%s7082_s3 + $0xe8] sm:$0xff] }
  0xf8   : > { %v4808_v11 = vsel %vm7531_vm6, %v1202_v5, -1e+09  ;;  %v4812_v35 = vsel %vm7533_vm0, %v1203_v14, -1e+09  ;;  %vm7535_vm1 = vnez %v7404_v6  ;;  %vm7537_vm10 = vnez %v7407_v7 }
  0xf9   : > { %7532 = vst [vmem:[#allocation49_spill] sm:$0xff] %v4808_v11  ;;  %7534 = vst [vmem:[#allocation50_spill] sm:$0xff] %v4812_v35  ;;  %v4816_v50 = vsel %vm7535_vm1, %v1200_v3, -1e+09  ;;  %v4820_v24 = vsel %vm7537_vm10, %v1201_v45, -1e+09  ;;  %v1206_v47 = vsel %vm1142_vm5, %v1110_v8, %v1174_v19  ;;  %v1207_v10 = vsel %vm1143_vm8, %v1111_v20, %v1175_v44  ;;  %v4852_v20 = vpop.permute.xlu0 %1059 }
  0xfa   : > { %7536 = vst [vmem:[#allocation51_spill] sm:$0xff] %v4816_v50  ;;  %7538 = vst [vmem:[#allocation52_spill] sm:$0xff] %v4820_v24  ;;  %v1204_v2 = vsel %vm1140_vm3, %v1108_v37, %v1172_v42  ;;  %v1205_v22 = vsel %vm1141_vm7, %v1109_v54, %v1173_v43  ;;  %v1269_v16 = vmax.f32 %v4808_v11, %v4812_v35  ;;  %v4828_v14 = vsel %vm7539_vm15, %v1206_v47, -1e+09  ;;  %v4846_v54 = vpop.permute.xlu1 %1043 }
  0xfb   : > { %v1266_v5 = vmax.f32 %v4816_v50, %v4820_v24  ;;  %7540 = vst [vmem:[#allocation53_spill] sm:$0xff] %v4828_v14  ;;  %vm7541_vm0 = vnez %v7431_v53  ;;  %vm7543_vm5 = vnez %v7422_v0  ;;  %vm7545_vm3 = vnez %v7425_v56 }
  0xfc   : > { %v4832_v45 = vsel %vm7541_vm0, %v1207_v10, -1e+09  ;;  %v4836_v8 = vsel %vm7543_vm5, %v1204_v2, -1e+09  ;;  %v4840_v44 = vsel %vm7545_vm3, %v1205_v22, -1e+09 }
  0xfd   : > { %7542 = vst [vmem:[#allocation54_spill] sm:$0xff] %v4832_v45  ;;  %7544 = vst [vmem:[#allocation55_spill] sm:$0xff] %v4836_v8  ;;  %v1275_v43 = vmax.f32 %v4828_v14, %v4832_v45  ;;  %v1272_v42 = vmax.f32 %v4836_v8, %v4840_v44  ;;  %v4857_v3 = vpop.permute.xlu0 %1067  ;;  %v7192_v19 = vmov 2   ;;  %v7547_v45 = vld [vmem:[#allocation17_spill] sm:$0xff] }
  0xfe   : > { %7546 = vst [vmem:[#allocation56_spill] sm:$0xff] %v4840_v44  ;;  %v4849_v37 = vpop.permute.xlu1 %1047  ;;  %v7548_v44 = vld [vmem:[#allocation18_spill] sm:$0xff] }
 0x10d   : > { %1264 = vmax.xlane.f32.xlu1 %v1263_v32  ;;  %v4854_v32 = vpop.permute.xlu1 %1051 }
 0x10e   : > { %1261 = vmax.xlane.f32.xlu0 %v1260_v60 }
 0x111   : > { %1267 = vmax.xlane.f32.xlu1 %v1266_v5  ;;  %v4860_v60 = vpop.permute.xlu1 %1055 }
 0x112   : > { %1270 = vmax.xlane.f32.xlu0 %v1269_v16 }
 0x115   : > { %1273 = vmax.xlane.f32.xlu1 %v1272_v42  ;;  %v4864_v2 = vpop.permute.xlu1 %1063 }
 0x116   : > { %1276 = vmax.xlane.f32.xlu0 %v1275_v43  ;;  %v1123_v29 = vadd.f32 %v4772_v15, %v4864_v2 }
 0x12a   : > { %v651_v47 = vpop.xlane.xlu0 %650 }
 0x12b   : > { %v698_v10 = vsub.f32 %v4390_v26, %v651_v47  ;;  %v7549_v26 = vld [vmem:[#allocation19_spill] sm:$0xff] }
 0x12c   : > { %2325 = vperm.xlu0 %3696, %v4203_v4   ;;  %v697_v4 = vsub.f32 %v4386_v49, %v651_v47 }
 0x12d   : > { %v731_v22 = vmul.f32 1.442695, %v698_v10 }
 0x12e   : > { %v657_v16 = vpop.xlane.xlu0 %656 }
 0x12f   : > { %v702_v5 = vsub.f32 %v4406_v39, %v657_v16 }
 0x130   : > { %2329 = vperm.xlu0 %3696, %v4197_v1   ;;  %v729_v1 = vmul.f32 1.442695, %v697_v4  ;;  %v7550_v4 = vld [vmem:[#allocation20_spill] sm:$0xff] }
 0x132   : > { %3702 = vpow2.f32 %v729_v1 }
 0x133   : > { %3704 = vpow2.f32 %v731_v22  ;;  %v654_v43 = vpop.xlane.xlu1 %653 }
 0x134   : > { %2357 = vperm.xlu0 %3696, %v4211_v9   ;;  %v701_v9 = vsub.f32 %v4402_v38, %v657_v16  ;;  %v699_v14 = vsub.f32 %v7547_v45, %v654_v43  ;;  %v700_v49 = vsub.f32 %v7548_v44, %v654_v43 }
 0x135   : > { %v660_v8 = vpop.xlane.xlu0 %659 }
 0x136   : > { %v737_v42 = vmul.f32 1.442695, %v701_v9  ;;  %v703_v47 = vsub.f32 %v7549_v26, %v660_v8  ;;  %v704_v10 = vsub.f32 %v7550_v4, %v660_v8  ;;  %v733_v35 = vmul.f32 1.442695, %v699_v14 }
 0x137   : > { %v735_v1 = vmul.f32 1.442695, %v700_v49  ;;  %v7553_v49 = vld [vmem:[#allocation28_spill] sm:$0xff] }
 0x138   : > { %3699 = vset.pattern.permute.xlu0 %v7192_v19  ;;  %v739_v19 = vmul.f32 1.442695, %v702_v5  ;;  %3706 = vpow2.f32 %v737_v42  ;;  %v741_v38 = vmul.f32 1.442695, %v703_v47  ;;  %v743_v11 = vmul.f32 1.442695, %v704_v10 }
 0x139   : > { %v7552_v42 = vld [vmem:[#allocation26_spill] sm:$0xff] }
 0x13a   : > { %3708 = vpow2.f32 %v739_v19  ;;  %v663_v39 = vpop.xlane.xlu1 %662  ;;  %v7551_v19 = vld [vmem:[#allocation25_spill] sm:$0xff] }
 0x13b   : > { %3710 = vpow2.f32 %v733_v35  ;;  %v705_v22 = vsub.f32 %v4490_v57, %v663_v39  ;;  %v706_v45 = vsub.f32 %v4494_v58, %v663_v39  ;;  %v7554_v57 = vld [vmem:[#allocation29_spill] sm:$0xff] }
 0x13c   : > { %3712 = vpow2.f32 %v735_v1  ;;  %v4874_v44 = vpop.eup %3702 }
 0x13d   : > { %3714 = vpow2.f32 %v741_v38  ;;  %v745_v16 = vmul.f32 1.442695, %v705_v22  ;;  %v747_v9 = vmul.f32 1.442695, %v706_v45  ;;  %v4876_v8 = vpop.eup %3704  ;;  %v7555_v45 = vld [vmem:[#allocation33_spill] sm:$0xff] }
 0x13e   : > { %3716 = vpow2.f32 %v743_v11  ;;  %v666_v5 = vpop.xlane.xlu0 %665  ;;  %v793_v58 = vadd.f32 %v4876_v8, %v4874_v44 }
 0x13f   : > { %v669_v14 = vpop.xlane.xlu1 %668  ;;  %v707_v43 = vsub.f32 %v7551_v19, %v666_v5  ;;  %v708_v35 = vsub.f32 %v7552_v42, %v666_v5  ;;  %3718 = vpow2.f32 %v745_v16  ;;  %v7556_v5 = vld [vmem:[#allocation34_spill] sm:$0xff] }
 0x140   : > { %v709_v26 = vsub.f32 %v7553_v49, %v669_v14  ;;  %v710_v47 = vsub.f32 %v7554_v57, %v669_v14  ;;  %3720 = vpow2.f32 %v747_v9  ;;  %794 = vadd.xlane.f32.xlu1 %v793_v58 }
 0x141   : > { %v749_v4 = vmul.f32 1.442695, %v707_v43  ;;  %v751_v38 = vmul.f32 1.442695, %v708_v35 }
 0x142   : > { %v4884_v10 = vpop.eup %3706  ;;  %v753_v11 = vmul.f32 1.442695, %v709_v26  ;;  %v755_v1 = vmul.f32 1.442695, %v710_v47 }
 0x143   : > { %3722 = vpow2.f32 %v749_v4 }
 0x144   : > { %v4886_v39 = vpop.eup %3708  ;;  %3724 = vpow2.f32 %v753_v11 }
 0x145   : > { %v799_v19 = vadd.f32 %v4886_v39, %v4884_v10  ;;  %v4892_v9 = vpop.eup %3710  ;;  %3726 = vpow2.f32 %v755_v1 }
 0x146   : > { %v4894_v43 = vpop.eup %3712  ;;  %3728 = vpow2.f32 %v751_v38 }
 0x147   : > { %v672_v22 = vpop.xlane.xlu0 %671  ;;  %800 = vadd.xlane.f32.xlu1 %v799_v19  ;;  %v4896_v49 = vpop.eup %3714  ;;  %v796_v57 = vadd.f32 %v4894_v43, %v4892_v9 }
 0x148   : > { %v711_v16 = vsub.f32 %v7555_v45, %v672_v22  ;;  %v712_v14 = vsub.f32 %v7556_v5, %v672_v22  ;;  %v4900_v47 = vpop.eup %3716 }
 0x149   : > { %v802_v11 = vadd.f32 %v4900_v47, %v4896_v49  ;;  %v4906_v1 = vpop.eup %3718 }
 0x14a   : > { %v757_v42 = vmul.f32 1.442695, %v711_v16  ;;  %v759_v35 = vmul.f32 1.442695, %v712_v14  ;;  %v4908_v16 = vpop.eup %3720 }
 0x14c   : > { %3730 = vpow2.f32 %v757_v42  ;;  %v805_v42 = vadd.f32 %v4908_v16, %v4906_v1 }
 0x14d   : > { %3732 = vpow2.f32 %v759_v35  ;;  %v4916_v35 = vpop.eup %3722 }
 0x14e   : > { %806 = vadd.xlane.f32.xlu1 %v805_v42 }
 0x14f   : > { %v675_v26 = vpop.xlane.xlu1 %674 }
 0x150   : > { %v713_v58 = vsub.f32 %v4615_v55, %v675_v26  ;;  %v714_v4 = vsub.f32 %v4619_v23, %v675_v26 }
 0x152   : > { %v761_v38 = vmul.f32 1.442695, %v713_v58  ;;  %v763_v22 = vmul.f32 1.442695, %v714_v4 }
 0x153   : > { %797 = vadd.xlane.f32.xlu0 %v796_v57  ;;  %v678_v45 = vpop.xlane.xlu0 %677 }
 0x154   : > { %v715_v14 = vsub.f32 %v4631_v30, %v678_v45  ;;  %v716_v55 = vsub.f32 %v4647_v18, %v678_v45  ;;  %3734 = vpow2.f32 %v761_v38  ;;  %v294_v30 = vld [vmem:[%s7082_s3 + $0x80] sm:$0xff]  ;;  %v295_v18 = vld [vmem:[%s7082_s3 + $0x88] sm:$0xff] }
 0x155   : > { %3736 = vpow2.f32 %v763_v22  ;;  %v4926_v4 = vpack.c.bf16 %v295_v18, %v294_v30  ;;  %v278_v38 = vld [vmem:[%s7082_s3] sm:$0xff]  ;;  %v297_v30 = vld [vmem:[%s7082_s3 + $0x98] sm:$0xff] }
 0x156   : > { %v681_v5 = vpop.xlane.xlu1 %680  ;;  %v765_v26 = vmul.f32 1.442695, %v715_v14  ;;  %v767_v57 = vmul.f32 1.442695, %v716_v55 }
 0x157   : > { %v717_v23 = vsub.f32 %v4660_v12, %v681_v5  ;;  %v718_v19 = vsub.f32 %v4664_v27, %v681_v5  ;;  %803 = vadd.xlane.f32.xlu0 %v802_v11  ;;  %v4924_v12 = vpop.eup %3724  ;;  %7557 = vst [vmem:[#allocation17_spill] sm:$0xff] %v4926_v4  ;;  %v279_v11 = vld [vmem:[%s7082_s3 + $0x8] sm:$0xff]  ;;  %3418 = vmatprep.subr.bf16.mxu0 %v4926_v4 }
 0x158   : > { %v4934_v22 = vpop.eup %3726  ;;  %3738 = vpow2.f32 %v765_v26  ;;  %v4936_v5 = vpack.c.bf16 %v279_v11, %v278_v38  ;;  %v296_v26 = vld [vmem:[%s7082_s3 + $0x90] sm:$0xff]  ;;  %v281_v38 = vld [vmem:[%s7082_s3 + $0x18] sm:$0xff] }
 0x159   : > { %v769_v27 = vmul.f32 1.442695, %v717_v23  ;;  %v771_v58 = vmul.f32 1.442695, %v718_v19  ;;  %v4938_v14 = vpop.eup %3728  ;;  %v811_v42 = vadd.f32 %v4934_v22, %v4924_v12  ;;  %v4972_v13 = vpack.c.bf16 %v297_v30, %v296_v26 }
 0x15a   : > { %v684_v45 = vpop.xlane.xlu0 %683  ;;  %7558 = vst [vmem:[#allocation18_spill] sm:$0xff] %v4936_v5  ;;  %3419 = vmatpush3.bf16.msra.mxu0 %v4936_v5  ;;  %v4962_v11 = vpop.eup %3730 }
 0x15b   : > { %3740 = vpow2.f32 %v769_v27  ;;  %v687_v55 = vpop.xlane.xlu1 %686  ;;  %v719_v23 = vsub.f32 %v4680_v46, %v684_v45  ;;  %v720_v19 = vsub.f32 %v4684_v36, %v684_v45  ;;  %v808_v36 = vadd.f32 %v4938_v14, %v4916_v35  ;;  %v280_v27 = vld [vmem:[%s7082_s3 + $0x10] sm:$0xff]  ;;  %812 = vadd.xlane.f32.xlu1 %v811_v42  ;;  %v4970_v45 = vpop.eup %3732  ;;  %7559 = vst [vmem:[#allocation19_spill] sm:$0xff] %v4972_v13 }
 0x15c   : > { %3742 = vpow2.f32 %v771_v58  ;;  %v721_v18 = vsub.f32 %v4690_v51, %v687_v55  ;;  %v722_v46 = vsub.f32 %v4694_v59, %v687_v55  ;;  %v298_v51 = vld [vmem:[%s7082_s3 + $0xa0] sm:$0xff]  ;;  %v299_v59 = vld [vmem:[%s7082_s3 + $0xa8] sm:$0xff]  ;;  %v4976_v42 = vpack.c.bf16 %v281_v38, %v280_v27  ;;  %3420 = vmatprep.subr.bf16.mxu0 %v4972_v13 }
 0x15d   : > { %3744 = vpow2.f32 %v767_v57  ;;  %v773_v58 = vmul.f32 1.442695, %v719_v23  ;;  %v775_v50 = vmul.f32 1.442695, %v720_v19  ;;  %809 = vadd.xlane.f32.xlu0 %v808_v36  ;;  %v814_v23 = vadd.f32 %v4970_v45, %v4962_v11  ;;  %v301_v36 = vld [vmem:[%s7082_s3 + $0xb8] sm:$0xff] }
 0x15e   : > { %v777_v55 = vmul.f32 1.442695, %v721_v18  ;;  %v779_v24 = vmul.f32 1.442695, %v722_v46  ;;  %7560 = vst [vmem:[#allocation20_spill] sm:$0xff] %v4976_v42  ;;  %v283_v18 = vld [vmem:[%s7082_s3 + $0x28] sm:$0xff]  ;;  %v4993_v27 = vpop.eup %3734  ;;  %3421 = vmatpush3.bf16.msra.mxu0 %v4976_v42 }
 0x15f   : > { %3746 = vpow2.f32 %v773_v58  ;;  %v300_v46 = vld [vmem:[%s7082_s3 + $0xb0] sm:$0xff]  ;;  %v5002_v13 = vpack.c.bf16 %v283_v18, %v282_v48  ;;  %v302_v48 = vld [vmem:[%s7082_s3 + $0xc0] sm:$0xff]  ;;  %v289_v42 = vld [vmem:[%s7082_s3 + $0x58] sm:$0xff] }
 0x160   : > { %v690_v57 = vpop.xlane.xlu0 %689  ;;  %3748 = vpow2.f32 %v777_v55 }
 0x161   : > { %v693_v19 = vpop.xlane.xlu1 %692  ;;  %v723_v26 = vsub.f32 %v4720_v40, %v690_v57  ;;  %v724_v30 = vsub.f32 %v4724_v25, %v690_v57  ;;  %3750 = vpow2.f32 %v779_v24  ;;  %v4998_v40 = vpack.c.bf16 %v299_v59, %v298_v51  ;;  %v5000_v25 = vpop.eup %3736  ;;  %815 = vadd.xlane.f32.xlu0 %v814_v23  ;;  %7562 = vst [vmem:[#allocation26_spill] sm:$0xff] %v5002_v13  ;;  %v284_v24 = vld [vmem:[%s7082_s3 + $0x30] sm:$0xff]  ;;  %v303_v59 = vld [vmem:[%s7082_s3 + $0xc8] sm:$0xff] }
 0x162   : > { %v725_v38 = vsub.f32 %v4730_v17, %v693_v19  ;;  %v726_v58 = vsub.f32 %v4734_v61, %v693_v19  ;;  %3752 = vpow2.f32 %v775_v50  ;;  %v285_v17 = vld [vmem:[%s7082_s3 + $0x38] sm:$0xff]  ;;  %v817_v51 = vadd.f32 %v5000_v25, %v4993_v27  ;;  %v5021_v23 = vpop.eup %3738 }
 0x163   : > { %7561 = vst [vmem:[#allocation25_spill] sm:$0xff] %v4998_v40  ;;  %v781_v55 = vmul.f32 1.442695, %v723_v26  ;;  %v783_v57 = vmul.f32 1.442695, %v724_v30  ;;  %3422 = vmatprep.subr.bf16.mxu0 %v4998_v40  ;;  %v5013_v50 = vpack.c.bf16 %v301_v36, %v300_v46  ;;  %v5027_v46 = vpack.c.bf16 %v285_v17, %v284_v24  ;;  %v306_v40 = vld [vmem:[%s7082_s3 + $0xe0] sm:$0xff] }
 0x164   : > { %v785_v61 = vmul.f32 1.442695, %v725_v38  ;;  %v787_v19 = vmul.f32 1.442695, %v726_v58  ;;  %818 = vadd.xlane.f32.xlu1 %v817_v51  ;;  %3423 = vmatpush3.bf16.msra.mxu0 %v5002_v13  ;;  %v1112_v38 = vadd.f32 %v4770_v28, %v4846_v54 }
 0x165   : > { %7563 = vst [vmem:[#allocation28_spill] sm:$0xff] %v5013_v50  ;;  %3754 = vpow2.f32 %v781_v55  ;;  %v5023_v26 = vpop.eup %3740  ;;  %7564 = vst [vmem:[#allocation29_spill] sm:$0xff] %v5027_v46  ;;  %3424 = vmatprep.subr.bf16.mxu0 %v5013_v50  ;;  %v5035_v55 = vpack.c.bf16 %v303_v59, %v302_v48  ;;  %v1116_v48 = vadd.f32 %v4770_v28, %v4854_v32 }
 0x166   : > { %v696_v18 = vpop.xlane.xlu0 %695  ;;  %3756 = vpow2.f32 %v785_v61  ;;  %v5029_v36 = vpop.eup %3742  ;;  %v1176_v59 = vmul.f32 0.2, %v1112_v38  ;;  %vm1144_vm8 = vcmp.ge.f32.partialorder %v1112_v38, 0.0 }
 0x167   : > { %v727_v30 = vsub.f32 %v4753_v31, %v696_v18  ;;  %3758 = vpow2.f32 %v787_v19  ;;  %v728_v58 = vsub.f32 %v4757_v34, %v696_v18  ;;  %7565 = vst [vmem:[#allocation33_spill] sm:$0xff] %v5035_v55  ;;  %v5037_v61 = vpop.eup %3744  ;;  %v1113_v31 = vadd.f32 %v4772_v15, %v4846_v54  ;;  %v286_v34 = vld [vmem:[%s7082_s3 + $0x40] sm:$0xff]  ;;  %v287_v54 = vld [vmem:[%s7082_s3 + $0x48] sm:$0xff] }
 0x168   : > { %3760 = vpow2.f32 %v783_v57  ;;  %v823_v17 = vadd.f32 %v5029_v36, %v5023_v26  ;;  %v820_v19 = vadd.f32 %v5037_v61, %v5021_v23  ;;  %3425 = vmatpush3.bf16.msra.mxu0 %v5027_v46  ;;  %v5059_v18 = vpack.c.bf16 %v287_v54, %v286_v34 }
 0x169   : > { %v789_v24 = vmul.f32 1.442695, %v727_v30  ;;  %v791_v51 = vmul.f32 1.442695, %v728_v58  ;;  %v5045_v13 = vpop.eup %3746  ;;  %3426 = vmatprep.subr.bf16.mxu0 %v5035_v55  ;;  %v1114_v58 = vadd.f32 %v4770_v28, %v4849_v37  ;;  %v1115_v54 = vadd.f32 %v4772_v15, %v4849_v37  ;;  %v288_v37 = vld [vmem:[%s7082_s3 + $0x50] sm:$0xff] }
 0x16a   : > { %824 = vadd.xlane.f32.xlu1 %v823_v17  ;;  %v5054_v57 = vpop.eup %3748  ;;  %821 = vadd.xlane.f32.xlu0 %v820_v19  ;;  %7566 = vst [vmem:[#allocation34_spill] sm:$0xff] %v5059_v18  ;;  %v1177_v17 = vmul.f32 0.2, %v1113_v31  ;;  %v305_v19 = vld [vmem:[%s7082_s3 + $0xd8] sm:$0xff]  ;;  %v5085_v55 = vadd.f32 %v4772_v15, %v4860_v60  ;;  %vm7569_vm0 = vcmp.ge.f32.partialorder %v1113_v31, 0.0 }
 0x16b   : > { %3762 = vpow2.f32 %v789_v24  ;;  %v5061_v30 = vpop.eup %3750  ;;  %v1117_v24 = vadd.f32 %v4772_v15, %v4854_v32  ;;  %v5081_v32 = vadd.f32 %v4770_v28, %v4860_v60  ;;  %v1208_v60 = vsel %vm1144_vm8, %v1112_v38, %v1176_v59 }
 0x16c   : > { %3764 = vpow2.f32 %v791_v51  ;;  %v304_v51 = vld [vmem:[%s7082_s3 + $0xd0] sm:$0xff]  ;;  %v5073_v34 = vpop.eup %3752  ;;  %v829_v50 = vadd.f32 %v5061_v30, %v5054_v57  ;;  %3427 = vmatpush3.bf16.msra.mxu0 %v5059_v18  ;;  %v5104_v18 = vpack.c.bf16 %v289_v42, %v288_v37  ;;  %v1209_v53 = vsel %vm7569_vm0, %v1113_v31, %v1177_v17  ;;  %v290_v31 = vld [vmem:[%s7082_s3 + $0x60] sm:$0xff]  ;;  %v7571_v17 = vld [vmem:[#allocation15_spill] sm:$0xff] }
 0x16d   : > { %v826_v46 = vadd.f32 %v5073_v34, %v5045_v13  ;;  %v5102_v21 = vpack.c.bf16 %v305_v19, %v304_v51  ;;  %v1180_v52 = vmul.f32 0.2, %v1116_v48  ;;  %v1181_v56 = vmul.f32 0.2, %v1117_v24  ;;  %v7574_v37 = vld [vmem:[#allocation16_spill] sm:$0xff] }
 0x16e   : > { %830 = vadd.xlane.f32.xlu1 %v829_v50  ;;  %7568 = vst [vmem:[#allocation58_spill] sm:$0xff] %v5104_v18  ;;  %v1178_v0 = vmul.f32 0.2, %v1114_v58  ;;  %v1179_v38 = vmul.f32 0.2, %v1115_v54  ;;  %v5115_v42 = vpack.c.bf16 %v307_v33, %v306_v40  ;;  %v1122_v51 = vadd.f32 %v4770_v28, %v4864_v2  ;;  %v291_v33 = vld [vmem:[%s7082_s3 + $0x68] sm:$0xff] }
 0x16f   : > { %v5099_v5 = vpop.eup %3754  ;;  %7567 = vst [vmem:[#allocation57_spill] sm:$0xff] %v5102_v21  ;;  %827 = vadd.xlane.f32.xlu0 %v826_v46  ;;  %3428 = vmatprep.subr.bf16.mxu0 %v5102_v21  ;;  %vm7572_vm7 = vnez %v7571_v17  ;;  %vm7575_vm8 = vnez %v7574_v37  ;;  %vm7578_vm0 = vcmp.ge.f32.partialorder %v1116_v48, 0.0  ;;  %vm7579_vm15 = vcmp.ge.f32.partialorder %v1117_v24, 0.0  ;;  %v7616_v37 = vld [vmem:[#allocation44_spill] sm:$0xff] }
 0x170   : > { %v5109_v4 = vpop.eup %3756  ;;  %7570 = vst [vmem:[#allocation59_spill] sm:$0xff] %v5115_v42  ;;  %3429 = vmatpush3.bf16.msra.mxu0 %v5104_v18  ;;  %v5134_v19 = vsel %vm7572_vm7, %v1208_v60, -1e+09  ;;  %v5138_v21 = vsel %vm7575_vm8, %v1209_v53, -1e+09  ;;  %v5141_v18 = vpack.c.bf16 %v291_v33, %v290_v31  ;;  %v1212_v7 = vsel %vm7578_vm0, %v1116_v48, %v1180_v52  ;;  %v308_v53 = vld [vmem:[%s7082_s3 + $0xf0] sm:$0xff] }
 0x171   : > { %v5112_v50 = vpop.eup %3758  ;;  %7573 = vst [vmem:[#allocation60_spill] sm:$0xff] %v5134_v19  ;;  %7576 = vst [vmem:[#allocation61_spill] sm:$0xff] %v5138_v21  ;;  %3430 = vmatprep.subr.bf16.mxu0 %v5115_v42  ;;  %v1213_v17 = vsel %vm7579_vm15, %v1117_v24, %v1181_v56  ;;  %vm7580_vm7 = vcmp.ge.f32.partialorder %v1114_v58, 0.0  ;;  %v309_v31 = vld [vmem:[%s7082_s3 + $0xf8] sm:$0xff]  ;;  %vm7581_vm8 = vcmp.ge.f32.partialorder %v1115_v54, 0.0  ;;  %vm1150_vm15 = vcmp.ge.f32.partialorder %v5081_v32, 0.0 }
 0x172   : > { %v5117_v59 = vpop.eup %3760  ;;  %v835_v46 = vadd.f32 %v5112_v50, %v5109_v4  ;;  %7577 = vst [vmem:[#allocation62_spill] sm:$0xff] %v5141_v18  ;;  %v1210_v60 = vsel %vm7580_vm7, %v1114_v58, %v1178_v0  ;;  %v1211_v2 = vsel %vm7581_vm8, %v1115_v54, %v1179_v38  ;;  %v1183_v52 = vmul.f32 0.2, %v5085_v55  ;;  %v292_v58 = vld [vmem:[%s7082_s3 + $0x70] sm:$0xff]  ;;  %v293_v24 = vld [vmem:[%s7082_s3 + $0x78] sm:$0xff] }
 0x173   : > { %v832_v40 = vadd.f32 %v5117_v59, %v5099_v5  ;;  %v5161_v56 = vpack.c.bf16 %v309_v31, %v308_v53  ;;  %v1278_v0 = vmax.f32 %v5134_v19, %v5138_v21  ;;  %vm1151_vm7 = vcmp.ge.f32.partialorder %v5085_v55, 0.0  ;;  %v7591_v19 = vld [vmem:[#allocation22_spill] sm:$0xff] }
 0x174   : > { %836 = vadd.xlane.f32.xlu1 %v835_v46  ;;  %v1182_v46 = vmul.f32 0.2, %v5081_v32  ;;  %3431 = vmatpush3.bf16.msra.mxu0 %v5141_v18  ;;  %v5178_v38 = vsel %vm4498_vm13, %v1212_v7, -1e+09  ;;  %v5182_v53 = vsel %vm4506_vm11, %v1213_v17, -1e+09  ;;  %v5185_v31 = vpack.c.bf16 %v293_v24, %v292_v58 }
 0x175   : > { %v5143_v41 = vpop.eup %3762  ;;  %833 = vadd.xlane.f32.xlu0 %v832_v40  ;;  %7582 = vst [vmem:[#allocation63_spill] sm:$0xff] %v5161_v56  ;;  %7584 = vst [vmem:[#allocation64_spill] sm:$0xff] %v5178_v38  ;;  %3432 = vmatprep.subr.bf16.mxu0 %v5161_v56  ;;  %v7588_v18 = vld [vmem:[#allocation21_spill] sm:$0xff]  ;;  %vm7592_vm0 = vnez %v7591_v19  ;;  %v1215_v40 = vsel %vm1151_vm7, %v5085_v55, %v1183_v52  ;;  %v1186_v17 = vmul.f32 0.2, %v1122_v51  ;;  %vm1154_vm11 = vcmp.ge.f32.partialorder %v1122_v51, 0.0 }
 0x176   : > { %v5156_v33 = vpop.eup %3764  ;;  %7586 = vst [vmem:[#allocation65_spill] sm:$0xff] %v5182_v53  ;;  %7587 = vst [vmem:[#allocation66_spill] sm:$0xff] %v5185_v31  ;;  %vm7589_vm8 = vnez %v7588_v18  ;;  %v5193_v42 = vsel %vm7592_vm0, %v1211_v2, -1e+09  ;;  %v1214_v7 = vsel %vm1150_vm15, %v5081_v32, %v1182_v46  ;;  %v1187_v54 = vmul.f32 0.2, %v1123_v29 }
 0x177   : > { %v838_v48 = vadd.f32 %v5156_v33, %v5143_v41  ;;  %v5189_v21 = vsel %vm7589_vm8, %v1210_v60, -1e+09  ;;  %7593 = vst [vmem:[#allocation68_spill] sm:$0xff] %v5193_v42  ;;  %v1284_v58 = vmax.f32 %v5178_v38, %v5182_v53  ;;  %vm1155_vm13 = vcmp.ge.f32.partialorder %v1123_v29, 0.0  ;;  %v7594_v2 = vld [vmem:[#allocation27_spill] sm:$0xff] }
 0x178   : > { %1279 = vmax.xlane.f32.xlu1 %v1278_v0  ;;  %7590 = vst [vmem:[#allocation67_spill] sm:$0xff] %v5189_v21  ;;  %3433 = vmatpush3.bf16.msra.mxu0 %v5185_v31  ;;  %v1281_v60 = vmax.f32 %v5189_v21, %v5193_v42  ;;  %vm7595_vm0 = vnez %v7594_v2  ;;  %v5208_v46 = vsel %vm4542_vm14, %v1215_v40, -1e+09  ;;  %v1218_v52 = vsel %vm1154_vm11, %v1122_v51, %v1186_v17  ;;  %v5224_v51 = vld [vmem:[%s4194_s21 + $0x18] sm:$0xff]  ;;  %v5229_v17 = vld [vmem:[%s4194_s21 + $0x28] sm:$0xff] }
 0x179   : > { %839 = vadd.xlane.f32.xlu0 %v838_v48  ;;  %v5204_v32 = vsel %vm7595_vm0, %v1214_v7, -1e+09  ;;  %7598 = vst [vmem:[#allocation70_spill] sm:$0xff] %v5208_v46  ;;  %v1219_v0 = vsel %vm1155_vm13, %v1123_v29, %v1187_v54  ;;  %v4118_v29 = vld [vmem:[%s4194_s21] sm:$0xff]  ;;  %v1121_v24 = vadd.f32 %v4772_v15, %v4852_v20 }
 0x17a   : > { %7596 = vst [vmem:[#allocation69_spill] sm:$0xff] %v5204_v32  ;;  %v1287_v48 = vmax.f32 %v5204_v32, %v5208_v46  ;;  %v5218_v7 = vsel %vm4594_vm2, %v1219_v0, -1e+09  ;;  %v4120_v54 = vld [vmem:[%s4194_s21 + $0x20] sm:$0xff]  ;;  %v1072_v46 = vpop.permute.xlu1 %1071 }
 0x17b   : > { %7602 = vst [vmem:[#allocation72_spill] sm:$0xff] %v5218_v7  ;;  %v4124_v0 = vld [vmem:[%s4194_s21 + $0x40] sm:$0xff]  ;;  %v1127_v53 = vadd.f32 %v4772_v15, %v1072_v46  ;;  %v1185_v18 = vmul.f32 0.2, %v1121_v24 }
 0x17c   : > { %1285 = vmax.xlane.f32.xlu1 %v1284_v58  ;;  %v5214_v58 = vsel %vm4588_vm4, %v1218_v52, -1e+09  ;;  %v4123_v52 = vld [vmem:[%s4194_s21 + $0x38] sm:$0xff] }
 0x17d   : > { %1282 = vmax.xlane.f32.xlu0 %v1281_v60  ;;  %7600 = vst [vmem:[#allocation71_spill] sm:$0xff] %v5214_v58  ;;  %v1293_v40 = vmax.f32 %v5214_v58, %v5218_v7  ;;  %v5233_v60 = vld [vmem:[%s4194_s21 + $0x30] sm:$0xff]  ;;  %v5245_v7 = vld [vmem:[%s4194_s21 + $0x60] sm:$0xff]  ;;  %v5254_v58 = vpop.permute.xlu0 %1075  ;;  %v1191_v31 = vmul.f32 0.2, %v1127_v53  ;;  %vm1159_vm11 = vcmp.ge.f32.partialorder %v1127_v53, 0.0 }
 0x17e   : > { %v1080_v38 = vpop.permute.xlu1 %1079 }
 0x17f   : > { %v1130_v56 = vadd.f32 %v4770_v28, %v1080_v38  ;;  %v1131_v42 = vadd.f32 %v4772_v15, %v1080_v38  ;;  %v1223_v2 = vsel %vm1159_vm11, %v1127_v53, %v1191_v31  ;;  %vm1153_vm11 = vcmp.ge.f32.partialorder %v1121_v24, 0.0 }
 0x180   : > { %v5278_v62 = vsel %vm4641_vm12, %v1223_v2, -1e+09  ;;  %v1217_v2 = vsel %vm1153_vm11, %v1121_v24, %v1185_v18 }
 0x181   : > { %1288 = vmax.xlane.f32.xlu0 %v1287_v48  ;;  %v5239_v48 = vld [vmem:[%s4194_s21 + $0x50] sm:$0xff]  ;;  %vm1162_vm15 = vcmp.ge.f32.partialorder %v1130_v56, 0.0  ;;  %vm1163_vm7 = vcmp.ge.f32.partialorder %v1131_v42, 0.0  ;;  %7612 = vst [vmem:[#allocation78_spill] sm:$0xff] %v5278_v62 }
 0x185   : > { %1294 = vmax.xlane.f32.xlu0 %v1293_v40  ;;  %v4126_v40 = vld [vmem:[%s4194_s21 + $0x58] sm:$0xff] }
 0x18d   : > { %2321 = vperm.xlu1 %3697, %v4118_v29  }
 0x191   : > { %2333 = vperm.xlu1 %3697, %v5224_v51  }
 0x195   : > { %2337 = vperm.xlu1 %3697, %v4120_v54  }
 0x199   : > { %2341 = vperm.xlu1 %3697, %v5229_v17  }
 0x19a   : > { %v5268_v38 = vpop.xlane.xlu1 %1264 }
 0x19b   : > { %1678 = vperm.xlu0 %3699, %v4118_v29   ;;  %v4127_v29 = vld [vmem:[%s4194_s21 + $0x68] sm:$0xff]  ;;  %v5256_v32 = vpop.xlane.xlu0 %1261  ;;  %7607 = vst [vmem:[#allocation75_spill] sm:$0xff] %v5268_v38 }
 0x19c   : > { %7605 = vst [vmem:[#allocation73_spill] sm:$0xff] %v5256_v32  ;;  %v1195_v32 = vmul.f32 0.2, %v1131_v42 }
 0x19d   : > { %2345 = vperm.xlu1 %3697, %v5233_v60  }
 0x19e   : > { %v1227_v53 = vsel %vm1163_vm7, %v1131_v42, %v1195_v32  ;;  %v5292_v38 = vpop.xlane.xlu1 %1267 }
 0x19f   : > { %1694 = vperm.xlu0 %3699, %v4120_v54   ;;  %v5249_v54 = vld [vmem:[%s4194_s21 + $0x78] sm:$0xff]  ;;  %v5262_v21 = vpop.xlane.xlu0 %1270 }
 0x1a0   : > { %7606 = vst [vmem:[#allocation74_spill] sm:$0xff] %v5262_v21 }
 0x1a1   : > { %2349 = vperm.xlu1 %3697, %v4123_v52  }
 0x1a3   : > { %1706 = vperm.xlu0 %3699, %v4123_v52   ;;  %v7603_v52 = vmov 3   ;;  %v5270_v21 = vpop.xlane.xlu0 %1276 }
 0x1a4   : > { %7608 = vst [vmem:[#allocation76_spill] sm:$0xff] %v5270_v21 }
 0x1a5   : > { %2353 = vperm.xlu1 %3697, %v4124_v0  }
 0x1a7   : > { %1710 = vperm.xlu0 %3699, %v4124_v0   ;;  %v7604_v0 = vmov 2  }
 0x1a9   : > { %2361 = vperm.xlu1 %3697, %v5239_v48  }
 0x1ab   : > { %1722 = vperm.xlu0 %3699, %v4126_v40  }
 0x1ad   : > { %2365 = vperm.xlu1 %3697, %v4126_v40   ;;  %v1126_v40 = vadd.f32 %v4770_v28, %v1072_v46  ;;  %v1194_v46 = vmul.f32 0.2, %v1130_v56 }
 0x1af   : > { %1730 = vperm.xlu0 %3699, %v4127_v29   ;;  %vm1158_vm13 = vcmp.ge.f32.partialorder %v1126_v40, 0.0 }
 0x1b1   : > { %2369 = vperm.xlu1 %3697, %v5245_v7  }
 0x1b3   : > { %1738 = vperm.xlu0 %3699, %v5249_v54  }
 0x1b5   : > { %2373 = vperm.xlu1 %3697, %v4127_v29   ;;  %v1190_v29 = vmul.f32 0.2, %v1126_v40 }
 0x1b7   : > { %3701 = vset.pattern.permute.xlu0 %v7603_v52  ;;  %v1222_v55 = vsel %vm1158_vm13, %v1126_v40, %v1190_v29  ;;  %v5282_v40 = vpop.permute.xlu0 %2325  ;;  %v7613_v29 = vld [vmem:[#allocation43_spill] sm:$0xff] }
 0x1b8   : > { %v5274_v6 = vsel %vm4635_vm9, %v1222_v55, -1e+09  ;;  %vm7614_vm2 = vnez %v7613_v29  ;;  %vm7617_vm9 = vnez %v7616_v37 }
 0x1b9   : > { %3698 = vset.pattern.permute.xlu1 %v7604_v0  ;;  %v1120_v0 = vadd.f32 %v4770_v28, %v4852_v20  ;;  %7610 = vst [vmem:[#allocation77_spill] sm:$0xff] %v5274_v6  ;;  %v1226_v20 = vsel %vm1162_vm15, %v1130_v56, %v1194_v46  ;;  %v1299_v31 = vmax.f32 %v5274_v6, %v5278_v62  ;;  %v5290_v55 = vsel %vm7617_vm9, %v1227_v53, -1e+09  ;;  %v7619_v56 = vld [vmem:[#allocation31_spill] sm:$0xff]  ;;  %v7622_v46 = vld [vmem:[#allocation32_spill] sm:$0xff] }
 0x1ba   : > { %v5286_v21 = vsel %vm7614_vm2, %v1226_v20, -1e+09  ;;  %7618 = vst [vmem:[#allocation80_spill] sm:$0xff] %v5290_v55  ;;  %vm7620_vm15 = vnez %v7619_v56  ;;  %vm7623_vm7 = vnez %v7622_v46 }
 0x1bb   : > { %v1184_v19 = vmul.f32 0.2, %v1120_v0  ;;  %vm1152_vm13 = vcmp.ge.f32.partialorder %v1120_v0, 0.0  ;;  %7615 = vst [vmem:[#allocation79_spill] sm:$0xff] %v5286_v21  ;;  %v1305_v42 = vmax.f32 %v5286_v21, %v5290_v55  ;;  %v5302_v20 = vsel %vm7623_vm7, %v1217_v2, -1e+09  ;;  %v5304_v53 = vpop.permute.xlu0 %2329 }
 0x1bc   : > { %7624 = vst [vmem:[#allocation81_spill] sm:$0xff] %v5302_v20  ;;  %v4130_v55 = vld [vmem:[%s4194_s21 + $0x8] sm:$0xff] }
 0x1bd   : > { %v1216_v63 = vsel %vm1152_vm13, %v1120_v0, %v1184_v19  ;;  %v5308_v19 = vpop.xlane.xlu1 %1273 }
 0x1be   : > { %v5298_v32 = vsel %vm7620_vm15, %v1216_v63, -1e+09 }
 0x1bf   : > { %7621 = vst [vmem:[#allocation31_spill] sm:$0xff] %v5298_v32  ;;  %v1290_v18 = vmax.f32 %v5298_v32, %v5302_v20  ;;  %v5310_v0 = vpop.permute.xlu0 %2357 }
 0x1cd   : > { %v795_v24 = vpop.xlane.xlu1 %794 }
 0x1ce   : > { %3766 = vrcp.f32 %v795_v24 }
 0x1d2   : > { %1300 = vmax.xlane.f32.xlu0 %v1299_v31 }
 0x1d4   : > { %v801_v63 = vpop.xlane.xlu1 %800 }
 0x1d6   : > { %1306 = vmax.xlane.f32.xlu0 %v1305_v42 }
 0x1d8   : > { %v3767_v37 = vpop.eup %3766 }
 0x1d9   : > { %1291 = vmax.xlane.f32.xlu1 %v1290_v18  ;;  %v4131_v18 = vld [vmem:[%s4194_s21 + $0x10] sm:$0xff]  ;;  %v858_v62 = vmul.f32 %v3767_v37, %v4876_v8  ;;  %v857_v6 = vmul.f32 %v3767_v37, %v4874_v44 }
 0x1db   : > { %v807_v42 = vpop.xlane.xlu1 %806 }
 0x1e0   : > { %v798_v31 = vpop.xlane.xlu0 %797 }
 0x1e1   : > { %3768 = vrcp.f32 %v798_v31 }
 0x1e2   : > { %3770 = vrcp.f32 %v801_v63 }
 0x1e4   : > { %v804_v2 = vpop.xlane.xlu0 %803 }
 0x1e5   : > { %3772 = vrcp.f32 %v804_v2 }
 0x1e6   : > { %3774 = vrcp.f32 %v807_v42 }
 0x1e8   : > { %v813_v2 = vpop.xlane.xlu1 %812 }
 0x1ea   : > { %1682 = vperm.xlu1 %3698, %v4130_v55   ;;  %v810_v29 = vpop.xlane.xlu0 %809 }
 0x1eb   : > { %v3769_v21 = vpop.eup %3768  ;;  %3776 = vrcp.f32 %v810_v29 }
 0x1ec   : > { %v860_v24 = vmul.f32 %v3769_v21, %v4894_v43  ;;  %v859_v63 = vmul.f32 %v3769_v21, %v4892_v9  ;;  %v3771_v31 = vpop.eup %3770 }
 0x1ed   : > { %v862_v29 = vmul.f32 %v3771_v31, %v4886_v39 }
 0x1ee   : > { %1686 = vperm.xlu1 %3698, %v4131_v18   ;;  %v816_v20 = vpop.xlane.xlu0 %815  ;;  %v890_v32 = vpack.c.bf16 %v860_v24, %v858_v62  ;;  %v889_v55 = vpack.c.bf16 %v859_v63, %v857_v6  ;;  %v861_v6 = vmul.f32 %v3771_v31, %v4884_v10 }
 0x1ef   : > { %v3773_v46 = vpop.eup %3772  ;;  %3778 = vrcp.f32 %v816_v20 }
 0x1f0   : > { %953 = vmatprep.mubr.bf16.mxu0 %v890_v32  ;;  %v864_v8 = vmul.f32 %v3773_v46, %v4900_v47  ;;  %3780 = vrcp.f32 %v813_v2  ;;  %v3775_v44 = vpop.eup %3774  ;;  %v863_v21 = vmul.f32 %v3773_v46, %v4896_v49  ;;  %v4132_v46 = vld [vmem:[%s4194_s21 + $0x48] sm:$0xff] }
 0x1f1   : > { %954 = vmatmul.mubr.bf16.vlgmr.msra.gmra.mrb[0].mxu0 %v889_v55  ;;  %v819_v9 = vpop.xlane.xlu1 %818 }
 0x1f2   : > { %1690 = vperm.xlu1 %3698, %v5224_v51   ;;  %v892_v43 = vpack.c.bf16 %v864_v8, %v862_v29  ;;  %v866_v51 = vmul.f32 %v3775_v44, %v4908_v16  ;;  %v891_v47 = vpack.c.bf16 %v863_v21, %v861_v6  ;;  %v865_v16 = vmul.f32 %v3775_v44, %v4906_v1  ;;  %v4133_v29 = vld [vmem:[%s4194_s21 + $0x70] sm:$0xff] }
 0x1f4   : > { %961 = vmatprep.mubr.bf16.mxu0 %v892_v43 }
 0x1f5   : > { %v3777_v62 = vpop.eup %3776 }
 0x1f6   : > { %1698 = vperm.xlu1 %3698, %v5229_v17   ;;  %v868_v39 = vmul.f32 %v3777_v62, %v4938_v14  ;;  %v867_v17 = vmul.f32 %v3777_v62, %v4916_v35 }
 0x1f7   : > { %v822_v37 = vpop.xlane.xlu0 %821  ;;  %v825_v14 = vpop.xlane.xlu1 %824 }
 0x1f8   : > { %3782 = vrcp.f32 %v822_v37  ;;  %v894_v32 = vpack.c.bf16 %v868_v39, %v866_v51 }
 0x1f9   : > { %v3779_v20 = vpop.eup %3778  ;;  %3784 = vrcp.f32 %v819_v9  ;;  %962 = vmatmul.mubr.bf16.gmra.mrb[4].mxu0 %v891_v47 }
 0x1fa   : > { %1702 = vperm.xlu1 %3698, %v5233_v60   ;;  %969 = vmatprep.mubr.bf16.mxu0 %v894_v32  ;;  %v3781_v49 = vpop.eup %3780  ;;  %v872_v42 = vmul.f32 %v3779_v20, %v4970_v45  ;;  %v893_v60 = vpack.c.bf16 %v867_v17, %v865_v16  ;;  %v871_v31 = vmul.f32 %v3779_v20, %v4962_v11 }
 0x1fb   : > { %v870_v18 = vmul.f32 %v3781_v49, %v4934_v22  ;;  %v869_v22 = vmul.f32 %v3781_v49, %v4924_v12  ;;  %v831_v45 = vpop.xlane.xlu1 %830 }
 0x1fc   : > { %v828_v10 = vpop.xlane.xlu0 %827 }
 0x1fd   : > { %3786 = vrcp.f32 %v828_v10  ;;  %v896_v24 = vpack.c.bf16 %v872_v42, %v870_v18  ;;  %v7625_v10 = vld [vmem:[#allocation2_spill] sm:$0xff] }
 0x1fe   : > { %1714 = vperm.xlu1 %3698, %v4132_v46   ;;  %3788 = vrcp.f32 %v825_v14  ;;  %v1743_v46 = vsub.s32 2, %v7625_v10  ;;  %v1747_v42 = vsub.s32 6, %v7625_v10 }
 0x201   : > { %970 = vmatmul.mubr.bf16.gmra.mrb[8].mxu0 %v893_v60 }
 0x202   : > { %1718 = vperm.xlu1 %3698, %v5239_v48   ;;  %v3783_v63 = vpop.eup %3782  ;;  %977 = vmatprep.mubr.bf16.mxu0 %v896_v24  ;;  %v834_v2 = vpop.xlane.xlu0 %833  ;;  %v895_v48 = vpack.c.bf16 %v871_v31, %v869_v22  ;;  %v1125_v24 = vadd.f32 %v4772_v15, %v4857_v3 }
 0x203   : > { %v3785_v35 = vpop.eup %3784  ;;  %v876_v1 = vmul.f32 %v3783_v63, %v5037_v61  ;;  %3790 = vrcp.f32 %v834_v2  ;;  %v875_v44 = vmul.f32 %v3783_v63, %v5021_v23  ;;  %v837_v61 = vpop.xlane.xlu1 %836 }
 0x204   : > { %v874_v55 = vmul.f32 %v3785_v35, %v5000_v25  ;;  %3792 = vrcp.f32 %v831_v45  ;;  %v873_v25 = vmul.f32 %v3785_v35, %v4993_v27  ;;  %v2386_v35 = vsub.s32 3, %v7625_v10 }
 0x205   : > { %vm1157_vm11 = vcmp.ge.f32.partialorder %v1125_v24, 0.0 }
 0x206   : > { %1726 = vperm.xlu1 %3698, %v5245_v7   ;;  %v898_v8 = vpack.c.bf16 %v876_v1, %v874_v55  ;;  %v840_v7 = vpop.xlane.xlu0 %839  ;;  %v897_v62 = vpack.c.bf16 %v875_v44, %v873_v25  ;;  %v1189_v55 = vmul.f32 0.2, %v1125_v24 }
 0x207   : > { %v3787_v43 = vpop.eup %3786  ;;  %3794 = vrcp.f32 %v840_v7 }
 0x208   : > { %v3789_v11 = vpop.eup %3788  ;;  %v880_v12 = vmul.f32 %v3787_v43, %v5073_v34  ;;  %3796 = vrcp.f32 %v837_v61  ;;  %v1221_v25 = vsel %vm1157_vm11, %v1125_v24, %v1189_v55 }
 0x209   : > { %978 = vmatmul.mubr.bf16.gmra.mrb[12].mxu0 %v895_v48  ;;  %v878_v21 = vmul.f32 %v3789_v11, %v5029_v36  ;;  %v877_v37 = vmul.f32 %v3789_v11, %v5023_v26  ;;  %v5349_v36 = vpop.xlane.xlu1 %1279  ;;  %v1128_v48 = vadd.f32 %v4770_v28, %v5254_v58 }
 0x20a   : > { %1734 = vperm.xlu1 %3698, %v4133_v29   ;;  %985 = vmatprep.mubr.bf16.mxu0 %v898_v8  ;;  %v5351_v39 = vpop.xlane.xlu0 %1282 }
 0x20b   : > { %v900_v6 = vpack.c.bf16 %v880_v12, %v878_v21  ;;  %v1192_v44 = vmul.f32 0.2, %v1128_v48  ;;  %vm1160_vm9 = vcmp.ge.f32.partialorder %v1128_v48, 0.0 }
 0x20d   : > { %v3791_v9 = vpop.eup %3790  ;;  %v5356_v49 = vpop.xlane.xlu1 %1285 }
 0x20e   : > { %3700 = vset.pattern.permute.xlu1 %v7603_v52  ;;  %v3793_v23 = vpop.eup %3792  ;;  %v879_v52 = vmul.f32 %v3787_v43, %v5045_v13  ;;  %v884_v34 = vmul.f32 %v3791_v9, %v5117_v59  ;;  %v883_v20 = vmul.f32 %v3791_v9, %v5099_v5  ;;  %v5358_v26 = vpop.xlane.xlu0 %1288  ;;  %v7629_v9 = vld [vmem:[#allocation38_spill] sm:$0xff] }
 0x20f   : > { %2377 = vperm.xlu1 %3700, %v4133_v29   ;;  %v882_v27 = vmul.f32 %v3793_v23, %v5061_v30  ;;  %v881_v59 = vmul.f32 %v3793_v23, %v5054_v57  ;;  %v4134_v57 = vld [vmem:[%s7080_s1] sm:$0xff]  ;;  %vm7630_vm15 = vnez %v7629_v9 }
 0x210   : > { %v899_v51 = vpack.c.bf16 %v879_v52, %v877_v37  ;;  %v1748_v14 = vrot.slane %v4134_v57, %v1747_v42  ;;  %v2387_v29 = vrot.slane %v4134_v57, %v2386_v35  ;;  %v5400_v23 = vsel %vm7630_vm15, %v1221_v25, -1e+09 }
 0x211   : > { %986 = vmatmul.mubr.bf16.gmra.mrb[16].mxu0 %v897_v62  ;;  %v902_v47 = vpack.c.bf16 %v884_v34, %v882_v27  ;;  %v3795_v32 = vpop.eup %3794  ;;  %v901_v17 = vpack.c.bf16 %v883_v20, %v881_v59  ;;  %v2322_v18 = vpop.permute.xlu1 %2321  ;;  %v7626_v62 = vld [vmem:[#allocation37_spill] sm:$0xff]  ;;  %v1224_v37 = vsel %vm1160_vm9, %v1128_v48, %v1192_v44 }
 0x212   : > { %993 = vmatprep.mubr.bf16.mxu0 %v900_v6  ;;  %v888_v13 = vmul.f32 %v3795_v32, %v5156_v33  ;;  %v887_v5 = vmul.f32 %v3795_v32, %v5143_v41  ;;  %v1744_v33 = vrot.slane %v4134_v57, %v1743_v46  ;;  %v5367_v60 = vpop.xlane.xlu0 %1294  ;;  %v2390_v41 = vsub.s32 7, %v7625_v10  ;;  %7631 = vst [vmem:[#allocation37_spill] sm:$0xff] %v5400_v23 }
 0x213   : > { %2381 = vperm.xlu1 %3700, %v5249_v54   ;;  %v3797_v54 = vpop.eup %3796  ;;  %v5378_v1 = vrot.slane %v1748_v14, %v1743_v46  ;;  %vm7627_vm7 = vnez %v7626_v62 }
 0x214   : > { %v886_v30 = vmul.f32 %v3797_v54, %v5112_v50  ;;  %v1124_v50 = vadd.f32 %v4770_v28, %v4857_v3  ;;  %v885_v63 = vmul.f32 %v3797_v54, %v5109_v4  ;;  %v5376_v2 = vrot.slane %v1744_v33, %v1743_v46  ;;  %v7632_v54 = vld [vmem:[#allocation41_spill] sm:$0xff]  ;;  %v7638_v46 = vld [vmem:[#allocation3_spill] sm:$0xff] }
 0x215   : > { %v1129_v3 = vadd.f32 %v4772_v15, %v5254_v58  ;;  %v5384_v4 = vpop.permute.xlu1 %2333  ;;  %v2391_v8 = vrot.slane %v4134_v57, %v2390_v41  ;;  %v5388_v28 = vrot.slane %v2387_v29, %v2386_v35 }
 0x216   : > { %v904_v16 = vpack.c.bf16 %v888_v13, %v886_v30  ;;  %v903_v31 = vpack.c.bf16 %v887_v5, %v885_v63  ;;  %v1188_v45 = vmul.f32 0.2, %v1124_v50  ;;  %vm1156_vm13 = vcmp.ge.f32.partialorder %v1124_v50, 0.0  ;;  %v7635_v13 = vld [vmem:[#allocation42_spill] sm:$0xff] }
 0x217   : > { %v1193_v7 = vmul.f32 0.2, %v1129_v3  ;;  %vm1161_vm2 = vcmp.ge.f32.partialorder %v1129_v3, 0.0  ;;  %v5390_v15 = vrot.slane %v2391_v8, %v2386_v35  ;;  %v2402_v52 = vadd.f32 %v5388_v28, %v2322_v18 }
 0x218   : > { %v1220_v12 = vsel %vm1156_vm13, %v1124_v50, %v1188_v45  ;;  %vm7633_vm13 = vnez %v7632_v54  ;;  %vm7636_vm11 = vnez %v7635_v13  ;;  %v2404_v55 = vadd.f32 %v5388_v28, %v5282_v40 }
 0x219   : > { %994 = vmatmul.mubr.bf16.gmra.mrb[20].mxu0 %v899_v51  ;;  %v5392_v21 = vpop.permute.xlu1 %2337  ;;  %v5396_v6 = vsel %vm7627_vm7, %v1220_v12, -1e+09  ;;  %v2403_v34 = vadd.f32 %v5390_v15, %v2322_v18  ;;  %v1225_v27 = vsel %vm1161_vm2, %v1129_v3, %v1193_v7  ;;  %v5408_v20 = vsel %vm7633_vm13, %v1224_v37, -1e+09 }
 0x21a   : > { %1001 = vmatprep.mubr.bf16.mxu0 %v902_v47  ;;  %v1679_v22 = vpop.permute.xlu0 %1678  ;;  %7628 = vst [vmem:[#allocation2_spill] sm:$0xff] %v5396_v6  ;;  %v1296_v51 = vmax.f32 %v5396_v6, %v5400_v23  ;;  %7634 = vst [vmem:[#allocation38_spill] sm:$0xff] %v5408_v20  ;;  %v5412_v59 = vsel %vm7636_vm11, %v1225_v27, -1e+09  ;;  %v2466_v30 = vmul.f32 0.2, %v2402_v52  ;;  %vm7639_vm2 = vnez %v7638_v46 }
 0x21b   : > { %v1759_v43 = vadd.f32 %v5376_v2, %v1679_v22  ;;  %v1760_v11 = vadd.f32 %v5378_v1, %v1679_v22  ;;  %7637 = vst [vmem:[#allocation41_spill] sm:$0xff] %v5412_v59  ;;  %vm2434_vm15 = vcmp.ge.f32.partialorder %v2402_v52, 0.0  ;;  %vm2435_vm7 = vcmp.ge.f32.partialorder %v2403_v34, 0.0  ;;  %v7729_v6 = vld [vmem:[#allocation23_spill] sm:$0xff] }
 0x21c   : > { %v1302_v57 = vmax.f32 %v5408_v20, %v5412_v59  ;;  %v2498_v14 = vsel %vm2434_vm15, %v2402_v52, %v2466_v30  ;;  %v2405_v48 = vadd.f32 %v5390_v15, %v5282_v40  ;;  %v2406_v29 = vadd.f32 %v5388_v28, %v5304_v53 }
 0x21d   : > { %v1823_v58 = vmul.f32 0.2, %v1759_v43  ;;  %v1824_v61 = vmul.f32 0.2, %v1760_v11  ;;  %vm1791_vm12 = vcmp.ge.f32.partialorder %v1759_v43, 0.0  ;;  %vm1792_vm4 = vcmp.ge.f32.partialorder %v1760_v11, 0.0  ;;  %v5414_v10 = vpop.permute.xlu1 %2341 }
 0x21e   : > { %v5432_v24 = vsel %vm7639_vm2, %v2498_v14, -1e+09  ;;  %v2407_v8 = vadd.f32 %v5390_v15, %v5304_v53  ;;  %v2470_v44 = vmul.f32 0.2, %v2406_v29  ;;  %vm2436_vm9 = vcmp.ge.f32.partialorder %v2404_v55, 0.0  ;;  %v7649_v53 = vld [vmem:[#allocation8_spill] sm:$0xff] }
 0x21f   : > { %v1855_v47 = vsel %vm1791_vm12, %v1759_v43, %v1823_v58  ;;  %v1856_v32 = vsel %vm1792_vm4, %v1760_v11, %v1824_v61  ;;  %v2468_v43 = vmul.f32 0.2, %v2404_v55  ;;  %v2469_v11 = vmul.f32 0.2, %v2405_v48 }
 0x220   : > { %v5418_v42 = vsel %vm7639_vm2, %v1855_v47, -1e+09  ;;  %v2471_v7 = vmul.f32 0.2, %v2407_v8  ;;  %vm2437_vm12 = vcmp.ge.f32.partialorder %v2405_v48, 0.0  ;;  %vm2438_vm15 = vcmp.ge.f32.partialorder %v2406_v29, 0.0 }
 0x221   : > { %1002 = vmatmul.mubr.bf16.gmra.mrb[24].mxu0 %v901_v17  ;;  %v2467_v17 = vmul.f32 0.2, %v2403_v34  ;;  %7640 = vst [vmem:[#allocation42_spill] sm:$0xff] %v5418_v42  ;;  %v5428_v50 = vpop.permute.xlu1 %2345  ;;  %v2500_v25 = vsel %vm2436_vm9, %v2404_v55, %v2468_v43  ;;  %v2501_v40 = vsel %vm2437_vm12, %v2405_v48, %v2469_v11  ;;  %v2502_v58 = vsel %vm2438_vm15, %v2406_v29, %v2470_v44  ;;  %v1695_v48 = vpop.permute.xlu0 %1694 }
 0x222   : > { %1009 = vmatprep.mubr.bf16.mxu0 %v904_v16  ;;  %v7641_v16 = vld [vmem:[#allocation4_spill] sm:$0xff]  ;;  %v2409_v47 = vadd.f32 %v5390_v15, %v5384_v4  ;;  %v5476_v30 = vsel %vm7535_vm1, %v2502_v58, -1e+09  ;;  %v5494_v55 = vadd.f32 %v5390_v15, %v5392_v21  ;;  %v1767_v44 = vadd.f32 %v5376_v2, %v1695_v48 }
 0x223   : > { %vm7642_vm4 = vnez %v7641_v16  ;;  %v2499_v18 = vsel %vm2435_vm7, %v2403_v34, %v2467_v17  ;;  %7644 = vst [vmem:[#allocation4_spill] sm:$0xff] %v5432_v24  ;;  %vm2439_vm7 = vcmp.ge.f32.partialorder %v2407_v8, 0.0  ;;  %v7646_v34 = vld [vmem:[#allocation7_spill] sm:$0xff]  ;;  %7653 = vst [vmem:[#allocation5_spill] sm:$0xff] %v5476_v30  ;;  %v5484_v16 = vadd.f32 %v5388_v28, %v5392_v21 }
 0x224   : > { %v5422_v5 = vsel %vm7642_vm4, %v1856_v32, -1e+09  ;;  %v5436_v63 = vsel %vm7642_vm4, %v2499_v18, -1e+09  ;;  %v2503_v61 = vsel %vm2439_vm7, %v2407_v8, %v2471_v7  ;;  %vm7647_vm2 = vnez %v7646_v34 }
 0x225   : > { %7643 = vst [vmem:[#allocation3_spill] sm:$0xff] %v5422_v5  ;;  %v1919_v33 = vmax.f32 %v5418_v42, %v5422_v5  ;;  %7645 = vst [vmem:[#allocation82_spill] sm:$0xff] %v5436_v63  ;;  %v2562_v35 = vmax.f32 %v5432_v24, %v5436_v63  ;;  %v5440_v41 = vpop.permute.xlu1 %2349  ;;  %v5464_v37 = vsel %vm7647_vm2, %v2500_v25, -1e+09  ;;  %vm7650_vm4 = vnez %v7649_v53 }
 0x226   : > { %7648 = vst [vmem:[#allocation7_spill] sm:$0xff] %v5464_v37  ;;  %v5468_v27 = vsel %vm7650_vm4, %v2501_v40, -1e+09  ;;  %v5480_v46 = vsel %vm7537_vm10, %v2503_v61, -1e+09  ;;  %v1768_v7 = vadd.f32 %v5378_v1, %v1695_v48  ;;  %vm2443_vm9 = vcmp.ge.f32.partialorder %v5494_v55, 0.0 }
 0x227   : > { %7651 = vst [vmem:[#allocation8_spill] sm:$0xff] %v5468_v27  ;;  %7655 = vst [vmem:[#allocation6_spill] sm:$0xff] %v5480_v46  ;;  %v2473_v43 = vmul.f32 0.2, %v2409_v47  ;;  %v2474_v11 = vmul.f32 0.2, %v5484_v16  ;;  %v2421_v5 = vadd.f32 %v5390_v15, %v5310_v0 }
 0x229   : > { %1010 = vmatmul.mubr.bf16.gmra.mrb[28].mxu0 %v903_v31  ;;  %v5442_v31 = vpop.permute.xlu1 %2353 }
 0x22d   : > { %v5444_v22 = vpop.permute.xlu1 %2361 }
 0x231   : > { %v5446_v45 = vpop.permute.xlu1 %2365 }
 0x235   : > { %v5452_v3 = vpop.permute.xlu1 %2369 }
 0x237   : > { %1297 = vmax.xlane.f32.xlu1 %v1296_v51  ;;  %v2408_v51 = vadd.f32 %v5388_v28, %v5384_v4  ;;  %v2565_v4 = vmax.f32 %v5464_v37, %v5468_v27 }
 0x239   : > { %v5458_v12 = vpop.permute.xlu1 %2373  ;;  %vm7658_vm11 = vcmp.ge.f32.partialorder %v2408_v51, 0.0 }
 0x23b   : > { %1303 = vmax.xlane.f32.xlu1 %v1302_v57 }
 0x23f   : > { %1920 = vmax.xlane.f32.xlu1 %v1919_v33 }
 0x243   : > { %2563 = vmax.xlane.f32.xlu1 %v2562_v35  ;;  %v2472_v35 = vmul.f32 0.2, %v2408_v51 }
 0x245   : > { %v2504_v27 = vsel %vm7658_vm11, %v2408_v51, %v2472_v35  ;;  %vm7661_vm11 = vcmp.ge.f32.partialorder %v2409_v47, 0.0 }
 0x246   : > { %v2505_v63 = vsel %vm7661_vm11, %v2409_v47, %v2473_v43  ;;  %v5534_v17 = vsel %vm7531_vm6, %v2504_v27, -1e+09 }
 0x247   : > { %7663 = vst [vmem:[#allocation9_spill] sm:$0xff] %v5534_v17 }
 0x266   : > { %v5460_v52 = vpop.xlane.xlu1 %1291 }
 0x26a   : > { %v1683_v57 = vpop.permute.xlu1 %1682 }
 0x26b   : > { %v1761_v33 = vadd.f32 %v5376_v2, %v1683_v57  ;;  %v1762_v14 = vadd.f32 %v5378_v1, %v1683_v57  ;;  %v2475_v57 = vmul.f32 0.2, %v5494_v55 }
 0x26d   : > { %vm1793_vm15 = vcmp.ge.f32.partialorder %v1761_v33, 0.0  ;;  %vm1794_vm7 = vcmp.ge.f32.partialorder %v1762_v14, 0.0  ;;  %v1825_v29 = vmul.f32 0.2, %v1761_v33  ;;  %v1826_v8 = vmul.f32 0.2, %v1762_v14 }
 0x26e   : > { %v1687_v25 = vpop.permute.xlu1 %1686 }
 0x26f   : > { %v1763_v40 = vadd.f32 %v5376_v2, %v1687_v25  ;;  %v1764_v21 = vadd.f32 %v5378_v1, %v1687_v25  ;;  %v1857_v58 = vsel %vm1793_vm15, %v1761_v33, %v1825_v29  ;;  %v1858_v61 = vsel %vm1794_vm7, %v1762_v14, %v1826_v8 }
 0x270   : > { %v5506_v18 = vsel %vm7647_vm2, %v1857_v58, -1e+09  ;;  %v5510_v48 = vsel %vm7650_vm4, %v1858_v61, -1e+09  ;;  %vm1799_vm15 = vcmp.ge.f32.partialorder %v1767_v44, 0.0  ;;  %vm1800_vm7 = vcmp.ge.f32.partialorder %v1768_v7, 0.0 }
 0x271   : > { %7656 = vst [vmem:[#allocation83_spill] sm:$0xff] %v5506_v18  ;;  %7657 = vst [vmem:[#allocation84_spill] sm:$0xff] %v5510_v48  ;;  %vm1795_vm12 = vcmp.ge.f32.partialorder %v1763_v40, 0.0  ;;  %vm1796_vm13 = vcmp.ge.f32.partialorder %v1764_v21, 0.0  ;;  %v1827_v37 = vmul.f32 0.2, %v1763_v40  ;;  %v1922_v29 = vmax.f32 %v5506_v18, %v5510_v48 }
 0x272   : > { %v1828_v25 = vmul.f32 0.2, %v1764_v21  ;;  %v1831_v33 = vmul.f32 0.2, %v1767_v44  ;;  %v1691_v14 = vpop.permute.xlu1 %1690  ;;  %v1832_v61 = vmul.f32 0.2, %v1768_v7 }
 0x273   : > { %v1765_v34 = vadd.f32 %v5376_v2, %v1691_v14  ;;  %v1766_v8 = vadd.f32 %v5378_v1, %v1691_v14  ;;  %v1859_v53 = vsel %vm1795_vm12, %v1763_v40, %v1827_v37  ;;  %1923 = vmax.xlane.f32.xlu0 %v1922_v29  ;;  %v2412_v37 = vadd.f32 %v5388_v28, %v5414_v10 }
 0x274   : > { %v1860_v58 = vsel %vm1796_vm13, %v1764_v21, %v1828_v25  ;;  %v5519_v51 = vsel %vm7535_vm1, %v1859_v53, -1e+09  ;;  %v2413_v40 = vadd.f32 %v5390_v15, %v5414_v10  ;;  %v7665_v10 = vld [vmem:[#allocation10_spill] sm:$0xff]  ;;  %v1864_v27 = vsel %vm1800_vm7, %v1768_v7, %v1832_v61 }
 0x275   : > { %7659 = vst [vmem:[#allocation85_spill] sm:$0xff] %v5519_v51  ;;  %v5523_v35 = vsel %vm7537_vm10, %v1860_v58, -1e+09  ;;  %vm1797_vm2 = vcmp.ge.f32.partialorder %v1765_v34, 0.0  ;;  %vm1798_vm4 = vcmp.ge.f32.partialorder %v1766_v8, 0.0  ;;  %vm7666_vm1 = vnez %v7665_v10 }
 0x276   : > { %7660 = vst [vmem:[#allocation86_spill] sm:$0xff] %v5523_v35  ;;  %v1829_v24 = vmul.f32 0.2, %v1765_v34  ;;  %v1830_v48 = vmul.f32 0.2, %v1766_v8  ;;  %v1699_v21 = vpop.permute.xlu1 %1698  ;;  %v1925_v32 = vmax.f32 %v5519_v51, %v5523_v35  ;;  %v1863_v35 = vsel %vm1799_vm15, %v1767_v44, %v1831_v33 }
 0x277   : > { %v1769_v47 = vadd.f32 %v5376_v2, %v1699_v21  ;;  %v1770_v43 = vadd.f32 %v5378_v1, %v1699_v21  ;;  %2566 = vmax.xlane.f32.xlu0 %v2565_v4  ;;  %v5560_v33 = vsel %vm7543_vm5, %v1863_v35, -1e+09  ;;  %v2507_v25 = vsel %vm2443_vm9, %v5494_v55, %v2475_v57 }
 0x278   : > { %v1861_v14 = vsel %vm1797_vm2, %v1765_v34, %v1829_v24  ;;  %v1862_v29 = vsel %vm1798_vm4, %v1766_v8, %v1830_v48  ;;  %1926 = vmax.xlane.f32.xlu1 %v1925_v32  ;;  %v2476_v24 = vmul.f32 0.2, %v2412_v37  ;;  %v5552_v34 = vsel %vm7666_vm1, %v2505_v63, -1e+09  ;;  %7671 = vst [vmem:[#allocation11_spill] sm:$0xff] %v5560_v33 }
 0x279   : > { %v5540_v53 = vsel %vm7531_vm6, %v1861_v14, -1e+09  ;;  %v5544_v58 = vsel %vm7666_vm1, %v1862_v29, -1e+09  ;;  %vm1801_vm10 = vcmp.ge.f32.partialorder %v1769_v47, 0.0  ;;  %vm1802_vm13 = vcmp.ge.f32.partialorder %v1770_v43, 0.0  ;;  %v1707_v29 = vpop.permute.xlu0 %1706 }
 0x27a   : > { %7664 = vst [vmem:[#allocation87_spill] sm:$0xff] %v5540_v53  ;;  %7667 = vst [vmem:[#allocation10_spill] sm:$0xff] %v5544_v58  ;;  %v1833_v51 = vmul.f32 0.2, %v1769_v47  ;;  %v1834_v21 = vmul.f32 0.2, %v1770_v43  ;;  %v1703_v48 = vpop.permute.xlu1 %1702  ;;  %v1928_v4 = vmax.f32 %v5540_v53, %v5544_v58  ;;  %v1773_v10 = vadd.f32 %v5376_v2, %v1707_v29 }
 0x27b   : > { %7668 = vst [vmem:[#allocation88_spill] sm:$0xff] %v5552_v34  ;;  %vm7669_vm6 = vcmp.ge.f32.partialorder %v5484_v16, 0.0  ;;  %v1771_v44 = vadd.f32 %v5376_v2, %v1703_v48  ;;  %v5564_v32 = vsel %vm7545_vm3, %v1864_v27, -1e+09  ;;  %v2477_v63 = vmul.f32 0.2, %v2413_v40 }
 0x27c   : > { %v2506_v8 = vsel %vm7669_vm6, %v5484_v16, %v2474_v11  ;;  %7673 = vst [vmem:[#allocation12_spill] sm:$0xff] %v5564_v32  ;;  %v1772_v14 = vadd.f32 %v5378_v1, %v1703_v48  ;;  %1929 = vmax.xlane.f32.xlu0 %v1928_v4  ;;  %v7674_v16 = vmax.f32 %v5476_v30, %v5480_v46  ;;  %vm2444_vm12 = vcmp.ge.f32.partialorder %v2412_v37, 0.0  ;;  %v7724_v53 = vld [vmem:[#allocation74_spill] sm:$0xff] }
 0x27d   : > { %v1865_v11 = vsel %vm1801_vm10, %v1769_v47, %v1833_v51  ;;  %v1866_v35 = vsel %vm1802_vm13, %v1770_v43, %v1834_v21  ;;  %vm2445_vm15 = vcmp.ge.f32.partialorder %v2413_v40, 0.0  ;;  %v2571_v55 = vmax.f32 %v5534_v17, %v5552_v34  ;;  %v7676_v51 = vld [vmem:[#allocation13_spill] sm:$0xff]  ;;  %v7679_v43 = vld [vmem:[#allocation14_spill] sm:$0xff] }
 0x27e   : > { %2569 = vmax.xlane.f32.xlu1 %v7674_v16  ;;  %v1931_v57 = vmax.f32 %v5560_v33, %v5564_v32  ;;  %v5582_v27 = vsel %vm7543_vm5, %v2506_v8, -1e+09  ;;  %v1774_v48 = vadd.f32 %v5378_v1, %v1707_v29  ;;  %vm7677_vm9 = vnez %v7676_v51  ;;  %v7688_v51 = vld [vmem:[#allocation16_spill] sm:$0xff] }
 0x27f   : > { %7675 = vst [vmem:[#allocation89_spill] sm:$0xff] %v5582_v27  ;;  %v5587_v47 = vsel %vm7677_vm9, %v1865_v11, -1e+09  ;;  %vm7680_vm7 = vnez %v7679_v43  ;;  %v5595_v4 = vsel %vm7545_vm3, %v2507_v25, -1e+09  ;;  %v2508_v8 = vsel %vm2444_vm12, %v2412_v37, %v2476_v24 }
 0x280   : > { %7678 = vst [vmem:[#allocation13_spill] sm:$0xff] %v5587_v47  ;;  %v5591_v21 = vsel %vm7680_vm7, %v1866_v35, -1e+09  ;;  %7682 = vst [vmem:[#allocation90_spill] sm:$0xff] %v5595_v4  ;;  %v1835_v16 = vmul.f32 0.2, %v1771_v44  ;;  %2572 = vmax.xlane.f32.xlu0 %v2571_v55  ;;  %v2509_v7 = vsel %vm2445_vm15, %v2413_v40, %v2477_v63  ;;  %v2574_v29 = vmax.f32 %v5582_v27, %v5595_v4 }
 0x281   : > { %7681 = vst [vmem:[#allocation14_spill] sm:$0xff] %v5591_v21  ;;  %v1836_v32 = vmul.f32 0.2, %v1772_v14  ;;  %vm1803_vm5 = vcmp.ge.f32.partialorder %v1771_v44, 0.0  ;;  %vm1804_vm11 = vcmp.ge.f32.partialorder %v1772_v14, 0.0  ;;  %v1934_v11 = vmax.f32 %v5587_v47, %v5591_v21  ;;  %v7685_v63 = vld [vmem:[#allocation15_spill] sm:$0xff] }
 0x282   : > { %1932 = vmax.xlane.f32.xlu1 %v1931_v57  ;;  %v5603_v35 = vsel %vm7677_vm9, %v2508_v8, -1e+09  ;;  %v5607_v61 = vsel %vm7680_vm7, %v2509_v7, -1e+09  ;;  %v1837_v25 = vmul.f32 0.2, %v1773_v10  ;;  %v1867_v37 = vsel %vm1803_vm5, %v1771_v44, %v1835_v16 }
 0x283   : > { %7683 = vst [vmem:[#allocation91_spill] sm:$0xff] %v5603_v35  ;;  %7684 = vst [vmem:[#allocation92_spill] sm:$0xff] %v5607_v61  ;;  %v1838_v55 = vmul.f32 0.2, %v1774_v48  ;;  %v1868_v40 = vsel %vm1804_vm11, %v1772_v14, %v1836_v32  ;;  %vm1805_vm3 = vcmp.ge.f32.partialorder %v1773_v10, 0.0  ;;  %vm1806_vm2 = vcmp.ge.f32.partialorder %v1774_v48, 0.0  ;;  %v1715_v32 = vpop.permute.xlu1 %1714 }
 0x284   : > { %1935 = vmax.xlane.f32.xlu0 %v1934_v11  ;;  %v2577_v24 = vmax.f32 %v5603_v35, %v5607_v61  ;;  %vm7686_vm4 = vnez %v7685_v63  ;;  %vm7689_vm1 = vnez %v7688_v51  ;;  %v1869_v8 = vsel %vm1805_vm3, %v1773_v10, %v1837_v25  ;;  %v7693_v16 = vld [vmem:[#allocation22_spill] sm:$0xff]  ;;  %v7696_v10 = vld [vmem:[#allocation17_spill] sm:$0xff]  ;;  %v7698_v25 = vld [vmem:[#allocation47_spill] sm:$0xff] }
 0x285   : > { %v5613_v57 = vsel %vm7686_vm4, %v1867_v37, -1e+09  ;;  %v5617_v43 = vsel %vm7689_vm1, %v1868_v40, -1e+09  ;;  %v1870_v7 = vsel %vm1806_vm2, %v1774_v48, %v1838_v55  ;;  %v5623_v14 = vsel %vm7589_vm8, %v1869_v8, -1e+09 }
 0x286   : > { %2575 = vmax.xlane.f32.xlu1 %v2574_v29  ;;  %7687 = vst [vmem:[#allocation15_spill] sm:$0xff] %v5613_v57  ;;  %7690 = vst [vmem:[#allocation16_spill] sm:$0xff] %v5617_v43  ;;  %v1937_v44 = vmax.f32 %v5613_v57, %v5617_v43  ;;  %vm7694_vm10 = vnez %v7693_v16  ;;  %v7697_v48 = vld [vmem:[#allocation73_spill] sm:$0xff]  ;;  %v7699_v37 = vld [vmem:[#allocation48_spill] sm:$0xff]  ;;  %vm7730_vm2 = vnez %v7729_v6 }
 0x287   : > { %7692 = vst [vmem:[#allocation21_spill] sm:$0xff] %v5623_v14  ;;  %v5627_v11 = vsel %vm7694_vm10, %v1870_v7, -1e+09  ;;  %v1308_v55 = vsub.f32 %v7698_v25, %v7697_v48  ;;  %v1309_v40 = vsub.f32 %v7699_v37, %v7697_v48  ;;  %v7701_v8 = vld [vmem:[#allocation75_spill] sm:$0xff]  ;;  %v7702_v7 = vld [vmem:[#allocation45_spill] sm:$0xff] }
 0x288   : > { %2578 = vmax.xlane.f32.xlu0 %v2577_v24  ;;  %7695 = vst [vmem:[#allocation22_spill] sm:$0xff] %v5627_v11  ;;  %v1940_v29 = vmax.f32 %v5623_v14, %v5627_v11  ;;  %v7700_v24 = vld [vmem:[#allocation18_spill] sm:$0xff]  ;;  %v2415_v11 = vadd.f32 %v5390_v15, %v5428_v50 }
 0x289   : > { %v1340_v43 = vmul.f32 1.442695, %v1308_v55  ;;  %v7703_v14 = vld [vmem:[#allocation46_spill] sm:$0xff]  ;;  %v1342_v25 = vmul.f32 1.442695, %v1309_v40 }
 0x28a   : > { %v1311_v57 = vsub.f32 %v7703_v14, %v7701_v8  ;;  %v2479_v37 = vmul.f32 0.2, %v2415_v11  ;;  %vm2447_vm6 = vcmp.ge.f32.partialorder %v2415_v11, 0.0 }
 0x28b   : > { %3798 = vpow2.f32 %v1340_v43  ;;  %v2416_v43 = vadd.f32 %v5388_v28, %v5440_v41 }
 0x28c   : > { %1938 = vmax.xlane.f32.xlu0 %v1937_v44  ;;  %v1310_v44 = vsub.f32 %v7702_v7, %v7701_v8  ;;  %v1346_v35 = vmul.f32 1.442695, %v1311_v57  ;;  %3800 = vpow2.f32 %v1342_v25  ;;  %v2511_v7 = vsel %vm2447_vm6, %v2415_v11, %v2479_v37 }
 0x28d   : > { %v2417_v57 = vadd.f32 %v5390_v15, %v5440_v41  ;;  %v2480_v63 = vmul.f32 0.2, %v2416_v43  ;;  %vm2448_vm12 = vcmp.ge.f32.partialorder %v2416_v43, 0.0 }
 0x28e   : > { %v1344_v61 = vmul.f32 1.442695, %v1310_v44 }
 0x28f   : > { %v2481_v11 = vmul.f32 0.2, %v2417_v57  ;;  %vm2449_vm15 = vcmp.ge.f32.partialorder %v2417_v57, 0.0  ;;  %v2512_v41 = vsel %vm2448_vm12, %v2416_v43, %v2480_v63 }
 0x290   : > { %1941 = vmax.xlane.f32.xlu0 %v1940_v29  ;;  %v2414_v29 = vadd.f32 %v5388_v28, %v5428_v50  ;;  %3802 = vpow2.f32 %v1344_v61  ;;  %v5653_v50 = vsel %vm7689_vm1, %v2511_v7, -1e+09  ;;  %v5675_v25 = vsel %vm7589_vm8, %v2512_v41, -1e+09 }
 0x291   : > { %3804 = vpow2.f32 %v1346_v35  ;;  %7705 = vst [vmem:[#allocation47_spill] sm:$0xff] %v5653_v50  ;;  %v2513_v44 = vsel %vm2449_vm15, %v2417_v57, %v2481_v11  ;;  %7706 = vst [vmem:[#allocation48_spill] sm:$0xff] %v5675_v25 }
 0x292   : > { %v2478_v48 = vmul.f32 0.2, %v2414_v29  ;;  %vm2446_vm13 = vcmp.ge.f32.partialorder %v2414_v29, 0.0 }
 0x294   : > { %v2510_v55 = vsel %vm2446_vm13, %v2414_v29, %v2478_v48  ;;  %v5679_v48 = vsel %vm7694_vm10, %v2513_v44, -1e+09  ;;  %vm2453_vm10 = vcmp.ge.f32.partialorder %v2421_v5, 0.0  ;;  %vm7762_vm13 = vnez %v7619_v56 }
 0x295   : > { %v5649_v4 = vsel %vm7686_vm4, %v2510_v55, -1e+09  ;;  %v5659_v14 = vpop.eup %3798  ;;  %7707 = vst [vmem:[#allocation75_spill] sm:$0xff] %v5679_v48  ;;  %v2583_v37 = vmax.f32 %v5675_v25, %v5679_v48 }
 0x296   : > { %7704 = vst [vmem:[#allocation73_spill] sm:$0xff] %v5649_v4  ;;  %v2580_v61 = vmax.f32 %v5649_v4, %v5653_v50  ;;  %v5663_v35 = vpop.eup %3800 }
 0x297   : > { %1548 = vrot.lane.b32.xlu1 %v7696_v10, %s4147_s23  ;;  %v1404_v40 = vadd.f32 %v5663_v35, %v5659_v14 }
 0x29a   : > { %v5665_v51 = vpop.eup %3802 }
 0x29b   : > { %v5669_v8 = vpop.eup %3804 }
 0x29c   : > { %v1407_v29 = vadd.f32 %v5669_v8, %v5665_v51 }
 0x2a6   : > { %1532 = vrot.lane.b32.xlu0 %v7700_v24, %s4147_s23 }
 0x2bb   : > { %2581 = vmax.xlane.f32.xlu1 %v2580_v61 }
 0x2bf   : > { %1405 = vadd.xlane.f32.xlu1 %v1404_v40 }
 0x2c3   : > { %1408 = vadd.xlane.f32.xlu1 %v1407_v29  ;;  %v7711_v29 = vld [vmem:[#allocation19_spill] sm:$0xff] }
 0x2c4   : > { %v3434_v55 = vpop.f32.mrb[0].mxu0 }
 0x2c5   : > { %2584 = vmax.xlane.f32.xlu0 %v2583_v37  ;;  %v3435_v7 = vpop.f32.mrb[1].mxu0  ;;  %v5693_v37 = vpop.permute.xlu1 %1718 }
 0x2c6   : > { %v5683_v43 = vadd.f32 %v3435_v7, %v3434_v55  ;;  %v3437_v57 = vpop.f32.mrb[2].mxu0  ;;  %v7713_v55 = vld [vmem:[#allocation25_spill] sm:$0xff] }
 0x2c7   : > { %v3438_v61 = vpop.f32.mrb[3].mxu0 }
 0x2c8   : > { %7708 = vst [vmem:[#allocation45_spill] sm:$0xff] %v5683_v43  ;;  %v5685_v63 = vadd.f32 %v3438_v61, %v3437_v57 }
 0x2ca   : > { %7709 = vst [vmem:[#allocation46_spill] sm:$0xff] %v5685_v63 }
 0x2cc   : > { %v3440_v11 = vpop.f32.mrb[4].mxu0 }
 0x2cd   : > { %v3441_v40 = vpop.f32.mrb[5].mxu0 }
 0x2ce   : > { %v5687_v41 = vadd.f32 %v3441_v40, %v3440_v11  ;;  %v3443_v16 = vpop.f32.mrb[6].mxu0  ;;  %v5699_v11 = vpop.permute.xlu1 %1726 }
 0x2cf   : > { %v3444_v44 = vpop.f32.mrb[7].mxu0 }
 0x2d0   : > { %7710 = vst [vmem:[#allocation93_spill] sm:$0xff] %v5687_v41  ;;  %v5691_v48 = vadd.f32 %v3444_v44, %v3443_v16  ;;  %v7716_v41 = vld [vmem:[#allocation20_spill] sm:$0xff]  ;;  %v1711_v44 = vpop.permute.xlu0 %1710 }
 0x2d1   : > { %v1775_v47 = vadd.f32 %v5376_v2, %v1711_v44  ;;  %v1776_v33 = vadd.f32 %v5378_v1, %v1711_v44  ;;  %v2419_v44 = vadd.f32 %v5390_v15, %v5442_v31 }
 0x2d2   : > { %7712 = vst [vmem:[#allocation94_spill] sm:$0xff] %v5691_v48  ;;  %v5705_v25 = vpop.permute.xlu1 %1734 }
 0x2d3   : > { %v1840_v17 = vmul.f32 0.2, %v1776_v33  ;;  %vm1807_vm8 = vcmp.ge.f32.partialorder %v1775_v47, 0.0  ;;  %vm1808_vm9 = vcmp.ge.f32.partialorder %v1776_v33, 0.0  ;;  %v2483_v10 = vmul.f32 0.2, %v2419_v44 }
 0x2d4   : > { %1550 = vrot.lane.b32.xlu1 %v7711_v29, %s4147_s23  ;;  %v3446_v7 = vpop.f32.mrb[8].mxu0  ;;  %vm2451_vm3 = vcmp.ge.f32.partialorder %v2419_v44, 0.0 }
 0x2d5   : > { %v3447_v57 = vpop.f32.mrb[9].mxu0  ;;  %v1872_v20 = vsel %vm1808_vm9, %v1776_v33, %v1840_v17  ;;  %v7736_v33 = vld [vmem:[#allocation24_spill] sm:$0xff] }
 0x2d6   : > { %v5697_v61 = vadd.f32 %v3447_v57, %v3446_v7  ;;  %v3449_v43 = vpop.f32.mrb[10].mxu0  ;;  %v5711_v57 = vpop.permute.xlu1 %2377  ;;  %vm7737_vm4 = vnez %v7736_v33 }
 0x2d7   : > { %v3450_v63 = vpop.f32.mrb[11].mxu0 }
 0x2d8   : > { %1552 = vrot.lane.b32.xlu1 %v7713_v55, %s4147_s23  ;;  %7714 = vst [vmem:[#allocation95_spill] sm:$0xff] %v5697_v61  ;;  %v5701_v40 = vadd.f32 %v3450_v63, %v3449_v43  ;;  %v5713_v61 = vpop.permute.xlu0 %1722  ;;  %v7725_v55 = vld [vmem:[#allocation49_spill] sm:$0xff] }
 0x2d9   : > { %v1314_v29 = vsub.f32 %v7725_v55, %v7724_v53 }
 0x2da   : > { %7715 = vst [vmem:[#allocation96_spill] sm:$0xff] %v5701_v40 }
 0x2db   : > { %1534 = vrot.lane.b32.xlu0 %v7716_v41, %s4147_s23 }
 0x2dc   : > { %v3452_v16 = vpop.f32.mrb[12].mxu0 }
 0x2dd   : > { %v3453_v48 = vpop.f32.mrb[13].mxu0 }
 0x2de   : > { %v5707_v50 = vadd.f32 %v3453_v48, %v3452_v16  ;;  %v3455_v4 = vpop.f32.mrb[14].mxu0  ;;  %v1777_v48 = vadd.f32 %v5376_v2, %v1715_v32  ;;  %v1778_v16 = vadd.f32 %v5378_v1, %v1715_v32 }
 0x2df   : > { %v3456_v27 = vpop.f32.mrb[15].mxu0 }
 0x2e0   : > { %7717 = vst [vmem:[#allocation97_spill] sm:$0xff] %v5707_v50  ;;  %v5709_v7 = vadd.f32 %v3456_v27, %v3455_v4  ;;  %v5721_v27 = vpop.permute.xlu1 %2381  ;;  %v7721_v50 = vld [vmem:[#allocation51_spill] sm:$0xff]  ;;  %v1841_v46 = vmul.f32 0.2, %v1777_v48  ;;  %v1842_v32 = vmul.f32 0.2, %v1778_v16 }
 0x2e1   : > { %vm1809_vm7 = vcmp.ge.f32.partialorder %v1777_v48, 0.0  ;;  %vm1810_vm5 = vcmp.ge.f32.partialorder %v1778_v16, 0.0 }
 0x2e2   : > { %7718 = vst [vmem:[#allocation98_spill] sm:$0xff] %v5709_v7  ;;  %v5725_v7 = vpop.permute.xlu0 %1730  ;;  %v1873_v59 = vsel %vm1809_vm7, %v1777_v48, %v1841_v46  ;;  %v1874_v55 = vsel %vm1810_vm5, %v1778_v16, %v1842_v32 }
 0x2e3   : > { %v5761_v46 = vsel %vm7595_vm0, %v1873_v59, -1e+09  ;;  %v5765_v17 = vsel %vm4542_vm14, %v1874_v55, -1e+09 }
 0x2e4   : > { %v3458_v43 = vpop.f32.mrb[16].mxu0  ;;  %v5733_v30 = vpop.xlane.xlu1 %1297  ;;  %7735 = vst [vmem:[#allocation23_spill] sm:$0xff] %v5765_v17  ;;  %v1946_v32 = vmax.f32 %v5761_v46, %v5765_v17  ;;  %v1780_v17 = vadd.f32 %v5378_v1, %v5693_v37 }
 0x2e5   : > { %v3459_v63 = vpop.f32.mrb[17].mxu0  ;;  %7722 = vst [vmem:[#allocation51_spill] sm:$0xff] %v5733_v30 }
 0x2e6   : > { %v5715_v40 = vadd.f32 %v3459_v63, %v3458_v43  ;;  %v3461_v21 = vpop.f32.mrb[18].mxu0  ;;  %v1312_v43 = vsub.f32 %v7721_v50, %v5292_v38  ;;  %v2418_v63 = vadd.f32 %v5388_v28, %v5442_v31  ;;  %v2420_v31 = vadd.f32 %v5388_v28, %v5310_v0 }
 0x2e7   : > { %v3462_v34 = vpop.f32.mrb[19].mxu0  ;;  %v1352_v0 = vmul.f32 1.442695, %v1314_v29 }
 0x2e8   : > { %7719 = vst [vmem:[#allocation99_spill] sm:$0xff] %v5715_v40  ;;  %v5723_v4 = vadd.f32 %v3462_v34, %v3461_v21  ;;  %v1839_v40 = vmul.f32 0.2, %v1775_v47  ;;  %v7723_v21 = vld [vmem:[#allocation52_spill] sm:$0xff]  ;;  %v1348_v58 = vmul.f32 1.442695, %v1312_v43 }
 0x2e9   : > { %v2482_v42 = vmul.f32 0.2, %v2418_v63  ;;  %vm2450_vm11 = vcmp.ge.f32.partialorder %v2418_v63, 0.0  ;;  %v2484_v29 = vmul.f32 0.2, %v2420_v31  ;;  %vm2452_vm1 = vcmp.ge.f32.partialorder %v2420_v31, 0.0 }
 0x2ea   : > { %7720 = vst [vmem:[#allocation100_spill] sm:$0xff] %v5723_v4  ;;  %v1313_v4 = vsub.f32 %v7723_v21, %v5292_v38  ;;  %v5745_v38 = vpop.permute.xlu0 %1738  ;;  %v1871_v24 = vsel %vm1807_vm8, %v1775_v47, %v1839_v40  ;;  %3806 = vpow2.f32 %v1348_v58  ;;  %v2485_v40 = vmul.f32 0.2, %v2421_v5 }
 0x2eb   : > { %v5757_v30 = vsel %vm7730_vm2, %v1871_v24, -1e+09  ;;  %v2514_v16 = vsel %vm2450_vm11, %v2418_v63, %v2482_v42 }
 0x2ec   : > { %v3464_v34 = vpop.f32.mrb[20].mxu0  ;;  %v1350_v23 = vmul.f32 1.442695, %v1313_v4  ;;  %7731 = vst [vmem:[#allocation49_spill] sm:$0xff] %v5757_v30  ;;  %v2515_v4 = vsel %vm2451_vm3, %v2419_v44, %v2483_v10  ;;  %v5781_v42 = vsel %vm7730_vm2, %v2514_v16, -1e+09 }
 0x2ed   : > { %v3465_v50 = vpop.f32.mrb[21].mxu0  ;;  %7740 = vst [vmem:[#allocation24_spill] sm:$0xff] %v5781_v42 }
 0x2ee   : > { %v5741_v41 = vadd.f32 %v3465_v50, %v3464_v34  ;;  %v3467_v18 = vpop.f32.mrb[22].mxu0  ;;  %v7728_v34 = vld [vmem:[#allocation50_spill] sm:$0xff]  ;;  %3808 = vpow2.f32 %v1350_v23  ;;  %v5771_v58 = vpop.xlane.xlu0 %1300  ;;  %v5785_v23 = vsel %vm7737_vm4, %v2515_v4, -1e+09 }
 0x2ef   : > { %v3468_v21 = vpop.f32.mrb[23].mxu0  ;;  %v1315_v50 = vsub.f32 %v7728_v34, %v7724_v53  ;;  %7733 = vst [vmem:[#allocation50_spill] sm:$0xff] %v5761_v46  ;;  %v5769_v53 = vsel %vm7737_vm4, %v1872_v20, -1e+09  ;;  %7741 = vst [vmem:[#allocation101_spill] sm:$0xff] %v5785_v23  ;;  %3810 = vpow2.f32 %v1352_v0  ;;  %v2516_v34 = vsel %vm2452_vm1, %v2420_v31, %v2484_v29 }
 0x2f0   : > { %7726 = vst [vmem:[#allocation52_spill] sm:$0xff] %v5741_v41  ;;  %v5748_v43 = vadd.f32 %v3468_v21, %v3467_v18  ;;  %v5753_v41 = vpop.xlane.xlu1 %1303  ;;  %7738 = vst [vmem:[#allocation27_spill] sm:$0xff] %v5769_v53  ;;  %v1943_v21 = vmax.f32 %v5757_v30, %v5769_v53  ;;  %v2586_v6 = vmax.f32 %v5781_v42, %v5785_v23  ;;  %v5799_v33 = vsel %vm7595_vm0, %v2516_v34, -1e+09 }
 0x2f1   : > { %v1354_v24 = vmul.f32 1.442695, %v1315_v50  ;;  %v2517_v50 = vsel %vm2453_vm10, %v2421_v5, %v2485_v40  ;;  %7743 = vst [vmem:[#allocation103_spill] sm:$0xff] %v5799_v33  ;;  %v1779_v42 = vadd.f32 %v5376_v2, %v5693_v37  ;;  %vm1812_vm0 = vcmp.ge.f32.partialorder %v1780_v17, 0.0 }
 0x2f2   : > { %7727 = vst [vmem:[#allocation74_spill] sm:$0xff] %v5748_v43  ;;  %v5803_v0 = vsel %vm4542_vm14, %v2517_v50, -1e+09  ;;  %v1781_v53 = vadd.f32 %v5376_v2, %v5713_v61  ;;  %v1782_v30 = vadd.f32 %v5378_v1, %v5713_v61  ;;  %v2423_v37 = vadd.f32 %v5390_v15, %v5444_v22 }
 0x2f3   : > { %3812 = vpow2.f32 %v1354_v24  ;;  %7744 = vst [vmem:[#allocation104_spill] sm:$0xff] %v5803_v0  ;;  %v2589_v29 = vmax.f32 %v5799_v33, %v5803_v0  ;;  %v7759_v0 = vld [vmem:[#allocation28_spill] sm:$0xff]  ;;  %v1843_v46 = vmul.f32 0.2, %v1779_v42  ;;  %vm1811_vm14 = vcmp.ge.f32.partialorder %v1779_v42, 0.0 }
 0x2f4   : > { %v3470_v48 = vpop.f32.mrb[24].mxu0  ;;  %v5787_v63 = vpop.xlane.xlu1 %1920  ;;  %v1845_v61 = vmul.f32 0.2, %v1781_v53  ;;  %vm1813_vm12 = vcmp.ge.f32.partialorder %v1781_v53, 0.0  ;;  %vm1814_vm15 = vcmp.ge.f32.partialorder %v1782_v30, 0.0  ;;  %vm2455_vm9 = vcmp.ge.f32.partialorder %v2423_v37, 0.0 }
 0x2f5   : > { %v3471_v59 = vpop.f32.mrb[25].mxu0  ;;  %v5805_v4 = vpop.eup %3806 }
 0x2f6   : > { %v5777_v20 = vadd.f32 %v3471_v59, %v3470_v48  ;;  %v3473_v55 = vpop.f32.mrb[26].mxu0  ;;  %v5795_v48 = vpop.xlane.xlu0 %1306 }
 0x2f7   : > { %v3474_v10 = vpop.f32.mrb[27].mxu0 }
 0x2f8   : > { %7739 = vst [vmem:[#allocation30_spill] sm:$0xff] %v5777_v20  ;;  %v5789_v44 = vadd.f32 %v3474_v10, %v3473_v55  ;;  %v5807_v5 = vpop.xlane.xlu1 %2563  ;;  %v5813_v18 = vpop.eup %3808 }
 0x2f9   : > { %v1410_v55 = vadd.f32 %v5813_v18, %v5805_v4 }
 0x2fa   : > { %1947 = vmax.xlane.f32.xlu0 %v1946_v32  ;;  %7742 = vst [vmem:[#allocation102_spill] sm:$0xff] %v5789_v44 }
 0x2fc   : > { %1944 = vmax.xlane.f32.xlu1 %v1943_v21  ;;  %v3476_v16 = vpop.f32.mrb[28].mxu0  ;;  %v5819_v21 = vpop.eup %3810 }
 0x2fd   : > { %v3477_v31 = vpop.f32.mrb[29].mxu0  ;;  %v5823_v10 = vpop.eup %3812 }
 0x2fe   : > { %v5811_v40 = vadd.f32 %v3477_v31, %v3476_v16  ;;  %v3479_v24 = vpop.f32.mrb[30].mxu0 }
 0x2ff   : > { %v3480_v47 = vpop.f32.mrb[31].mxu0 }
 0x300   : > { %2587 = vmax.xlane.f32.xlu1 %v2586_v6  ;;  %7745 = vst [vmem:[#allocation105_spill] sm:$0xff] %v5811_v40  ;;  %v5815_v59 = vpop.xlane.xlu0 %1923  ;;  %v5817_v32 = vadd.f32 %v3480_v47, %v3479_v24  ;;  %v1413_v6 = vadd.f32 %v5823_v10, %v5819_v21  ;;  %v7752_v47 = vld [vmem:[#allocation26_spill] sm:$0xff] }
 0x302   : > { %7746 = vst [vmem:[#allocation106_spill] sm:$0xff] %v5817_v32 }
 0x304   : > { %2590 = vmax.xlane.f32.xlu1 %v2589_v29  ;;  %v5827_v50 = vpop.xlane.xlu0 %2566 }
 0x305   : > { %v5825_v34 = vpop.xlane.xlu1 %1926 }
 0x306   : > { %7747 = vst [vmem:[#allocation107_spill] sm:$0xff] %v5825_v34 }
 0x308   : > { %1411 = vadd.xlane.f32.xlu1 %v1410_v55  ;;  %v7755_v55 = vld [vmem:[#allocation29_spill] sm:$0xff] }
 0x309   : > { %v5833_v31 = vpop.xlane.xlu0 %1929 }
 0x30a   : > { %7749 = vst [vmem:[#allocation109_spill] sm:$0xff] %v5833_v31 }
 0x30b   : > { %v5831_v16 = vpop.xlane.xlu1 %2569 }
 0x30c   : > { %7748 = vst [vmem:[#allocation108_spill] sm:$0xff] %v5831_v16  ;;  %1414 = vadd.xlane.f32.xlu1 %v1413_v6  ;;  %v7757_v6 = vld [vmem:[#allocation33_spill] sm:$0xff] }
 0x30d   : > { %v5837_v24 = vpop.xlane.xlu0 %2572 }
 0x30e   : > { %7751 = vst [vmem:[#allocation111_spill] sm:$0xff] %v5837_v24 }
 0x30f   : > { %v5835_v29 = vpop.xlane.xlu1 %1932 }
 0x310   : > { %7750 = vst [vmem:[#allocation110_spill] sm:$0xff] %v5835_v29  ;;  %1536 = vrot.lane.b32.xlu0 %v7752_v47, %s4147_s23  ;;  %v7764_v29 = vld [vmem:[#allocation32_spill] sm:$0xff] }
 0x311   : > { %v5843_v40 = vpop.xlane.xlu0 %1935  ;;  %vm7765_vm6 = vnez %v7764_v29 }
 0x312   : > { %7754 = vst [vmem:[#allocation113_spill] sm:$0xff] %v5843_v40 }
 0x313   : > { %v5841_v32 = vpop.xlane.xlu1 %2575 }
 0x314   : > { %7753 = vst [vmem:[#allocation112_spill] sm:$0xff] %v5841_v32  ;;  %1538 = vrot.lane.b32.xlu0 %v7755_v55, %s4147_s23  ;;  %v2422_v32 = vadd.f32 %v5388_v28, %v5444_v22  ;;  %v1877_v55 = vsel %vm1813_vm12, %v1781_v53, %v1845_v61  ;;  %vm7795_vm12 = vnez %v7626_v62  ;;  %v7809_v62 = vld [vmem:[#allocation64_spill] sm:$0xff] }
 0x315   : > { %v5847_v20 = vpop.xlane.xlu0 %2578 }
 0x316   : > { %7756 = vst [vmem:[#allocation114_spill] sm:$0xff] %v5847_v20  ;;  %v2486_v22 = vmul.f32 0.2, %v2422_v32  ;;  %vm2454_vm8 = vcmp.ge.f32.partialorder %v2422_v32, 0.0 }
 0x317   : > { %v1549_v44 = vpop.permute.xlu1 %1548 }
 0x318   : > { %3482 = vmatprep.subr.bf16.mxu1 %v1549_v44  ;;  %1556 = vrot.lane.b32.xlu0 %v7757_v6, %s4147_s23  ;;  %v1844_v44 = vmul.f32 0.2, %v1780_v17  ;;  %v2518_v34 = vsel %vm2454_vm8, %v2422_v32, %v2486_v22 }
 0x319   : > { %v5851_v43 = vpop.xlane.xlu0 %1938 }
 0x31a   : > { %7758 = vst [vmem:[#allocation115_spill] sm:$0xff] %v5851_v43  ;;  %v1875_v43 = vsel %vm1811_vm14, %v1779_v42, %v1843_v46  ;;  %v1846_v46 = vmul.f32 0.2, %v1782_v30 }
 0x31b   : > { %v5873_v40 = vsel %vm7762_vm13, %v1875_v43, -1e+09  ;;  %v2424_v43 = vadd.f32 %v5388_v28, %v5446_v45 }
 0x31c   : > { %v1878_v24 = vsel %vm1814_vm15, %v1782_v30, %v1846_v46  ;;  %v5899_v30 = vsel %vm7762_vm13, %v2518_v34, -1e+09  ;;  %vm7797_vm15 = vnez %v7629_v9  ;;  %v7810_v9 = vld [vmem:[#allocation65_spill] sm:$0xff] }
 0x31d   : > { %1554 = vrot.lane.b32.xlu1 %v7759_v0, %s4147_s23  ;;  %v5855_v33 = vpop.xlane.xlu0 %1941  ;;  %v2487_v0 = vmul.f32 0.2, %v2423_v37  ;;  %vm2456_vm11 = vcmp.ge.f32.partialorder %v2424_v43, 0.0 }
 0x31e   : > { %7760 = vst [vmem:[#allocation116_spill] sm:$0xff] %v5855_v33  ;;  %v1876_v33 = vsel %vm1812_vm0, %v1780_v17, %v1844_v44  ;;  %v7767_v17 = vld [vmem:[#allocation56_spill] sm:$0xff] }
 0x31f   : > { %v5877_v6 = vsel %vm7765_vm6, %v1876_v33, -1e+09  ;;  %v1317_v42 = vsub.f32 %v7767_v17, %v5308_v19  ;;  %v2425_v33 = vadd.f32 %v5390_v15, %v5446_v45  ;;  %v2519_v47 = vsel %vm2455_vm9, %v2423_v37, %v2487_v0  ;;  %v7778_v37 = vld [vmem:[#allocation34_spill] sm:$0xff] }
 0x320   : > { %7766 = vst [vmem:[#allocation32_spill] sm:$0xff] %v5877_v6  ;;  %v1949_v44 = vmax.f32 %v5873_v40, %v5877_v6  ;;  %v5903_v53 = vsel %vm7765_vm6, %v2519_v47, -1e+09 }
 0x321   : > { %v1533_v23 = vpop.permute.xlu0 %1532  ;;  %v1358_v16 = vmul.f32 1.442695, %v1317_v42  ;;  %v2489_v31 = vmul.f32 0.2, %v2425_v33  ;;  %vm2457_vm3 = vcmp.ge.f32.partialorder %v2425_v33, 0.0  ;;  %7775 = vst [vmem:[#allocation117_spill] sm:$0xff] %v5903_v53  ;;  %v2592_v0 = vmax.f32 %v5899_v30, %v5903_v53 }
 0x322   : > { %3483 = vmatpush3.bf16.msra.mxu1 %v1533_v23  ;;  %v7761_v23 = vld [vmem:[#allocation55_spill] sm:$0xff] }
 0x323   : > { %v1316_v20 = vsub.f32 %v7761_v23, %v5308_v19  ;;  %7763 = vst [vmem:[#allocation55_spill] sm:$0xff] %v5873_v40  ;;  %v7768_v19 = vld [vmem:[#allocation35_spill] sm:$0xff]  ;;  %v2488_v40 = vmul.f32 0.2, %v2424_v43 }
 0x324   : > { %vm7769_vm7 = vnez %v7768_v19 }
 0x325   : > { %v1356_v23 = vmul.f32 1.442695, %v1316_v20  ;;  %v5889_v17 = vsel %vm7769_vm7, %v1877_v55, -1e+09  ;;  %v7771_v20 = vld [vmem:[#allocation36_spill] sm:$0xff]  ;;  %v2521_v55 = vsel %vm2457_vm3, %v2425_v33, %v2489_v31 }
 0x326   : > { %7770 = vst [vmem:[#allocation56_spill] sm:$0xff] %v5889_v17  ;;  %vm7772_vm5 = vnez %v7771_v20  ;;  %7774 = vst [vmem:[#allocation36_spill] sm:$0xff] %v5899_v30 }
 0x327   : > { %3814 = vpow2.f32 %v1356_v23  ;;  %v5893_v6 = vsel %vm7772_vm5, %v1878_v24, -1e+09  ;;  %v2520_v24 = vsel %vm2456_vm11, %v2424_v43, %v2488_v40  ;;  %v7780_v23 = vld [vmem:[#allocation53_spill] sm:$0xff]  ;;  %v7781_v43 = vld [vmem:[#allocation54_spill] sm:$0xff] }
 0x328   : > { %7773 = vst [vmem:[#allocation35_spill] sm:$0xff] %v5893_v6  ;;  %3816 = vpow2.f32 %v1358_v16  ;;  %v1952_v45 = vmax.f32 %v5889_v17, %v5893_v6  ;;  %v5909_v32 = vsel %vm7769_vm7, %v2520_v24, -1e+09  ;;  %v5913_v16 = vsel %vm7772_vm5, %v2521_v55, -1e+09  ;;  %v7808_v6 = vld [vmem:[#allocation63_spill] sm:$0xff] }
 0x329   : > { %7776 = vst [vmem:[#allocation118_spill] sm:$0xff] %v5909_v32  ;;  %7777 = vst [vmem:[#allocation119_spill] sm:$0xff] %v5913_v16  ;;  %v2595_v34 = vmax.f32 %v5909_v32, %v5913_v16  ;;  %v7794_v32 = vld [vmem:[#allocation68_spill] sm:$0xff]  ;;  %v7814_v17 = vld [vmem:[#allocation71_spill] sm:$0xff] }
 0x32a   : > { %v1323_v53 = vsub.f32 %v7794_v32, %v5351_v39 }
 0x32c   : > { %v1370_v30 = vmul.f32 1.442695, %v1323_v53 }
 0x331   : > { %v5915_v56 = vpop.eup %3814 }
 0x332   : > { %v5919_v29 = vpop.eup %3816 }
 0x333   : > { %v1416_v31 = vadd.f32 %v5919_v29, %v5915_v56 }
 0x337   : > { %1950 = vmax.xlane.f32.xlu0 %v1949_v44  ;;  %v7779_v44 = vld [vmem:[#allocation76_spill] sm:$0xff] }
 0x338   : > { %v1318_v22 = vsub.f32 %v7780_v23, %v7779_v44  ;;  %v1319_v33 = vsub.f32 %v7781_v43, %v7779_v44  ;;  %v7784_v43 = vld [vmem:[#allocation59_spill] sm:$0xff] }
 0x33a   : > { %v1360_v24 = vmul.f32 1.442695, %v1318_v22 }
 0x341   : > { %1953 = vmax.xlane.f32.xlu1 %v1952_v45 }
 0x345   : > { %2593 = vmax.xlane.f32.xlu1 %v2592_v0  ;;  %v1362_v0 = vmul.f32 1.442695, %v1319_v33 }
 0x348   : > { %v5921_v40 = vpop.xlane.xlu1 %2581 }
 0x349   : > { %2596 = vmax.xlane.f32.xlu1 %v2595_v34 }
 0x34c   : > { %v1406_v47 = vpop.xlane.xlu1 %1405 }
 0x34d   : > { %1417 = vadd.xlane.f32.xlu1 %v1416_v31  ;;  %3818 = vrcp.f32 %v1406_v47  ;;  %1540 = vrot.lane.b32.xlu0 %v7778_v37, %s4147_s23 }
 0x350   : > { %v1409_v61 = vpop.xlane.xlu1 %1408 }
 0x351   : > { %3820 = vrcp.f32 %v1409_v61 }
 0x352   : > { %v5927_v42 = vpop.xlane.xlu0 %2584  ;;  %3822 = vpow2.f32 %v1360_v24 }
 0x353   : > { %3824 = vpow2.f32 %v1362_v0  ;;  %v7788_v0 = vld [vmem:[#allocation40_spill] sm:$0xff] }
 0x354   : > { %v1551_v46 = vpop.permute.xlu1 %1550  ;;  %vm7789_vm10 = vnez %v7788_v0 }
 0x355   : > { %3484 = vmatprep.subr.bf16.mxu1 %v1551_v46  ;;  %v7782_v46 = vld [vmem:[#allocation57_spill] sm:$0xff] }
 0x356   : > { %v1535_v20 = vpop.permute.xlu0 %1534 }
 0x357   : > { %v3819_v45 = vpop.eup %3818  ;;  %3485 = vmatpush3.bf16.msra.mxu1 %v1535_v20 }
 0x358   : > { %v1553_v19 = vpop.permute.xlu1 %1552  ;;  %v1469_v34 = vmul.f32 %v3819_v45, %v5663_v35  ;;  %v5936_v47 = vmul.f32 %v3819_v45, %v5659_v14  ;;  %v1785_v35 = vadd.f32 %v5376_v2, %v5725_v7  ;;  %v1786_v14 = vadd.f32 %v5378_v1, %v5725_v7  ;;  %v7785_v7 = vld [vmem:[#allocation39_spill] sm:$0xff] }
 0x359   : > { %3486 = vmatprep.subr.bf16.mxu1 %v1553_v19  ;;  %vm7786_vm1 = vnez %v7785_v7 }
 0x35a   : > { %v1850_v22 = vmul.f32 0.2, %v1786_v14  ;;  %vm1817_vm2 = vcmp.ge.f32.partialorder %v1785_v35, 0.0  ;;  %vm1818_vm4 = vcmp.ge.f32.partialorder %v1786_v14, 0.0 }
 0x35b   : > { %v3821_v55 = vpop.eup %3820 }
 0x35c   : > { %v1471_v31 = vmul.f32 %v3821_v55, %v5669_v8  ;;  %v5939_v61 = vmul.f32 %v3821_v55, %v5665_v51  ;;  %v7783_v8 = vld [vmem:[#allocation58_spill] sm:$0xff]  ;;  %v1849_v51 = vmul.f32 0.2, %v1785_v35  ;;  %v5953_v33 = vpop.eup %3822  ;;  %v1882_v45 = vsel %vm1818_vm4, %v1786_v14, %v1850_v22  ;;  %v7792_v22 = vld [vmem:[#allocation61_spill] sm:$0xff] }
 0x35d   : > { %v5955_v19 = vpop.eup %3824  ;;  %v1783_v14 = vadd.f32 %v5376_v2, %v5699_v11  ;;  %vm7818_vm4 = vnez %v7635_v13 }
 0x35e   : > { %1558 = vrot.lane.b32.xlu1 %v7782_v46, %s4147_s23  ;;  %v1501_v44 = vpack.c.bf16 %v1471_v31, %v1469_v34  ;;  %v1881_v20 = vsel %vm1817_vm2, %v1785_v35, %v1849_v51  ;;  %v1419_v24 = vadd.f32 %v5955_v19, %v5953_v33  ;;  %v5965_v34 = vsel %vm7789_vm10, %v1882_v45, -1e+09  ;;  %v7793_v45 = vld [vmem:[#allocation67_spill] sm:$0xff] }
 0x35f   : > { %v5961_v55 = vsel %vm7786_vm1, %v1881_v20, -1e+09  ;;  %7790 = vst [vmem:[#allocation76_spill] sm:$0xff] %v5965_v34  ;;  %v1784_v51 = vadd.f32 %v5378_v1, %v5699_v11  ;;  %v1321_v20 = vsub.f32 %v7792_v22, %v5349_v36  ;;  %vm1815_vm14 = vcmp.ge.f32.partialorder %v1783_v14, 0.0 }
 0x360   : > { %1612 = vmatprep.mubr.bf16.mxu1 %v1501_v44  ;;  %7787 = vst [vmem:[#allocation34_spill] sm:$0xff] %v5961_v55  ;;  %v1958_v31 = vmax.f32 %v5961_v55, %v5965_v34  ;;  %v7791_v44 = vld [vmem:[#allocation60_spill] sm:$0xff]  ;;  %v2428_v34 = vadd.f32 %v5388_v28, %v5458_v12  ;;  %vm7816_vm2 = vnez %v7632_v54 }
 0x361   : > { %v1320_v35 = vsub.f32 %v7791_v44, %v5349_v36  ;;  %v1847_v44 = vmul.f32 0.2, %v1783_v14  ;;  %v1848_v55 = vmul.f32 0.2, %v1784_v51  ;;  %v1366_v16 = vmul.f32 1.442695, %v1321_v20 }
 0x362   : > { %1542 = vrot.lane.b32.xlu1 %v7783_v8, %s4147_s23  ;;  %vm1816_vm0 = vcmp.ge.f32.partialorder %v1784_v51, 0.0  ;;  %v2492_v11 = vmul.f32 0.2, %v2428_v34  ;;  %vm2460_vm13 = vcmp.ge.f32.partialorder %v2428_v34, 0.0 }
 0x363   : > { %v1364_v23 = vmul.f32 1.442695, %v1320_v35  ;;  %v1879_v22 = vsel %vm1815_vm14, %v1783_v14, %v1847_v44 }
 0x365   : > { %3826 = vpow2.f32 %v1364_v23  ;;  %v7799_v23 = vld [vmem:[#allocation62_spill] sm:$0xff] }
 0x366   : > { %1560 = vrot.lane.b32.xlu1 %v7784_v43, %s4147_s23  ;;  %3828 = vpow2.f32 %v1366_v16 }
 0x36c   : > { %1420 = vadd.xlane.f32.xlu0 %v1419_v24  ;;  %v1322_v24 = vsub.f32 %v7793_v45, %v5351_v39  ;;  %v1880_v45 = vsel %vm1816_vm0, %v1784_v51, %v1848_v55  ;;  %v2524_v39 = vsel %vm2460_vm13, %v2428_v34, %v2492_v11 }
 0x36d   : > { %v5991_v20 = vsel %vm7797_vm15, %v1880_v45, -1e+09  ;;  %v6003_v14 = vsel %vm7786_vm1, %v2524_v39, -1e+09  ;;  %v2426_v45 = vadd.f32 %v5388_v28, %v5452_v3  ;;  %v2427_v39 = vadd.f32 %v5390_v15, %v5452_v3 }
 0x36e   : > { %v1368_v36 = vmul.f32 1.442695, %v1322_v24  ;;  %7798 = vst [vmem:[#allocation54_spill] sm:$0xff] %v5991_v20  ;;  %7802 = vst [vmem:[#allocation59_spill] sm:$0xff] %v6003_v14 }
 0x36f   : > { %vm2458_vm8 = vcmp.ge.f32.partialorder %v2426_v45, 0.0  ;;  %vm2459_vm9 = vcmp.ge.f32.partialorder %v2427_v39, 0.0 }
 0x370   : > { %1959 = vmax.xlane.f32.xlu0 %v1958_v31  ;;  %v2429_v31 = vadd.f32 %v5390_v15, %v5458_v12  ;;  %v5987_v12 = vsel %vm7795_vm12, %v1879_v22, -1e+09  ;;  %3830 = vpow2.f32 %v1368_v36 }
 0x371   : > { %7796 = vst [vmem:[#allocation53_spill] sm:$0xff] %v5987_v12  ;;  %3832 = vpow2.f32 %v1370_v30  ;;  %v1955_v53 = vmax.f32 %v5987_v12, %v5991_v20  ;;  %v6009_v30 = vpop.eup %3826 }
 0x372   : > { %v2493_v35 = vmul.f32 0.2, %v2429_v31  ;;  %vm2461_vm6 = vcmp.ge.f32.partialorder %v2429_v31, 0.0  ;;  %v6013_v24 = vpop.eup %3828 }
 0x373   : > { %v1422_v0 = vadd.f32 %v6013_v24, %v6009_v30 }
 0x374   : > { %v2525_v32 = vsel %vm2461_vm6, %v2429_v31, %v2493_v35 }
 0x375   : > { %v6007_v51 = vsel %vm7789_vm10, %v2525_v32, -1e+09 }
 0x376   : > { %7803 = vst [vmem:[#allocation39_spill] sm:$0xff] %v6007_v51  ;;  %v2601_v34 = vmax.f32 %v6003_v14, %v6007_v51 }
 0x37a   : > { %v6017_v7 = vpop.eup %3830 }
 0x37b   : > { %v6021_v36 = vpop.eup %3832 }
 0x37c   : > { %v1425_v35 = vadd.f32 %v6021_v36, %v6017_v7 }
 0x386   : > { %1544 = vrot.lane.b32.xlu0 %v7799_v23, %s4147_s23 }
 0x387   : > { %v5999_v55 = vpop.xlane.xlu0 %1947 }
 0x388   : > { %7801 = vst [vmem:[#allocation58_spill] sm:$0xff] %v5999_v55 }
 0x389   : > { %v5997_v16 = vpop.xlane.xlu1 %1944 }
 0x38a   : > { %7800 = vst [vmem:[#allocation57_spill] sm:$0xff] %v5997_v16  ;;  %1956 = vmax.xlane.f32.xlu1 %v1955_v53 }
 0x38b   : > { %v1537_v44 = vpop.permute.xlu0 %1536 }
 0x38c   : > { %3487 = vmatpush3.bf16.msra.mxu1 %v1537_v44  ;;  %v2491_v44 = vmul.f32 0.2, %v2427_v39 }
 0x38d   : > { %v6015_v31 = vpop.xlane.xlu1 %2587 }
 0x38e   : > { %7804 = vst [vmem:[#allocation40_spill] sm:$0xff] %v6015_v31  ;;  %2602 = vmax.xlane.f32.xlu1 %v2601_v34  ;;  %v2490_v34 = vmul.f32 0.2, %v2426_v45  ;;  %v2523_v20 = vsel %vm2459_vm9, %v2427_v39, %v2491_v44  ;;  %v7811_v39 = vld [vmem:[#allocation66_spill] sm:$0xff]  ;;  %vm3302_vm9 = vcmask 261120  }
 0x38f   : > { %v1539_v32 = vpop.permute.xlu0 %1538  ;;  %v6041_v3 = vsel %vm7797_vm15, %v2523_v20, -1e+09  ;;  %v1325_v20 = vsub.f32 %v7810_v9, %v5356_v49  ;;  %vm3172_vm15 = vcmask 130048  }
 0x390   : > { %v2522_v14 = vsel %vm2458_vm8, %v2426_v45, %v2490_v34  ;;  %7807 = vst [vmem:[#allocation67_spill] sm:$0xff] %v6041_v3  ;;  %v1787_v45 = vadd.f32 %v5376_v2, %v5705_v25  ;;  %vm3189_vm8 = vcmask 195584  }
 0x391   : > { %v6023_v11 = vpop.xlane.xlu1 %2590 }
 0x392   : > { %7805 = vst [vmem:[#allocation60_spill] sm:$0xff] %v6023_v11  ;;  %1423 = vadd.xlane.f32.xlu1 %v1422_v0  ;;  %v1851_v44 = vmul.f32 0.2, %v1787_v45  ;;  %vm1819_vm7 = vcmp.ge.f32.partialorder %v1787_v45, 0.0  ;;  %v1330_v11 = vsub.f32 %v7814_v17, %v5367_v60 }
 0x393   : > { %v1557_v51 = vpop.permute.xlu0 %1556 }
 0x394   : > { %v1384_v17 = vmul.f32 1.442695, %v1330_v11  ;;  %v1789_v11 = vadd.f32 %v5376_v2, %v5745_v38 }
 0x395   : > { %v6027_v22 = vpop.xlane.xlu1 %1411 }
 0x396   : > { %1426 = vadd.xlane.f32.xlu1 %v1425_v35  ;;  %v6037_v35 = vsel %vm7795_vm12, %v2522_v14, -1e+09  ;;  %v1324_v14 = vsub.f32 %v7809_v62, %v5356_v49  ;;  %v7813_v49 = vld [vmem:[#allocation70_spill] sm:$0xff]  ;;  %vm1821_vm14 = vcmp.ge.f32.partialorder %v1789_v11, 0.0  ;;  %vm3155_vm12 = vcmask 64512  }
 0x397   : > { %7806 = vst [vmem:[#allocation61_spill] sm:$0xff] %v6037_v35  ;;  %v2598_v12 = vmax.f32 %v6037_v35, %v6041_v3  ;;  %v1374_v3 = vmul.f32 1.442695, %v1325_v20  ;;  %v1327_v9 = vsub.f32 %v7813_v49, %v5358_v26 }
 0x398   : > { %v1372_v62 = vmul.f32 1.442695, %v1324_v14 }
 0x399   : > { %v6033_v53 = vpop.xlane.xlu1 %1414 }
 0x39a   : > { %3834 = vpow2.f32 %v1372_v62 }
 0x39b   : > { %3836 = vpow2.f32 %v1374_v3  ;;  %v7820_v3 = vld [vmem:[#allocation31_spill] sm:$0xff] }
 0x39d   : > { %v1555_v0 = vpop.permute.xlu1 %1554 }
 0x39e   : > { %3488 = vmatprep.subr.bf16.mxu1 %v1555_v0  ;;  %v2430_v0 = vadd.f32 %v5388_v28, %v5711_v57 }
 0x39f   : > { %3489 = vmatpush3.bf16.msra.mxu1 %v1539_v32  ;;  %v7812_v32 = vld [vmem:[#allocation69_spill] sm:$0xff] }
 0x3a0   : > { %3490 = vmatprep.subr.bf16.mxu1 %v1557_v51  ;;  %v1788_v51 = vadd.f32 %v5378_v1, %v5705_v25  ;;  %v1326_v34 = vsub.f32 %v7812_v32, %v5358_v26  ;;  %v2431_v25 = vadd.f32 %v5390_v15, %v5711_v57  ;;  %v1883_v32 = vsel %vm1819_vm7, %v1787_v45, %v1851_v44  ;;  %v7815_v57 = vld [vmem:[#allocation72_spill] sm:$0xff] }
 0x3a1   : > { %v2494_v55 = vmul.f32 0.2, %v2430_v0  ;;  %v1331_v14 = vsub.f32 %v7815_v57, %v5367_v60  ;;  %vm2462_vm11 = vcmp.ge.f32.partialorder %v2430_v0, 0.0  ;;  %v1378_v26 = vmul.f32 1.442695, %v1327_v9  ;;  %v7827_v57 = vld [vmem:[#allocation2_spill] sm:$0xff] }
 0x3a2   : > { %vm1820_vm5 = vcmp.ge.f32.partialorder %v1788_v51, 0.0  ;;  %v1376_v35 = vmul.f32 1.442695, %v1326_v34  ;;  %v2495_v16 = vmul.f32 0.2, %v2431_v25  ;;  %vm2463_vm3 = vcmp.ge.f32.partialorder %v2431_v25, 0.0 }
 0x3a3   : > { %v2526_v20 = vsel %vm2462_vm11, %v2430_v0, %v2494_v55  ;;  %v1386_v34 = vmul.f32 1.442695, %v1331_v14  ;;  %v1328_v44 = vsub.f32 %v7820_v3, %v5460_v52  ;;  %v1790_v55 = vadd.f32 %v5378_v1, %v5745_v38 }
 0x3a4   : > { %3838 = vpow2.f32 %v1376_v35  ;;  %v2527_v60 = vsel %vm2463_vm3, %v2431_v25, %v2495_v16  ;;  %v7821_v35 = vld [vmem:[#allocation81_spill] sm:$0xff]  ;;  %v6097_v62 = vsel %vm7816_vm2, %v2526_v20, -1e+09  ;;  %v6111_v20 = vpop.eup %3834 }
 0x3a5   : > { %2599 = vmax.xlane.f32.xlu0 %v2598_v12  ;;  %v1852_v12 = vmul.f32 0.2, %v1788_v51  ;;  %3840 = vpow2.f32 %v1378_v26  ;;  %v7822_v16 = vld [vmem:[#allocation77_spill] sm:$0xff]  ;;  %7823 = vst [vmem:[#allocation64_spill] sm:$0xff] %v6097_v62  ;;  %v6101_v2 = vsel %vm7818_vm4, %v2527_v60, -1e+09 }
 0x3a6   : > { %v1334_v0 = vsub.f32 %v7822_v16, %v5771_v58  ;;  %7824 = vst [vmem:[#allocation65_spill] sm:$0xff] %v6101_v2  ;;  %3842 = vpow2.f32 %v1384_v17  ;;  %v1380_v38 = vmul.f32 1.442695, %v1328_v44  ;;  %v7828_v26 = vld [vmem:[#allocation37_spill] sm:$0xff]  ;;  %v2604_v17 = vmax.f32 %v6097_v62, %v6101_v2  ;;  %v7829_v60 = vld [vmem:[#allocation79_spill] sm:$0xff]  ;;  %v6125_v44 = vpop.eup %3836 }
 0x3a7   : > { %1562 = vrot.lane.b32.xlu1 %v7808_v6, %s4147_s23  ;;  %v1884_v31 = vsel %vm1820_vm5, %v1788_v51, %v1852_v12  ;;  %v2432_v6 = vadd.f32 %v5388_v28, %v5721_v27  ;;  %v6077_v51 = vsel %vm7816_vm2, %v1883_v32, -1e+09  ;;  %v1329_v12 = vsub.f32 %v7821_v35, %v5460_v52  ;;  %v7825_v52 = vld [vmem:[#allocation78_spill] sm:$0xff]  ;;  %v7826_v32 = vld [vmem:[#allocation51_spill] sm:$0xff] }
 0x3a8   : > { %7817 = vst [vmem:[#allocation68_spill] sm:$0xff] %v6077_v51  ;;  %v6081_v28 = vsel %vm7818_vm4, %v1884_v31, -1e+09  ;;  %v1335_v49 = vsub.f32 %v7825_v52, %v5771_v58  ;;  %3844 = vpow2.f32 %v1386_v34  ;;  %v1332_v14 = vsub.f32 %v7827_v57, %v7826_v32  ;;  %v7833_v34 = vld [vmem:[#allocation44_spill] sm:$0xff]  ;;  %v7838_v57 = vld [vmem:[#allocation41_spill] sm:$0xff] }
 0x3a9   : > { %7819 = vst [vmem:[#allocation62_spill] sm:$0xff] %v6081_v28  ;;  %vm2464_vm1 = vcmp.ge.f32.partialorder %v2432_v6, 0.0  ;;  %v1961_v31 = vmax.f32 %v6077_v51, %v6081_v28  ;;  %v1382_v54 = vmul.f32 1.442695, %v1329_v12  ;;  %v1333_v13 = vsub.f32 %v7828_v26, %v7826_v32 }
 0x3aa   : > { %v1392_v58 = vmul.f32 1.442695, %v1334_v0  ;;  %vm7834_vm13 = vnez %v7833_v34  ;;  %vm1822_vm6 = vcmp.ge.f32.partialorder %v1790_v55, 0.0  ;;  %v1853_v35 = vmul.f32 0.2, %v1789_v11 }
 0x3ab   : > { %v1394_v12 = vmul.f32 1.442695, %v1335_v49  ;;  %3846 = vpow2.f32 %v1380_v38  ;;  %v1388_v52 = vmul.f32 1.442695, %v1332_v14  ;;  %v1337_v26 = vsub.f32 %v7838_v57, %v5753_v41 }
 0x3ac   : > { %3848 = vpow2.f32 %v1382_v54  ;;  %v1885_v54 = vsel %vm1821_vm14, %v1789_v11, %v1853_v35 }
 0x3ad   : > { %3850 = vpow2.f32 %v1392_v58  ;;  %v1428_v58 = vadd.f32 %v6125_v44, %v6111_v20 }
 0x3ae   : > { %v6129_v0 = vpop.eup %3838  ;;  %3852 = vpow2.f32 %v1394_v12 }
 0x3af   : > { %3854 = vpow2.f32 %v1388_v52 }
 0x3bb   : > { %1546 = vrot.lane.b32.xlu0 %v7811_v39, %s4147_s23  ;;  %v2433_v39 = vadd.f32 %v5390_v15, %v5721_v27  ;;  %v2496_v15 = vmul.f32 0.2, %v2432_v6 }
 0x3bd   : > { %v2497_v27 = vmul.f32 0.2, %v2433_v39  ;;  %vm2465_vm10 = vcmp.ge.f32.partialorder %v2433_v39, 0.0  ;;  %v2528_v9 = vsel %vm2464_vm1, %v2432_v6, %v2496_v15  ;;  %v1338_v6 = vsub.f32 %v7829_v60, %v5795_v48  ;;  %v7830_v15 = vld [vmem:[#allocation43_spill] sm:$0xff] }
 0x3be   : > { %vm7831_vm0 = vnez %v7830_v15 }
 0x3bf   : > { %v2529_v1 = vsel %vm2465_vm10, %v2433_v39, %v2497_v27  ;;  %v6119_v27 = vsel %vm7831_vm0, %v2528_v9, -1e+09  ;;  %v7837_v9 = vld [vmem:[#allocation38_spill] sm:$0xff]  ;;  %v1400_v60 = vmul.f32 1.442695, %v1338_v6 }
 0x3c0   : > { %7832 = vst [vmem:[#allocation69_spill] sm:$0xff] %v6119_v27  ;;  %v6123_v3 = vsel %vm7834_vm13, %v2529_v1, -1e+09  ;;  %v1336_v32 = vsub.f32 %v7837_v9, %v5753_v41  ;;  %v1390_v1 = vmul.f32 1.442695, %v1333_v13 }
 0x3c1   : > { %7835 = vst [vmem:[#allocation70_spill] sm:$0xff] %v6123_v3  ;;  %v2607_v49 = vmax.f32 %v6119_v27, %v6123_v3  ;;  %v1398_v41 = vmul.f32 1.442695, %v1337_v26  ;;  %v6153_v12 = vsel %vm7831_vm0, %v1885_v54, -1e+09  ;;  %v7848_v3 = vld [vmem:[#allocation83_spill] sm:$0xff] }
 0x3c2   : > { %v1396_v14 = vmul.f32 1.442695, %v1336_v32  ;;  %3856 = vpow2.f32 %v1390_v1  ;;  %7841 = vst [vmem:[#allocation31_spill] sm:$0xff] %v6153_v12  ;;  %v1969_v27 = vsub.f32 %v7848_v3, %v5815_v59 }
 0x3c3   : > { %3858 = vpow2.f32 %v1400_v60 }
 0x3c4   : > { %v6073_v45 = vpop.xlane.xlu0 %1950 }
 0x3c8   : > { %v1541_v25 = vpop.permute.xlu0 %1540 }
 0x3c9   : > { %3491 = vmatpush3.bf16.msra.mxu1 %v1541_v25  ;;  %v1854_v25 = vmul.f32 0.2, %v1790_v55 }
 0x3cb   : > { %1962 = vmax.xlane.f32.xlu1 %v1961_v31  ;;  %v7836_v31 = vld [vmem:[#allocation80_spill] sm:$0xff]  ;;  %v1886_v13 = vsel %vm1822_vm6, %v1790_v55, %v1854_v25 }
 0x3cc   : > { %v1339_v16 = vsub.f32 %v7836_v31, %v5795_v48  ;;  %v6157_v11 = vsel %vm7834_vm13, %v1886_v13, -1e+09 }
 0x3cd   : > { %7842 = vst [vmem:[#allocation81_spill] sm:$0xff] %v6157_v11  ;;  %v1964_v25 = vmax.f32 %v6153_v12, %v6157_v11  ;;  %v7849_v12 = vld [vmem:[#allocation84_spill] sm:$0xff] }
 0x3ce   : > { %v6115_v39 = vpop.xlane.xlu1 %1953  ;;  %v1402_v38 = vmul.f32 1.442695, %v1339_v16  ;;  %v1970_v62 = vsub.f32 %v7849_v12, %v5815_v59  ;;  %v7853_v59 = vld [vmem:[#allocation8_spill] sm:$0xff] }
 0x3cf   : > { %2605 = vmax.xlane.f32.xlu1 %v2604_v17  ;;  %v6139_v17 = vpop.eup %3840 }
 0x3d0   : > { %v6143_v31 = vpop.eup %3842  ;;  %3860 = vpow2.f32 %v1402_v38  ;;  %v1431_v55 = vadd.f32 %v6139_v17, %v6129_v0 }
 0x3d1   : > { %v6147_v6 = vpop.eup %3844  ;;  %3862 = vpow2.f32 %v1396_v14 }
 0x3d2   : > { %v6137_v48 = vpop.xlane.xlu1 %2593  ;;  %3864 = vpow2.f32 %v1398_v41  ;;  %v6161_v35 = vpop.eup %3846  ;;  %v1437_v32 = vadd.f32 %v6147_v6, %v6143_v31 }
 0x3d3   : > { %7839 = vst [vmem:[#allocation71_spill] sm:$0xff] %v6137_v48  ;;  %2608 = vmax.xlane.f32.xlu1 %v2607_v49  ;;  %v6167_v52 = vpop.eup %3848 }
 0x3d4   : > { %v6169_v15 = vpop.eup %3850  ;;  %v1434_v26 = vadd.f32 %v6167_v52, %v6161_v35 }
 0x3d5   : > { %v6171_v34 = vpop.eup %3852 }
 0x3d6   : > { %v6149_v9 = vpop.xlane.xlu1 %2596  ;;  %v6175_v1 = vpop.eup %3854  ;;  %v1443_v14 = vadd.f32 %v6171_v34, %v6169_v15 }
 0x3d7   : > { %7840 = vst [vmem:[#allocation72_spill] sm:$0xff] %v6149_v9  ;;  %1429 = vadd.xlane.f32.xlu1 %v1428_v58  ;;  %v6179_v49 = vpop.eup %3856 }
 0x3d8   : > { %v6181_v60 = vpop.eup %3858  ;;  %v1440_v41 = vadd.f32 %v6179_v49, %v6175_v1 }
 0x3da   : > { %v6163_v16 = vpop.xlane.xlu1 %1417  ;;  %1965 = vmax.xlane.f32.xlu0 %v1964_v25  ;;  %v6183_v38 = vpop.eup %3860 }
 0x3db   : > { %1432 = vadd.xlane.f32.xlu1 %v1431_v55  ;;  %v6187_v54 = vpop.eup %3862  ;;  %v1449_v55 = vadd.f32 %v6183_v38, %v6181_v60 }
 0x3dc   : > { %v6191_v58 = vpop.eup %3864 }
 0x3de   : > { %v1559_v57 = vpop.permute.xlu1 %1558  ;;  %1435 = vadd.xlane.f32.xlu0 %v1434_v26 }
 0x3df   : > { %1438 = vadd.xlane.f32.xlu1 %v1437_v32  ;;  %3492 = vmatprep.subr.bf16.mxu1 %v1559_v57  ;;  %v1446_v32 = vadd.f32 %v6191_v58, %v6187_v54  ;;  %v7843_v57 = vld [vmem:[#allocation18_spill] sm:$0xff] }
 0x3e2   : > { %v1543_v13 = vpop.permute.xlu1 %1542  ;;  %1441 = vadd.xlane.f32.xlu0 %v1440_v41 }
 0x3e3   : > { %1444 = vadd.xlane.f32.xlu1 %v1443_v14  ;;  %3493 = vmatpush3.bf16.msra.mxu1 %v1543_v13  ;;  %v7844_v14 = vld [vmem:[#allocation17_spill] sm:$0xff] }
 0x3e6   : > { %v1561_v25 = vpop.permute.xlu1 %1560  ;;  %1447 = vadd.xlane.f32.xlu0 %v1446_v32  ;;  %v7847_v32 = vld [vmem:[#allocation3_spill] sm:$0xff] }
 0x3e7   : > { %1450 = vadd.xlane.f32.xlu1 %v1449_v55  ;;  %3494 = vmatprep.subr.bf16.mxu1 %v1561_v25  ;;  %v7846_v55 = vld [vmem:[#allocation42_spill] sm:$0xff]  ;;  %v1968_v2 = vsub.f32 %v7847_v32, %v5787_v63 }
 0x3e8   : > { %v1967_v25 = vsub.f32 %v7846_v55, %v5787_v63  ;;  %v2005_v55 = vmul.f32 1.442695, %v1970_v62  ;;  %v7852_v63 = vld [vmem:[#allocation7_spill] sm:$0xff] }
 0x3e9   : > { %v2001_v28 = vmul.f32 1.442695, %v1968_v2  ;;  %v2612_v3 = vsub.f32 %v7852_v63, %v5827_v50  ;;  %v2613_v2 = vsub.f32 %v7853_v59, %v5827_v50 }
 0x3ea   : > { %v1999_v11 = vmul.f32 1.442695, %v1967_v25 }
 0x3eb   : > { %v2646_v12 = vmul.f32 1.442695, %v2612_v3 }
 0x3ec   : > { %3866 = vpow2.f32 %v1999_v11 }
 0x3ed   : > { %3868 = vpow2.f32 %v2001_v28 }
 0x3f6   : > { %v6221_v11 = vpop.eup %3866 }
 0x3f8   : > { %2175 = vrot.lane.b32.xlu1 %v7843_v57, %s4148_s24 }
 0x3f9   : > { %v1421_v26 = vpop.xlane.xlu0 %1420 }
 0x3fc   : > { %2834 = vrot.lane.b32.xlu1 %v7844_v14, %s4149_s25  ;;  %2191 = vrot.lane.b32.xlu0 %v7844_v14, %s4148_s24  ;;  %v7850_v14 = vld [vmem:[#allocation4_spill] sm:$0xff] }
 0x3fd   : > { %v6203_v13 = vpop.xlane.xlu0 %1959  ;;  %v2610_v51 = vsub.f32 %v7850_v14, %v5807_v5 }
 0x3fe   : > { %7845 = vst [vmem:[#allocation77_spill] sm:$0xff] %v6203_v13  ;;  %v2003_v13 = vmul.f32 1.442695, %v1969_v27  ;;  %v2648_v27 = vmul.f32 1.442695, %v2613_v2 }
 0x3ff   : > { %v2642_v48 = vmul.f32 1.442695, %v2610_v51 }
 0x400   : > { %3870 = vpow2.f32 %v2003_v13 }
 0x401   : > { %v1545_v41 = vpop.permute.xlu0 %1544  ;;  %3872 = vpow2.f32 %v2005_v55 }
 0x402   : > { %3495 = vmatpush3.bf16.msra.mxu1 %v1545_v41  ;;  %v7851_v41 = vld [vmem:[#allocation82_spill] sm:$0xff]  ;;  %3874 = vpow2.f32 %v2642_v48 }
 0x403   : > { %v2611_v9 = vsub.f32 %v7851_v41, %v5807_v5  ;;  %v6225_v5 = vpop.eup %3868 }
 0x404   : > { %v2063_v50 = vadd.f32 %v6225_v5, %v6221_v11 }
 0x405   : > { %v2644_v25 = vmul.f32 1.442695, %v2611_v9 }
 0x407   : > { %3876 = vpow2.f32 %v2644_v25 }
 0x408   : > { %3878 = vpow2.f32 %v2646_v12 }
 0x409   : > { %3880 = vpow2.f32 %v2648_v27 }
 0x40a   : > { %v6227_v51 = vpop.eup %3870  ;;  %3882 = vrcp.f32 %v6033_v53  ;;  %v7855_v53 = vld [vmem:[#allocation19_spill] sm:$0xff] }
 0x40b   : > { %v6229_v28 = vpop.eup %3872  ;;  %3884 = vrcp.f32 %v6027_v22 }
 0x40c   : > { %v6235_v48 = vpop.eup %3874  ;;  %v2066_v9 = vadd.f32 %v6229_v28, %v6227_v51  ;;  %3886 = vrcp.f32 %v1421_v26  ;;  %v7856_v26 = vpack.c.bf16 %v5939_v61, %v5936_v47 }
 0x40d   : > { %3888 = vrcp.f32 %v6163_v16 }
 0x411   : > { %v6239_v13 = vpop.eup %3876 }
 0x412   : > { %v6241_v41 = vpop.eup %3878  ;;  %v2706_v55 = vadd.f32 %v6239_v13, %v6235_v48 }
 0x413   : > { %v6245_v63 = vpop.eup %3880 }
 0x414   : > { %v2709_v25 = vadd.f32 %v6245_v63, %v6241_v41  ;;  %v3883_v2 = vpop.eup %3882 }
 0x415   : > { %v3885_v27 = vpop.eup %3884 }
 0x416   : > { %v1473_v22 = vmul.f32 %v3885_v27, %v5813_v18 }
 0x417   : > { %v6223_v32 = vpop.xlane.xlu1 %1956 }
 0x41b   : > { %v6231_v62 = vpop.xlane.xlu1 %2602  ;;  %2064 = vadd.xlane.f32.xlu0 %v2063_v50  ;;  %v7854_v50 = vld [vmem:[#allocation20_spill] sm:$0xff] }
 0x41f   : > { %v1424_v14 = vpop.xlane.xlu1 %1423 }
 0x420   : > { %2067 = vadd.xlane.f32.xlu1 %v2066_v9  ;;  %v1475_v9 = vmul.f32 %v3883_v2, %v5823_v10  ;;  %v7857_v10 = vld [vmem:[#allocation25_spill] sm:$0xff] }
 0x422   : > { %v1503_v16 = vpack.c.bf16 %v1475_v9, %v1473_v22 }
 0x423   : > { %v1427_v3 = vpop.xlane.xlu1 %1426 }
 0x424   : > { %2707 = vadd.xlane.f32.xlu1 %v2706_v55  ;;  %3890 = vrcp.f32 %v1427_v3  ;;  %v1472_v3 = vmul.f32 %v3885_v27, %v5805_v4 }
 0x425   : > { %3892 = vrcp.f32 %v1424_v14  ;;  %v7858_v14 = vld [vmem:[#allocation26_spill] sm:$0xff] }
 0x427   : > { %v1563_v59 = vpop.permute.xlu1 %1562 }
 0x428   : > { %2710 = vadd.xlane.f32.xlu1 %v2709_v25  ;;  %3496 = vmatprep.subr.bf16.mxu1 %v1563_v59  ;;  %v1474_v59 = vmul.f32 %v3883_v2, %v5819_v21 }
 0x42a   : > { %v1502_v61 = vpack.c.bf16 %v1474_v59, %v1472_v3  ;;  %v7862_v59 = vld [vmem:[#allocation109_spill] sm:$0xff] }
 0x431   : > { %2818 = vrot.lane.b32.xlu0 %v7843_v57, %s4149_s25  ;;  %v3887_v57 = vpop.eup %3886 }
 0x432   : > { %v6254_v12 = vpop.xlane.xlu0 %2599  ;;  %v3889_v25 = vpop.eup %3888  ;;  %v1479_v18 = vmul.f32 %v3887_v57, %v5955_v19  ;;  %v1478_v2 = vmul.f32 %v3887_v57, %v5953_v33 }
 0x433   : > { %v1477_v47 = vmul.f32 %v3889_v25, %v5919_v29  ;;  %v1476_v4 = vmul.f32 %v3889_v25, %v5915_v56 }
 0x435   : > { %2177 = vrot.lane.b32.xlu0 %v7854_v50, %s4148_s24  ;;  %v1505_v9 = vpack.c.bf16 %v1479_v18, %v1477_v47  ;;  %v1504_v22 = vpack.c.bf16 %v1478_v2, %v1476_v4  ;;  %v7863_v18 = vld [vmem:[#allocation87_spill] sm:$0xff]  ;;  %v7865_v47 = vld [vmem:[#allocation108_spill] sm:$0xff] }
 0x436   : > { %v1547_v55 = vpop.permute.xlu0 %1546  ;;  %v1973_v3 = vsub.f32 %v7863_v18, %v7862_v59 }
 0x437   : > { %3497 = vmatpush3.bf16.msra.mxu1 %v1547_v55  ;;  %v3891_v55 = vpop.eup %3890 }
 0x438   : > { %v3893_v21 = vpop.eup %3892  ;;  %v1483_v19 = vmul.f32 %v3891_v55, %v6021_v36  ;;  %v7864_v36 = vld [vmem:[#allocation10_spill] sm:$0xff]  ;;  %v1482_v56 = vmul.f32 %v3891_v55, %v6017_v7  ;;  %v2011_v2 = vmul.f32 1.442695, %v1973_v3 }
 0x439   : > { %2193 = vrot.lane.b32.xlu1 %v7855_v53, %s4148_s24  ;;  %2836 = vrot.lane.b32.xlu0 %v7855_v53, %s4149_s25  ;;  %v1481_v27 = vmul.f32 %v3893_v21, %v6013_v24  ;;  %v7860_v53 = vld [vmem:[#allocation85_spill] sm:$0xff]  ;;  %v1974_v57 = vsub.f32 %v7864_v36, %v7862_v59  ;;  %v1480_v25 = vmul.f32 %v3893_v21, %v6009_v30  ;;  %v7870_v30 = vld [vmem:[#allocation88_spill] sm:$0xff] }
 0x43a   : > { %1613 = vmatmul.mubr.bf16.vlgmr.msra.gmra.mrb[0].mxu1 %v7856_v26 }
 0x43b   : > { %1620 = vmatprep.mubr.bf16.mxu1 %v1503_v16  ;;  %v7861_v16 = vld [vmem:[#allocation86_spill] sm:$0xff] }
 0x43d   : > { %2195 = vrot.lane.b32.xlu1 %v7857_v10, %s4148_s24  ;;  %2820 = vrot.lane.b32.xlu0 %v7854_v50, %s4149_s25  ;;  %v7859_v50 = vld [vmem:[#allocation107_spill] sm:$0xff] }
 0x43e   : > { %v1971_v29 = vsub.f32 %v7860_v53, %v7859_v50  ;;  %v1972_v26 = vsub.f32 %v7861_v16, %v7859_v50  ;;  %v1506_v50 = vpack.c.bf16 %v1482_v56, %v1480_v25 }
 0x440   : > { %v2007_v33 = vmul.f32 1.442695, %v1971_v29  ;;  %v2009_v24 = vmul.f32 1.442695, %v1972_v26  ;;  %v7868_v29 = vld [vmem:[#allocation111_spill] sm:$0xff] }
 0x441   : > { %2838 = vrot.lane.b32.xlu1 %v7857_v10, %s4149_s25  ;;  %2179 = vrot.lane.b32.xlu0 %v7858_v14, %s4148_s24  ;;  %v1507_v10 = vpack.c.bf16 %v1483_v19, %v1481_v27  ;;  %v7867_v19 = vld [vmem:[#allocation6_spill] sm:$0xff]  ;;  %v2013_v27 = vmul.f32 1.442695, %v1974_v57  ;;  %v2617_v21 = vsub.f32 %v7870_v30, %v7868_v29 }
 0x442   : > { %1621 = vmatmul.mubr.bf16.gmra.mrb[4].mxu1 %v1502_v61  ;;  %v7866_v61 = vld [vmem:[#allocation5_spill] sm:$0xff]  ;;  %3894 = vpow2.f32 %v2007_v33  ;;  %v2615_v4 = vsub.f32 %v7867_v19, %v7865_v47 }
 0x443   : > { %1628 = vmatprep.mubr.bf16.mxu1 %v1505_v9  ;;  %v2614_v9 = vsub.f32 %v7866_v61, %v7865_v47  ;;  %3896 = vpow2.f32 %v2009_v24 }
 0x444   : > { %3898 = vpow2.f32 %v2011_v2  ;;  %v2652_v55 = vmul.f32 1.442695, %v2615_v4 }
 0x445   : > { %v2650_v53 = vmul.f32 1.442695, %v2614_v9  ;;  %3900 = vpow2.f32 %v2013_v27 }
 0x447   : > { %3902 = vpow2.f32 %v2650_v53 }
 0x448   : > { %3904 = vpow2.f32 %v2652_v55 }
 0x44a   : > { %1629 = vmatmul.mubr.bf16.gmra.mrb[8].mxu1 %v1504_v22  ;;  %v7869_v22 = vld [vmem:[#allocation9_spill] sm:$0xff] }
 0x44b   : > { %1636 = vmatprep.mubr.bf16.mxu1 %v1507_v10  ;;  %v2616_v7 = vsub.f32 %v7869_v22, %v7868_v29  ;;  %v2656_v10 = vmul.f32 1.442695, %v2617_v21 }
 0x44c   : > { %v6303_v59 = vpop.eup %3894 }
 0x44d   : > { %v2654_v26 = vmul.f32 1.442695, %v2616_v7  ;;  %v6307_v3 = vpop.eup %3896 }
 0x44e   : > { %v6309_v33 = vpop.eup %3898  ;;  %v2069_v56 = vadd.f32 %v6307_v3, %v6303_v59 }
 0x44f   : > { %3906 = vpow2.f32 %v2654_v26  ;;  %v6311_v36 = vpop.eup %3900 }
 0x450   : > { %3908 = vpow2.f32 %v2656_v10  ;;  %v2072_v25 = vadd.f32 %v6311_v36, %v6309_v33 }
 0x451   : > { %v6317_v24 = vpop.eup %3902 }
 0x452   : > { %1637 = vmatmul.mubr.bf16.gmra.mrb[12].mxu1 %v1506_v50  ;;  %v6321_v47 = vpop.eup %3904 }
 0x453   : > { %v2712_v2 = vadd.f32 %v6321_v47, %v6317_v24 }
 0x458   : > { %v6301_v16 = vpop.xlane.xlu1 %1962 }
 0x459   : > { %v6323_v9 = vpop.eup %3906 }
 0x45a   : > { %v6327_v19 = vpop.eup %3908 }
 0x45b   : > { %v2715_v50 = vadd.f32 %v6327_v19, %v6323_v9 }
 0x45c   : > { %v6305_v18 = vpop.xlane.xlu1 %2605 }
 0x460   : > { %v6313_v57 = vpop.xlane.xlu1 %2608  ;;  %2070 = vadd.xlane.f32.xlu0 %v2069_v56 }
 0x464   : > { %v1430_v61 = vpop.xlane.xlu1 %1429 }
 0x465   : > { %2073 = vadd.xlane.f32.xlu1 %v2072_v25  ;;  %3910 = vrcp.f32 %v1430_v61 }
 0x467   : > { %v6329_v27 = vpop.xlane.xlu0 %1965 }
 0x468   : > { %v1433_v4 = vpop.xlane.xlu1 %1432 }
 0x469   : > { %3912 = vrcp.f32 %v1433_v4  ;;  %2713 = vadd.xlane.f32.xlu1 %v2712_v2 }
 0x46b   : > { %v1436_v29 = vpop.xlane.xlu0 %1435 }
 0x46c   : > { %v1439_v53 = vpop.xlane.xlu1 %1438 }
 0x46d   : > { %3914 = vrcp.f32 %v1439_v53  ;;  %2716 = vadd.xlane.f32.xlu1 %v2715_v50 }
 0x46e   : > { %3916 = vrcp.f32 %v1436_v29 }
 0x46f   : > { %v3911_v7 = vpop.eup %3910  ;;  %v1442_v55 = vpop.xlane.xlu0 %1441 }
 0x470   : > { %v1445_v22 = vpop.xlane.xlu1 %1444  ;;  %v1485_v26 = vmul.f32 %v3911_v7, %v6125_v44  ;;  %v1484_v56 = vmul.f32 %v3911_v7, %v6111_v20 }
 0x471   : > { %3918 = vrcp.f32 %v1445_v22 }
 0x472   : > { %3920 = vrcp.f32 %v1442_v55 }
 0x473   : > { %v3913_v30 = vpop.eup %3912  ;;  %v1448_v61 = vpop.xlane.xlu0 %1447 }
 0x474   : > { %v1451_v21 = vpop.xlane.xlu1 %1450  ;;  %v1487_v10 = vmul.f32 %v3913_v30, %v6139_v17  ;;  %v1486_v25 = vmul.f32 %v3913_v30, %v6129_v0  ;;  %v7871_v30 = vld [vmem:[#allocation29_spill] sm:$0xff] }
 0x475   : > { %3922 = vrcp.f32 %v1451_v21 }
 0x476   : > { %v1509_v2 = vpack.c.bf16 %v1487_v10, %v1485_v26  ;;  %v1508_v4 = vpack.c.bf16 %v1486_v25, %v1484_v56  ;;  %3924 = vrcp.f32 %v1448_v61  ;;  %2822 = vrot.lane.b32.xlu0 %v7858_v14, %s4149_s25  ;;  %v7872_v10 = vld [vmem:[#allocation28_spill] sm:$0xff]  ;;  %v7873_v25 = vld [vmem:[#allocation33_spill] sm:$0xff] }
 0x477   : > { %v3915_v50 = vpop.eup %3914  ;;  %v2192_v29 = vpop.permute.xlu0 %2191 }
 0x478   : > { %v2176_v53 = vpop.permute.xlu1 %2175  ;;  %1644 = vmatprep.mubr.bf16.mxu1 %v1509_v2  ;;  %v1491_v44 = vmul.f32 %v3915_v50, %v6147_v6  ;;  %v3917_v17 = vpop.eup %3916  ;;  %3546 = vmatprep.subr.bf16.mxu0 %v2192_v29  ;;  %v1490_v7 = vmul.f32 %v3915_v50, %v6143_v31  ;;  %v7875_v29 = vld [vmem:[#allocation11_spill] sm:$0xff] }
 0x479   : > { %1645 = vmatmul.mubr.bf16.gmra.mrb[16].mxu1 %v1508_v4  ;;  %3547 = vmatpush3.bf16.msra.mxu0 %v2176_v53  ;;  %v1489_v0 = vmul.f32 %v3917_v17, %v6167_v52  ;;  %v1488_v22 = vmul.f32 %v3917_v17, %v6161_v35  ;;  %v7874_v53 = vld [vmem:[#allocation110_spill] sm:$0xff] }
 0x47a   : > { %2181 = vrot.lane.b32.xlu0 %v7871_v30, %s4148_s24 }
 0x47b   : > { %v3919_v20 = vpop.eup %3918  ;;  %v1511_v26 = vpack.c.bf16 %v1491_v44, %v1489_v0  ;;  %v1510_v52 = vpack.c.bf16 %v1490_v7, %v1488_v22  ;;  %v1975_v44 = vsub.f32 %v7875_v29, %v7874_v53  ;;  %v7878_v0 = vld [vmem:[#allocation13_spill] sm:$0xff] }
 0x47c   : > { %v3921_v55 = vpop.eup %3920  ;;  %v2835_v14 = vpop.permute.xlu1 %2834  ;;  %v1495_v21 = vmul.f32 %v3919_v20, %v6171_v34 }
 0x47d   : > { %3610 = vmatprep.subr.bf16.mxu1 %v2835_v14  ;;  %v1493_v6 = vmul.f32 %v3921_v55, %v6179_v49  ;;  %1652 = vmatprep.mubr.bf16.mxu1 %v1511_v26  ;;  %v1492_v34 = vmul.f32 %v3921_v55, %v6175_v1  ;;  %v1494_v49 = vmul.f32 %v3919_v20, %v6169_v15  ;;  %v7877_v20 = vld [vmem:[#allocation113_spill] sm:$0xff]  ;;  %v2015_v7 = vmul.f32 1.442695, %v1975_v44  ;;  %v7879_v55 = vld [vmem:[#allocation14_spill] sm:$0xff] }
 0x47e   : > { %2197 = vrot.lane.b32.xlu1 %v7872_v10, %s4148_s24  ;;  %2840 = vrot.lane.b32.xlu0 %v7872_v10, %s4149_s25  ;;  %v1977_v22 = vsub.f32 %v7878_v0, %v7877_v20 }
 0x47f   : > { %v1513_v56 = vpack.c.bf16 %v1495_v21, %v1493_v6  ;;  %v3923_v35 = vpop.eup %3922  ;;  %v1512_v4 = vpack.c.bf16 %v1494_v49, %v1492_v34  ;;  %v7880_v21 = vld [vmem:[#allocation112_spill] sm:$0xff]  ;;  %3926 = vpow2.f32 %v2015_v7  ;;  %v7882_v6 = vld [vmem:[#allocation90_spill] sm:$0xff] }
 0x480   : > { %v3925_v31 = vpop.eup %3924  ;;  %v1499_v2 = vmul.f32 %v3923_v35, %v6183_v38  ;;  %v1498_v15 = vmul.f32 %v3923_v35, %v6181_v60  ;;  %v7876_v38 = vld [vmem:[#allocation12_spill] sm:$0xff]  ;;  %v2019_v60 = vmul.f32 1.442695, %v1977_v22  ;;  %v2619_v10 = vsub.f32 %v7882_v6, %v7880_v21  ;;  %v7883_v35 = vld [vmem:[#allocation114_spill] sm:$0xff] }
 0x481   : > { %1653 = vmatmul.mubr.bf16.gmra.mrb[20].mxu1 %v1510_v52  ;;  %v1497_v61 = vmul.f32 %v3925_v31, %v6191_v58  ;;  %v1496_v1 = vmul.f32 %v3925_v31, %v6187_v54  ;;  %v1976_v17 = vsub.f32 %v7876_v38, %v7874_v53  ;;  %v7881_v54 = vld [vmem:[#allocation89_spill] sm:$0xff]  ;;  %v7884_v31 = vld [vmem:[#allocation91_spill] sm:$0xff]  ;;  %v7885_v49 = vld [vmem:[#allocation92_spill] sm:$0xff] }
 0x482   : > { %2199 = vrot.lane.b32.xlu1 %v7873_v25, %s4148_s24  ;;  %1660 = vmatprep.mubr.bf16.mxu1 %v1513_v56  ;;  %v2618_v26 = vsub.f32 %v7881_v54, %v7880_v21  ;;  %v2660_v34 = vmul.f32 1.442695, %v2619_v10 }
 0x483   : > { %2824 = vrot.lane.b32.xlu0 %v7871_v30, %s4149_s25  ;;  %v1515_v50 = vpack.c.bf16 %v1499_v2, %v1497_v61  ;;  %v1514_v58 = vpack.c.bf16 %v1498_v15, %v1496_v1  ;;  %v1978_v30 = vsub.f32 %v7879_v55, %v7877_v20  ;;  %v2017_v14 = vmul.f32 1.442695, %v1976_v17 }
 0x484   : > { %v2658_v56 = vmul.f32 1.442695, %v2618_v26  ;;  %v2621_v61 = vsub.f32 %v7885_v49, %v7883_v35 }
 0x485   : > { %v2021_v52 = vmul.f32 1.442695, %v1978_v30  ;;  %3928 = vpow2.f32 %v2017_v14 }
 0x486   : > { %2842 = vrot.lane.b32.xlu1 %v7873_v25, %s4149_s25  ;;  %3930 = vpow2.f32 %v2019_v60  ;;  %v2620_v25 = vsub.f32 %v7884_v31, %v7883_v35 }
 0x487   : > { %2183 = vrot.lane.b32.xlu0 %v7778_v37, %s4148_s24  ;;  %3932 = vpow2.f32 %v2021_v52 }
 0x488   : > { %3934 = vpow2.f32 %v2658_v56  ;;  %v2662_v2 = vmul.f32 1.442695, %v2620_v25 }
 0x489   : > { %1661 = vmatmul.mubr.bf16.gmra.mrb[24].mxu1 %v1512_v4  ;;  %3936 = vpow2.f32 %v2660_v34  ;;  %v2664_v4 = vmul.f32 1.442695, %v2621_v61 }
 0x48a   : > { %1668 = vmatprep.mubr.bf16.mxu1 %v1515_v50  ;;  %v6381_v50 = vpop.eup %3926  ;;  %3938 = vpow2.f32 %v2662_v2 }
 0x48b   : > { %3940 = vpow2.f32 %v2664_v4 }
 0x48f   : > { %v6383_v1 = vpop.eup %3928 }
 0x490   : > { %v6385_v15 = vpop.eup %3930  ;;  %v2075_v29 = vadd.f32 %v6383_v1, %v6381_v50 }
 0x491   : > { %1669 = vmatmul.mubr.bf16.gmra.mrb[28].mxu1 %v1514_v58  ;;  %v6387_v53 = vpop.eup %3932 }
 0x492   : > { %v6391_v44 = vpop.eup %3934  ;;  %v2078_v58 = vadd.f32 %v6387_v53, %v6385_v15 }
 0x493   : > { %v6395_v38 = vpop.eup %3936 }
 0x494   : > { %v6397_v20 = vpop.eup %3938  ;;  %v2718_v0 = vadd.f32 %v6395_v38, %v6391_v44 }
 0x495   : > { %v6401_v22 = vpop.eup %3940 }
 0x496   : > { %v2721_v30 = vadd.f32 %v6401_v22, %v6397_v20 }
 0x4a6   : > { %2076 = vadd.xlane.f32.xlu0 %v2075_v29 }
 0x4a8   : > { %v2065_v17 = vpop.xlane.xlu0 %2064 }
 0x4a9   : > { %3942 = vrcp.f32 %v2065_v17  ;;  %v7888_v17 = vld [vmem:[#allocation16_spill] sm:$0xff] }
 0x4aa   : > { %2079 = vadd.xlane.f32.xlu1 %v2078_v58 }
 0x4ac   : > { %v2819_v55 = vpop.permute.xlu0 %2818 }
 0x4ad   : > { %v2068_v7 = vpop.xlane.xlu1 %2067  ;;  %3611 = vmatpush3.bf16.msra.mxu1 %v2819_v55 }
 0x4ae   : > { %3944 = vrcp.f32 %v2068_v7  ;;  %2719 = vadd.xlane.f32.xlu1 %v2718_v0  ;;  %v7890_v7 = vld [vmem:[#allocation21_spill] sm:$0xff] }
 0x4b0   : > { %v2178_v21 = vpop.permute.xlu0 %2177 }
 0x4b1   : > { %v2708_v14 = vpop.xlane.xlu1 %2707 }
 0x4b2   : > { %2722 = vadd.xlane.f32.xlu1 %v2721_v30  ;;  %3946 = vrcp.f32 %v2708_v14  ;;  %v7891_v14 = vld [vmem:[#allocation22_spill] sm:$0xff] }
 0x4b3   : > { %v3943_v26 = vpop.eup %3942 }
 0x4b4   : > { %v2837_v60 = vpop.permute.xlu0 %2836  ;;  %v6406_v10 = vmul.f32 %v3943_v26, %v6221_v11  ;;  %v2128_v35 = vmul.f32 %v3943_v26, %v6225_v5 }
 0x4b5   : > { %v2711_v54 = vpop.xlane.xlu1 %2710  ;;  %3612 = vmatprep.subr.bf16.mxu1 %v2837_v60 }
 0x4b6   : > { %3948 = vrcp.f32 %v2711_v54 }
 0x4b8   : > { %v3945_v6 = vpop.eup %3944  ;;  %v2821_v25 = vpop.permute.xlu0 %2820 }
 0x4b9   : > { %v6409_v52 = vmul.f32 %v3945_v6, %v6227_v51  ;;  %v2194_v56 = vpop.permute.xlu1 %2193  ;;  %v2130_v31 = vmul.f32 %v3945_v6, %v6229_v28  ;;  %3613 = vmatpush3.bf16.msra.mxu1 %v2821_v25  ;;  %v7893_v6 = vld [vmem:[#allocation47_spill] sm:$0xff] }
 0x4ba   : > { %3548 = vmatprep.subr.bf16.mxu0 %v2194_v56  ;;  %v2623_v56 = vsub.f32 %v7893_v6, %v5921_v40 }
 0x4bb   : > { %3549 = vmatpush3.bf16.msra.mxu0 %v2178_v21  ;;  %v2160_v34 = vpack.c.bf16 %v2130_v31, %v2128_v35  ;;  %v7894_v31 = vld [vmem:[#allocation48_spill] sm:$0xff] }
 0x4bc   : > { %2826 = vrot.lane.b32.xlu0 %v7778_v37, %s4149_s25  ;;  %v3947_v51 = vpop.eup %3946  ;;  %v2180_v61 = vpop.permute.xlu0 %2179  ;;  %v2624_v25 = vsub.f32 %v7894_v31, %v5927_v42 }
 0x4bd   : > { %v2196_v11 = vpop.permute.xlu1 %2195  ;;  %2255 = vmatprep.mubr.bf16.mxu0 %v2160_v34  ;;  %v6418_v28 = vmul.f32 %v3947_v51, %v6235_v48  ;;  %v2771_v29 = vmul.f32 %v3947_v51, %v6239_v13  ;;  %v7886_v13 = vld [vmem:[#allocation115_spill] sm:$0xff]  ;;  %v2668_v34 = vmul.f32 1.442695, %v2623_v56 }
 0x4be   : > { %3550 = vmatprep.subr.bf16.mxu0 %v2196_v11  ;;  %v1980_v0 = vsub.f32 %v7888_v17, %v7886_v13  ;;  %v7895_v11 = vld [vmem:[#allocation75_spill] sm:$0xff] }
 0x4bf   : > { %3551 = vmatpush3.bf16.msra.mxu0 %v2180_v61  ;;  %v2625_v51 = vsub.f32 %v7895_v11, %v5927_v42  ;;  %v2670_v61 = vmul.f32 1.442695, %v2624_v25 }
 0x4c0   : > { %v3949_v5 = vpop.eup %3948  ;;  %2185 = vrot.lane.b32.xlu0 %v7783_v8, %s4148_s24 }
 0x4c1   : > { %v6421_v2 = vmul.f32 %v3949_v5, %v6241_v41  ;;  %v2839_v4 = vpop.permute.xlu1 %2838  ;;  %v2773_v37 = vmul.f32 %v3949_v5, %v6245_v63  ;;  %v7887_v41 = vld [vmem:[#allocation15_spill] sm:$0xff]  ;;  %v2672_v5 = vmul.f32 1.442695, %v2625_v51 }
 0x4c2   : > { %3614 = vmatprep.subr.bf16.mxu1 %v2839_v4  ;;  %v1979_v63 = vsub.f32 %v7887_v41, %v7886_v13 }
 0x4c3   : > { %2201 = vrot.lane.b32.xlu1 %v7782_v46, %s4148_s24  ;;  %v2803_v58 = vpack.c.bf16 %v2773_v37, %v2771_v29 }
 0x4c4   : > { %2844 = vrot.lane.b32.xlu0 %v7782_v46, %s4149_s25  ;;  %v7889_v46 = vld [vmem:[#allocation116_spill] sm:$0xff]  ;;  %v2023_v30 = vmul.f32 1.442695, %v1979_v63 }
 0x4c5   : > { %2898 = vmatprep.mubr.bf16.mxu1 %v2803_v58  ;;  %v1981_v55 = vsub.f32 %v7890_v7, %v7889_v46  ;;  %v1982_v21 = vsub.f32 %v7891_v14, %v7889_v46 }
 0x4c6   : > { %3950 = vpow2.f32 %v2023_v30 }
 0x4c7   : > { %2203 = vrot.lane.b32.xlu1 %v7784_v43, %s4148_s24  ;;  %v2027_v54 = vmul.f32 1.442695, %v1981_v55  ;;  %v2029_v60 = vmul.f32 1.442695, %v1982_v21 }
 0x4c8   : > { %2828 = vrot.lane.b32.xlu0 %v7783_v8, %s4149_s25  ;;  %v2025_v8 = vmul.f32 1.442695, %v1980_v0 }
 0x4ca   : > { %3952 = vpow2.f32 %v2025_v8 }
 0x4cb   : > { %2846 = vrot.lane.b32.xlu1 %v7784_v43, %s4149_s25  ;;  %v7892_v43 = vld [vmem:[#allocation73_spill] sm:$0xff]  ;;  %3954 = vpow2.f32 %v2027_v54 }
 0x4cc   : > { %2187 = vrot.lane.b32.xlu0 %v7799_v23, %s4148_s24  ;;  %v2622_v26 = vsub.f32 %v7892_v43, %v5921_v40  ;;  %3956 = vpow2.f32 %v2029_v60 }
 0x4ce   : > { %v2666_v35 = vmul.f32 1.442695, %v2622_v26 }
 0x4d0   : > { %3958 = vpow2.f32 %v2666_v35  ;;  %v6457_v4 = vpop.eup %3950 }
 0x4d1   : > { %3960 = vpow2.f32 %v2668_v34  ;;  %7896 = vst [vmem:[#allocation78_spill] sm:$0xff] %v6457_v4  ;;  %v7914_v34 = vld [vmem:[#allocation56_spill] sm:$0xff] }
 0x4d2   : > { %3962 = vpow2.f32 %v2670_v61  ;;  %v7898_v61 = vld [vmem:[#allocation66_spill] sm:$0xff] }
 0x4d3   : > { %3964 = vpow2.f32 %v2672_v5 }
 0x4d4   : > { %v6459_v29 = vpop.eup %3952 }
 0x4d5   : > { %v6461_v40 = vpop.eup %3954  ;;  %v2081_v58 = vadd.f32 %v6459_v29, %v6457_v4 }
 0x4d6   : > { %v6463_v37 = vpop.eup %3956 }
 0x4d7   : > { %v2084_v42 = vadd.f32 %v6463_v37, %v6461_v40 }
 0x4da   : > { %v6467_v13 = vpop.eup %3958 }
 0x4db   : > { %7897 = vst [vmem:[#allocation51_spill] sm:$0xff] %v6467_v13  ;;  %v6471_v41 = vpop.eup %3960 }
 0x4dc   : > { %v6473_v17 = vpop.eup %3962  ;;  %v2724_v0 = vadd.f32 %v6471_v41, %v6467_v13 }
 0x4dd   : > { %v6477_v46 = vpop.eup %3964 }
 0x4de   : > { %v2727_v30 = vadd.f32 %v6477_v46, %v6473_v17 }
 0x4eb   : > { %2082 = vadd.xlane.f32.xlu0 %v2081_v58 }
 0x4ed   : > { %v2071_v63 = vpop.xlane.xlu0 %2070 }
 0x4ee   : > { %3966 = vrcp.f32 %v2071_v63  ;;  %v7899_v63 = vld [vmem:[#allocation63_spill] sm:$0xff] }
 0x4ef   : > { %2085 = vadd.xlane.f32.xlu1 %v2084_v42 }
 0x4f1   : > { %v2823_v55 = vpop.permute.xlu0 %2822 }
 0x4f2   : > { %v2074_v7 = vpop.xlane.xlu1 %2073  ;;  %3615 = vmatpush3.bf16.msra.mxu1 %v2823_v55 }
 0x4f3   : > { %3968 = vrcp.f32 %v2074_v7  ;;  %2725 = vadd.xlane.f32.xlu1 %v2724_v0  ;;  %v7901_v7 = vld [vmem:[#allocation49_spill] sm:$0xff] }
 0x4f5   : > { %v2182_v21 = vpop.permute.xlu0 %2181 }
 0x4f6   : > { %v2714_v14 = vpop.xlane.xlu1 %2713 }
 0x4f7   : > { %2728 = vadd.xlane.f32.xlu1 %v2727_v30  ;;  %3970 = vrcp.f32 %v2714_v14 }
 0x4f8   : > { %v3967_v54 = vpop.eup %3966 }
 0x4f9   : > { %v2841_v43 = vpop.permute.xlu0 %2840  ;;  %v6482_v6 = vmul.f32 %v3967_v54, %v6307_v3  ;;  %v6488_v35 = vmul.f32 %v3967_v54, %v6303_v59 }
 0x4fa   : > { %v2717_v8 = vpop.xlane.xlu1 %2716  ;;  %3616 = vmatprep.subr.bf16.mxu1 %v2841_v43  ;;  %v7903_v43 = vld [vmem:[#allocation58_spill] sm:$0xff] }
 0x4fb   : > { %3972 = vrcp.f32 %v2717_v8 }
 0x4fd   : > { %v3969_v26 = vpop.eup %3968  ;;  %v2825_v25 = vpop.permute.xlu0 %2824 }
 0x4fe   : > { %v2198_v60 = vpop.permute.xlu1 %2197  ;;  %v6485_v56 = vmul.f32 %v3969_v26, %v6311_v36  ;;  %v6491_v31 = vmul.f32 %v3969_v26, %v6309_v33  ;;  %3617 = vmatpush3.bf16.msra.mxu1 %v2825_v25  ;;  %v7904_v26 = vld [vmem:[#allocation50_spill] sm:$0xff] }
 0x4ff   : > { %3552 = vmatprep.subr.bf16.mxu0 %v2198_v60  ;;  %v1985_v60 = vsub.f32 %v7904_v26, %v7903_v43 }
 0x500   : > { %3553 = vmatpush3.bf16.msra.mxu0 %v2182_v21  ;;  %v7902_v21 = vld [vmem:[#allocation27_spill] sm:$0xff] }
 0x501   : > { %2830 = vrot.lane.b32.xlu0 %v7799_v23, %s4149_s25  ;;  %v3971_v36 = vpop.eup %3970  ;;  %v2184_v59 = vpop.permute.xlu0 %2183 }
 0x502   : > { %v2200_v11 = vpop.permute.xlu1 %2199  ;;  %v6502_v5 = vmul.f32 %v3971_v36, %v6321_v47  ;;  %v6508_v42 = vmul.f32 %v3971_v36, %v6317_v24  ;;  %v7909_v47 = vld [vmem:[#allocation60_spill] sm:$0xff] }
 0x503   : > { %3554 = vmatprep.subr.bf16.mxu0 %v2200_v11  ;;  %v7905_v11 = vld [vmem:[#allocation23_spill] sm:$0xff] }
 0x504   : > { %3555 = vmatpush3.bf16.msra.mxu0 %v2184_v59  ;;  %v1986_v36 = vsub.f32 %v7905_v11, %v7903_v43 }
 0x505   : > { %v3973_v33 = vpop.eup %3972  ;;  %2189 = vrot.lane.b32.xlu0 %v7898_v61, %s4148_s24 }
 0x506   : > { %v2843_v51 = vpop.permute.xlu1 %2842  ;;  %v6505_v58 = vmul.f32 %v3973_v33, %v6327_v19  ;;  %v6511_v23 = vmul.f32 %v3973_v33, %v6323_v9  ;;  %v7900_v9 = vld [vmem:[#allocation57_spill] sm:$0xff]  ;;  %v7906_v33 = vld [vmem:[#allocation40_spill] sm:$0xff]  ;;  %v2037_v0 = vmul.f32 1.442695, %v1986_v36 }
 0x507   : > { %3618 = vmatprep.subr.bf16.mxu1 %v2843_v51  ;;  %v1983_v55 = vsub.f32 %v7901_v7, %v7900_v9  ;;  %v1984_v8 = vsub.f32 %v7902_v21, %v7900_v9  ;;  %v7907_v51 = vld [vmem:[#allocation24_spill] sm:$0xff]  ;;  %v2035_v7 = vmul.f32 1.442695, %v1985_v60  ;;  %v7910_v9 = vld [vmem:[#allocation103_spill] sm:$0xff] }
 0x508   : > { %2205 = vrot.lane.b32.xlu1 %v7899_v63, %s4148_s24  ;;  %v2628_v21 = vsub.f32 %v7910_v9, %v7909_v47  ;;  %v7913_v60 = vld [vmem:[#allocation32_spill] sm:$0xff] }
 0x509   : > { %2848 = vrot.lane.b32.xlu0 %v7899_v63, %s4149_s25  ;;  %v2031_v59 = vmul.f32 1.442695, %v1983_v55  ;;  %v2033_v63 = vmul.f32 1.442695, %v1984_v8  ;;  %v7912_v55 = vld [vmem:[#allocation55_spill] sm:$0xff] }
 0x50a   : > { %v1987_v11 = vsub.f32 %v7912_v55, %v6073_v45  ;;  %v2678_v36 = vmul.f32 1.442695, %v2628_v21 }
 0x50b   : > { %3974 = vpow2.f32 %v2031_v59 }
 0x50c   : > { %3976 = vpow2.f32 %v2033_v63  ;;  %v7916_v63 = vld [vmem:[#allocation71_spill] sm:$0xff] }
 0x50d   : > { %2832 = vrot.lane.b32.xlu0 %v7898_v61, %s4149_s25  ;;  %v3498_v24 = vpop.f32.mrb[0].mxu1  ;;  %v2626_v61 = vsub.f32 %v7907_v51, %v7906_v33  ;;  %3978 = vpow2.f32 %v2035_v7  ;;  %v7918_v7 = vld [vmem:[#allocation117_spill] sm:$0xff] }
 0x50e   : > { %v3499_v19 = vpop.f32.mrb[1].mxu1  ;;  %3980 = vpow2.f32 %v2037_v0  ;;  %v2631_v21 = vsub.f32 %v7918_v7, %v7916_v63 }
 0x50f   : > { %v6525_v30 = vadd.f32 %v3499_v19, %v3498_v24  ;;  %v3501_v14 = vpop.f32.mrb[2].mxu1  ;;  %v7908_v24 = vld [vmem:[#allocation101_spill] sm:$0xff]  ;;  %v2674_v43 = vmul.f32 1.442695, %v2626_v61  ;;  %v7915_v61 = vld [vmem:[#allocation35_spill] sm:$0xff] }
 0x510   : > { %v3502_v54 = vpop.f32.mrb[3].mxu1  ;;  %v2627_v19 = vsub.f32 %v7908_v24, %v7906_v33  ;;  %v1988_v24 = vsub.f32 %v7913_v60, %v6073_v45 }
 0x511   : > { %v6531_v25 = vadd.f32 %v3502_v54, %v3501_v14  ;;  %v7911_v14 = vld [vmem:[#allocation104_spill] sm:$0xff]  ;;  %3982 = vpow2.f32 %v2674_v43 }
 0x512   : > { %v2629_v54 = vsub.f32 %v7911_v14, %v7909_v47  ;;  %v2676_v33 = vmul.f32 1.442695, %v2627_v19  ;;  %v1989_v47 = vsub.f32 %v7914_v34, %v6115_v39  ;;  %v7917_v19 = vld [vmem:[#allocation36_spill] sm:$0xff]  ;;  %v2041_v45 = vmul.f32 1.442695, %v1988_v24 }
 0x513   : > { %v2630_v55 = vsub.f32 %v7917_v19, %v7916_v63  ;;  %v7919_v34 = vld [vmem:[#allocation72_spill] sm:$0xff]  ;;  %v7922_v19 = vld [vmem:[#allocation77_spill] sm:$0xff] }
 0x514   : > { %v2680_v59 = vmul.f32 1.442695, %v2629_v54  ;;  %3984 = vpow2.f32 %v2676_v33  ;;  %v2043_v60 = vmul.f32 1.442695, %v1989_v47  ;;  %v7923_v33 = vld [vmem:[#allocation34_spill] sm:$0xff]  ;;  %v7924_v47 = vld [vmem:[#allocation76_spill] sm:$0xff] }
 0x515   : > { %v3504_v3 = vpop.f32.mrb[4].mxu1  ;;  %3986 = vpow2.f32 %v2678_v36  ;;  %v1993_v24 = vsub.f32 %v7923_v33, %v7922_v19  ;;  %v2684_v36 = vmul.f32 1.442695, %v2631_v21  ;;  %v1994_v7 = vsub.f32 %v7924_v47, %v7922_v19  ;;  %v7930_v33 = vld [vmem:[#allocation59_spill] sm:$0xff] }
 0x516   : > { %v3505_v26 = vpop.f32.mrb[5].mxu1  ;;  %3988 = vpow2.f32 %v2680_v59  ;;  %v6569_v59 = vpop.eup %3974 }
 0x517   : > { %v6545_v51 = vadd.f32 %v3505_v26, %v3504_v3  ;;  %v3507_v8 = vpop.f32.mrb[6].mxu1  ;;  %v1990_v3 = vsub.f32 %v7915_v61, %v6115_v39  ;;  %v2039_v26 = vmul.f32 1.442695, %v1987_v11  ;;  %v7921_v39 = vld [vmem:[#allocation119_spill] sm:$0xff]  ;;  %v2682_v61 = vmul.f32 1.442695, %v2630_v55 }
 0x518   : > { %v3508_v9 = vpop.f32.mrb[7].mxu1  ;;  %v2633_v43 = vsub.f32 %v7921_v39, %v7919_v34  ;;  %7925 = vst [vmem:[#allocation2_spill] sm:$0xff] %v6569_v59  ;;  %v6575_v39 = vpop.eup %3976  ;;  %v2051_v19 = vmul.f32 1.442695, %v1993_v24  ;;  %v2053_v47 = vmul.f32 1.442695, %v1994_v7 }
 0x519   : > { %v6551_v14 = vadd.f32 %v3508_v9, %v3507_v8  ;;  %v7920_v8 = vld [vmem:[#allocation118_spill] sm:$0xff]  ;;  %v2045_v54 = vmul.f32 1.442695, %v1990_v3  ;;  %3990 = vpow2.f32 %v2039_v26  ;;  %7927 = vst [vmem:[#allocation37_spill] sm:$0xff] %v6575_v39  ;;  %v2087_v7 = vadd.f32 %v6575_v39, %v6569_v59 }
 0x51a   : > { %v2632_v9 = vsub.f32 %v7920_v8, %v7919_v34  ;;  %3992 = vpow2.f32 %v2041_v45  ;;  %v7926_v34 = vld [vmem:[#allocation53_spill] sm:$0xff]  ;;  %v7928_v45 = vld [vmem:[#allocation54_spill] sm:$0xff] }
 0x51b   : > { %3994 = vpow2.f32 %v2043_v60  ;;  %v1991_v26 = vsub.f32 %v7926_v34, %v6223_v32  ;;  %v1992_v21 = vsub.f32 %v7928_v45, %v6223_v32  ;;  %v2636_v60 = vsub.f32 %v7930_v33, %v6231_v62  ;;  %v7933_v32 = vld [vmem:[#allocation61_spill] sm:$0xff]  ;;  %v7934_v33 = vld [vmem:[#allocation67_spill] sm:$0xff] }
 0x51c   : > { %v2686_v3 = vmul.f32 1.442695, %v2632_v9  ;;  %3996 = vpow2.f32 %v2045_v54  ;;  %v2635_v49 = vsub.f32 %v7934_v33, %v6254_v12 }
 0x51d   : > { %v3510_v0 = vpop.f32.mrb[8].mxu1  ;;  %3998 = vpow2.f32 %v2682_v61  ;;  %v2047_v54 = vmul.f32 1.442695, %v1991_v26  ;;  %v2049_v24 = vmul.f32 1.442695, %v1992_v21  ;;  %v7935_v26 = vld [vmem:[#allocation68_spill] sm:$0xff] }
 0x51e   : > { %v3511_v11 = vpop.f32.mrb[9].mxu1  ;;  %4000 = vpow2.f32 %v2684_v36 }
 0x51f   : > { %v6565_v48 = vadd.f32 %v3511_v11, %v3510_v0  ;;  %v3513_v63 = vpop.f32.mrb[10].mxu1  ;;  %v2688_v0 = vmul.f32 1.442695, %v2633_v43  ;;  %v6579_v11 = vpop.eup %3978  ;;  %4002 = vpow2.f32 %v2686_v3  ;;  %v2634_v43 = vsub.f32 %v7933_v32, %v6254_v12  ;;  %v7936_v12 = vld [vmem:[#allocation62_spill] sm:$0xff] }
 0x520   : > { %v3514_v8 = vpop.f32.mrb[11].mxu1  ;;  %7929 = vst [vmem:[#allocation79_spill] sm:$0xff] %v6579_v11  ;;  %v6583_v9 = vpop.eup %3980  ;;  %v2694_v3 = vmul.f32 1.442695, %v2636_v60  ;;  %v1996_v21 = vsub.f32 %v7936_v12, %v6301_v16  ;;  %v7937_v60 = vld [vmem:[#allocation64_spill] sm:$0xff] }
 0x521   : > { %v6573_v55 = vadd.f32 %v3514_v8, %v3513_v63  ;;  %7931 = vst [vmem:[#allocation43_spill] sm:$0xff] %v6583_v9  ;;  %v7932_v63 = vld [vmem:[#allocation39_spill] sm:$0xff]  ;;  %v6587_v34 = vpop.eup %3982  ;;  %4004 = vpow2.f32 %v2688_v0  ;;  %v2090_v59 = vadd.f32 %v6583_v9, %v6579_v11 }
 0x522   : > { %v2637_v8 = vsub.f32 %v7932_v63, %v6231_v62  ;;  %v6591_v61 = vpop.eup %3984  ;;  %4006 = vpow2.f32 %v2051_v19  ;;  %v1995_v63 = vsub.f32 %v7935_v26, %v6301_v16  ;;  %v2690_v19 = vmul.f32 1.442695, %v2634_v43 }
 0x523   : > { %v6597_v62 = vpop.eup %3986  ;;  %4008 = vpow2.f32 %v2053_v47  ;;  %v2692_v47 = vmul.f32 1.442695, %v2635_v49 }
 0x524   : > { %v6603_v4 = vpop.eup %3988  ;;  %v2696_v0 = vmul.f32 1.442695, %v2637_v8  ;;  %4010 = vpow2.f32 %v2047_v54  ;;  %v7938_v8 = vld [vmem:[#allocation31_spill] sm:$0xff]  ;;  %v2055_v11 = vmul.f32 1.442695, %v1995_v63  ;;  %v7939_v54 = vld [vmem:[#allocation81_spill] sm:$0xff] }
 0x525   : > { %v3516_v45 = vpop.f32.mrb[12].mxu1  ;;  %v6609_v39 = vpop.eup %3990  ;;  %4012 = vpow2.f32 %v2049_v24  ;;  %v1997_v16 = vsub.f32 %v7938_v8, %v6329_v27  ;;  %v1998_v43 = vsub.f32 %v7939_v54, %v6329_v27  ;;  %v2733_v24 = vadd.f32 %v6603_v4, %v6597_v62 }
 0x526   : > { %v3517_v36 = vpop.f32.mrb[13].mxu1  ;;  %v6615_v26 = vpop.eup %3992  ;;  %4014 = vpow2.f32 %v2694_v3  ;;  %v2730_v3 = vadd.f32 %v6591_v61, %v6587_v34 }
 0x527   : > { %v6601_v32 = vadd.f32 %v3517_v36, %v3516_v45  ;;  %v3519_v13 = vpop.f32.mrb[14].mxu1  ;;  %v2638_v45 = vsub.f32 %v7937_v60, %v6305_v18  ;;  %v6619_v12 = vpop.eup %3994  ;;  %4016 = vpow2.f32 %v2696_v0  ;;  %v2059_v27 = vmul.f32 1.442695, %v1997_v16  ;;  %v7942_v0 = vld [vmem:[#allocation70_spill] sm:$0xff] }
 0x528   : > { %v3520_v33 = vpop.f32.mrb[15].mxu1  ;;  %v6623_v9 = vpop.eup %3996  ;;  %4018 = vpow2.f32 %v2690_v19  ;;  %v2061_v8 = vmul.f32 1.442695, %v1998_v43 }
 0x529   : > { %v6613_v36 = vadd.f32 %v3520_v33, %v3519_v13  ;;  %v2057_v13 = vmul.f32 1.442695, %v1996_v21  ;;  %v6627_v49 = vpop.eup %3998  ;;  %v2698_v33 = vmul.f32 1.442695, %v2638_v45  ;;  %4020 = vpow2.f32 %v2692_v47  ;;  %v7943_v45 = vld [vmem:[#allocation65_spill] sm:$0xff] }
 0x52a   : > { %7940 = vst [vmem:[#allocation44_spill] sm:$0xff] %v6627_v49  ;;  %v6633_v63 = vpop.eup %4000  ;;  %4022 = vpow2.f32 %v2055_v11  ;;  %v2641_v21 = vsub.f32 %v7942_v0, %v6313_v57  ;;  %v2639_v54 = vsub.f32 %v7943_v45, %v6305_v18  ;;  %v2093_v11 = vadd.f32 %v6615_v26, %v6609_v39 }
 0x52b   : > { %4024 = vpow2.f32 %v2057_v13 }
 0x52c   : > { %2088 = vadd.xlane.f32.xlu1 %v2087_v7  ;;  %2091 = vadd.xlane.f32.xlu0 %v2090_v59  ;;  %v7941_v7 = vld [vmem:[#allocation69_spill] sm:$0xff]  ;;  %v6635_v59 = vpop.eup %4002  ;;  %4026 = vpow2.f32 %v2698_v33  ;;  %v2704_v13 = vmul.f32 1.442695, %v2641_v21 }
 0x52d   : > { %v2640_v60 = vsub.f32 %v7941_v7, %v6313_v57  ;;  %v6639_v19 = vpop.eup %4004  ;;  %v2096_v7 = vadd.f32 %v6623_v9, %v6619_v12  ;;  %4028 = vpow2.f32 %v2059_v27  ;;  %v2736_v27 = vadd.f32 %v6633_v63, %v6627_v49 }
 0x52e   : > { %v6645_v47 = vpop.eup %4006  ;;  %4030 = vpow2.f32 %v2061_v8  ;;  %v2739_v33 = vadd.f32 %v6639_v19, %v6635_v59 }
 0x52f   : > { %7944 = vst [vmem:[#allocation80_spill] sm:$0xff] %v6645_v47  ;;  %v2702_v16 = vmul.f32 1.442695, %v2640_v60 }
 0x530   : > { %2734 = vadd.xlane.f32.xlu1 %v2733_v24  ;;  %2731 = vadd.xlane.f32.xlu0 %v2730_v3  ;;  %v6649_v24 = vpop.eup %4008  ;;  %v2700_v3 = vmul.f32 1.442695, %v2639_v54 }
 0x531   : > { %7945 = vst [vmem:[#allocation38_spill] sm:$0xff] %v6649_v24  ;;  %v6651_v43 = vpop.eup %4010 }
 0x532   : > { %7946 = vst [vmem:[#allocation41_spill] sm:$0xff] %v6651_v43  ;;  %v6653_v18 = vpop.eup %4012 }
 0x533   : > { %v2077_v57 = vpop.xlane.xlu0 %2076  ;;  %7947 = vst [vmem:[#allocation18_spill] sm:$0xff] %v6653_v18  ;;  %v6657_v60 = vpop.eup %4014 }
 0x534   : > { %2097 = vadd.xlane.f32.xlu1 %v2096_v7  ;;  %2094 = vadd.xlane.f32.xlu0 %v2093_v11  ;;  %4032 = vrcp.f32 %v2077_v57  ;;  %7948 = vst [vmem:[#allocation17_spill] sm:$0xff] %v6657_v60  ;;  %v6661_v45 = vpop.eup %4016  ;;  %v2102_v7 = vadd.f32 %v6649_v24, %v6645_v47  ;;  %v2099_v57 = vadd.f32 %v6653_v18, %v6651_v43 }
 0x535   : > { %4034 = vpow2.f32 %v2702_v16  ;;  %7949 = vst [vmem:[#allocation42_spill] sm:$0xff] %v6661_v45  ;;  %v6663_v8 = vpop.eup %4018 }
 0x536   : > { %7950 = vst [vmem:[#allocation3_spill] sm:$0xff] %v6663_v8  ;;  %v6665_v54 = vpop.eup %4020 }
 0x537   : > { %v2080_v0 = vpop.xlane.xlu1 %2079  ;;  %v2827_v21 = vpop.permute.xlu0 %2826  ;;  %v2742_v47 = vadd.f32 %v6665_v54, %v6663_v8 }
 0x538   : > { %4036 = vrcp.f32 %v2080_v0  ;;  %2740 = vadd.xlane.f32.xlu1 %v2739_v33  ;;  %2737 = vadd.xlane.f32.xlu0 %v2736_v27  ;;  %v6669_v16 = vpop.eup %4022 }
 0x539   : > { %4038 = vpow2.f32 %v2704_v13  ;;  %3619 = vmatpush3.bf16.msra.mxu1 %v2827_v21  ;;  %7951 = vst [vmem:[#allocation83_spill] sm:$0xff] %v6669_v16  ;;  %v6673_v0 = vpop.eup %4024 }
 0x53a   : > { %4040 = vpow2.f32 %v2700_v3  ;;  %7952 = vst [vmem:[#allocation84_spill] sm:$0xff] %v6673_v0  ;;  %v6675_v49 = vpop.eup %4026  ;;  %v2745_v3 = vadd.f32 %v6661_v45, %v6657_v60  ;;  %v2105_v60 = vadd.f32 %v6673_v0, %v6669_v16 }
 0x53b   : > { %v2720_v11 = vpop.xlane.xlu1 %2719  ;;  %v2186_v33 = vpop.permute.xlu0 %2185  ;;  %7953 = vst [vmem:[#allocation4_spill] sm:$0xff] %v6675_v49 }
 0x53c   : > { %2103 = vadd.xlane.f32.xlu1 %v2102_v7  ;;  %2100 = vadd.xlane.f32.xlu0 %v2099_v57  ;;  %v6677_v13 = vpop.eup %4028  ;;  %4042 = vrcp.f32 %v2720_v11 }
 0x53d   : > { %7954 = vst [vmem:[#allocation82_spill] sm:$0xff] %v6677_v13  ;;  %v6681_v27 = vpop.eup %4030 }
 0x53e   : > { %v4033_v43 = vpop.eup %4032  ;;  %v2108_v11 = vadd.f32 %v6681_v27, %v6677_v13 }
 0x53f   : > { %v2723_v21 = vpop.xlane.xlu1 %2722  ;;  %v2845_v7 = vpop.permute.xlu0 %2844  ;;  %v6694_v8 = vmul.f32 %v4033_v43, %v6383_v1 }
 0x540   : > { %4044 = vrcp.f32 %v2723_v21  ;;  %2746 = vadd.xlane.f32.xlu1 %v2745_v3  ;;  %v6685_v18 = vpop.eup %4034  ;;  %2743 = vadd.xlane.f32.xlu0 %v2742_v47  ;;  %v6700_v21 = vmul.f32 %v4033_v43, %v6381_v50 }
 0x541   : > { %7955 = vst [vmem:[#allocation7_spill] sm:$0xff] %v6685_v18  ;;  %3620 = vmatprep.subr.bf16.mxu1 %v2845_v7 }
 0x542   : > { %v4037_v57 = vpop.eup %4036 }
 0x543   : > { %v6691_v45 = vpop.eup %4038  ;;  %v2202_v24 = vpop.permute.xlu1 %2201  ;;  %v6697_v3 = vmul.f32 %v4037_v57, %v6387_v53  ;;  %v6703_v47 = vmul.f32 %v4037_v57, %v6385_v15 }
 0x544   : > { %7956 = vst [vmem:[#allocation8_spill] sm:$0xff] %v6691_v45  ;;  %v6705_v7 = vpop.eup %4040  ;;  %2109 = vadd.xlane.f32.xlu1 %v2108_v11  ;;  %3556 = vmatprep.subr.bf16.mxu0 %v2202_v24  ;;  %v2829_v16 = vpop.permute.xlu0 %2828  ;;  %v2751_v50 = vadd.f32 %v6691_v45, %v6685_v18 }
 0x545   : > { %7957 = vst [vmem:[#allocation20_spill] sm:$0xff] %v6705_v7  ;;  %2106 = vadd.xlane.f32.xlu0 %v2105_v60  ;;  %3557 = vmatpush3.bf16.msra.mxu0 %v2186_v33  ;;  %v2748_v15 = vadd.f32 %v6705_v7, %v6675_v49 }
 0x546   : > { %3621 = vmatpush3.bf16.msra.mxu1 %v2829_v16  ;;  %v4043_v57 = vpop.eup %4042 }
 0x547   : > { %v2204_v43 = vpop.permute.xlu1 %2203  ;;  %v6716_v11 = vmul.f32 %v4043_v57, %v6395_v38  ;;  %v6722_v53 = vmul.f32 %v4043_v57, %v6391_v44 }
 0x548   : > { %2752 = vadd.xlane.f32.xlu1 %v2751_v50  ;;  %3558 = vmatprep.subr.bf16.mxu0 %v2204_v43  ;;  %v2188_v24 = vpop.permute.xlu0 %2187 }
 0x549   : > { %2749 = vadd.xlane.f32.xlu0 %v2748_v15  ;;  %3559 = vmatpush3.bf16.msra.mxu0 %v2188_v24 }
 0x54a   : > { %v4045_v60 = vpop.eup %4044 }
 0x54b   : > { %v2847_v33 = vpop.permute.xlu1 %2846  ;;  %v6719_v16 = vmul.f32 %v4045_v60, %v6401_v22  ;;  %v6725_v1 = vmul.f32 %v4045_v60, %v6397_v20 }
 0x54c   : > { %v3522_v49 = vpop.f32.mrb[16].mxu1  ;;  %3622 = vmatprep.subr.bf16.mxu1 %v2847_v33 }
 0x54d   : > { %v3523_v50 = vpop.f32.mrb[17].mxu1  ;;  %v2806_v15 = vpack.c.bf16 %v6725_v1, %v6722_v53 }
 0x54e   : > { %v3524_v38 = vadd.f32 %v3523_v50, %v3522_v49  ;;  %v3525_v24 = vpop.f32.mrb[18].mxu1 }
 0x54f   : > { %v3526_v7 = vpop.f32.mrb[19].mxu1 }
 0x550   : > { %v3527_v22 = vadd.f32 %v3526_v7, %v3525_v24 }
 0x554   : > { %v3528_v18 = vpop.f32.mrb[20].mxu1 }
 0x555   : > { %v3529_v45 = vpop.f32.mrb[21].mxu1 }
 0x556   : > { %v3530_v44 = vadd.f32 %v3529_v45, %v3528_v18  ;;  %v3531_v57 = vpop.f32.mrb[22].mxu1 }
 0x557   : > { %v3532_v0 = vpop.f32.mrb[23].mxu1 }
 0x558   : > { %v3533_v20 = vadd.f32 %v3532_v0, %v3531_v57 }
 0x559   : > { %2981 = vrot.lane.b32.xlu1 %v6531_v25, %s4150_s26 }
 0x55c   : > { %v3534_v60 = vpop.f32.mrb[24].mxu1 }
 0x55d   : > { %2983 = vrot.lane.b32.xlu1 %v6545_v51, %s4150_s26  ;;  %v3535_v33 = vpop.f32.mrb[25].mxu1 }
 0x55e   : > { %v3536_v43 = vadd.f32 %v3535_v33, %v3534_v60  ;;  %v3537_v13 = vpop.f32.mrb[26].mxu1  ;;  %v7962_v33 = vpack.c.bf16 %v6491_v31, %v6488_v35 }
 0x55f   : > { %2979 = vrot.lane.b32.xlu0 %v6525_v30, %s4150_s26  ;;  %v3538_v49 = vpop.f32.mrb[27].mxu1 }
 0x560   : > { %v3539_v50 = vadd.f32 %v3538_v49, %v3537_v13 }
 0x561   : > { %2987 = vrot.lane.b32.xlu1 %v6565_v48, %s4150_s26 }
 0x563   : > { %2985 = vrot.lane.b32.xlu0 %v6551_v14, %s4150_s26 }
 0x564   : > { %v3540_v18 = vpop.f32.mrb[28].mxu1 }
 0x565   : > { %2991 = vrot.lane.b32.xlu1 %v6601_v32, %s4150_s26  ;;  %v3541_v45 = vpop.f32.mrb[29].mxu1 }
 0x566   : > { %v3542_v0 = vadd.f32 %v3541_v45, %v3540_v18  ;;  %v3543_v25 = vpop.f32.mrb[30].mxu1  ;;  %v7969_v18 = vld [vmem:[#allocation37_spill] sm:$0xff] }
 0x567   : > { %2989 = vrot.lane.b32.xlu0 %v6573_v55, %s4150_s26  ;;  %v3544_v51 = vpop.f32.mrb[31].mxu1 }
 0x568   : > { %v3545_v7 = vadd.f32 %v3544_v51, %v3543_v25 }
 0x569   : > { %2995 = vrot.lane.b32.xlu1 %v3524_v38, %s4150_s26 }
 0x56b   : > { %2993 = vrot.lane.b32.xlu0 %v6613_v36, %s4150_s26  ;;  %v7958_v36 = vpack.c.bf16 %v6409_v52, %v6406_v10  ;;  %v7963_v10 = vpack.c.bf16 %v6511_v23, %v6508_v42  ;;  %v7966_v23 = vpack.c.bf16 %v6703_v47, %v6700_v21 }
 0x56d   : > { %2999 = vrot.lane.b32.xlu1 %v3530_v44, %s4150_s26  ;;  %v7961_v44 = vpack.c.bf16 %v6505_v58, %v6502_v5 }
 0x56f   : > { %2997 = vrot.lane.b32.xlu0 %v3527_v22, %s4150_s26  ;;  %v7960_v22 = vpack.c.bf16 %v6485_v56, %v6482_v6 }
 0x571   : > { %3003 = vrot.lane.b32.xlu1 %v3536_v43, %s4150_s26  ;;  %v7959_v43 = vpack.c.bf16 %v6421_v2, %v6418_v28  ;;  %v7964_v28 = vpack.c.bf16 %v6697_v3, %v6694_v8  ;;  %v7965_v2 = vpack.c.bf16 %v6719_v16, %v6716_v11  ;;  %v7967_v8 = vld [vmem:[#allocation78_spill] sm:$0xff]  ;;  %v7968_v3 = vld [vmem:[#allocation51_spill] sm:$0xff] }
 0x573   : > { %3001 = vrot.lane.b32.xlu0 %v3533_v20, %s4150_s26 }
 0x575   : > { %3007 = vrot.lane.b32.xlu1 %v3542_v0, %s4150_s26  ;;  %v7970_v0 = vld [vmem:[#allocation2_spill] sm:$0xff] }
 0x577   : > { %3005 = vrot.lane.b32.xlu0 %v3539_v50, %s4150_s26 }
 0x578   : > { %v2083_v48 = vpop.xlane.xlu0 %2082 }
 0x57b   : > { %3009 = vrot.lane.b32.xlu0 %v3545_v7, %s4150_s26  ;;  %v7971_v7 = vld [vmem:[#allocation43_spill] sm:$0xff] }
 0x57c   : > { %v2086_v30 = vpop.xlane.xlu1 %2085  ;;  %v2831_v14 = vpop.permute.xlu0 %2830 }
 0x57d   : > { %3623 = vmatpush3.bf16.msra.mxu1 %v2831_v14  ;;  %4046 = vrcp.f32 %v2086_v30  ;;  %v7972_v30 = vld [vmem:[#allocation79_spill] sm:$0xff] }
 0x580   : > { %v2726_v32 = vpop.xlane.xlu1 %2725  ;;  %v2190_v13 = vpop.permute.xlu0 %2189 }
 0x584   : > { %v2729_v24 = vpop.xlane.xlu1 %2728  ;;  %v2849_v55 = vpop.permute.xlu0 %2848 }
 0x585   : > { %3624 = vmatprep.subr.bf16.mxu1 %v2849_v55  ;;  %4048 = vrcp.f32 %v2729_v24 }
 0x586   : > { %4050 = vrcp.f32 %v2083_v48 }
 0x587   : > { %4052 = vrcp.f32 %v2726_v32  ;;  %v4047_v20 = vpop.eup %4046 }
 0x588   : > { %v2206_v57 = vpop.permute.xlu1 %2205  ;;  %v2833_v38 = vpop.permute.xlu0 %2832  ;;  %v2142_v56 = vmul.f32 %v4047_v20, %v6463_v37  ;;  %v2141_v37 = vmul.f32 %v4047_v20, %v6461_v40 }
 0x589   : > { %3560 = vmatprep.subr.bf16.mxu0 %v2206_v57  ;;  %3625 = vmatpush3.bf16.msra.mxu1 %v2833_v38 }
 0x58a   : > { %3561 = vmatpush3.bf16.msra.mxu0 %v2190_v13 }
 0x58c   : > { %2899 = vmatmul.mubr.bf16.vlgmr.msra.gmra.mrb[32].mxu1 %v7959_v43 }
 0x58d   : > { %2256 = vmatmul.mubr.bf16.vlgmr.msra.gmra.mrb[32].mxu0 %v7958_v36  ;;  %2906 = vmatprep.mubr.bf16.mxu1 %v7961_v44 }
 0x58e   : > { %2263 = vmatprep.mubr.bf16.mxu0 %v7960_v22 }
 0x58f   : > { %v4049_v60 = vpop.eup %4048 }
 0x590   : > { %v4051_v52 = vpop.eup %4050  ;;  %v2785_v5 = vmul.f32 %v4049_v60, %v6477_v46  ;;  %v2784_v46 = vmul.f32 %v4049_v60, %v6473_v17 }
 0x591   : > { %v4053_v6 = vpop.eup %4052  ;;  %v2140_v35 = vmul.f32 %v4051_v52, %v6459_v29  ;;  %v2139_v29 = vmul.f32 %v4051_v52, %v7967_v8 }
 0x592   : > { %v2783_v31 = vmul.f32 %v4053_v6, %v6471_v41  ;;  %v2782_v41 = vmul.f32 %v4053_v6, %v7968_v3 }
 0x593   : > { %v2166_v58 = vpack.c.bf16 %v2142_v56, %v2140_v35  ;;  %v2165_v11 = vpack.c.bf16 %v2141_v37, %v2139_v29  ;;  %v7974_v29 = vld [vmem:[#allocation38_spill] sm:$0xff] }
 0x594   : > { %2907 = vmatmul.mubr.bf16.gmra.mrb[36].mxu1 %v7963_v10  ;;  %v2809_v42 = vpack.c.bf16 %v2785_v5, %v2783_v31  ;;  %v2808_v16 = vpack.c.bf16 %v2784_v46, %v2782_v41  ;;  %v7975_v41 = vld [vmem:[#allocation80_spill] sm:$0xff] }
 0x595   : > { %2264 = vmatmul.mubr.bf16.gmra.mrb[36].mxu0 %v7962_v33  ;;  %2914 = vmatprep.mubr.bf16.mxu1 %v7965_v2 }
 0x596   : > { %2271 = vmatprep.mubr.bf16.mxu0 %v7964_v28 }
 0x59c   : > { %2915 = vmatmul.mubr.bf16.gmra.mrb[40].mxu1 %v2806_v15 }
 0x59d   : > { %2272 = vmatmul.mubr.bf16.gmra.mrb[40].mxu0 %v7966_v23  ;;  %2922 = vmatprep.mubr.bf16.mxu1 %v2809_v42  ;;  %v7973_v42 = vld [vmem:[#allocation44_spill] sm:$0xff] }
 0x59e   : > { %2279 = vmatprep.mubr.bf16.mxu0 %v2166_v58 }
 0x5a4   : > { %2923 = vmatmul.mubr.bf16.gmra.mrb[44].mxu1 %v2808_v16 }
 0x5a5   : > { %2280 = vmatmul.mubr.bf16.gmra.mrb[44].mxu0 %v2165_v11  ;;  %v7976_v11 = vld [vmem:[#allocation18_spill] sm:$0xff] }
 0x5b9   : > { %v2089_v21 = vpop.xlane.xlu1 %2088  ;;  %v2092_v47 = vpop.xlane.xlu0 %2091 }
 0x5ba   : > { %4054 = vrcp.f32 %v2089_v21  ;;  %v7977_v21 = vld [vmem:[#allocation41_spill] sm:$0xff] }
 0x5bb   : > { %4056 = vrcp.f32 %v2092_v47 }
 0x5bd   : > { %v2735_v1 = vpop.xlane.xlu1 %2734  ;;  %v2732_v53 = vpop.xlane.xlu0 %2731 }
 0x5be   : > { %4058 = vrcp.f32 %v2735_v1 }
 0x5bf   : > { %4060 = vrcp.f32 %v2732_v53 }
 0x5c1   : > { %v2098_v15 = vpop.xlane.xlu1 %2097  ;;  %v2095_v40 = vpop.xlane.xlu0 %2094 }
 0x5c2   : > { %4062 = vrcp.f32 %v2098_v15 }
 0x5c3   : > { %4064 = vrcp.f32 %v2095_v40 }
 0x5c4   : > { %v4055_v17 = vpop.eup %4054 }
 0x5c5   : > { %v4057_v49 = vpop.eup %4056  ;;  %v2741_v50 = vpop.xlane.xlu1 %2740  ;;  %v2144_v45 = vmul.f32 %v4055_v17, %v7969_v18  ;;  %v2143_v25 = vmul.f32 %v4055_v17, %v7970_v0  ;;  %v7978_v17 = vld [vmem:[#allocation42_spill] sm:$0xff] }
 0x5c6   : > { %4066 = vrcp.f32 %v2741_v50  ;;  %v2738_v51 = vpop.xlane.xlu0 %2737  ;;  %v2146_v48 = vmul.f32 %v4057_v49, %v7971_v7  ;;  %v2145_v14 = vmul.f32 %v4057_v49, %v7972_v30  ;;  %v7979_v50 = vld [vmem:[#allocation17_spill] sm:$0xff] }
 0x5c7   : > { %4068 = vrcp.f32 %v2738_v51  ;;  %v7981_v51 = vld [vmem:[#allocation3_spill] sm:$0xff] }
 0x5c8   : > { %v4059_v32 = vpop.eup %4058  ;;  %v2168_v13 = vpack.c.bf16 %v2146_v48, %v2144_v45  ;;  %v2167_v24 = vpack.c.bf16 %v2145_v14, %v2143_v25  ;;  %v7980_v45 = vld [vmem:[#allocation46_spill] sm:$0xff] }
 0x5c9   : > { %v4061_v55 = vpop.eup %4060  ;;  %v2104_v57 = vpop.xlane.xlu1 %2103  ;;  %v2789_v38 = vmul.f32 %v4059_v32, %v6603_v4  ;;  %v2788_v36 = vmul.f32 %v4059_v32, %v6597_v62 }
 0x5ca   : > { %4070 = vrcp.f32 %v2104_v57  ;;  %2287 = vmatprep.mubr.bf16.mxu0 %v2168_v13  ;;  %v2101_v43 = vpop.xlane.xlu0 %2100  ;;  %v2787_v22 = vmul.f32 %v4061_v55, %v6591_v61  ;;  %v2786_v44 = vmul.f32 %v4061_v55, %v6587_v34  ;;  %v7983_v57 = vld [vmem:[#allocation84_spill] sm:$0xff] }
 0x5cb   : > { %4072 = vrcp.f32 %v2101_v43  ;;  %2288 = vmatmul.mubr.bf16.gmra.mrb[48].mxu0 %v2167_v24  ;;  %v7982_v24 = vld [vmem:[#allocation82_spill] sm:$0xff] }
 0x5cc   : > { %v4063_v20 = vpop.eup %4062  ;;  %v2811_v60 = vpack.c.bf16 %v2789_v38, %v2787_v22  ;;  %v2810_v33 = vpack.c.bf16 %v2788_v36, %v2786_v44  ;;  %v7984_v36 = vld [vmem:[#allocation83_spill] sm:$0xff] }
 0x5cd   : > { %v4065_v10 = vpop.eup %4064  ;;  %v2747_v52 = vpop.xlane.xlu1 %2746  ;;  %v2150_v28 = vmul.f32 %v4063_v20, %v6623_v9  ;;  %v2149_v4 = vmul.f32 %v4063_v20, %v6619_v12 }
 0x5ce   : > { %4074 = vrcp.f32 %v2747_v52  ;;  %2930 = vmatprep.mubr.bf16.mxu1 %v2811_v60  ;;  %v2744_v62 = vpop.xlane.xlu0 %2743  ;;  %v2148_v2 = vmul.f32 %v4065_v10, %v6615_v26  ;;  %v2147_v61 = vmul.f32 %v4065_v10, %v6609_v39  ;;  %v7985_v60 = vld [vmem:[#allocation8_spill] sm:$0xff]  ;;  %v7986_v10 = vld [vmem:[#allocation7_spill] sm:$0xff] }
 0x5cf   : > { %4076 = vrcp.f32 %v2744_v62  ;;  %2931 = vmatmul.mubr.bf16.gmra.mrb[48].mxu1 %v2810_v33 }
 0x5d0   : > { %v4067_v34 = vpop.eup %4066  ;;  %v2170_v6 = vpack.c.bf16 %v2150_v28, %v2148_v2  ;;  %v2169_v56 = vpack.c.bf16 %v2149_v4, %v2147_v61  ;;  %v7987_v28 = vld [vmem:[#allocation20_spill] sm:$0xff] }
 0x5d1   : > { %v4069_v5 = vpop.eup %4068  ;;  %v2110_v35 = vpop.xlane.xlu1 %2109  ;;  %v2793_v31 = vmul.f32 %v4067_v34, %v6639_v19  ;;  %v2792_v9 = vmul.f32 %v4067_v34, %v6635_v59 }
 0x5d2   : > { %4078 = vrcp.f32 %v2110_v35  ;;  %2295 = vmatprep.mubr.bf16.mxu0 %v2170_v6  ;;  %v2107_v12 = vpop.xlane.xlu0 %2106  ;;  %v2791_v58 = vmul.f32 %v4069_v5, %v6633_v63  ;;  %v2790_v26 = vmul.f32 %v4069_v5, %v7973_v42 }
 0x5d3   : > { %4080 = vrcp.f32 %v2107_v12  ;;  %2296 = vmatmul.mubr.bf16.gmra.mrb[52].mxu0 %v2169_v56 }
 0x5d4   : > { %v4071_v39 = vpop.eup %4070  ;;  %v2813_v23 = vpack.c.bf16 %v2793_v31, %v2791_v58  ;;  %v2812_v37 = vpack.c.bf16 %v2792_v9, %v2790_v26 }
 0x5d5   : > { %v4073_v46 = vpop.eup %4072  ;;  %v2753_v8 = vpop.xlane.xlu1 %2752  ;;  %v2154_v3 = vmul.f32 %v4071_v39, %v7974_v29  ;;  %v2153_v19 = vmul.f32 %v4071_v39, %v7975_v41 }
 0x5d6   : > { %4082 = vrcp.f32 %v2753_v8  ;;  %2938 = vmatprep.mubr.bf16.mxu1 %v2813_v23  ;;  %v2750_v59 = vpop.xlane.xlu0 %2749  ;;  %v2152_v16 = vmul.f32 %v4073_v46, %v7976_v11  ;;  %v2151_v63 = vmul.f32 %v4073_v46, %v7977_v21 }
 0x5d7   : > { %4084 = vrcp.f32 %v2750_v59  ;;  %2939 = vmatmul.mubr.bf16.gmra.mrb[52].mxu1 %v2812_v37 }
 0x5d8   : > { %v4075_v47 = vpop.eup %4074  ;;  %v2172_v1 = vpack.c.bf16 %v2154_v3, %v2152_v16  ;;  %v2171_v53 = vpack.c.bf16 %v2153_v19, %v2151_v63 }
 0x5d9   : > { %v4077_v15 = vpop.eup %4076  ;;  %v2982_v40 = vpop.permute.xlu1 %2981  ;;  %v2797_v49 = vmul.f32 %v4075_v47, %v7978_v17  ;;  %v2796_v18 = vmul.f32 %v4075_v47, %v7979_v50 }
 0x5da   : > { %v6801_v0 = vsel %vm3155_vm12, %v7980_v45, %v2982_v40  ;;  %2303 = vmatprep.mubr.bf16.mxu0 %v2172_v1  ;;  %v2795_v25 = vmul.f32 %v4077_v15, %v6665_v54  ;;  %v2794_v7 = vmul.f32 %v4077_v15, %v7981_v51 }
 0x5db   : > { %2304 = vmatmul.mubr.bf16.gmra.mrb[56].mxu0 %v2171_v53 }
 0x5dc   : > { %v4079_v48 = vpop.eup %4078  ;;  %v2815_v30 = vpack.c.bf16 %v2797_v49, %v2795_v25  ;;  %v2814_v14 = vpack.c.bf16 %v2796_v18, %v2794_v7 }
 0x5dd   : > { %v4081_v32 = vpop.eup %4080  ;;  %v2158_v13 = vmul.f32 %v4079_v48, %v6681_v27  ;;  %v2157_v55 = vmul.f32 %v4079_v48, %v7982_v24  ;;  %v7988_v27 = vld [vmem:[#allocation4_spill] sm:$0xff] }
 0x5de   : > { %2946 = vmatprep.mubr.bf16.mxu1 %v2815_v30  ;;  %v2156_v38 = vmul.f32 %v4081_v32, %v7983_v57  ;;  %v2155_v43 = vmul.f32 %v4081_v32, %v7984_v36 }
 0x5df   : > { %2947 = vmatmul.mubr.bf16.gmra.mrb[56].mxu1 %v2814_v14 }
 0x5e0   : > { %v4083_v22 = vpop.eup %4082  ;;  %v2174_v44 = vpack.c.bf16 %v2158_v13, %v2156_v38  ;;  %v2173_v54 = vpack.c.bf16 %v2157_v55, %v2155_v43 }
 0x5e1   : > { %v4085_v20 = vpop.eup %4084  ;;  %v2801_v33 = vmul.f32 %v4083_v22, %v7985_v60  ;;  %v2800_v52 = vmul.f32 %v4083_v22, %v7986_v10 }
 0x5e2   : > { %2311 = vmatprep.mubr.bf16.mxu0 %v2174_v44  ;;  %v2799_v4 = vmul.f32 %v4085_v20, %v7987_v28  ;;  %v2798_v62 = vmul.f32 %v4085_v20, %v7988_v27 }
 0x5e3   : > { %2312 = vmatmul.mubr.bf16.gmra.mrb[60].mxu0 %v2173_v54 }
 0x5e4   : > { %v2817_v2 = vpack.c.bf16 %v2801_v33, %v2799_v4  ;;  %v2816_v61 = vpack.c.bf16 %v2800_v52, %v2798_v62 }
 0x5e6   : > { %2954 = vmatprep.mubr.bf16.mxu1 %v2817_v2 }
 0x5e7   : > { %2955 = vmatmul.mubr.bf16.gmra.mrb[60].mxu1 %v2816_v61 }
 0x65f   : > { %v3626_v6 = vpop.f32.mrb[32].mxu1 }
 0x660   : > { %v3562_v34 = vpop.f32.mrb[32].mxu0  ;;  %v3627_v5 = vpop.f32.mrb[33].mxu1 }
 0x661   : > { %v3563_v56 = vpop.f32.mrb[33].mxu0  ;;  %v6813_v31 = vadd.f32 %v3627_v5, %v3626_v6  ;;  %v3629_v12 = vpop.f32.mrb[34].mxu1 }
 0x662   : > { %v3564_v35 = vadd.f32 %v3563_v56, %v3562_v34  ;;  %v3565_v9 = vpop.f32.mrb[34].mxu0  ;;  %v3630_v42 = vpop.f32.mrb[35].mxu1 }
 0x663   : > { %v3566_v58 = vpop.f32.mrb[35].mxu0  ;;  %v6815_v39 = vadd.f32 %v3630_v42, %v3629_v12 }
 0x664   : > { %v3567_v26 = vadd.f32 %v3566_v58, %v3565_v9  ;;  %3043 = vrot.lane.b32.xlu1 %v3564_v35, %s4151_s27 }
 0x666   : > { %3045 = vrot.lane.b32.xlu0 %v3567_v26, %s4151_s27 }
 0x667   : > { %v3632_v37 = vpop.f32.mrb[36].mxu1 }
 0x668   : > { %v3568_v23 = vpop.f32.mrb[36].mxu0  ;;  %v3633_v8 = vpop.f32.mrb[37].mxu1 }
 0x669   : > { %v3569_v46 = vpop.f32.mrb[37].mxu0  ;;  %v6819_v3 = vadd.f32 %v3633_v8, %v3632_v37  ;;  %v3635_v19 = vpop.f32.mrb[38].mxu1 }
 0x66a   : > { %v3570_v29 = vadd.f32 %v3569_v46, %v3568_v23  ;;  %v3571_v41 = vpop.f32.mrb[38].mxu0  ;;  %v3636_v11 = vpop.f32.mrb[39].mxu1 }
 0x66b   : > { %v3572_v59 = vpop.f32.mrb[39].mxu0  ;;  %v6821_v21 = vadd.f32 %v3636_v11, %v3635_v19 }
 0x66c   : > { %v3573_v16 = vadd.f32 %v3572_v59, %v3571_v41  ;;  %3047 = vrot.lane.b32.xlu1 %v3570_v29, %s4151_s27 }
 0x66e   : > { %3049 = vrot.lane.b32.xlu0 %v3573_v16, %s4151_s27 }
 0x66f   : > { %v3638_v47 = vpop.f32.mrb[40].mxu1 }
 0x670   : > { %v3574_v63 = vpop.f32.mrb[40].mxu0  ;;  %v3639_v53 = vpop.f32.mrb[41].mxu1 }
 0x671   : > { %v3575_v1 = vpop.f32.mrb[41].mxu0  ;;  %v6825_v40 = vadd.f32 %v3639_v53, %v3638_v47  ;;  %v3641_v49 = vpop.f32.mrb[42].mxu1 }
 0x672   : > { %v3576_v15 = vadd.f32 %v3575_v1, %v3574_v63  ;;  %v3577_v17 = vpop.f32.mrb[42].mxu0  ;;  %v3642_v18 = vpop.f32.mrb[43].mxu1 }
 0x673   : > { %v3578_v50 = vpop.f32.mrb[43].mxu0  ;;  %v6827_v25 = vadd.f32 %v3642_v18, %v3641_v49 }
 0x674   : > { %v3579_v45 = vadd.f32 %v3578_v50, %v3577_v17  ;;  %3051 = vrot.lane.b32.xlu1 %v3576_v15, %s4151_s27 }
 0x676   : > { %3053 = vrot.lane.b32.xlu0 %v3579_v45, %s4151_s27 }
 0x677   : > { %v3644_v7 = vpop.f32.mrb[44].mxu1 }
 0x678   : > { %v3580_v51 = vpop.f32.mrb[44].mxu0  ;;  %v3645_v30 = vpop.f32.mrb[45].mxu1 }
 0x679   : > { %v3581_v48 = vpop.f32.mrb[45].mxu0  ;;  %v6831_v32 = vadd.f32 %v3645_v30, %v3644_v7  ;;  %v3647_v24 = vpop.f32.mrb[46].mxu1 }
 0x67a   : > { %v3582_v14 = vadd.f32 %v3581_v48, %v3580_v51  ;;  %v3583_v13 = vpop.f32.mrb[46].mxu0  ;;  %v3648_v57 = vpop.f32.mrb[47].mxu1 }
 0x67b   : > { %v3584_v55 = vpop.f32.mrb[47].mxu0  ;;  %v6833_v36 = vadd.f32 %v3648_v57, %v3647_v24 }
 0x67c   : > { %v3585_v38 = vadd.f32 %v3584_v55, %v3583_v13  ;;  %3055 = vrot.lane.b32.xlu1 %v3582_v14, %s4151_s27 }
 0x67e   : > { %3057 = vrot.lane.b32.xlu0 %v3585_v38, %s4151_s27 }
 0x69e   : > { %v3586_v43 = vpop.f32.mrb[48].mxu0 }
 0x69f   : > { %v3587_v22 = vpop.f32.mrb[49].mxu0 }
 0x6a0   : > { %v3588_v44 = vadd.f32 %v3587_v22, %v3586_v43  ;;  %v3589_v54 = vpop.f32.mrb[50].mxu0 }
 0x6a1   : > { %v3590_v20 = vpop.f32.mrb[51].mxu0 }
 0x6a2   : > { %v3591_v60 = vadd.f32 %v3590_v20, %v3589_v54  ;;  %3059 = vrot.lane.b32.xlu1 %v3588_v44, %s4151_s27  ;;  %v3650_v33 = vpop.f32.mrb[48].mxu1 }
 0x6a3   : > { %v3651_v10 = vpop.f32.mrb[49].mxu1 }
 0x6a4   : > { %v3652_v52 = vadd.f32 %v3651_v10, %v3650_v33  ;;  %3061 = vrot.lane.b32.xlu0 %v3591_v60, %s4151_s27  ;;  %v3653_v28 = vpop.f32.mrb[50].mxu1 }
 0x6a5   : > { %v3654_v4 = vpop.f32.mrb[51].mxu1 }
 0x6a6   : > { %v3655_v27 = vadd.f32 %v3654_v4, %v3653_v28  ;;  %v3592_v62 = vpop.f32.mrb[52].mxu0 }
 0x6a7   : > { %v3593_v2 = vpop.f32.mrb[53].mxu0 }
 0x6a8   : > { %v3594_v61 = vadd.f32 %v3593_v2, %v3592_v62  ;;  %v3595_v34 = vpop.f32.mrb[54].mxu0 }
 0x6a9   : > { %v3596_v6 = vpop.f32.mrb[55].mxu0 }
 0x6aa   : > { %v3597_v56 = vadd.f32 %v3596_v6, %v3595_v34  ;;  %3063 = vrot.lane.b32.xlu1 %v3594_v61, %s4151_s27  ;;  %v3656_v5 = vpop.f32.mrb[52].mxu1  ;;  %v7989_v6 = vld [vmem:[#allocation45_spill] sm:$0xff] }
 0x6ab   : > { %v3657_v35 = vpop.f32.mrb[53].mxu1 }
 0x6ac   : > { %v3658_v9 = vadd.f32 %v3657_v35, %v3656_v5  ;;  %3065 = vrot.lane.b32.xlu0 %v3597_v56, %s4151_s27  ;;  %v3659_v12 = vpop.f32.mrb[54].mxu1 }
 0x6ad   : > { %v3660_v58 = vpop.f32.mrb[55].mxu1 }
 0x6ae   : > { %v3661_v42 = vadd.f32 %v3660_v58, %v3659_v12  ;;  %v3598_v26 = vpop.f32.mrb[56].mxu0 }
 0x6af   : > { %v3599_v23 = vpop.f32.mrb[57].mxu0 }
 0x6b0   : > { %v3600_v37 = vadd.f32 %v3599_v23, %v3598_v26  ;;  %v3601_v46 = vpop.f32.mrb[58].mxu0  ;;  %v7990_v26 = vld [vmem:[#allocation93_spill] sm:$0xff] }
 0x6b1   : > { %v3602_v8 = vpop.f32.mrb[59].mxu0 }
 0x6b2   : > { %v3603_v29 = vadd.f32 %v3602_v8, %v3601_v46  ;;  %3067 = vrot.lane.b32.xlu1 %v3600_v37, %s4151_s27  ;;  %v3662_v41 = vpop.f32.mrb[56].mxu1 }
 0x6b3   : > { %v3663_v19 = vpop.f32.mrb[57].mxu1 }
 0x6b4   : > { %v3664_v59 = vadd.f32 %v3663_v19, %v3662_v41  ;;  %3069 = vrot.lane.b32.xlu0 %v3603_v29, %s4151_s27  ;;  %v3665_v11 = vpop.f32.mrb[58].mxu1  ;;  %v7991_v19 = vld [vmem:[#allocation94_spill] sm:$0xff] }
 0x6b5   : > { %v3666_v16 = vpop.f32.mrb[59].mxu1 }
 0x6b6   : > { %v3667_v63 = vadd.f32 %v3666_v16, %v3665_v11  ;;  %v3604_v47 = vpop.f32.mrb[60].mxu0 }
 0x6b7   : > { %v3605_v1 = vpop.f32.mrb[61].mxu0 }
 0x6b8   : > { %v3606_v53 = vadd.f32 %v3605_v1, %v3604_v47  ;;  %v3607_v15 = vpop.f32.mrb[62].mxu0  ;;  %v7992_v1 = vld [vmem:[#allocation95_spill] sm:$0xff] }
 0x6b9   : > { %v3608_v17 = vpop.f32.mrb[63].mxu0 }
 0x6ba   : > { %v3609_v49 = vadd.f32 %v3608_v17, %v3607_v15  ;;  %3071 = vrot.lane.b32.xlu1 %v3606_v53, %s4151_s27  ;;  %v3668_v50 = vpop.f32.mrb[60].mxu1 }
 0x6bb   : > { %v3669_v18 = vpop.f32.mrb[61].mxu1 }
 0x6bc   : > { %v3670_v45 = vadd.f32 %v3669_v18, %v3668_v50  ;;  %3073 = vrot.lane.b32.xlu0 %v3609_v49, %s4151_s27  ;;  %v3671_v51 = vpop.f32.mrb[62].mxu1 }
 0x6bd   : > { %v3672_v7 = vpop.f32.mrb[63].mxu1 }
 0x6be   : > { %v3673_v48 = vadd.f32 %v3672_v7, %v3671_v51  ;;  %3107 = vrot.lane.b32.xlu1 %v6813_v31, %s4152_s28  ;;  %v2980_v31 = vpop.permute.xlu0 %2979  ;;  %v7994_v7 = vld [vmem:[#allocation97_spill] sm:$0xff] }
 0x6bf   : > { %v3156_v56 = vsel %vm3155_vm12, %v7989_v6, %v2980_v31 }
 0x6c0   : > { %3109 = vrot.lane.b32.xlu0 %v6815_v39, %s4152_s28  ;;  %v2984_v39 = vpop.permute.xlu1 %2983 }
 0x6c1   : > { %v3158_v23 = vsel %vm3155_vm12, %v7990_v26, %v2984_v39 }
 0x6c2   : > { %3111 = vrot.lane.b32.xlu1 %v6819_v3, %s4152_s28  ;;  %v2986_v3 = vpop.permute.xlu0 %2985 }
 0x6c4   : > { %3113 = vrot.lane.b32.xlu0 %v6821_v21, %s4152_s28  ;;  %v2988_v21 = vpop.permute.xlu1 %2987 }
 0x6c5   : > { %v3160_v53 = vsel %vm3155_vm12, %v7992_v1, %v2988_v21 }
 0x6c6   : > { %3115 = vrot.lane.b32.xlu1 %v6825_v40, %s4152_s28  ;;  %v2990_v30 = vpop.permute.xlu0 %2989 }
 0x6c8   : > { %3117 = vrot.lane.b32.xlu0 %v6827_v25, %s4152_s28  ;;  %v2992_v40 = vpop.permute.xlu1 %2991 }
 0x6ca   : > { %3119 = vrot.lane.b32.xlu1 %v6831_v32, %s4152_s28  ;;  %v6853_v14 = vpop.permute.xlu0 %2993 }
 0x6cc   : > { %3121 = vrot.lane.b32.xlu0 %v6833_v36, %s4152_s28  ;;  %v6855_v25 = vpop.permute.xlu1 %2995 }
 0x6ce   : > { %3123 = vrot.lane.b32.xlu1 %v3652_v52, %s4152_s28  ;;  %v6857_v32 = vpop.permute.xlu0 %2997 }
 0x6d0   : > { %3125 = vrot.lane.b32.xlu0 %v3655_v27, %s4152_s28  ;;  %v6859_v13 = vpop.permute.xlu1 %2999 }
 0x6d2   : > { %3127 = vrot.lane.b32.xlu1 %v3658_v9, %s4152_s28  ;;  %v6861_v24 = vpop.permute.xlu0 %3001 }
 0x6d4   : > { %3129 = vrot.lane.b32.xlu0 %v3661_v42, %s4152_s28  ;;  %v6863_v55 = vpop.permute.xlu1 %3003 }
 0x6d6   : > { %3131 = vrot.lane.b32.xlu1 %v3664_v59, %s4152_s28  ;;  %v6865_v57 = vpop.permute.xlu0 %3005  ;;  %v3159_v59 = vsel %vm3155_vm12, %v7991_v19, %v2986_v3 }
 0x6d8   : > { %3133 = vrot.lane.b32.xlu0 %v3667_v63, %s4152_s28  ;;  %v6867_v38 = vpop.permute.xlu1 %3007 }
 0x6da   : > { %3135 = vrot.lane.b32.xlu1 %v3670_v45, %s4152_s28  ;;  %v6869_v36 = vpop.permute.xlu0 %3009  ;;  %v7993_v45 = vld [vmem:[#allocation96_spill] sm:$0xff] }
 0x6db   : > { %v3161_v51 = vsel %vm3155_vm12, %v7993_v45, %v2990_v30 }
 0x6dc   : > { %3137 = vrot.lane.b32.xlu0 %v3673_v48, %s4152_s28  ;;  %v3044_v43 = vpop.permute.xlu1 %3043  ;;  %v3162_v48 = vsel %vm3155_vm12, %v7994_v7, %v2992_v40  ;;  %v7997_v40 = vld [vmem:[#allocation100_spill] sm:$0xff] }
 0x6dd   : > { %v3173_v5 = vsel %vm3172_vm15, %v3156_v56, %v3044_v43 }
 0x6de   : > { %v3046_v22 = vpop.permute.xlu0 %3045 }
 0x6df   : > { %v3174_v12 = vsel %vm3172_vm15, %v6801_v0, %v3046_v22  ;;  %v7995_v22 = vld [vmem:[#allocation98_spill] sm:$0xff] }
 0x6e0   : > { %v3048_v44 = vpop.permute.xlu1 %3047 }
 0x6e1   : > { %v3175_v46 = vsel %vm3172_vm15, %v3158_v23, %v3048_v44  ;;  %v3163_v44 = vsel %vm3155_vm12, %v7995_v22, %v6853_v14  ;;  %v7998_v14 = vld [vmem:[#allocation52_spill] sm:$0xff] }
 0x6e2   : > { %v3050_v54 = vpop.permute.xlu0 %3049 }
 0x6e3   : > { %v3176_v11 = vsel %vm3172_vm15, %v3159_v59, %v3050_v54  ;;  %v7996_v54 = vld [vmem:[#allocation99_spill] sm:$0xff] }
 0x6e4   : > { %v3164_v30 = vsel %vm3155_vm12, %v7996_v54, %v6855_v25  ;;  %v7999_v25 = vld [vmem:[#allocation74_spill] sm:$0xff] }
 0x6e6   : > { %v3052_v20 = vpop.permute.xlu1 %3051 }
 0x6e7   : > { %v3177_v17 = vsel %vm3172_vm15, %v3160_v53, %v3052_v20  ;;  %v3165_v20 = vsel %vm3155_vm12, %v7997_v40, %v6857_v32  ;;  %v8000_v32 = vld [vmem:[#allocation30_spill] sm:$0xff] }
 0x6e8   : > { %v3054_v60 = vpop.permute.xlu0 %3053 }
 0x6e9   : > { %v3178_v39 = vsel %vm3172_vm15, %v3161_v51, %v3054_v60 }
 0x6ee   : > { %v3056_v33 = vpop.permute.xlu1 %3055 }
 0x6ef   : > { %v3179_v60 = vsel %vm3172_vm15, %v3162_v48, %v3056_v33 }
 0x6f0   : > { %v3058_v10 = vpop.permute.xlu0 %3057 }
 0x6f1   : > { %v3180_v33 = vsel %vm3172_vm15, %v3163_v44, %v3058_v10 }
 0x714   : > { %v6871_v52 = vpop.permute.xlu1 %3059 }
 0x716   : > { %v6873_v28 = vpop.permute.xlu0 %3061 }
 0x71c   : > { %v6875_v4 = vpop.permute.xlu1 %3063 }
 0x71e   : > { %v6877_v27 = vpop.permute.xlu0 %3065 }
 0x724   : > { %v6879_v62 = vpop.permute.xlu1 %3067 }
 0x726   : > { %v6881_v2 = vpop.permute.xlu0 %3069 }
 0x72c   : > { %v6883_v61 = vpop.permute.xlu1 %3071 }
 0x72e   : > { %v6885_v34 = vpop.permute.xlu0 %3073 }
 0x730   : > { %v3108_v35 = vpop.permute.xlu1 %3107 }
 0x731   : > { %v6891_v9 = vsel %vm3189_vm8, %v3173_v5, %v3108_v35 }
 0x732   : > { %v3222_v58 = vmin.f32 %v6891_v9, 0.0  ;;  %v3110_v42 = vpop.permute.xlu0 %3109  ;;  %vm3206_vm7 = vcmp.gt.f32.partialorder %v6891_v9, 0.0 }
 0x733   : > { %v6899_v37 = vsel %vm3189_vm8, %v3174_v12, %v3110_v42  ;;  %v3166_v12 = vsel %vm3155_vm12, %v7998_v14, %v6859_v13  ;;  %v3168_v42 = vsel %vm3155_vm12, %v8000_v32, %v6863_v55  ;;  %v8001_v13 = vld [vmem:[#allocation102_spill] sm:$0xff] }
 0x734   : > { %v3238_v8 = vmul.f32 1.442695, %v3222_v58  ;;  %v3223_v29 = vmin.f32 %v6899_v37, 0.0  ;;  %v3112_v41 = vpop.permute.xlu1 %3111  ;;  %v3167_v58 = vsel %vm3155_vm12, %v7999_v25, %v6861_v24  ;;  %v8002_v24 = vld [vmem:[#allocation105_spill] sm:$0xff]  ;;  %v8003_v55 = vld [vmem:[#allocation106_spill] sm:$0xff]  ;;  %vm3207_vm5 = vcmp.gt.f32.partialorder %v6899_v37, 0.0 }
 0x735   : > { %v6906_v0 = vsel %vm3189_vm8, %v3175_v46, %v3112_v41  ;;  %v6960_v41 = vsel %vm3155_vm12, %v8002_v24, %v6867_v38  ;;  %v6965_v19 = vsel %vm3155_vm12, %v8003_v55, %v6869_v36  ;;  %v3182_v38 = vsel %vm3172_vm15, %v3165_v20, %v6873_v28 }
 0x736   : > { %4086 = vpow2.f32 %v3238_v8  ;;  %v3240_v16 = vmul.f32 1.442695, %v3223_v29  ;;  %v3224_v63 = vmin.f32 %v6906_v0, 0.0  ;;  %v3114_v47 = vpop.permute.xlu0 %3113  ;;  %v3169_v29 = vsel %vm3155_vm12, %v8001_v13, %v6865_v57 }
 0x737   : > { %v6913_v15 = vsel %vm3189_vm8, %v3176_v11, %v3114_v47  ;;  %v3181_v11 = vsel %vm3172_vm15, %v3164_v30, %v6871_v52  ;;  %v3183_v28 = vsel %vm3172_vm15, %v3166_v12, %v6875_v4  ;;  %v3184_v4 = vsel %vm3172_vm15, %v3167_v58, %v6877_v27 }
 0x738   : > { %4088 = vpow2.f32 %v3240_v16  ;;  %v3242_v49 = vmul.f32 1.442695, %v3224_v63  ;;  %v3225_v50 = vmin.f32 %v6913_v15, 0.0  ;;  %v3116_v18 = vpop.permute.xlu1 %3115  ;;  %vm3208_vm11 = vcmp.gt.f32.partialorder %v6906_v0, 0.0 }
 0x739   : > { %v6922_v31 = vsel %vm3189_vm8, %v3177_v17, %v3116_v18  ;;  %v3185_v27 = vsel %vm3172_vm15, %v3168_v42, %v6879_v62  ;;  %vm3209_vm3 = vcmp.gt.f32.partialorder %v6913_v15, 0.0  ;;  %v3186_v62 = vsel %vm3172_vm15, %v3169_v29, %v6881_v2 }
 0x73a   : > { %4090 = vpow2.f32 %v3242_v49  ;;  %v3244_v3 = vmul.f32 1.442695, %v3225_v50  ;;  %v3226_v21 = vmin.f32 %v6922_v31, 0.0  ;;  %v3118_v43 = vpop.permute.xlu0 %3117  ;;  %vm3210_vm2 = vcmp.gt.f32.partialorder %v6922_v31, 0.0 }
 0x73b   : > { %v6936_v6 = vsel %vm3189_vm8, %v3178_v39, %v3118_v43  ;;  %v3187_v2 = vsel %vm3172_vm15, %v6960_v41, %v6883_v61  ;;  %v3188_v61 = vsel %vm3172_vm15, %v6965_v19, %v6885_v34 }
 0x73c   : > { %4092 = vpow2.f32 %v3244_v3  ;;  %v3246_v56 = vmul.f32 1.442695, %v3226_v21  ;;  %v3227_v5 = vmin.f32 %v6936_v6, 0.0  ;;  %v3120_v35 = vpop.permute.xlu1 %3119  ;;  %vm3211_vm4 = vcmp.gt.f32.partialorder %v6936_v6, 0.0 }
 0x73d   : > { %v6950_v26 = vsel %vm3189_vm8, %v3179_v60, %v3120_v35 }
 0x73e   : > { %4094 = vpow2.f32 %v3246_v56  ;;  %v3248_v23 = vmul.f32 1.442695, %v3227_v5  ;;  %v3228_v46 = vmin.f32 %v6950_v26, 0.0  ;;  %v3122_v8 = vpop.permute.xlu0 %3121  ;;  %vm3212_vm1 = vcmp.gt.f32.partialorder %v6950_v26, 0.0 }
 0x73f   : > { %v6968_v10 = vsel %vm3189_vm8, %v3180_v33, %v3122_v8 }
 0x740   : > { %v4087_v59 = vpop.eup %4086  ;;  %4096 = vpow2.f32 %v3248_v23  ;;  %v3250_v16 = vmul.f32 1.442695, %v3228_v46  ;;  %v3229_v57 = vmin.f32 %v6968_v10, 0.0  ;;  %v3124_v63 = vpop.permute.xlu1 %3123  ;;  %vm3213_vm10 = vcmp.gt.f32.partialorder %v6968_v10, 0.0 }
 0x741   : > { %v3399_v36 = vadd.f32 -1.0, %v4087_v59  ;;  %v6982_v47 = vsel %vm3189_vm8, %v3181_v11, %v3124_v63 }
 0x742   : > { %v4089_v52 = vpop.eup %4088  ;;  %4098 = vpow2.f32 %v3250_v16  ;;  %v3252_v1 = vmul.f32 1.442695, %v3229_v57  ;;  %v3230_v53 = vmin.f32 %v6982_v47, 0.0  ;;  %v3126_v17 = vpop.permute.xlu0 %3125  ;;  %vm3214_vm14 = vcmp.gt.f32.partialorder %v6982_v47, 0.0 }
 0x743   : > { %v3286_v49 = vsel %vm3206_vm7, %v6891_v9, %v3399_v36  ;;  %v3400_v50 = vadd.f32 -1.0, %v4089_v52  ;;  %v6990_v18 = vsel %vm3189_vm8, %v3182_v38, %v3126_v17 }
 0x744   : > { %v4091_v45 = vpop.eup %4090  ;;  %3303 = vst.msk [vmem:[%s6979_s5] sm:$0xff] %vm3302_vm9, %v3286_v49  ;;  %4100 = vpow2.f32 %v3252_v1  ;;  %v3254_v51 = vmul.f32 1.442695, %v3230_v53  ;;  %v3231_v7 = vmin.f32 %v6990_v18, 0.0  ;;  %v3128_v48 = vpop.permute.xlu1 %3127  ;;  %vm3215_vm0 = vcmp.gt.f32.partialorder %v6990_v18, 0.0 }
 0x745   : > { %v3287_v9 = vsel %vm3207_vm5, %v6899_v37, %v3400_v50  ;;  %v3401_v39 = vadd.f32 -1.0, %v4091_v45  ;;  %v7000_v3 = vsel %vm3189_vm8, %v3183_v28, %v3128_v48 }
 0x746   : > { %v4093_v21 = vpop.eup %4092  ;;  %3304 = vst.msk [vmem:[%s6979_s5 + $0x8] sm:$0xff] %vm3302_vm9, %v3287_v9  ;;  %4102 = vpow2.f32 %v3254_v51  ;;  %v3256_v43 = vmul.f32 1.442695, %v3231_v7  ;;  %v3232_v22 = vmin.f32 %v7000_v3, 0.0  ;;  %v3130_v44 = vpop.permute.xlu0 %3129  ;;  %vm3216_vm13 = vcmp.gt.f32.partialorder %v7000_v3, 0.0 }
 0x747   : > { %v3288_v37 = vsel %vm3208_vm11, %v6906_v0, %v3401_v39  ;;  %v3402_v54 = vadd.f32 -1.0, %v4093_v21  ;;  %v7010_v30 = vsel %vm3189_vm8, %v3184_v4, %v3130_v44 }
 0x748   : > { %v4095_v40 = vpop.eup %4094  ;;  %3305 = vst.msk [vmem:[%s6979_s5 + $0x10] sm:$0xff] %vm3302_vm9, %v3288_v37  ;;  %4104 = vpow2.f32 %v3256_v43  ;;  %v3258_v20 = vmul.f32 1.442695, %v3232_v22  ;;  %v3233_v60 = vmin.f32 %v7010_v30, 0.0  ;;  %v3132_v56 = vpop.permute.xlu1 %3131  ;;  %vm3217_vm6 = vcmp.gt.f32.partialorder %v7010_v30, 0.0 }
 0x749   : > { %v3289_v0 = vsel %vm3209_vm3, %v6913_v15, %v3402_v54  ;;  %v3403_v5 = vadd.f32 -1.0, %v4095_v40  ;;  %v7020_v35 = vsel %vm3189_vm8, %v3185_v27, %v3132_v56 }
 0x74a   : > { %v4097_v14 = vpop.eup %4096  ;;  %3306 = vst.msk [vmem:[%s6979_s5 + $0x18] sm:$0xff] %vm3302_vm9, %v3289_v0  ;;  %4106 = vpow2.f32 %v3258_v20  ;;  %v3260_v12 = vmul.f32 1.442695, %v3233_v60  ;;  %v3234_v25 = vmin.f32 %v7020_v35, 0.0  ;;  %v3134_v58 = vpop.permute.xlu0 %3133  ;;  %vm3218_vm12 = vcmp.gt.f32.partialorder %v7020_v35, 0.0 }
 0x74b   : > { %v3290_v15 = vsel %vm3210_vm2, %v6922_v31, %v3403_v5  ;;  %v3404_v32 = vadd.f32 -1.0, %v4097_v14  ;;  %v3203_v42 = vsel %vm3189_vm8, %v3186_v62, %v3134_v58 }
 0x74c   : > { %v4099_v33 = vpop.eup %4098  ;;  %3307 = vst.msk [vmem:[%s6979_s5 + $0x20] sm:$0xff] %vm3302_vm9, %v3290_v15  ;;  %4108 = vpow2.f32 %v3260_v12  ;;  %v3262_v23 = vmul.f32 1.442695, %v3234_v25  ;;  %v3235_v46 = vmin.f32 %v3203_v42, 0.0  ;;  %v3136_v8 = vpop.permute.xlu1 %3135  ;;  %vm3219_vm15 = vcmp.gt.f32.partialorder %v3203_v42, 0.0 }
 0x74d   : > { %v3291_v13 = vsel %vm3211_vm4, %v6936_v6, %v3404_v32  ;;  %v3405_v31 = vadd.f32 -1.0, %v4099_v33  ;;  %v3204_v29 = vsel %vm3189_vm8, %v3187_v2, %v3136_v8 }
 0x74e   : > { %v4101_v24 = vpop.eup %4100  ;;  %3308 = vst.msk [vmem:[%s6979_s5 + $0x28] sm:$0xff] %vm3302_vm9, %v3291_v13  ;;  %4110 = vpow2.f32 %v3262_v23  ;;  %v3264_v41 = vmul.f32 1.442695, %v3235_v46  ;;  %v3236_v55 = vmin.f32 %v3204_v29, 0.0  ;;  %v3138_v59 = vpop.permute.xlu0 %3137 }
 0x74f   : > { %v3292_v11 = vsel %vm3212_vm1, %v6950_v26, %v3405_v31  ;;  %v3406_v16 = vadd.f32 -1.0, %v4101_v24  ;;  %v3205_v34 = vsel %vm3189_vm8, %v3188_v61, %v3138_v59  ;;  %vm3220_vm8 = vcmp.gt.f32.partialorder %v3204_v29, 0.0 }
 0x750   : > { %v4103_v19 = vpop.eup %4102  ;;  %3309 = vst.msk [vmem:[%s6979_s5 + $0x30] sm:$0xff] %vm3302_vm9, %v3292_v11  ;;  %4112 = vpow2.f32 %v3264_v41  ;;  %v3266_v6 = vmul.f32 1.442695, %v3236_v55  ;;  %v3237_v57 = vmin.f32 %v3205_v34, 0.0  ;;  %vm3221_vm7 = vcmp.gt.f32.partialorder %v3205_v34, 0.0 }
 0x751   : > { %v3293_v63 = vsel %vm3213_vm10, %v6968_v10, %v3406_v16  ;;  %v3407_v38 = vadd.f32 -1.0, %v4103_v19 }
 0x752   : > { %v4105_v36 = vpop.eup %4104  ;;  %3310 = vst.msk [vmem:[%s6979_s5 + $0x38] sm:$0xff] %vm3302_vm9, %v3293_v63  ;;  %4114 = vpow2.f32 %v3266_v6  ;;  %v3268_v26 = vmul.f32 1.442695, %v3237_v57 }
 0x753   : > { %v3294_v52 = vsel %vm3214_vm14, %v6982_v47, %v3407_v38  ;;  %v3408_v1 = vadd.f32 -1.0, %v4105_v36 }
 0x754   : > { %v4107_v53 = vpop.eup %4106  ;;  %3311 = vst.msk [vmem:[%s6979_s5 + $0x40] sm:$0xff] %vm3302_vm9, %v3294_v52  ;;  %4116 = vpow2.f32 %v3268_v26 }
 0x755   : > { %v3295_v10 = vsel %vm3215_vm0, %v6990_v18, %v3408_v1  ;;  %v3409_v17 = vadd.f32 -1.0, %v4107_v53 }
 0x756   : > { %v4109_v28 = vpop.eup %4108  ;;  %3312 = vst.msk [vmem:[%s6979_s5 + $0x48] sm:$0xff] %vm3302_vm9, %v3295_v10 }
 0x757   : > { %v3296_v49 = vsel %vm3216_vm13, %v7000_v3, %v3409_v17  ;;  %v3410_v47 = vadd.f32 -1.0, %v4109_v28 }
 0x758   : > { %v4111_v50 = vpop.eup %4110  ;;  %3313 = vst.msk [vmem:[%s6979_s5 + $0x50] sm:$0xff] %vm3302_vm9, %v3296_v49 }
 0x759   : > { %v3297_v45 = vsel %vm3217_vm6, %v7010_v30, %v3410_v47  ;;  %v3411_v51 = vadd.f32 -1.0, %v4111_v50 }
 0x75a   : > { %v4113_v18 = vpop.eup %4112  ;;  %3314 = vst.msk [vmem:[%s6979_s5 + $0x58] sm:$0xff] %vm3302_vm9, %v3297_v45 }
 0x75b   : > { %v3298_v7 = vsel %vm3218_vm12, %v7020_v35, %v3411_v51  ;;  %v3412_v48 = vadd.f32 -1.0, %v4113_v18 }
 0x75c   : > { %v4115_v4 = vpop.eup %4114  ;;  %3315 = vst.msk [vmem:[%s6979_s5 + $0x60] sm:$0xff] %vm3302_vm9, %v3298_v7 }
 0x75d   : > { %v3299_v9 = vsel %vm3219_vm15, %v3203_v42, %v3412_v48  ;;  %v3413_v39 = vadd.f32 -1.0, %v4115_v4 }
 0x75e   : > { %v4117_v3 = vpop.eup %4116  ;;  %3316 = vst.msk [vmem:[%s6979_s5 + $0x68] sm:$0xff] %vm3302_vm9, %v3299_v9 }
 0x75f   : > { %v3300_v21 = vsel %vm3220_vm8, %v3204_v29, %v3413_v39  ;;  %v3414_v43 = vadd.f32 -1.0, %v4117_v3 }
 0x760   : > { %3317 = vst.msk [vmem:[%s6979_s5 + $0x70] sm:$0xff] %vm3302_vm9, %v3300_v21 }
 0x761   : > { %v3301_v22 = vsel %vm3221_vm7, %v3205_v34, %v3414_v43 }
 0x762   : > { %3318 = vst.msk [vmem:[%s6979_s5 + $0x78] sm:$0xff] %vm3302_vm9, %v3301_v22 }
 0x763 PF: > { %s14_s15 = sadd.s32 1, %s4141_s15  }
 0x764   : > { %p11_p4 = scmp.ge.s32.totalorder %s14_s15, 4  }
 0x766   :  { %13 = sbr.rel (!%p11_p4) target bundleno = 1 (0x1), region = 69 }

// kernel: gat_forward.7
= control target key start
LH: loop header
LB: loop body
LE: loop exit
PB: predicated region body
PF: predicated region fallthrough
CT: control target
= control target key end

     0   :  { %s1331_s15 = smov 0   ;;  %s2257_s0 = inlined_call_operand.vmem [shape: f32[256,1], index: 0, kind: input, shape index: {}]   ;;  %s2258_s1 = inlined_call_operand.vmem [shape: f32[1,256], index: 1, kind: input, shape index: {}]   ;;  %s2259_s2 = inlined_call_operand.vmem [shape: bf16[256,256], index: 2, kind: input, shape index: {}]   ;;  %s2260_s3 = inlined_call_operand.vmem [shape: f32[256,8], index: 3, kind: input, shape index: {}]   ;;  %s2261_s4 = inlined_call_operand.vmem [shape: f32[256,8], index: 4, kind: output, shape index: {}]  }
   0x1 LB: > { %s1095_s16 = sadd.s32 4294967295, %s1303_s15   ;;  %p1099_p0 = scmp.ge.s32.totalorder %s1303_s15, 1  ;;  %s1303_s15 = sphi %s1331_s15, %s14_s15  }
   0x2   : > { %p175_p1 = scmp.lt.s32.totalorder %s1303_s15, 3 }
   0x4   : > { %p176_p2 = pnand %p1099_p0, %p175_p1 }
   0x6   : > { %179 = sbr.rel (%p176_p2) target bundleno = 742 (0x2e6), region = 36 }
   0xd   : > { %s1100_s17 = sshll.u32 %s1095_s16, 4  ;;  %v1305_v0 = vmov 0   ;;  %v391_v17 = vlaneseq  ;;  %v245_v25 = vld [vmem:[%s2258_s1] sm:$0x3] }
   0xe   : > { %1200 = vset.pattern.permute.xlu1 %v1305_v0  ;;  %1199 = vset.pattern.permute.xlu0 %v1305_v0  ;;  %p208_p3 = scmp.lt.s32.totalorder %s1100_s17, 31 }
   0xf   : > { %v392_v18 = vshrl.u32 %v391_v17, 7 }
  0x10   : > { %s2344_s17 = smov (!%p208_p3, %s1100_s17), 31 }
  0x11   : > { %s1341_s18 = sshll.u32 %s2344_s17, 3  ;;  %v393_v23 = vsub.s32 0, %v392_v18  ;;  %v397_v26 = vsub.s32 1, %v392_v18 }
  0x12   : > { %s211_s21 = scalar_lea.vmem %s2257_s0, %s1341_s18  ;;  %s1351_s24 = scalar_lea.vmem %s2259_s2, %s1341_s18 }
  0x13   : > { %v237_v1 = vld [vmem:[%s211_s21 + $0x40] sm:$0xff]  ;;  %v238_v3 = vld [vmem:[%s211_s21 + $0x48] sm:$0xff]  ;;  %v232_v5 = vld [vmem:[%s211_s21 + $0x18] sm:$0xff]  ;;  %v1366_v32 = vrot.slane %v245_v25, %v393_v23  ;;  %v1371_v34 = vrot.slane %v245_v25, %v397_v26 }
  0x14   : > { %v229_v2 = vld [vmem:[%s211_s21] sm:$0xff]  ;;  %352 = vperm.xlu1 %1200, %v237_v1   ;;  %v230_v4 = vld [vmem:[%s211_s21 + $0x8] sm:$0xff]  ;;  %v231_v6 = vld [vmem:[%s211_s21 + $0x10] sm:$0xff] }
  0x15   : > { %312 = vperm.xlu0 %1199, %v229_v2   ;;  %v240_v7 = vld [vmem:[%s211_s21 + $0x58] sm:$0xff]  ;;  %v239_v8 = vld [vmem:[%s211_s21 + $0x50] sm:$0xff]  ;;  %v234_v9 = vld [vmem:[%s211_s21 + $0x28] sm:$0xff] }
  0x16   : > { %v233_v10 = vld [vmem:[%s211_s21 + $0x20] sm:$0xff]  ;;  %v242_v11 = vld [vmem:[%s211_s21 + $0x68] sm:$0xff]  ;;  %v236_v13 = vld [vmem:[%s211_s21 + $0x38] sm:$0xff] }
  0x17   : > { %v241_v12 = vld [vmem:[%s211_s21 + $0x60] sm:$0xff]  ;;  %v235_v14 = vld [vmem:[%s211_s21 + $0x30] sm:$0xff]  ;;  %v244_v15 = vld [vmem:[%s211_s21 + $0x78] sm:$0xff] }
  0x18   : > { %357 = vperm.xlu1 %1200, %v238_v3   ;;  %v243_v16 = vld [vmem:[%s211_s21 + $0x70] sm:$0xff]  ;;  %v246_v19 = vld [vmem:[%s1351_s24] sm:$0xff]  ;;  %v247_v21 = vld [vmem:[%s1351_s24 + $0x8] sm:$0xff]  ;;  %s2220_s21 = scalar_lea.vmem %s2261_s4, %s1341_s18 }
  0x19   : > { %317 = vperm.xlu0 %1199, %v230_v4   ;;  %v254_v20 = vld [vmem:[%s1351_s24 + $0x40] sm:$0xff]  ;;  %vm262_vm0 = vcmp.gt.bf16.partialorder %v246_v19, 0  ;;  %v255_v22 = vld [vmem:[%s1351_s24 + $0x48] sm:$0xff]  ;;  %v248_v24 = vld [vmem:[%s1351_s24 + $0x10] sm:$0xff]  ;;  %vm263_vm2 = vcmp.gt.bf16.partialorder %v247_v21, 0 }
  0x1a   : > { %vm270_vm1 = vcmp.gt.bf16.partialorder %v254_v20, 0  ;;  %v249_v27 = vld [vmem:[%s1351_s24 + $0x18] sm:$0xff]  ;;  %v529_v28 = vsel %vm262_vm0, 65537, %v1305_v0  ;;  %vm271_vm3 = vcmp.gt.bf16.partialorder %v255_v22, 0  ;;  %v256_v29 = vld [vmem:[%s1351_s24 + $0x50] sm:$0xff]  ;;  %vm264_vm4 = vcmp.gt.bf16.partialorder %v248_v24, 0 }
  0x1b   : > { %v537_v30 = vsel %vm270_vm1, 65537, %v1305_v0  ;;  %v257_v31 = vld [vmem:[%s1351_s24 + $0x58] sm:$0xff]  ;;  %v1369_v33 = vsel %vm263_vm2, 65537, %v1305_v0  ;;  %vm265_vm5 = vcmp.gt.bf16.partialorder %v249_v27, 0  ;;  %v545_v35 = vunpack.c.l.b16 %v529_v28  ;;  %v250_v37 = vld [vmem:[%s1351_s24 + $0x20] sm:$0xff]  ;;  %v251_v38 = vld [vmem:[%s1351_s24 + $0x28] sm:$0xff] }
  0x1c   : > { %327 = vperm.xlu1 %1200, %v232_v5   ;;  %v1374_v36 = vsel %vm271_vm3, 65537, %v1305_v0  ;;  %vm272_vm6 = vcmp.gt.bf16.partialorder %v256_v29, 0  ;;  %v546_v39 = vunpack.c.h.b16 %v529_v28  ;;  %v561_v40 = vunpack.c.l.b16 %v537_v30  ;;  %v258_v42 = vld [vmem:[%s1351_s24 + $0x60] sm:$0xff]  ;;  %v259_v47 = vld [vmem:[%s1351_s24 + $0x68] sm:$0xff]  ;;  %v252_v48 = vld [vmem:[%s1351_s24 + $0x30] sm:$0xff] }
  0x1d   : > { %322 = vperm.xlu0 %1199, %v231_v6   ;;  %v1379_v41 = vsel %vm264_vm4, 65537, %v1305_v0  ;;  %vm273_vm7 = vcmp.gt.bf16.partialorder %v257_v31, 0  ;;  %v562_v43 = vunpack.c.h.b16 %v537_v30  ;;  %v547_v44 = vunpack.c.l.b16 %v1369_v33  ;;  %v253_v54 = vld [vmem:[%s1351_s24 + $0x38] sm:$0xff]  ;;  %v260_v57 = vld [vmem:[%s1351_s24 + $0x70] sm:$0xff] }
  0x1e   : > { %v548_v45 = vunpack.c.h.b16 %v1369_v33  ;;  %v1385_v46 = vsel %vm265_vm5, 65537, %v1305_v0  ;;  %v563_v49 = vunpack.c.l.b16 %v1374_v36  ;;  %v1391_v50 = vsel %vm272_vm6, 65537, %v1305_v0  ;;  %v261_v2 = vld [vmem:[%s1351_s24 + $0x78] sm:$0xff] }
  0x1f   : > { %vm266_vm8 = vcmp.gt.bf16.partialorder %v250_v37, 0  ;;  %vm267_vm9 = vcmp.gt.bf16.partialorder %v251_v38, 0  ;;  %v564_v51 = vunpack.c.h.b16 %v1374_v36  ;;  %v549_v52 = vunpack.c.l.b16 %v1379_v41 }
  0x20   : > { %367 = vperm.xlu1 %1200, %v240_v7   ;;  %v1396_v53 = vsel %vm273_vm7, 65537, %v1305_v0  ;;  %vm274_vm10 = vcmp.gt.bf16.partialorder %v258_v42, 0  ;;  %v550_v55 = vunpack.c.h.b16 %v1379_v41  ;;  %v551_v56 = vunpack.c.l.b16 %v1385_v46 }
  0x21   : > { %362 = vperm.xlu0 %1199, %v239_v8   ;;  %vm275_vm11 = vcmp.gt.bf16.partialorder %v259_v47, 0  ;;  %vm268_vm12 = vcmp.gt.bf16.partialorder %v252_v48, 0  ;;  %v552_v58 = vunpack.c.h.b16 %v1385_v46  ;;  %v565_v59 = vunpack.c.l.b16 %v1391_v50 }
  0x22   : > { %v1405_v60 = vsel %vm266_vm8, 65537, %v1305_v0  ;;  %v1408_v61 = vsel %vm267_vm9, 65537, %v1305_v0  ;;  %v566_v62 = vunpack.c.h.b16 %v1391_v50  ;;  %v567_v63 = vunpack.c.l.b16 %v1396_v53 }
  0x23   : > { %v1413_v1 = vsel %vm274_vm10, 65537, %v1305_v0  ;;  %vm269_vm13 = vcmp.gt.bf16.partialorder %v253_v54, 0  ;;  %vm1416_vm14 = vcmp.ne.s32.totalorder %v545_v35, 0  ;;  %vm1420_vm15 = vcmp.ne.s32.totalorder %v546_v39, 0 }
  0x24   : > { %337 = vperm.xlu1 %1200, %v234_v9   ;;  %v568_v5 = vunpack.c.h.b16 %v1396_v53  ;;  %v1426_v6 = vsel %vm275_vm11, 65537, %v1305_v0  ;;  %v1429_v7 = vsel %vm268_vm12, 65537, %v1305_v0  ;;  %vm276_vm0 = vcmp.gt.bf16.partialorder %v260_v57, 0 }
  0x25   : > { %332 = vperm.xlu0 %1199, %v233_v10   ;;  %v553_v8 = vunpack.c.l.b16 %v1405_v60  ;;  %v554_v9 = vunpack.c.h.b16 %v1405_v60  ;;  %v555_v10 = vunpack.c.l.b16 %v1408_v61  ;;  %vm1435_vm1 = vcmp.ne.s32.totalorder %v561_v40, 0 }
  0x26   : > { %vm1439_vm2 = vcmp.ne.s32.totalorder %v562_v43, 0  ;;  %vm277_vm3 = vcmp.gt.bf16.partialorder %v261_v2, 0  ;;  %v1454_v22 = vsel %vm276_vm0, 65537, %v1305_v0  ;;  %vm1466_vm4 = vcmp.ne.s32.totalorder %v547_v44, 0 }
  0x27   : > { %v1464_v30 = vsel %vm277_vm3, 65537, %v1305_v0  ;;  %vm1477_vm8 = vcmp.ne.s32.totalorder %v548_v45, 0  ;;  %vm1483_vm9 = vcmp.ne.s32.totalorder %v563_v49, 0  ;;  %vm1489_vm11 = vcmp.ne.s32.totalorder %v564_v51, 0 }
  0x28   : > { %377 = vperm.xlu1 %1200, %v242_v11   ;;  %v556_v11 = vunpack.c.h.b16 %v1408_v61  ;;  %vm1564_vm3 = vcmp.ne.s32.totalorder %v552_v58, 0 }
  0x29   : > { %372 = vperm.xlu0 %1199, %v241_v12  }
  0x2c   : > { %347 = vperm.xlu1 %1200, %v236_v13  }
  0x2d   : > { %342 = vperm.xlu0 %1199, %v235_v14  }
  0x30   : > { %387 = vperm.xlu1 %1200, %v244_v15  }
  0x31   : > { %382 = vperm.xlu0 %1199, %v243_v16   ;;  %v1447_v16 = vsel %vm269_vm13, 65537, %v1305_v0  ;;  %vm1522_vm13 = vcmp.ne.s32.totalorder %v549_v52, 0 }
  0x93   : > { %v353_v17 = vpop.permute.xlu1 %352 }
  0x94   : > { %v313_v18 = vpop.permute.xlu0 %312  ;;  %v417_v23 = vadd.f32 %v1366_v32, %v353_v17  ;;  %v418_v24 = vadd.f32 %v1371_v34, %v353_v17 }
  0x95   : > { %v401_v25 = vadd.f32 %v1366_v32, %v313_v18  ;;  %v402_v26 = vadd.f32 %v1371_v34, %v313_v18 }
  0x96   : > { %v481_v31 = vmul.f32 0.2, %v417_v23  ;;  %v482_v35 = vmul.f32 0.2, %v418_v24  ;;  %vm449_vm7 = vcmp.ge.f32.partialorder %v417_v23, 0.0  ;;  %vm450_vm10 = vcmp.ge.f32.partialorder %v418_v24, 0.0 }
  0x97   : > { %v465_v37 = vmul.f32 0.2, %v401_v25  ;;  %v466_v40 = vmul.f32 0.2, %v402_v26  ;;  %v358_v42 = vpop.permute.xlu1 %357  ;;  %vm433_vm5 = vcmp.ge.f32.partialorder %v401_v25, 0.0  ;;  %vm434_vm6 = vcmp.ge.f32.partialorder %v402_v26, 0.0 }
  0x98   : > { %v318_v43 = vpop.permute.xlu0 %317  ;;  %v419_v47 = vadd.f32 %v1366_v32, %v358_v42  ;;  %v420_v0 = vadd.f32 %v1371_v34, %v358_v42  ;;  %v513_v18 = vsel %vm449_vm7, %v417_v23, %v481_v31 }
  0x99   : > { %v403_v48 = vadd.f32 %v1366_v32, %v318_v43  ;;  %v404_v54 = vadd.f32 %v1371_v34, %v318_v43  ;;  %v497_v2 = vsel %vm433_vm5, %v401_v25, %v465_v37  ;;  %v498_v17 = vsel %vm434_vm6, %v402_v26, %v466_v40 }
  0x9a   : > { %v483_v42 = vmul.f32 0.2, %v419_v47  ;;  %v484_v39 = vmul.f32 0.2, %v420_v0  ;;  %v514_v43 = vsel %vm450_vm10, %v418_v24, %v482_v35  ;;  %v1495_v27 = vsel %vm1416_vm14, %v497_v2, -1e+09 }
  0x9b   : > { %v467_v29 = vmul.f32 0.2, %v403_v48  ;;  %v468_v45 = vmul.f32 0.2, %v404_v54  ;;  %v328_v28 = vpop.permute.xlu1 %327  ;;  %v1499_v23 = vsel %vm1420_vm15, %v498_v17, -1e+09 }
  0x9c   : > { %v323_v49 = vpop.permute.xlu0 %322  ;;  %v1503_v24 = vadd.f32 %v1366_v32, %v328_v28  ;;  %v1506_v36 = vadd.f32 %v1371_v34, %v328_v28  ;;  %v641_v3 = vmax.f32 %v1495_v27, %v1499_v23  ;;  %v1514_v4 = vsel %vm1435_vm1, %v513_v18, -1e+09 }
  0x9d   : > { %v405_v51 = vadd.f32 %v1366_v32, %v323_v49  ;;  %v406_v26 = vadd.f32 %v1371_v34, %v323_v49  ;;  %v1518_v31 = vsel %vm1439_vm2, %v514_v43, -1e+09  ;;  %vm435_vm12 = vcmp.ge.f32.partialorder %v403_v48, 0.0 }
  0x9e   : > { %vm1528_vm14 = vcmp.ne.s32.totalorder %v550_v55, 0  ;;  %v1533_v12 = vmul.f32 0.2, %v1503_v24  ;;  %v1536_v13 = vmul.f32 0.2, %v1506_v36  ;;  %v665_v40 = vmax.f32 %v1514_v4, %v1518_v31  ;;  %642 = vmax.xlane.f32.xlu0 %v641_v3 }
  0x9f   : > { %v469_v37 = vmul.f32 0.2, %v405_v51  ;;  %v470_v52 = vmul.f32 0.2, %v406_v26  ;;  %v368_v2 = vpop.permute.xlu1 %367  ;;  %vm436_vm15 = vcmp.ge.f32.partialorder %v404_v54, 0.0  ;;  %v499_v41 = vsel %vm435_vm12, %v403_v48, %v467_v29 }
  0xa0   : > { %v363_v17 = vpop.permute.xlu0 %362  ;;  %vm451_vm0 = vcmp.ge.f32.partialorder %v419_v47, 0.0  ;;  %v1541_v55 = vadd.f32 %v1366_v32, %v368_v2  ;;  %v1544_v18 = vadd.f32 %v1371_v34, %v368_v2  ;;  %vm1554_vm1 = vcmp.ne.s32.totalorder %v551_v56, 0 }
  0xa1   : > { %v1547_v43 = vadd.f32 %v1366_v32, %v363_v17  ;;  %v1550_v49 = vadd.f32 %v1371_v34, %v363_v17  ;;  %v500_v29 = vsel %vm436_vm15, %v404_v54, %v468_v45  ;;  %v1560_v48 = vsel %vm1466_vm4, %v499_v41, -1e+09 }
  0xa2   : > { %vm452_vm2 = vcmp.ge.f32.partialorder %v420_v0, 0.0  ;;  %v515_v2 = vsel %vm451_vm0, %v419_v47, %v483_v42  ;;  %v1569_v17 = vmul.f32 0.2, %v1541_v55  ;;  %v1572_v56 = vmul.f32 0.2, %v1544_v18  ;;  %666 = vmax.xlane.f32.xlu0 %v665_v40 }
  0xa3   : > { %v485_v54 = vmul.f32 0.2, %v1547_v43  ;;  %v516_v45 = vsel %vm452_vm2, %v420_v0, %v484_v39  ;;  %v486_v38 = vmul.f32 0.2, %v1550_v49  ;;  %v1578_v47 = vsel %vm1477_vm8, %v500_v29, -1e+09  ;;  %v338_v46 = vpop.permute.xlu1 %337 }
  0xa4   : > { %v333_v58 = vpop.permute.xlu0 %332  ;;  %v1582_v42 = vsel %vm1483_vm9, %v515_v2, -1e+09  ;;  %vm1586_vm4 = vcmp.ne.s32.totalorder %v565_v59, 0  ;;  %vm1592_vm5 = vcmp.ne.s32.totalorder %v566_v62, 0  ;;  %v644_v44 = vmax.f32 %v1560_v48, %v1578_v47 }
  0xa5   : > { %v1600_v57 = vadd.f32 %v1366_v32, %v338_v46  ;;  %v1603_v40 = vadd.f32 %v1371_v34, %v338_v46  ;;  %v1606_v59 = vadd.f32 %v1366_v32, %v333_v58  ;;  %v1609_v50 = vadd.f32 %v1371_v34, %v333_v58 }
  0xa6   : > { %v1613_v62 = vsel %vm1489_vm11, %v516_v45, -1e+09  ;;  %vm437_vm6 = vcmp.ge.f32.partialorder %v405_v51, 0.0  ;;  %vm438_vm7 = vcmp.ge.f32.partialorder %v406_v26, 0.0  ;;  %645 = vmax.xlane.f32.xlu1 %v644_v44  ;;  %vm1628_vm8 = vcmp.ne.s32.totalorder %v567_v63, 0 }
  0xa7   : > { %v1616_v29 = vmul.f32 0.2, %v1600_v57  ;;  %v1619_v2 = vmul.f32 0.2, %v1603_v40  ;;  %v1622_v46 = vmul.f32 0.2, %v1606_v59  ;;  %v668_v58 = vmax.f32 %v1582_v42, %v1613_v62  ;;  %v378_v21 = vpop.permute.xlu1 %377 }
  0xa8   : > { %v1633_v45 = vmul.f32 0.2, %v1609_v50  ;;  %v501_v44 = vsel %vm437_vm6, %v405_v51, %v469_v37  ;;  %v502_v0 = vsel %vm438_vm7, %v406_v26, %v470_v52  ;;  %v373_v20 = vpop.permute.xlu0 %372  ;;  %vm439_vm9 = vcmp.ge.f32.partialorder %v1503_v24, 0.0 }
  0xa9   : > { %vm1638_vm10 = vcmp.ne.s32.totalorder %v568_v5, 0  ;;  %669 = vmax.xlane.f32.xlu0 %v668_v58  ;;  %v1644_v63 = vsel %vm1522_vm13, %v501_v44, -1e+09  ;;  %v1648_v15 = vsel %vm1528_vm14, %v502_v0, -1e+09  ;;  %v1651_v51 = vadd.f32 %v1366_v32, %v378_v21 }
  0xaa   : > { %v1654_v26 = vadd.f32 %v1371_v34, %v378_v21  ;;  %vm1658_vm11 = vcmp.ne.s32.totalorder %v553_v8, 0  ;;  %vm1664_vm12 = vcmp.ne.s32.totalorder %v554_v9, 0  ;;  %v647_v28 = vmax.f32 %v1644_v63, %v1648_v15 }
  0xab   : > { %v1671_v35 = vadd.f32 %v1366_v32, %v373_v20  ;;  %v1674_v21 = vadd.f32 %v1371_v34, %v373_v20  ;;  %vm440_vm13 = vcmp.ge.f32.partialorder %v1506_v36, 0.0  ;;  %v1678_v8 = vmul.f32 0.2, %v1651_v51  ;;  %v348_v58 = vpop.permute.xlu1 %347 }
  0xac   : > { %v1681_v60 = vmul.f32 0.2, %v1654_v26  ;;  %v503_v9 = vsel %vm439_vm9, %v1503_v24, %v1533_v12  ;;  %v504_v37 = vsel %vm440_vm13, %v1506_v36, %v1536_v13  ;;  %648 = vmax.xlane.f32.xlu1 %v647_v28  ;;  %v343_v44 = vpop.permute.xlu0 %342  ;;  %vm453_vm14 = vcmp.ge.f32.partialorder %v1547_v43, 0.0 }
  0xad   : > { %v1688_v52 = vmul.f32 0.2, %v1671_v35  ;;  %v1691_v20 = vmul.f32 0.2, %v1674_v21  ;;  %v1695_v0 = vsel %vm1554_vm1, %v503_v9, -1e+09  ;;  %v1705_v36 = vadd.f32 %v1366_v32, %v348_v58 }
  0xae   : > { %v1700_v24 = vsel %vm1564_vm3, %v504_v37, -1e+09  ;;  %vm454_vm15 = vcmp.ge.f32.partialorder %v1550_v49, 0.0  ;;  %vm1709_vm0 = vcmp.ne.s32.totalorder %v555_v10, 0  ;;  %vm1715_vm1 = vcmp.ne.s32.totalorder %v556_v11, 0 }
  0xaf   : > { %v650_v25 = vmax.f32 %v1695_v0, %v1700_v24  ;;  %v517_v3 = vsel %vm453_vm14, %v1547_v43, %v485_v54  ;;  %v518_v28 = vsel %vm454_vm15, %v1550_v49, %v486_v38  ;;  %v1724_v9 = vadd.f32 %v1371_v34, %v348_v58 }
  0xb0   : > { %v2304_v10 = vunpack.c.l.b16 %v1413_v1  ;;  %v1734_v61 = vsel %vm1586_vm4, %v517_v3, -1e+09  ;;  %v1738_v11 = vsel %vm1592_vm5, %v518_v28, -1e+09  ;;  %v1741_v43 = vmul.f32 0.2, %v1705_v36  ;;  %v388_v3 = vpop.permute.xlu1 %387 }
  0xb1   : > { %2307 = vst [vmem:[#allocation2_spill] sm:$0xff] %v1738_v11  ;;  %v1744_v49 = vadd.f32 %v1366_v32, %v343_v44  ;;  %v2308_v54 = vunpack.c.h.b16 %v1413_v1  ;;  %651 = vmax.xlane.f32.xlu0 %v650_v25  ;;  %v671_v41 = vmax.f32 %v1734_v61, %v1738_v11  ;;  %v1755_v39 = vmul.f32 0.2, %v1724_v9 }
  0xb2   : > { %vm1728_vm2 = vcmp.ne.s32.totalorder %v2304_v10, 0  ;;  %v1758_v58 = vadd.f32 %v1371_v34, %v343_v44  ;;  %vm455_vm4 = vcmp.ge.f32.partialorder %v1541_v55, 0.0  ;;  %v2311_v28 = vunpack.c.l.b16 %v1426_v6 }
  0xb3   : > { %vm1748_vm3 = vcmp.ne.s32.totalorder %v2308_v54, 0  ;;  %v477_v25 = vmul.f32 0.2, %v1744_v49  ;;  %vm456_vm6 = vcmp.ge.f32.partialorder %v1544_v18, 0.0  ;;  %v519_v10 = vsel %vm455_vm4, %v1541_v55, %v1569_v17  ;;  %672 = vmax.xlane.f32.xlu1 %v671_v41  ;;  %v383_v55 = vpop.permute.xlu0 %382 }
  0xb4   : > { %vm1763_vm5 = vcmp.ne.s32.totalorder %v2311_v28, 0  ;;  %vm441_vm7 = vcmp.ge.f32.partialorder %v1606_v59, 0.0  ;;  %v2314_v44 = vunpack.c.h.b16 %v1426_v6  ;;  %v478_v28 = vmul.f32 0.2, %v1758_v58 }
  0xb5   : > { %v520_v14 = vsel %vm456_vm6, %v1544_v18, %v1572_v56  ;;  %v1783_v11 = vsel %vm1628_vm8, %v519_v10, -1e+09  ;;  %vm442_vm13 = vcmp.ge.f32.partialorder %v1609_v50, 0.0  ;;  %v2317_v17 = vunpack.c.l.b16 %v1429_v7 }
  0xb6   : > { %vm1774_vm9 = vcmp.ne.s32.totalorder %v2314_v44, 0  ;;  %v2320_v41 = vunpack.c.h.b16 %v1429_v7  ;;  %v1800_v18 = vsel %vm1638_vm10, %v520_v14, -1e+09  ;;  %v505_v56 = vsel %vm441_vm7, %v1606_v59, %v1622_v46 }
  0xb7   : > { %vm1788_vm14 = vcmp.ne.s32.totalorder %v2317_v17, 0  ;;  %v506_v33 = vsel %vm442_vm13, %v1609_v50, %v1633_v45  ;;  %v1807_v10 = vadd.f32 %v1366_v32, %v388_v3  ;;  %v674_v7 = vmax.f32 %v1783_v11, %v1800_v18 }
  0xb8   : > { %vm1794_vm15 = vcmp.ne.s32.totalorder %v2320_v41, 0  ;;  %v1813_v17 = vsel %vm1658_vm11, %v505_v56, -1e+09  ;;  %v1817_v14 = vsel %vm1664_vm12, %v506_v33, -1e+09  ;;  %v1820_v19 = vadd.f32 %v1371_v34, %v388_v3  ;;  %v296_v33 = vld [vmem:[%s2260_s3 + $0x90] sm:$0xff] }
  0xb9   : > { %2323 = vst [vmem:[#allocation3_spill] sm:$0xff] %v1817_v14  ;;  %v2324_v59 = vunpack.c.l.b16 %v1447_v16  ;;  %v2327_v46 = vunpack.c.h.b16 %v1447_v16  ;;  %v653_v53 = vmax.f32 %v1813_v17, %v1817_v14  ;;  %v495_v5 = vmul.f32 0.2, %v1807_v10  ;;  %675 = vmax.xlane.f32.xlu0 %v674_v7  ;;  %v278_v14 = vld [vmem:[%s2260_s3] sm:$0xff] }
  0xba   : > { %v429_v3 = vadd.f32 %v1366_v32, %v383_v55  ;;  %v430_v41 = vadd.f32 %v1371_v34, %v383_v55  ;;  %v2330_v56 = vunpack.c.l.b16 %v1454_v22  ;;  %v496_v16 = vmul.f32 0.2, %v1820_v19 }
  0xbb   : > { %vm1824_vm8 = vcmp.ne.s32.totalorder %v2324_v59, 0  ;;  %vm1830_vm10 = vcmp.ne.s32.totalorder %v2327_v46, 0  ;;  %vm443_vm12 = vcmp.ge.f32.partialorder %v1600_v57, 0.0  ;;  %vm444_vm4 = vcmp.ge.f32.partialorder %v1603_v40, 0.0  ;;  %654 = vmax.xlane.f32.xlu1 %v653_v53 }
  0xbc   : > { %vm1841_vm11 = vcmp.ne.s32.totalorder %v2330_v56, 0  ;;  %vm457_vm6 = vcmp.ge.f32.partialorder %v1671_v35, 0.0  ;;  %v2333_v59 = vunpack.c.h.b16 %v1454_v22  ;;  %v2334_v32 = vmov 0 }
  0xbd   : > { %v493_v34 = vmul.f32 0.2, %v429_v3  ;;  %v494_v55 = vmul.f32 0.2, %v430_v41  ;;  %v507_v7 = vsel %vm443_vm12, %v1600_v57, %v1616_v29  ;;  %v508_v46 = vsel %vm444_vm4, %v1603_v40, %v1619_v2 }
  0xbe   : > { %vm1851_vm7 = vcmp.ne.s32.totalorder %v2333_v59, 0  ;;  %v2336_v56 = vunpack.c.l.b16 %v1464_v30  ;;  %v1867_v22 = vsel %vm1709_vm0, %v507_v7, -1e+09  ;;  %v1871_v53 = vsel %vm1715_vm1, %v508_v46, -1e+09  ;;  %v298_v7 = vld [vmem:[%s2260_s3 + $0xa0] sm:$0xff] }
  0xbf   : > { %v2335_v32 = vsel %vm1851_vm7, 4294967295, %v2334_v32  ;;  %vm458_vm7 = vcmp.ge.f32.partialorder %v1674_v21, 0.0  ;;  %v521_v57 = vsel %vm457_vm6, %v1671_v35, %v1688_v52  ;;  %v656_v40 = vmax.f32 %v1867_v22, %v1871_v53  ;;  %v299_v46 = vld [vmem:[%s2260_s3 + $0xa8] sm:$0xff] }
  0xc0   : > { %vm1861_vm13 = vcmp.ne.s32.totalorder %v2336_v56, 0  ;;  %v522_v29 = vsel %vm458_vm7, %v1674_v21, %v1691_v20  ;;  %v1882_v2 = vsel %vm1728_vm2, %v521_v57, -1e+09  ;;  %vm459_vm0 = vcmp.ge.f32.partialorder %v1651_v51, 0.0 }
  0xc1   : > { %v1887_v12 = vsel %vm1748_vm3, %v522_v29, -1e+09  ;;  %vm460_vm1 = vcmp.ge.f32.partialorder %v1654_v26, 0.0  ;;  %v523_v35 = vsel %vm459_vm0, %v1651_v51, %v1678_v8  ;;  %vm445_vm12 = vcmp.ge.f32.partialorder %v1744_v49, 0.0  ;;  %657 = vmax.xlane.f32.xlu0 %v656_v40  ;;  %v282_v40 = vld [vmem:[%s2260_s3 + $0x20] sm:$0xff]  ;;  %v283_v29 = vld [vmem:[%s2260_s3 + $0x28] sm:$0xff] }
  0xc2   : > { %v677_v21 = vmax.f32 %v1882_v2, %v1887_v12  ;;  %v524_v52 = vsel %vm460_vm1, %v1654_v26, %v1681_v60  ;;  %v1899_v20 = vsel %vm1763_vm5, %v523_v35, -1e+09  ;;  %vm446_vm2 = vcmp.ge.f32.partialorder %v1758_v58, 0.0 }
  0xc3   : > { %v1904_v13 = vsel %vm1774_vm9, %v524_v52, -1e+09  ;;  %v509_v51 = vsel %vm445_vm12, %v1744_v49, %v477_v25  ;;  %v510_v8 = vsel %vm446_vm2, %v1758_v58, %v478_v28  ;;  %vm447_vm3 = vcmp.ge.f32.partialorder %v1705_v36, 0.0 }
  0xc4   : > { %678 = vmax.xlane.f32.xlu1 %v677_v21  ;;  %v680_v26 = vmax.f32 %v1899_v20, %v1904_v13  ;;  %v1913_v60 = vsel %vm1788_vm14, %v509_v51, -1e+09  ;;  %v1917_v37 = vsel %vm1794_vm15, %v510_v8, -1e+09  ;;  %vm448_vm5 = vcmp.ge.f32.partialorder %v1724_v9, 0.0 }
  0xc5   : > { %v659_v49 = vmax.f32 %v1913_v60, %v1917_v37  ;;  %v511_v38 = vsel %vm447_vm3, %v1705_v36, %v1741_v43  ;;  %v512_v58 = vsel %vm448_vm5, %v1724_v9, %v1755_v39  ;;  %vm461_vm9 = vcmp.ge.f32.partialorder %v429_v3, 0.0 }
  0xc6   : > { %681 = vmax.xlane.f32.xlu0 %v680_v26  ;;  %v1928_v1 = vsel %vm1824_vm8, %v511_v38, -1e+09  ;;  %v1932_v25 = vsel %vm1830_vm10, %v512_v58, -1e+09  ;;  %vm462_vm14 = vcmp.ge.f32.partialorder %v430_v41, 0.0  ;;  %v525_v54 = vsel %vm461_vm9, %v429_v3, %v493_v34  ;;  %v280_v34 = vld [vmem:[%s2260_s3 + $0x10] sm:$0xff] }
  0xc7   : > { %v526_v28 = vsel %vm462_vm14, %v430_v41, %v494_v55  ;;  %v1936_v6 = vsel %vm1841_vm11, %v525_v54, -1e+09  ;;  %vm463_vm15 = vcmp.ge.f32.partialorder %v1807_v10, 0.0  ;;  %v2339_v36 = vunpack.c.h.b16 %v1464_v30  ;;  %v279_v41 = vld [vmem:[%s2260_s3 + $0x8] sm:$0xff]  ;;  %v281_v55 = vld [vmem:[%s2260_s3 + $0x18] sm:$0xff] }
  0xc8   : > { %660 = vmax.xlane.f32.xlu1 %v659_v49  ;;  %v662_v9 = vmax.f32 %v1928_v1, %v1932_v25  ;;  %vm2340_vm8 = vnez %v2335_v32  ;;  %vm464_vm10 = vcmp.ge.f32.partialorder %v1820_v19, 0.0  ;;  %v527_v39 = vsel %vm463_vm15, %v1807_v10, %v495_v5  ;;  %v294_v10 = vld [vmem:[%s2260_s3 + $0x80] sm:$0xff] }
  0xc9   : > { %vm608_vm4 = vcmp.ne.s32.totalorder %v2339_v36, 0  ;;  %v1945_v43 = vsel %vm2340_vm8, %v526_v28, -1e+09  ;;  %v528_v50 = vsel %vm464_vm10, %v1820_v19, %v496_v16  ;;  %v1954_v30 = vsel %vm1861_vm13, %v527_v39, -1e+09  ;;  %v295_v19 = vld [vmem:[%s2260_s3 + $0x88] sm:$0xff] }
  0xca   : > { %v683_v44 = vmax.f32 %v1936_v6, %v1945_v43  ;;  %663 = vmax.xlane.f32.xlu0 %v662_v9  ;;  %v1956_v45 = vsel %vm608_vm4, %v528_v50, -1e+09  ;;  %v905_v5 = vpack.c.bf16 %v295_v19, %v294_v10  ;;  %v297_v16 = vld [vmem:[%s2260_s3 + $0x98] sm:$0xff]  ;;  %v897_v59 = vpack.c.bf16 %v279_v41, %v278_v14 }
  0xcb   : > { %v686_v3 = vmax.f32 %v1954_v30, %v1956_v45  ;;  %v906_v32 = vpack.c.bf16 %v297_v16, %v296_v33  ;;  %v898_v56 = vpack.c.bf16 %v281_v55, %v280_v34  ;;  %v907_v57 = vpack.c.bf16 %v299_v46, %v298_v7 }
  0xcc   : > { %684 = vmax.xlane.f32.xlu1 %v683_v44  ;;  %1110 = vmatprep.subr.bf16.mxu0 %v905_v5  ;;  %v899_v35 = vpack.c.bf16 %v283_v29, %v282_v40  ;;  %vm1010_vm11 = vcmask 64512  }
  0xcd   : > { %1174 = vmatprep.subr.bf16.mxu1 %v905_v5  ;;  %1111 = vmatpush3.bf16.msra.mxu0 %v897_v59 }
  0xce   : > { %687 = vmax.xlane.f32.xlu0 %v686_v3  ;;  %1182 = vmatpush3.bf16.msra.mxu1 %v897_v59 }
  0xcf   : > { %1112 = vmatprep.subr.bf16.mxu0 %v906_v32  ;;  %1175 = vmatprep.subr.bf16.mxu1 %v906_v32  ;;  %v2341_v32 = vld [vmem:[#allocation2_spill] sm:$0xff] }
  0xd1   : > { %1113 = vmatpush3.bf16.msra.mxu0 %v898_v56 }
  0xd2   : > { %1183 = vmatpush3.bf16.msra.mxu1 %v898_v56  ;;  %1114 = vmatprep.subr.bf16.mxu0 %v907_v57 }
  0xd3   : > { %1176 = vmatprep.subr.bf16.mxu1 %v907_v57 }
  0xd5   : > { %1115 = vmatpush3.bf16.msra.mxu0 %v899_v35 }
  0xd6   : > { %1184 = vmatpush3.bf16.msra.mxu1 %v899_v35 }
 0x12b   : > { %v643_v21 = vpop.xlane.xlu0 %642 }
 0x12c   : > { %v689_v52 = vsub.f32 %v1495_v27, %v643_v21  ;;  %v690_v51 = vsub.f32 %v1499_v23, %v643_v21 }
 0x12e   : > { %v721_v8 = vmul.f32 1.442695, %v689_v52  ;;  %v723_v26 = vmul.f32 1.442695, %v690_v51 }
 0x12f   : > { %v667_v49 = vpop.xlane.xlu0 %666 }
 0x130   : > { %1201 = vpow2.f32 %v721_v8  ;;  %v705_v38 = vsub.f32 %v1514_v4, %v667_v49  ;;  %v706_v58 = vsub.f32 %v1518_v31, %v667_v49  ;;  %v2342_v8 = vld [vmem:[#allocation3_spill] sm:$0xff] }
 0x131   : > { %1203 = vpow2.f32 %v723_v26 }
 0x132   : > { %v753_v28 = vmul.f32 1.442695, %v705_v38  ;;  %v755_v36 = vmul.f32 1.442695, %v706_v58 }
 0x133   : > { %v646_v54 = vpop.xlane.xlu1 %645 }
 0x134   : > { %v691_v9 = vsub.f32 %v1560_v48, %v646_v54  ;;  %v692_v39 = vsub.f32 %v1578_v47, %v646_v54  ;;  %1205 = vpow2.f32 %v753_v28 }
 0x135   : > { %1207 = vpow2.f32 %v755_v36 }
 0x136   : > { %v670_v27 = vpop.xlane.xlu0 %669  ;;  %v725_v44 = vmul.f32 1.442695, %v691_v9  ;;  %v727_v23 = vmul.f32 1.442695, %v692_v39 }
 0x137   : > { %v707_v50 = vsub.f32 %v1582_v42, %v670_v27  ;;  %v708_v3 = vsub.f32 %v1613_v62, %v670_v27 }
 0x138   : > { %1209 = vpow2.f32 %v725_v44 }
 0x139   : > { %v649_v4 = vpop.xlane.xlu1 %648  ;;  %v757_v31 = vmul.f32 1.442695, %v707_v50  ;;  %1211 = vpow2.f32 %v727_v23  ;;  %v759_v48 = vmul.f32 1.442695, %v708_v3 }
 0x13a   : > { %v693_v10 = vsub.f32 %v1644_v63, %v649_v4  ;;  %v694_v19 = vsub.f32 %v1648_v15, %v649_v4  ;;  %v2006_v47 = vpop.eup %1201 }
 0x13b   : > { %1213 = vpow2.f32 %v757_v31  ;;  %v2008_v41 = vpop.eup %1203 }
 0x13c   : > { %v729_v14 = vmul.f32 1.442695, %v693_v10  ;;  %v731_v5 = vmul.f32 1.442695, %v694_v19  ;;  %1215 = vpow2.f32 %v759_v48  ;;  %v785_v63 = vadd.f32 %v2008_v41, %v2006_v47 }
 0x13e   : > { %v652_v42 = vpop.xlane.xlu0 %651  ;;  %1217 = vpow2.f32 %v729_v14  ;;  %v2014_v16 = vpop.eup %1205  ;;  %786 = vadd.xlane.f32.xlu1 %v785_v63 }
 0x13f   : > { %v695_v62 = vsub.f32 %v1695_v0, %v652_v42  ;;  %v696_v33 = vsub.f32 %v1700_v24, %v652_v42  ;;  %1219 = vpow2.f32 %v731_v5  ;;  %v2018_v46 = vpop.eup %1207 }
 0x140   : > { %v673_v15 = vpop.xlane.xlu1 %672  ;;  %v809_v24 = vadd.f32 %v2018_v46, %v2014_v16 }
 0x141   : > { %v709_v59 = vsub.f32 %v1734_v61, %v673_v15  ;;  %v710_v34 = vsub.f32 %v2341_v32, %v673_v15  ;;  %v733_v55 = vmul.f32 1.442695, %v695_v62  ;;  %v735_v7 = vmul.f32 1.442695, %v696_v33  ;;  %v300_v62 = vld [vmem:[%s2260_s3 + $0xb0] sm:$0xff]  ;;  %v301_v33 = vld [vmem:[%s2260_s3 + $0xb8] sm:$0xff] }
 0x142   : > { %v2022_v57 = vpop.eup %1209  ;;  %810 = vadd.xlane.f32.xlu1 %v809_v24  ;;  %v285_v32 = vld [vmem:[%s2260_s3 + $0x38] sm:$0xff] }
 0x143   : > { %v761_v56 = vmul.f32 1.442695, %v709_v59  ;;  %v763_v0 = vmul.f32 1.442695, %v710_v34  ;;  %1221 = vpow2.f32 %v733_v55  ;;  %v2024_v29 = vpop.eup %1211 }
 0x144   : > { %1223 = vpow2.f32 %v735_v7  ;;  %v788_v49 = vadd.f32 %v2024_v29, %v2022_v57 }
 0x145   : > { %1225 = vpow2.f32 %v761_v56  ;;  %v2028_v52 = vpop.eup %1213  ;;  %v908_v56 = vpack.c.bf16 %v301_v33, %v300_v62  ;;  %v289_v33 = vld [vmem:[%s2260_s3 + $0x58] sm:$0xff] }
 0x146   : > { %v676_v40 = vpop.xlane.xlu0 %675  ;;  %1227 = vpow2.f32 %v763_v0  ;;  %v2034_v38 = vpop.eup %1215  ;;  %789 = vadd.xlane.f32.xlu0 %v788_v49 }
 0x147   : > { %v711_v35 = vsub.f32 %v1783_v11, %v676_v40  ;;  %v712_v21 = vsub.f32 %v1800_v18, %v676_v40  ;;  %v812_v11 = vadd.f32 %v2034_v38, %v2028_v52  ;;  %1116 = vmatprep.subr.bf16.mxu0 %v908_v56  ;;  %1177 = vmatprep.subr.bf16.mxu1 %v908_v56  ;;  %v306_v56 = vld [vmem:[%s2260_s3 + $0xe0] sm:$0xff] }
 0x148   : > { %v655_v61 = vpop.xlane.xlu1 %654  ;;  %v2038_v18 = vpop.eup %1217 }
 0x149   : > { %v697_v51 = vsub.f32 %v1813_v17, %v655_v61  ;;  %v698_v26 = vsub.f32 %v2342_v8, %v655_v61  ;;  %v765_v58 = vmul.f32 1.442695, %v711_v35  ;;  %v767_v36 = vmul.f32 1.442695, %v712_v21  ;;  %v2040_v17 = vpop.eup %1219 }
 0x14a   : > { %v791_v23 = vadd.f32 %v2040_v17, %v2038_v18  ;;  %813 = vadd.xlane.f32.xlu0 %v812_v11 }
 0x14b   : > { %v737_v54 = vmul.f32 1.442695, %v697_v51  ;;  %v739_v28 = vmul.f32 1.442695, %v698_v26  ;;  %1229 = vpow2.f32 %v765_v58 }
 0x14c   : > { %792 = vadd.xlane.f32.xlu1 %v791_v23 }
 0x14d   : > { %1231 = vpow2.f32 %v737_v54  ;;  %v2048_v31 = vpop.eup %1221 }
 0x14e   : > { %v658_v9 = vpop.xlane.xlu0 %657  ;;  %1233 = vpow2.f32 %v739_v28 }
 0x14f   : > { %v699_v39 = vsub.f32 %v1867_v22, %v658_v9  ;;  %v700_v27 = vsub.f32 %v1871_v53, %v658_v9  ;;  %1235 = vpow2.f32 %v767_v36  ;;  %v2050_v22 = vpop.eup %1223 }
 0x150   : > { %v2053_v5 = vpop.eup %1225  ;;  %v794_v42 = vadd.f32 %v2050_v22, %v2048_v31 }
 0x151   : > { %v679_v44 = vpop.xlane.xlu1 %678  ;;  %v741_v4 = vmul.f32 1.442695, %v699_v39  ;;  %v743_v10 = vmul.f32 1.442695, %v700_v27  ;;  %v2064_v63 = vpop.eup %1227  ;;  %v287_v27 = vld [vmem:[%s2260_s3 + $0x48] sm:$0xff] }
 0x152   : > { %v713_v50 = vsub.f32 %v1882_v2, %v679_v44  ;;  %v714_v3 = vsub.f32 %v1887_v12, %v679_v44  ;;  %v815_v7 = vadd.f32 %v2064_v63, %v2053_v5  ;;  %795 = vadd.xlane.f32.xlu0 %v794_v42 }
 0x153   : > { %v682_v19 = vpop.xlane.xlu0 %681  ;;  %1237 = vpow2.f32 %v741_v4 }
 0x154   : > { %v769_v53 = vmul.f32 1.442695, %v713_v50  ;;  %v771_v48 = vmul.f32 1.442695, %v714_v3  ;;  %v715_v14 = vsub.f32 %v1899_v20, %v682_v19  ;;  %1239 = vpow2.f32 %v743_v10  ;;  %816 = vadd.xlane.f32.xlu1 %v815_v7 }
 0x155   : > { %v661_v2 = vpop.xlane.xlu1 %660  ;;  %v716_v12 = vsub.f32 %v1904_v13, %v682_v19  ;;  %v284_v13 = vld [vmem:[%s2260_s3 + $0x30] sm:$0xff]  ;;  %v2077_v24 = vpop.eup %1229 }
 0x156   : > { %1241 = vpow2.f32 %v769_v53  ;;  %v701_v20 = vsub.f32 %v1913_v60, %v661_v2  ;;  %v702_v15 = vsub.f32 %v1917_v37, %v661_v2  ;;  %v773_v59 = vmul.f32 1.442695, %v715_v14  ;;  %v305_v14 = vld [vmem:[%s2260_s3 + $0xd8] sm:$0xff]  ;;  %v288_v2 = vld [vmem:[%s2260_s3 + $0x50] sm:$0xff] }
 0x157   : > { %1243 = vpow2.f32 %v771_v48  ;;  %v775_v34 = vmul.f32 1.442695, %v716_v12  ;;  %v664_v55 = vpop.xlane.xlu0 %663  ;;  %v900_v35 = vpack.c.bf16 %v285_v32, %v284_v13  ;;  %v2080_v21 = vpop.eup %1231  ;;  %v304_v48 = vld [vmem:[%s2260_s3 + $0xd0] sm:$0xff] }
 0x158   : > { %v745_v60 = vmul.f32 1.442695, %v701_v20  ;;  %v747_v0 = vmul.f32 1.442695, %v702_v15  ;;  %1245 = vpow2.f32 %v773_v59  ;;  %v703_v37 = vsub.f32 %v1928_v1, %v664_v55  ;;  %v2084_v49 = vpop.eup %1233 }
 0x159   : > { %1247 = vpow2.f32 %v775_v34  ;;  %v685_v40 = vpop.xlane.xlu1 %684  ;;  %v704_v61 = vsub.f32 %v1932_v25, %v664_v55  ;;  %1117 = vmatpush3.bf16.msra.mxu0 %v900_v35  ;;  %1185 = vmatpush3.bf16.msra.mxu1 %v900_v35  ;;  %v2086_v25 = vpop.eup %1235  ;;  %v797_v9 = vadd.f32 %v2084_v49, %v2080_v21  ;;  %v910_v62 = vpack.c.bf16 %v305_v14, %v304_v48  ;;  %v291_v35 = vld [vmem:[%s2260_s3 + $0x68] sm:$0xff] }
 0x15a   : > { %1249 = vpow2.f32 %v745_v60  ;;  %v717_v51 = vsub.f32 %v1936_v6, %v685_v40  ;;  %v718_v8 = vsub.f32 %v1945_v43, %v685_v40  ;;  %v749_v26 = vmul.f32 1.442695, %v703_v37  ;;  %v302_v6 = vld [vmem:[%s2260_s3 + $0xc0] sm:$0xff]  ;;  %v303_v43 = vld [vmem:[%s2260_s3 + $0xc8] sm:$0xff] }
 0x15b   : > { %1251 = vpow2.f32 %v747_v0  ;;  %v751_v1 = vmul.f32 1.442695, %v704_v61  ;;  %v688_v58 = vpop.xlane.xlu0 %687  ;;  %v818_v39 = vadd.f32 %v2086_v25, %v2077_v24  ;;  %v909_v50 = vpack.c.bf16 %v303_v43, %v302_v6  ;;  %798 = vadd.xlane.f32.xlu1 %v797_v9  ;;  %v307_v60 = vld [vmem:[%s2260_s3 + $0xe8] sm:$0xff]  ;;  %v290_v0 = vld [vmem:[%s2260_s3 + $0x60] sm:$0xff]  ;;  %v292_v43 = vld [vmem:[%s2260_s3 + $0x70] sm:$0xff] }
 0x15c   : > { %v777_v54 = vmul.f32 1.442695, %v717_v51  ;;  %v779_v28 = vmul.f32 1.442695, %v718_v8  ;;  %1253 = vpow2.f32 %v749_v26  ;;  %v719_v36 = vsub.f32 %v1954_v30, %v688_v58  ;;  %v286_v30 = vld [vmem:[%s2260_s3 + $0x40] sm:$0xff] }
 0x15d   : > { %1255 = vpow2.f32 %v751_v1  ;;  %v720_v11 = vsub.f32 %v1956_v45, %v688_v58  ;;  %v2106_v44 = vpop.eup %1237  ;;  %v901_v45 = vpack.c.bf16 %v287_v27, %v286_v30  ;;  %819 = vadd.xlane.f32.xlu0 %v818_v39  ;;  %1118 = vmatprep.subr.bf16.mxu0 %v909_v50  ;;  %v902_v15 = vpack.c.bf16 %v289_v33, %v288_v2 }
 0x15e   : > { %1257 = vpow2.f32 %v777_v54  ;;  %v781_v23 = vmul.f32 1.442695, %v719_v36  ;;  %v2108_v3 = vpop.eup %1239  ;;  %1178 = vmatprep.subr.bf16.mxu1 %v909_v50  ;;  %v911_v61 = vpack.c.bf16 %v307_v60, %v306_v56  ;;  %v903_v8 = vpack.c.bf16 %v291_v35, %v290_v0  ;;  %v309_v36 = vld [vmem:[%s2260_s3 + $0xf8] sm:$0xff] }
 0x15f   : > { %1259 = vpow2.f32 %v779_v28  ;;  %v783_v4 = vmul.f32 1.442695, %v720_v11  ;;  %v800_v19 = vadd.f32 %v2108_v3, %v2106_v44  ;;  %1119 = vmatpush3.bf16.msra.mxu0 %v901_v45  ;;  %1186 = vmatpush3.bf16.msra.mxu1 %v901_v45  ;;  %v308_v28 = vld [vmem:[%s2260_s3 + $0xf0] sm:$0xff]  ;;  %v293_v11 = vld [vmem:[%s2260_s3 + $0x78] sm:$0xff] }
 0x160   : > { %v2110_v10 = vpop.eup %1241  ;;  %1261 = vpow2.f32 %v781_v23  ;;  %1120 = vmatprep.subr.bf16.mxu0 %v910_v62  ;;  %1179 = vmatprep.subr.bf16.mxu1 %v910_v62  ;;  %v912_v6 = vpack.c.bf16 %v309_v36, %v308_v28  ;;  %v904_v9 = vpack.c.bf16 %v293_v11, %v292_v43 }
 0x161   : > { %v2114_v53 = vpop.eup %1243  ;;  %1263 = vpow2.f32 %v783_v4  ;;  %801 = vadd.xlane.f32.xlu0 %v800_v19 }
 0x162   : > { %v2125_v12 = vpop.eup %1245  ;;  %v821_v42 = vadd.f32 %v2114_v53, %v2110_v10 }
 0x163   : > { %v2132_v20 = vpop.eup %1247  ;;  %1121 = vmatpush3.bf16.msra.mxu0 %v902_v15  ;;  %1187 = vmatpush3.bf16.msra.mxu1 %v902_v15 }
 0x164   : > { %v2134_v59 = vpop.eup %1249  ;;  %822 = vadd.xlane.f32.xlu1 %v821_v42  ;;  %v824_v13 = vadd.f32 %v2132_v20, %v2125_v12  ;;  %1122 = vmatprep.subr.bf16.mxu0 %v911_v61 }
 0x165   : > { %v2138_v32 = vpop.eup %1251  ;;  %1180 = vmatprep.subr.bf16.mxu1 %v911_v61 }
 0x166   : > { %v2140_v34 = vpop.eup %1253  ;;  %v803_v55 = vadd.f32 %v2138_v32, %v2134_v59  ;;  %825 = vadd.xlane.f32.xlu0 %v824_v13 }
 0x167   : > { %v2144_v7 = vpop.eup %1255  ;;  %1123 = vmatpush3.bf16.msra.mxu0 %v903_v8  ;;  %1188 = vmatpush3.bf16.msra.mxu1 %v903_v8 }
 0x168   : > { %v2155_v37 = vpop.eup %1257  ;;  %804 = vadd.xlane.f32.xlu1 %v803_v55  ;;  %v806_v40 = vadd.f32 %v2144_v7, %v2140_v34  ;;  %1124 = vmatprep.subr.bf16.mxu0 %v912_v6 }
 0x169   : > { %v2162_v51 = vpop.eup %1259  ;;  %1181 = vmatprep.subr.bf16.mxu1 %v912_v6 }
 0x16a   : > { %v2164_v26 = vpop.eup %1261  ;;  %v827_v1 = vadd.f32 %v2162_v51, %v2155_v37  ;;  %807 = vadd.xlane.f32.xlu0 %v806_v40 }
 0x16b   : > { %v2168_v58 = vpop.eup %1263  ;;  %1125 = vmatpush3.bf16.msra.mxu0 %v904_v9  ;;  %1189 = vmatpush3.bf16.msra.mxu1 %v904_v9 }
 0x16c   : > { %828 = vadd.xlane.f32.xlu1 %v827_v1  ;;  %v830_v54 = vadd.f32 %v2168_v58, %v2164_v26 }
 0x16e   : > { %831 = vadd.xlane.f32.xlu0 %v830_v54 }
 0x1cb   : > { %v787_v39 = vpop.xlane.xlu1 %786 }
 0x1cc   : > { %1265 = vrcp.f32 %v787_v39 }
 0x1cf   : > { %v811_v30 = vpop.xlane.xlu1 %810 }
 0x1d3   : > { %v790_v27 = vpop.xlane.xlu0 %789 }
 0x1d4   : > { %1267 = vrcp.f32 %v790_v27 }
 0x1d5   : > { %1269 = vrcp.f32 %v811_v30 }
 0x1d6   : > { %v1266_v45 = vpop.eup %1265 }
 0x1d7   : > { %v814_v23 = vpop.xlane.xlu0 %813  ;;  %v850_v2 = vmul.f32 %v1266_v45, %v2008_v41  ;;  %v849_v62 = vmul.f32 %v1266_v45, %v2006_v47 }
 0x1d8   : > { %1271 = vrcp.f32 %v814_v23 }
 0x1d9   : > { %v793_v50 = vpop.xlane.xlu1 %792 }
 0x1da   : > { %1273 = vrcp.f32 %v793_v50 }
 0x1de   : > { %v1268_v19 = vpop.eup %1267 }
 0x1df   : > { %v796_v4 = vpop.xlane.xlu0 %795  ;;  %v1270_v14 = vpop.eup %1269  ;;  %v852_v42 = vmul.f32 %v1268_v19, %v2024_v29  ;;  %v851_v33 = vmul.f32 %v1268_v19, %v2022_v57 }
 0x1e0   : > { %1275 = vrcp.f32 %v796_v4  ;;  %v866_v56 = vmul.f32 %v1270_v14, %v2018_v46  ;;  %v865_v0 = vmul.f32 %v1270_v14, %v2014_v16 }
 0x1e1   : > { %v817_v48 = vpop.xlane.xlu1 %816  ;;  %v882_v15 = vpack.c.bf16 %v852_v42, %v850_v2  ;;  %v881_v13 = vpack.c.bf16 %v851_v33, %v849_v62 }
 0x1e2   : > { %v1272_v55 = vpop.eup %1271  ;;  %1277 = vrcp.f32 %v817_v48 }
 0x1e3   : > { %945 = vmatprep.mubr.bf16.mxu0 %v882_v15  ;;  %v868_v60 = vmul.f32 %v1272_v55, %v2034_v38  ;;  %v867_v40 = vmul.f32 %v1272_v55, %v2028_v52 }
 0x1e4   : > { %946 = vmatmul.mubr.bf16.vlgmr.msra.gmra.mrb[0].mxu0 %v881_v13  ;;  %v1274_v29 = vpop.eup %1273 }
 0x1e5   : > { %v890_v47 = vpack.c.bf16 %v868_v60, %v866_v56  ;;  %v889_v35 = vpack.c.bf16 %v867_v40, %v865_v0  ;;  %v854_v46 = vmul.f32 %v1274_v29, %v2040_v17  ;;  %v853_v16 = vmul.f32 %v1274_v29, %v2038_v18 }
 0x1e7   : > { %977 = vmatprep.mubr.bf16.mxu1 %v890_v47 }
 0x1e8   : > { %v799_v41 = vpop.xlane.xlu1 %798  ;;  %978 = vmatmul.mubr.bf16.vlgmr.msra.gmra.mrb[0].mxu1 %v889_v35 }
 0x1ea   : > { %v820_v61 = vpop.xlane.xlu0 %819  ;;  %v1276_v57 = vpop.eup %1275 }
 0x1eb   : > { %1279 = vrcp.f32 %v820_v61  ;;  %v856_v38 = vmul.f32 %v1276_v57, %v2050_v22  ;;  %v855_v52 = vmul.f32 %v1276_v57, %v2048_v31 }
 0x1ec   : > { %1281 = vrcp.f32 %v799_v41  ;;  %v1278_v6 = vpop.eup %1277 }
 0x1ed   : > { %v884_v54 = vpack.c.bf16 %v856_v38, %v854_v46  ;;  %v883_v28 = vpack.c.bf16 %v855_v52, %v853_v16  ;;  %v870_v22 = vmul.f32 %v1278_v6, %v2064_v63  ;;  %v869_v39 = vmul.f32 %v1278_v6, %v2053_v5 }
 0x1ee   : > { %v802_v8 = vpop.xlane.xlu0 %801 }
 0x1ef   : > { %1283 = vrcp.f32 %v802_v8  ;;  %953 = vmatprep.mubr.bf16.mxu0 %v884_v54 }
 0x1f0   : > { %954 = vmatmul.mubr.bf16.gmra.mrb[4].mxu0 %v883_v28 }
 0x1f1   : > { %v823_v1 = vpop.xlane.xlu1 %822 }
 0x1f2   : > { %1285 = vrcp.f32 %v823_v1 }
 0x1f3   : > { %v826_v36 = vpop.xlane.xlu0 %825 }
 0x1f4   : > { %1287 = vrcp.f32 %v826_v36 }
 0x1f5   : > { %v805_v43 = vpop.xlane.xlu1 %804  ;;  %v1280_v11 = vpop.eup %1279 }
 0x1f6   : > { %1289 = vrcp.f32 %v805_v43  ;;  %v1282_v9 = vpop.eup %1281  ;;  %v872_v31 = vmul.f32 %v1280_v11, %v2086_v25  ;;  %v871_v30 = vmul.f32 %v1280_v11, %v2077_v24 }
 0x1f7   : > { %v808_v17 = vpop.xlane.xlu0 %807  ;;  %v858_v4 = vmul.f32 %v1282_v9, %v2084_v49  ;;  %v857_v63 = vmul.f32 %v1282_v9, %v2080_v21 }
 0x1f8   : > { %1291 = vrcp.f32 %v808_v17  ;;  %v892_v23 = vpack.c.bf16 %v872_v31, %v870_v22  ;;  %v891_v50 = vpack.c.bf16 %v871_v30, %v869_v39 }
 0x1f9   : > { %v829_v18 = vpop.xlane.xlu1 %828  ;;  %v1284_v27 = vpop.eup %1283 }
 0x1fa   : > { %1293 = vrcp.f32 %v829_v18  ;;  %v860_v19 = vmul.f32 %v1284_v27, %v2108_v3  ;;  %v859_v48 = vmul.f32 %v1284_v27, %v2106_v44  ;;  %985 = vmatprep.mubr.bf16.mxu1 %v892_v23 }
 0x1fb   : > { %v832_v45 = vpop.xlane.xlu0 %831  ;;  %986 = vmatmul.mubr.bf16.gmra.mrb[4].mxu1 %v891_v50 }
 0x1fc   : > { %v1286_v14 = vpop.eup %1285  ;;  %1295 = vrcp.f32 %v832_v45  ;;  %v886_v5 = vpack.c.bf16 %v860_v19, %v858_v4  ;;  %v885_v25 = vpack.c.bf16 %v859_v48, %v857_v63 }
 0x1fd   : > { %v874_v2 = vmul.f32 %v1286_v14, %v2114_v53  ;;  %v873_v49 = vmul.f32 %v1286_v14, %v2110_v10 }
 0x1fe   : > { %v1288_v24 = vpop.eup %1287  ;;  %961 = vmatprep.mubr.bf16.mxu0 %v886_v5 }
 0x1ff   : > { %v876_v42 = vmul.f32 %v1288_v24, %v2132_v20  ;;  %v875_v3 = vmul.f32 %v1288_v24, %v2125_v12  ;;  %962 = vmatmul.mubr.bf16.gmra.mrb[8].mxu0 %v885_v25 }
 0x200   : > { %v1290_v62 = vpop.eup %1289 }
 0x201   : > { %v894_v21 = vpack.c.bf16 %v876_v42, %v874_v2  ;;  %v893_v44 = vpack.c.bf16 %v875_v3, %v873_v49  ;;  %v862_v15 = vmul.f32 %v1290_v62, %v2138_v32  ;;  %v861_v55 = vmul.f32 %v1290_v62, %v2134_v59 }
 0x202   : > { %v1292_v33 = vpop.eup %1291 }
 0x203   : > { %993 = vmatprep.mubr.bf16.mxu1 %v894_v21  ;;  %v864_v13 = vmul.f32 %v1292_v33, %v2144_v7  ;;  %v863_v53 = vmul.f32 %v1292_v33, %v2140_v34 }
 0x204   : > { %v1294_v56 = vpop.eup %1293  ;;  %994 = vmatmul.mubr.bf16.gmra.mrb[8].mxu1 %v893_v44 }
 0x205   : > { %v888_v10 = vpack.c.bf16 %v864_v13, %v862_v15  ;;  %v887_v20 = vpack.c.bf16 %v863_v53, %v861_v55  ;;  %v878_v60 = vmul.f32 %v1294_v56, %v2162_v51  ;;  %v877_v40 = vmul.f32 %v1294_v56, %v2155_v37 }
 0x206   : > { %v1296_v12 = vpop.eup %1295 }
 0x207   : > { %969 = vmatprep.mubr.bf16.mxu0 %v888_v10  ;;  %v880_v0 = vmul.f32 %v1296_v12, %v2168_v58  ;;  %v879_v32 = vmul.f32 %v1296_v12, %v2164_v26 }
 0x208   : > { %970 = vmatmul.mubr.bf16.gmra.mrb[12].mxu0 %v887_v20 }
 0x209   : > { %v896_v7 = vpack.c.bf16 %v880_v0, %v878_v60  ;;  %v895_v59 = vpack.c.bf16 %v879_v32, %v877_v40 }
 0x20b   : > { %1001 = vmatprep.mubr.bf16.mxu1 %v896_v7 }
 0x20c   : > { %1002 = vmatmul.mubr.bf16.gmra.mrb[12].mxu1 %v895_v59 }
 0x2b7   : > { %v1126_v34 = vpop.f32.mrb[0].mxu0 }
 0x2b8   : > { %v1127_v51 = vpop.f32.mrb[1].mxu0 }
 0x2b9   : > { %v1128_v37 = vadd.f32 %v1127_v51, %v1126_v34  ;;  %v1129_v58 = vpop.f32.mrb[2].mxu0 }
 0x2ba   : > { %v1130_v26 = vpop.f32.mrb[3].mxu0 }
 0x2bb   : > { %1011 = vst.msk [vmem:[%s2220_s21] sm:$0xff] %vm1010_vm11, %v1128_v37  ;;  %v1131_v41 = vadd.f32 %v1130_v26, %v1129_v58  ;;  %v1150_v61 = vpop.f32.mrb[0].mxu1 }
 0x2bc   : > { %v1151_v29 = vpop.f32.mrb[1].mxu1 }
 0x2bd   : > { %1012 = vst.msk [vmem:[%s2220_s21 + $0x8] sm:$0xff] %vm1010_vm11, %v1131_v41  ;;  %v1152_v47 = vadd.f32 %v1151_v29, %v1150_v61  ;;  %v1153_v35 = vpop.f32.mrb[2].mxu1 }
 0x2be   : > { %v1154_v57 = vpop.f32.mrb[3].mxu1 }
 0x2bf   : > { %1019 = vst.msk [vmem:[%s2220_s21 + $0x40] sm:$0xff] %vm1010_vm11, %v1152_v47  ;;  %v1155_v8 = vadd.f32 %v1154_v57, %v1153_v35 }
 0x2c1   : > { %1020 = vst.msk [vmem:[%s2220_s21 + $0x48] sm:$0xff] %vm1010_vm11, %v1155_v8 }
 0x2c3   : > { %v1132_v46 = vpop.f32.mrb[4].mxu0 }
 0x2c4   : > { %v1133_v38 = vpop.f32.mrb[5].mxu0 }
 0x2c5   : > { %v1134_v16 = vadd.f32 %v1133_v38, %v1132_v46  ;;  %v1135_v52 = vpop.f32.mrb[6].mxu0 }
 0x2c6   : > { %v1136_v1 = vpop.f32.mrb[7].mxu0 }
 0x2c7   : > { %1013 = vst.msk [vmem:[%s2220_s21 + $0x10] sm:$0xff] %vm1010_vm11, %v1134_v16  ;;  %v1137_v54 = vadd.f32 %v1136_v1, %v1135_v52 }
 0x2c9   : > { %1014 = vst.msk [vmem:[%s2220_s21 + $0x18] sm:$0xff] %vm1010_vm11, %v1137_v54 }
 0x2ce   : > { %v1156_v28 = vpop.f32.mrb[4].mxu1 }
 0x2cf   : > { %v1157_v36 = vpop.f32.mrb[5].mxu1 }
 0x2d0   : > { %v1158_v6 = vadd.f32 %v1157_v36, %v1156_v28  ;;  %v1159_v43 = vpop.f32.mrb[6].mxu1 }
 0x2d1   : > { %v1160_v11 = vpop.f32.mrb[7].mxu1 }
 0x2d2   : > { %v1138_v17 = vpop.f32.mrb[8].mxu0  ;;  %1021 = vst.msk [vmem:[%s2220_s21 + $0x50] sm:$0xff] %vm1010_vm11, %v1158_v6  ;;  %v1161_v22 = vadd.f32 %v1160_v11, %v1159_v43 }
 0x2d3   : > { %v1139_v9 = vpop.f32.mrb[9].mxu0 }
 0x2d4   : > { %v1140_v18 = vadd.f32 %v1139_v9, %v1138_v17  ;;  %v1141_v31 = vpop.f32.mrb[10].mxu0  ;;  %1022 = vst.msk [vmem:[%s2220_s21 + $0x58] sm:$0xff] %vm1010_vm11, %v1161_v22 }
 0x2d5   : > { %v1142_v39 = vpop.f32.mrb[11].mxu0 }
 0x2d6   : > { %1015 = vst.msk [vmem:[%s2220_s21 + $0x20] sm:$0xff] %vm1010_vm11, %v1140_v18  ;;  %v1143_v30 = vadd.f32 %v1142_v39, %v1141_v31 }
 0x2d7   : > { %v1162_v27 = vpop.f32.mrb[8].mxu1 }
 0x2d8   : > { %1016 = vst.msk [vmem:[%s2220_s21 + $0x28] sm:$0xff] %vm1010_vm11, %v1143_v30  ;;  %v1163_v23 = vpop.f32.mrb[9].mxu1 }
 0x2d9   : > { %v1164_v50 = vadd.f32 %v1163_v23, %v1162_v27  ;;  %v1165_v45 = vpop.f32.mrb[10].mxu1 }
 0x2da   : > { %v1166_v4 = vpop.f32.mrb[11].mxu1 }
 0x2db   : > { %v1144_v19 = vpop.f32.mrb[12].mxu0  ;;  %1023 = vst.msk [vmem:[%s2220_s21 + $0x60] sm:$0xff] %vm1010_vm11, %v1164_v50  ;;  %v1167_v63 = vadd.f32 %v1166_v4, %v1165_v45 }
 0x2dc   : > { %v1145_v48 = vpop.f32.mrb[13].mxu0 }
 0x2dd   : > { %v1146_v14 = vadd.f32 %v1145_v48, %v1144_v19  ;;  %v1147_v5 = vpop.f32.mrb[14].mxu0  ;;  %1024 = vst.msk [vmem:[%s2220_s21 + $0x68] sm:$0xff] %vm1010_vm11, %v1167_v63 }
 0x2de   : > { %v1148_v25 = vpop.f32.mrb[15].mxu0 }
 0x2df   : > { %1017 = vst.msk [vmem:[%s2220_s21 + $0x30] sm:$0xff] %vm1010_vm11, %v1146_v14  ;;  %v1149_v24 = vadd.f32 %v1148_v25, %v1147_v5  ;;  %v1168_v2 = vpop.f32.mrb[12].mxu1 }
 0x2e0   : > { %v1169_v42 = vpop.f32.mrb[13].mxu1 }
 0x2e1   : > { %1018 = vst.msk [vmem:[%s2220_s21 + $0x38] sm:$0xff] %vm1010_vm11, %v1149_v24  ;;  %v1170_v49 = vadd.f32 %v1169_v42, %v1168_v2  ;;  %v1171_v3 = vpop.f32.mrb[14].mxu1 }
 0x2e2   : > { %v1172_v62 = vpop.f32.mrb[15].mxu1 }
 0x2e3   : > { %1025 = vst.msk [vmem:[%s2220_s21 + $0x70] sm:$0xff] %vm1010_vm11, %v1170_v49  ;;  %v1173_v21 = vadd.f32 %v1172_v62, %v1171_v3 }
 0x2e5   : > { %1026 = vst.msk [vmem:[%s2220_s21 + $0x78] sm:$0xff] %vm1010_vm11, %v1173_v21 }
 0x2e6 PF: > { %s14_s15 = sadd.s32 1, %s1303_s15  }
 0x2e7   : > { %p11_p4 = scmp.ge.s32.totalorder %s14_s15, 4  }
 0x2e9   :  { %13 = sbr.rel (!%p11_p4) target bundleno = 1 (0x1), region = 69 }

</bundles_post_ra>
